<compile_context>
chip_gen: v5e
topology: v5e:2x2
jax: 0.10.0
libtpu: 0.0.40
codegen_flags: <defaults>
</compile_context>

<pallas_src>
import functools

import jax
import jax.numpy as jnp
from jax.experimental import pallas as pl
from jax.experimental.pallas import tpu as pltpu


def _conv_tile(xa_ref, xb_ref, w_ref, th, wout):
    """3x3 conv of one row-tile as 9 accumulating matmuls.

    xa_ref: (1, TH, Wp, Cin) bf16   -- padded rows [t*TH, t*TH+TH)
    xb_ref: (1, 2,  Wp, Cin) bf16   -- padded rows [t*TH+TH, t*TH+TH+2)  (halo)
    w_ref : (9, Cin, CP)     bf16   -- tap weights, Cout zero-padded to CP (>=128)
    returns acc: (TH*Wout, CP) f32
    """
    band = jnp.concatenate([xa_ref[0], xb_ref[0]], axis=0)      # (TH+2, Wp, Cin)
    cin = band.shape[-1]
    cp = w_ref.shape[-1]
    acc = jnp.zeros((th * wout, cp), jnp.float32)
    for k in range(9):
        kh, kw = divmod(k, 3)
        xs = band[kh:kh + th, kw:kw + wout, :].reshape(th * wout, cin)
        acc = acc + jnp.dot(xs, w_ref[k], preferred_element_type=jnp.float32)
    return acc


def _conv_stats_kernel(xa_ref, xb_ref, w_ref, stats_ref, *, th, wout):
    """Per-tile channel sum / sum-of-squares of the (pre-bias) conv output."""
    acc = _conv_tile(xa_ref, xb_ref, w_ref, th, wout)           # (TH*Wout, CP) f32
    # rows 0/1 of the (8, CP) block hold the partials; rows 2..7 are layout padding.
    stats_ref[0, 0, 0:1, :] = jnp.sum(acc, axis=0, keepdims=True)
    stats_ref[0, 0, 1:2, :] = jnp.sum(acc * acc, axis=0, keepdims=True)


def _conv_bn_relu_kernel(xa_ref, xb_ref, w_ref, scale_ref, shift_ref, o_ref,
                         *, th, wout, cout):
    """Recompute the conv tile, fold BN scale/shift + ReLU, store channels-first."""
    acc = _conv_tile(xa_ref, xb_ref, w_ref, th, wout)           # (TH*Wout, CP) f32
    acc_t = jnp.transpose(acc, (1, 0))                          # (CP, TH*Wout)
    y = acc_t[:cout, :]                                         # (Cout, TH*Wout)
    o_ref[0] = jnp.maximum(y * scale_ref[...] + shift_ref[...], 0.0)


def up_forward(x, indices, weight, bias, gamma, beta, eps=1e-5):
    """Forward of UP: MaxUnpool2d(2,2) -> Conv2d(3x3,pad=1) -> BatchNorm2d -> ReLU.

    x, indices: (N, Cin, H, W); weight: (Cout, Cin, 3, 3); bias/gamma/beta: (Cout,)
    Returns (N, Cout, 2H, 2W) float32.
    """
    N, Cin, H, W = x.shape
    Cout, Cin_w, K, K2 = weight.shape
    assert Cin_w == Cin and K == 3 and K2 == 3
    Hout, Wout = 2 * H, 2 * W
    HW = Hout * Wout
    Hp, Wp = Hout + 2, Wout + 2
    CP = ((Cout + 127) // 128) * 128                            # lane-padded channels

    # ---- glue: MaxUnpool2d(2, stride=2) as a vectorized masked interleave -------
    # Valid for indices produced by a matching MaxPool2d(2, stride=2) (the module's
    # intended use: each value lands inside its own 2x2 window).
    # TODO(synk): fully general out-of-window unpool indices would need a scatter.
    x_nhwc = jnp.transpose(x, (0, 2, 3, 1)).astype(jnp.float32)
    idx = jnp.transpose(indices, (0, 2, 3, 1)).astype(jnp.int32)
    hh = jnp.arange(H, dtype=jnp.int32).reshape(1, H, 1, 1)
    ww = jnp.arange(W, dtype=jnp.int32).reshape(1, 1, W, 1)
    r, c = idx // Wout, idx % Wout
    parts = []
    for dr in (0, 1):
        row = []
        for dc in (0, 1):
            sel = (r == 2 * hh + dr) & (c == 2 * ww + dc)
            row.append(jnp.where(sel, x_nhwc, 0.0))
        parts.append(jnp.stack(row, axis=3).reshape(N, H, Wout, Cin))
    up = jnp.stack(parts, axis=2).reshape(N, Hout, Wout, Cin)
    # conv padding (1,1) folded into the same pad; bf16 operands halve input DMA.
    x_pad = jnp.pad(up, ((0, 0), (1, 1), (1, 1), (0, 0))).astype(jnp.bfloat16)

    # tap weights (kh,kw) -> (Cin, Cout), zero-padded on the lane axis to CP.
    w_taps = jnp.transpose(weight.astype(jnp.float32), (2, 3, 1, 0)).reshape(9, Cin, Cout)
    w_pad = jnp.zeros((9, Cin, CP), jnp.float32).at[:, :, :Cout].set(w_taps)
    w_pad = w_pad.astype(jnp.bfloat16)

    # ---- row-tile size: even, divides Hout, TH*Wout a multiple of 128 -----------
    valid = [t for t in range(2, Hout + 1, 2)
             if Hout % t == 0 and (t * Wout) % 128 == 0]
    if not valid:
        valid = [Hout]                       # whole-sample fallback (block == full)
    TH = min((t for t in valid if t * Wout >= 512), default=valid[-1])
    nT = Hout // TH
    CHUNK = TH * Wout

    grid = (N, nT)
    xa_spec = pl.BlockSpec((1, TH, Wp, Cin), lambda n, t: (n, t, 0, 0))
    xb_spec = pl.BlockSpec((1, 2, Wp, Cin),
                           lambda n, t: (n, (t + 1) * (TH // 2), 0, 0))
    w_spec = pl.BlockSpec((9, Cin, CP), lambda n, t: (0, 0, 0))
    par2 = pltpu.CompilerParams(dimension_semantics=("parallel", "parallel"))

    # ---- pass 1: conv (pre-bias) + per-tile channel partial statistics ----------
    stats = pl.pallas_call(
        functools.partial(_conv_stats_kernel, th=TH, wout=Wout),
        out_shape=jax.ShapeDtypeStruct((N, nT, 8, CP), jnp.float32),
        grid=grid,
        in_specs=[xa_spec, xb_spec, w_spec],
        out_specs=pl.BlockSpec((1, 1, 8, CP), lambda n, t: (n, t, 0, 0)),
        compiler_params=par2,
    )(x_pad, x_pad, w_pad)

    # ---- tiny glue: fold batch stats (+ BatchNorm affine) into scale/shift ------
    count = float(N * HW)
    s = jnp.sum(stats[:, :, 0, :Cout], axis=(0, 1))
    sq = jnp.sum(stats[:, :, 1, :Cout], axis=(0, 1))
    mean = s / count
    var = jnp.maximum(sq / count - mean * mean, 0.0)            # biased variance
    scale = (gamma.astype(jnp.float32) / jnp.sqrt(var + eps)).reshape(Cout, 1)
    # Conv bias cancels exactly under training-mode BatchNorm, so it never enters
    # the kernels (shift is built from the pre-bias mean).
    shift = (beta.astype(jnp.float32) - mean * scale[:, 0]).reshape(Cout, 1)
    del bias  # unused in the forward math (see note above)
    # TODO(synk): BatchNorm running_mean/running_var buffer updates are a stateful
    # training side effect and do not affect the returned tensor.

    # ---- pass 2: conv recompute + BN + ReLU, written channels-first (NCHW) ------
    out_flat = pl.pallas_call(
        functools.partial(_conv_bn_relu_kernel, th=TH, wout=Wout, cout=Cout),
        out_shape=jax.ShapeDtypeStruct((N, Cout, HW), jnp.float32),
        grid=grid,
        in_specs=[xa_spec, xb_spec, w_spec,
                  pl.BlockSpec((Cout, 1), lambda n, t: (0, 0)),
                  pl.BlockSpec((Cout, 1), lambda n, t: (0, 0))],
        out_specs=pl.BlockSpec((1, Cout, CHUNK), lambda n, t: (n, 0, t)),
        compiler_params=par2,
    )(x_pad, x_pad, w_pad, scale, shift)

    return out_flat.reshape(N, Cout, Hout, Wout)


if __name__ == "__main__":
    key = jax.random.PRNGKey(0)
    N, Cin, Cout, H, W = 2, 4, 8, 16, 16
    Hout, Wout = 2 * H, 2 * W
    k1, k2, k3, k4, k5 = jax.random.split(key, 5)

    # Build (x, indices) exactly as a preceding MaxPool2d(2, stride=2,
    # return_indices=True) would produce them.
    feat = jax.random.normal(k1, (N, Cin, Hout, Wout), jnp.float32)
    blocks = feat.reshape(N, Cin, H, 2, W, 2).transpose(0, 1, 2, 4, 3, 5)
    blocks = blocks.reshape(N, Cin, H, W, 4)
    x = jnp.max(blocks, axis=-1)
    amax = jnp.argmax(blocks, axis=-1).astype(jnp.int32)        # 0..3 -> (dr, dc)
    hh = jnp.arange(H, dtype=jnp.int32).reshape(1, 1, H, 1)
    ww = jnp.arange(W, dtype=jnp.int32).reshape(1, 1, 1, W)
    indices = (2 * hh + amax // 2) * Wout + (2 * ww + amax % 2)  # flat into Hout*Wout

    weight = jax.random.normal(k2, (Cout, Cin, 3, 3), jnp.float32) * 0.2
    bias = jax.random.normal(k3, (Cout,), jnp.float32) * 0.5
    gamma = 1.0 + 0.1 * jax.random.normal(k4, (Cout,), jnp.float32)
    beta = 0.1 * jax.random.normal(k5, (Cout,), jnp.float32)

    out = jax.jit(up_forward)(x, indices, weight, bias, gamma, beta)
    jax.block_until_ready(out)

    # ---- reference: general-scatter MaxUnpool + Conv2d + BatchNorm + ReLU -------
    nn_idx = jnp.arange(N)[:, None, None]
    cc_idx = jnp.arange(Cin)[None, :, None]
    up_ref = jnp.zeros((N, Cin, Hout * Wout), jnp.float32).at[
        nn_idx, cc_idx, indices.reshape(N, Cin, H * W)
    ].set(x.reshape(N, Cin, H * W)).reshape(N, Cin, Hout, Wout)
    conv_ref = jax.lax.conv_general_dilated(
        up_ref, weight, window_strides=(1, 1), padding=((1, 1), (1, 1)),
        dimension_numbers=("NCHW", "OIHW", "NCHW"),
        precision=jax.lax.Precision.HIGHEST) + bias[None, :, None, None]
    mean = conv_ref.mean(axis=(0, 2, 3), keepdims=True)
    var = conv_ref.var(axis=(0, 2, 3), keepdims=True)
    bn_ref = (conv_ref - mean) / jnp.sqrt(var + 1e-5)
    ref = jnp.maximum(bn_ref * gamma[None, :, None, None]
                      + beta[None, :, None, None], 0.0)

    assert out.shape == (N, Cout, Hout, Wout)
    max_err = float(jnp.max(jnp.abs(out - ref)))
    assert jnp.allclose(out, ref, rtol=5e-2, atol=5e-2), max_err
    print("KERNEL_OK")
</pallas_src>

<mosaic_0001>
module attributes {stable_mosaic.version = 11 : i64} {
  func.func @_conv_stats_kernel(%arg0: i32, %arg1: i32, %arg2: memref<1x16x34x4xbf16, #tpu.memory_space<vmem>>, %arg3: memref<1x2x34x4xbf16, #tpu.memory_space<vmem>>, %arg4: memref<9x4x128xbf16, #tpu.memory_space<vmem>>, %arg5: memref<1x1x8x128xf32, #tpu.memory_space<vmem>>) attributes {dimension_semantics = [#tpu.dimension_semantics<parallel>, #tpu.dimension_semantics<parallel>], iteration_bounds = array<i64: 2, 2>, scalar_prefetch = 0 : i64, scratch_operands = 0 : i64, tpu.core_type = #tpu.core_type<tc>, window_params = [{transform_indices = @transform_0, window_bounds = array<i64: 1, 16, 34, 4>}, {transform_indices = @transform_1, window_bounds = array<i64: 1, 2, 34, 4>}, {pipeline_mode = #tpu.pipeline_mode<synchronous>, transform_indices = @transform_2, window_bounds = array<i64: 9, 4, 128>}, {transform_indices = @transform_3, window_bounds = array<i64: 1, 1, 8, 128>}]} {
    %c0 = arith.constant 0 : index
    %c0_0 = arith.constant 0 : index
    %c0_1 = arith.constant 0 : index
    %c0_2 = arith.constant 0 : index
    %0 = vector.load %arg2[%c0, %c0_0, %c0_1, %c0_2] : memref<1x16x34x4xbf16, #tpu.memory_space<vmem>>, vector<1x16x34x4xbf16>
    %1 = vector.shape_cast %0 : vector<1x16x34x4xbf16> to vector<16x34x4xbf16>
    %c0_3 = arith.constant 0 : index
    %c0_4 = arith.constant 0 : index
    %c0_5 = arith.constant 0 : index
    %c0_6 = arith.constant 0 : index
    %2 = vector.load %arg3[%c0_3, %c0_4, %c0_5, %c0_6] : memref<1x2x34x4xbf16, #tpu.memory_space<vmem>>, vector<1x2x34x4xbf16>
    %3 = vector.shape_cast %2 : vector<1x2x34x4xbf16> to vector<2x34x4xbf16>
    %4 = tpu.concatenate %1, %3 in 0 : vector<16x34x4xbf16>, vector<2x34x4xbf16> -> vector<18x34x4xbf16>
    %cst = arith.constant 0.000000e+00 : f32
    %5 = vector.broadcast %cst : f32 to vector<512x128xf32>
    %6 = vector.extract_strided_slice %4 {offsets = [0, 0, 0], sizes = [16, 32, 4], strides = [1, 1, 1]} : vector<18x34x4xbf16> to vector<16x32x4xbf16>
    %7 = vector.shape_cast %6 : vector<16x32x4xbf16> to vector<512x4xbf16>
    %c0_7 = arith.constant 0 : index
    %c0_8 = arith.constant 0 : index
    %c0_9 = arith.constant 0 : index
    %8 = vector.load %arg4[%c0_7, %c0_8, %c0_9] : memref<9x4x128xbf16, #tpu.memory_space<vmem>>, vector<1x4x128xbf16>
    %9 = vector.shape_cast %8 : vector<1x4x128xbf16> to vector<4x128xbf16>
    %cst_10 = arith.constant dense<0.000000e+00> : vector<512x128xf32>
    %10 = tpu.matmul %7, %9, %cst_10 {dimension_numbers = #tpu.dot_dimension_numbers<[1], [0], [0], [1], [0, 0, 1, 1], [], []>} : vector<512x4xbf16>, vector<4x128xbf16>, vector<512x128xf32> -> vector<512x128xf32>
    %11 = arith.addf %5, %10 : vector<512x128xf32>
    %12 = vector.extract_strided_slice %4 {offsets = [0, 1, 0], sizes = [16, 32, 4], strides = [1, 1, 1]} : vector<18x34x4xbf16> to vector<16x32x4xbf16>
    %13 = vector.shape_cast %12 : vector<16x32x4xbf16> to vector<512x4xbf16>
    %c1 = arith.constant 1 : index
    %c0_11 = arith.constant 0 : index
    %c0_12 = arith.constant 0 : index
    %14 = vector.load %arg4[%c1, %c0_11, %c0_12] : memref<9x4x128xbf16, #tpu.memory_space<vmem>>, vector<1x4x128xbf16>
    %15 = vector.shape_cast %14 : vector<1x4x128xbf16> to vector<4x128xbf16>
    %cst_13 = arith.constant dense<0.000000e+00> : vector<512x128xf32>
    %16 = tpu.matmul %13, %15, %cst_13 {dimension_numbers = #tpu.dot_dimension_numbers<[1], [0], [0], [1], [0, 0, 1, 1], [], []>} : vector<512x4xbf16>, vector<4x128xbf16>, vector<512x128xf32> -> vector<512x128xf32>
    %17 = arith.addf %11, %16 : vector<512x128xf32>
    %18 = vector.extract_strided_slice %4 {offsets = [0, 2, 0], sizes = [16, 32, 4], strides = [1, 1, 1]} : vector<18x34x4xbf16> to vector<16x32x4xbf16>
    %19 = vector.shape_cast %18 : vector<16x32x4xbf16> to vector<512x4xbf16>
    %c2 = arith.constant 2 : index
    %c0_14 = arith.constant 0 : index
    %c0_15 = arith.constant 0 : index
    %20 = vector.load %arg4[%c2, %c0_14, %c0_15] : memref<9x4x128xbf16, #tpu.memory_space<vmem>>, vector<1x4x128xbf16>
    %21 = vector.shape_cast %20 : vector<1x4x128xbf16> to vector<4x128xbf16>
    %cst_16 = arith.constant dense<0.000000e+00> : vector<512x128xf32>
    %22 = tpu.matmul %19, %21, %cst_16 {dimension_numbers = #tpu.dot_dimension_numbers<[1], [0], [0], [1], [0, 0, 1, 1], [], []>} : vector<512x4xbf16>, vector<4x128xbf16>, vector<512x128xf32> -> vector<512x128xf32>
    %23 = arith.addf %17, %22 : vector<512x128xf32>
    %24 = vector.extract_strided_slice %4 {offsets = [1, 0, 0], sizes = [16, 32, 4], strides = [1, 1, 1]} : vector<18x34x4xbf16> to vector<16x32x4xbf16>
    %25 = vector.shape_cast %24 : vector<16x32x4xbf16> to vector<512x4xbf16>
    %c3 = arith.constant 3 : index
    %c0_17 = arith.constant 0 : index
    %c0_18 = arith.constant 0 : index
    %26 = vector.load %arg4[%c3, %c0_17, %c0_18] : memref<9x4x128xbf16, #tpu.memory_space<vmem>>, vector<1x4x128xbf16>
    %27 = vector.shape_cast %26 : vector<1x4x128xbf16> to vector<4x128xbf16>
    %cst_19 = arith.constant dense<0.000000e+00> : vector<512x128xf32>
    %28 = tpu.matmul %25, %27, %cst_19 {dimension_numbers = #tpu.dot_dimension_numbers<[1], [0], [0], [1], [0, 0, 1, 1], [], []>} : vector<512x4xbf16>, vector<4x128xbf16>, vector<512x128xf32> -> vector<512x128xf32>
    %29 = arith.addf %23, %28 : vector<512x128xf32>
    %30 = vector.extract_strided_slice %4 {offsets = [1, 1, 0], sizes = [16, 32, 4], strides = [1, 1, 1]} : vector<18x34x4xbf16> to vector<16x32x4xbf16>
    %31 = vector.shape_cast %30 : vector<16x32x4xbf16> to vector<512x4xbf16>
    %c4 = arith.constant 4 : index
    %c0_20 = arith.constant 0 : index
    %c0_21 = arith.constant 0 : index
    %32 = vector.load %arg4[%c4, %c0_20, %c0_21] : memref<9x4x128xbf16, #tpu.memory_space<vmem>>, vector<1x4x128xbf16>
    %33 = vector.shape_cast %32 : vector<1x4x128xbf16> to vector<4x128xbf16>
    %cst_22 = arith.constant dense<0.000000e+00> : vector<512x128xf32>
    %34 = tpu.matmul %31, %33, %cst_22 {dimension_numbers = #tpu.dot_dimension_numbers<[1], [0], [0], [1], [0, 0, 1, 1], [], []>} : vector<512x4xbf16>, vector<4x128xbf16>, vector<512x128xf32> -> vector<512x128xf32>
    %35 = arith.addf %29, %34 : vector<512x128xf32>
    %36 = vector.extract_strided_slice %4 {offsets = [1, 2, 0], sizes = [16, 32, 4], strides = [1, 1, 1]} : vector<18x34x4xbf16> to vector<16x32x4xbf16>
    %37 = vector.shape_cast %36 : vector<16x32x4xbf16> to vector<512x4xbf16>
    %c5 = arith.constant 5 : index
    %c0_23 = arith.constant 0 : index
    %c0_24 = arith.constant 0 : index
    %38 = vector.load %arg4[%c5, %c0_23, %c0_24] : memref<9x4x128xbf16, #tpu.memory_space<vmem>>, vector<1x4x128xbf16>
    %39 = vector.shape_cast %38 : vector<1x4x128xbf16> to vector<4x128xbf16>
    %cst_25 = arith.constant dense<0.000000e+00> : vector<512x128xf32>
    %40 = tpu.matmul %37, %39, %cst_25 {dimension_numbers = #tpu.dot_dimension_numbers<[1], [0], [0], [1], [0, 0, 1, 1], [], []>} : vector<512x4xbf16>, vector<4x128xbf16>, vector<512x128xf32> -> vector<512x128xf32>
    %41 = arith.addf %35, %40 : vector<512x128xf32>
    %42 = vector.extract_strided_slice %4 {offsets = [2, 0, 0], sizes = [16, 32, 4], strides = [1, 1, 1]} : vector<18x34x4xbf16> to vector<16x32x4xbf16>
    %43 = vector.shape_cast %42 : vector<16x32x4xbf16> to vector<512x4xbf16>
    %c6 = arith.constant 6 : index
    %c0_26 = arith.constant 0 : index
    %c0_27 = arith.constant 0 : index
    %44 = vector.load %arg4[%c6, %c0_26, %c0_27] : memref<9x4x128xbf16, #tpu.memory_space<vmem>>, vector<1x4x128xbf16>
    %45 = vector.shape_cast %44 : vector<1x4x128xbf16> to vector<4x128xbf16>
    %cst_28 = arith.constant dense<0.000000e+00> : vector<512x128xf32>
    %46 = tpu.matmul %43, %45, %cst_28 {dimension_numbers = #tpu.dot_dimension_numbers<[1], [0], [0], [1], [0, 0, 1, 1], [], []>} : vector<512x4xbf16>, vector<4x128xbf16>, vector<512x128xf32> -> vector<512x128xf32>
    %47 = arith.addf %41, %46 : vector<512x128xf32>
    %48 = vector.extract_strided_slice %4 {offsets = [2, 1, 0], sizes = [16, 32, 4], strides = [1, 1, 1]} : vector<18x34x4xbf16> to vector<16x32x4xbf16>
    %49 = vector.shape_cast %48 : vector<16x32x4xbf16> to vector<512x4xbf16>
    %c7 = arith.constant 7 : index
    %c0_29 = arith.constant 0 : index
    %c0_30 = arith.constant 0 : index
    %50 = vector.load %arg4[%c7, %c0_29, %c0_30] : memref<9x4x128xbf16, #tpu.memory_space<vmem>>, vector<1x4x128xbf16>
    %51 = vector.shape_cast %50 : vector<1x4x128xbf16> to vector<4x128xbf16>
    %cst_31 = arith.constant dense<0.000000e+00> : vector<512x128xf32>
    %52 = tpu.matmul %49, %51, %cst_31 {dimension_numbers = #tpu.dot_dimension_numbers<[1], [0], [0], [1], [0, 0, 1, 1], [], []>} : vector<512x4xbf16>, vector<4x128xbf16>, vector<512x128xf32> -> vector<512x128xf32>
    %53 = arith.addf %47, %52 : vector<512x128xf32>
    %54 = vector.extract_strided_slice %4 {offsets = [2, 2, 0], sizes = [16, 32, 4], strides = [1, 1, 1]} : vector<18x34x4xbf16> to vector<16x32x4xbf16>
    %55 = vector.shape_cast %54 : vector<16x32x4xbf16> to vector<512x4xbf16>
    %c8 = arith.constant 8 : index
    %c0_32 = arith.constant 0 : index
    %c0_33 = arith.constant 0 : index
    %56 = vector.load %arg4[%c8, %c0_32, %c0_33] : memref<9x4x128xbf16, #tpu.memory_space<vmem>>, vector<1x4x128xbf16>
    %57 = vector.shape_cast %56 : vector<1x4x128xbf16> to vector<4x128xbf16>
    %cst_34 = arith.constant dense<0.000000e+00> : vector<512x128xf32>
    %58 = tpu.matmul %55, %57, %cst_34 {dimension_numbers = #tpu.dot_dimension_numbers<[1], [0], [0], [1], [0, 0, 1, 1], [], []>} : vector<512x4xbf16>, vector<4x128xbf16>, vector<512x128xf32> -> vector<512x128xf32>
    %59 = arith.addf %53, %58 : vector<512x128xf32>
    %cst_35 = arith.constant dense<0.000000e+00> : vector<128xf32>
    %60 = vector.multi_reduction <add>, %59, %cst_35 [0] : vector<512x128xf32> to vector<128xf32>
    %61 = vector.shape_cast %60 : vector<128xf32> to vector<1x128xf32>
    %c0_36 = arith.constant 0 : index
    %c0_37 = arith.constant 0 : index
    %c0_38 = arith.constant 0 : index
    %c0_39 = arith.constant 0 : index
    %62 = vector.load %arg5[%c0_36, %c0_37, %c0_38, %c0_39] : memref<1x1x8x128xf32, #tpu.memory_space<vmem>>, vector<1x1x1x128xf32>
    %63 = vector.shape_cast %62 : vector<1x1x1x128xf32> to vector<1x128xf32>
    %64 = vector.shape_cast %61 : vector<1x128xf32> to vector<1x1x1x128xf32>
    tpu.vector_store %arg5[%c0_36, %c0_37, %c0_38, %c0_39], %64 {strides = array<i32>} : memref<1x1x8x128xf32, #tpu.memory_space<vmem>>, vector<1x1x1x128xf32>,
    %65 = arith.mulf %59, %59 : vector<512x128xf32>
    %cst_40 = arith.constant dense<0.000000e+00> : vector<128xf32>
    %66 = vector.multi_reduction <add>, %65, %cst_40 [0] : vector<512x128xf32> to vector<128xf32>
    %67 = vector.shape_cast %66 : vector<128xf32> to vector<1x128xf32>
    %c0_41 = arith.constant 0 : index
    %c0_42 = arith.constant 0 : index
    %c1_43 = arith.constant 1 : index
    %c0_44 = arith.constant 0 : index
    %68 = vector.load %arg5[%c0_41, %c0_42, %c1_43, %c0_44] : memref<1x1x8x128xf32, #tpu.memory_space<vmem>>, vector<1x1x1x128xf32>
    %69 = vector.shape_cast %68 : vector<1x1x1x128xf32> to vector<1x128xf32>
    %70 = vector.shape_cast %67 : vector<1x128xf32> to vector<1x1x1x128xf32>
    tpu.vector_store %arg5[%c0_41, %c0_42, %c1_43, %c0_44], %70 {strides = array<i32>} : memref<1x1x8x128xf32, #tpu.memory_space<vmem>>, vector<1x1x1x128xf32>,
    return
  }
  func.func @transform_0(%arg0: i32, %arg1: i32) -> (i32, i32, i32, i32) {
    %c0_i32 = arith.constant 0 : i32
    %c0_i32_0 = arith.constant 0 : i32
    %c0_i32_1 = arith.constant 0 : i32
    return %arg0, %arg1, %c0_i32, %c0_i32_0 : i32, i32, i32, i32
  }
  func.func @transform_1(%arg0: i32, %arg1: i32) -> (i32, i32, i32, i32) {
    %c1_i32 = arith.constant 1 : i32
    %0 = arith.addi %arg1, %c1_i32 : i32
    %c8_i32 = arith.constant 8 : i32
    %1 = arith.muli %0, %c8_i32 : i32
    %c0_i32 = arith.constant 0 : i32
    %c0_i32_0 = arith.constant 0 : i32
    %c0_i32_1 = arith.constant 0 : i32
    return %arg0, %1, %c0_i32, %c0_i32_0 : i32, i32, i32, i32
  }
  func.func @transform_2(%arg0: i32, %arg1: i32) -> (i32, i32, i32) {
    %c0_i32 = arith.constant 0 : i32
    %c0_i32_0 = arith.constant 0 : i32
    %c0_i32_1 = arith.constant 0 : i32
    %c0_i32_2 = arith.constant 0 : i32
    return %c0_i32, %c0_i32_0, %c0_i32_1 : i32, i32, i32
  }
  func.func @transform_3(%arg0: i32, %arg1: i32) -> (i32, i32, i32, i32) {
    %c0_i32 = arith.constant 0 : i32
    %c0_i32_0 = arith.constant 0 : i32
    %c0_i32_1 = arith.constant 0 : i32
    return %arg0, %arg1, %c0_i32, %c0_i32_0 : i32, i32, i32, i32
  }
}

module attributes {stable_mosaic.version = 11 : i64} {
  func.func @_conv_bn_relu_kernel(%arg0: i32, %arg1: i32, %arg2: memref<1x16x34x4xbf16, #tpu.memory_space<vmem>>, %arg3: memref<1x2x34x4xbf16, #tpu.memory_space<vmem>>, %arg4: memref<9x4x128xbf16, #tpu.memory_space<vmem>>, %arg5: memref<8x1xf32, #tpu.memory_space<vmem>>, %arg6: memref<8x1xf32, #tpu.memory_space<vmem>>, %arg7: memref<1x8x512xf32, #tpu.memory_space<vmem>>) attributes {dimension_semantics = [#tpu.dimension_semantics<parallel>, #tpu.dimension_semantics<parallel>], iteration_bounds = array<i64: 2, 2>, scalar_prefetch = 0 : i64, scratch_operands = 0 : i64, tpu.core_type = #tpu.core_type<tc>, window_params = [{transform_indices = @transform_0, window_bounds = array<i64: 1, 16, 34, 4>}, {transform_indices = @transform_1, window_bounds = array<i64: 1, 2, 34, 4>}, {pipeline_mode = #tpu.pipeline_mode<synchronous>, transform_indices = @transform_2, window_bounds = array<i64: 9, 4, 128>}, {pipeline_mode = #tpu.pipeline_mode<synchronous>, transform_indices = @transform_3, window_bounds = array<i64: 8, 1>}, {pipeline_mode = #tpu.pipeline_mode<synchronous>, transform_indices = @transform_4, window_bounds = array<i64: 8, 1>}, {transform_indices = @transform_5, window_bounds = array<i64: 1, 8, 512>}]} {
    %c0 = arith.constant 0 : index
    %c0_0 = arith.constant 0 : index
    %c0_1 = arith.constant 0 : index
    %c0_2 = arith.constant 0 : index
    %0 = vector.load %arg2[%c0, %c0_0, %c0_1, %c0_2] : memref<1x16x34x4xbf16, #tpu.memory_space<vmem>>, vector<1x16x34x4xbf16>
    %1 = vector.shape_cast %0 : vector<1x16x34x4xbf16> to vector<16x34x4xbf16>
    %c0_3 = arith.constant 0 : index
    %c0_4 = arith.constant 0 : index
    %c0_5 = arith.constant 0 : index
    %c0_6 = arith.constant 0 : index
    %2 = vector.load %arg3[%c0_3, %c0_4, %c0_5, %c0_6] : memref<1x2x34x4xbf16, #tpu.memory_space<vmem>>, vector<1x2x34x4xbf16>
    %3 = vector.shape_cast %2 : vector<1x2x34x4xbf16> to vector<2x34x4xbf16>
    %4 = tpu.concatenate %1, %3 in 0 : vector<16x34x4xbf16>, vector<2x34x4xbf16> -> vector<18x34x4xbf16>
    %cst = arith.constant 0.000000e+00 : f32
    %5 = vector.broadcast %cst : f32 to vector<512x128xf32>
    %6 = vector.extract_strided_slice %4 {offsets = [0, 0, 0], sizes = [16, 32, 4], strides = [1, 1, 1]} : vector<18x34x4xbf16> to vector<16x32x4xbf16>
    %7 = vector.shape_cast %6 : vector<16x32x4xbf16> to vector<512x4xbf16>
    %c0_7 = arith.constant 0 : index
    %c0_8 = arith.constant 0 : index
    %c0_9 = arith.constant 0 : index
    %8 = vector.load %arg4[%c0_7, %c0_8, %c0_9] : memref<9x4x128xbf16, #tpu.memory_space<vmem>>, vector<1x4x128xbf16>
    %9 = vector.shape_cast %8 : vector<1x4x128xbf16> to vector<4x128xbf16>
    %cst_10 = arith.constant dense<0.000000e+00> : vector<512x128xf32>
    %10 = tpu.matmul %7, %9, %cst_10 {dimension_numbers = #tpu.dot_dimension_numbers<[1], [0], [0], [1], [0, 0, 1, 1], [], []>} : vector<512x4xbf16>, vector<4x128xbf16>, vector<512x128xf32> -> vector<512x128xf32>
    %11 = arith.addf %5, %10 : vector<512x128xf32>
    %12 = vector.extract_strided_slice %4 {offsets = [0, 1, 0], sizes = [16, 32, 4], strides = [1, 1, 1]} : vector<18x34x4xbf16> to vector<16x32x4xbf16>
    %13 = vector.shape_cast %12 : vector<16x32x4xbf16> to vector<512x4xbf16>
    %c1 = arith.constant 1 : index
    %c0_11 = arith.constant 0 : index
    %c0_12 = arith.constant 0 : index
    %14 = vector.load %arg4[%c1, %c0_11, %c0_12] : memref<9x4x128xbf16, #tpu.memory_space<vmem>>, vector<1x4x128xbf16>
    %15 = vector.shape_cast %14 : vector<1x4x128xbf16> to vector<4x128xbf16>
    %cst_13 = arith.constant dense<0.000000e+00> : vector<512x128xf32>
    %16 = tpu.matmul %13, %15, %cst_13 {dimension_numbers = #tpu.dot_dimension_numbers<[1], [0], [0], [1], [0, 0, 1, 1], [], []>} : vector<512x4xbf16>, vector<4x128xbf16>, vector<512x128xf32> -> vector<512x128xf32>
    %17 = arith.addf %11, %16 : vector<512x128xf32>
    %18 = vector.extract_strided_slice %4 {offsets = [0, 2, 0], sizes = [16, 32, 4], strides = [1, 1, 1]} : vector<18x34x4xbf16> to vector<16x32x4xbf16>
    %19 = vector.shape_cast %18 : vector<16x32x4xbf16> to vector<512x4xbf16>
    %c2 = arith.constant 2 : index
    %c0_14 = arith.constant 0 : index
    %c0_15 = arith.constant 0 : index
    %20 = vector.load %arg4[%c2, %c0_14, %c0_15] : memref<9x4x128xbf16, #tpu.memory_space<vmem>>, vector<1x4x128xbf16>
    %21 = vector.shape_cast %20 : vector<1x4x128xbf16> to vector<4x128xbf16>
    %cst_16 = arith.constant dense<0.000000e+00> : vector<512x128xf32>
    %22 = tpu.matmul %19, %21, %cst_16 {dimension_numbers = #tpu.dot_dimension_numbers<[1], [0], [0], [1], [0, 0, 1, 1], [], []>} : vector<512x4xbf16>, vector<4x128xbf16>, vector<512x128xf32> -> vector<512x128xf32>
    %23 = arith.addf %17, %22 : vector<512x128xf32>
    %24 = vector.extract_strided_slice %4 {offsets = [1, 0, 0], sizes = [16, 32, 4], strides = [1, 1, 1]} : vector<18x34x4xbf16> to vector<16x32x4xbf16>
    %25 = vector.shape_cast %24 : vector<16x32x4xbf16> to vector<512x4xbf16>
    %c3 = arith.constant 3 : index
    %c0_17 = arith.constant 0 : index
    %c0_18 = arith.constant 0 : index
    %26 = vector.load %arg4[%c3, %c0_17, %c0_18] : memref<9x4x128xbf16, #tpu.memory_space<vmem>>, vector<1x4x128xbf16>
    %27 = vector.shape_cast %26 : vector<1x4x128xbf16> to vector<4x128xbf16>
    %cst_19 = arith.constant dense<0.000000e+00> : vector<512x128xf32>
    %28 = tpu.matmul %25, %27, %cst_19 {dimension_numbers = #tpu.dot_dimension_numbers<[1], [0], [0], [1], [0, 0, 1, 1], [], []>} : vector<512x4xbf16>, vector<4x128xbf16>, vector<512x128xf32> -> vector<512x128xf32>
    %29 = arith.addf %23, %28 : vector<512x128xf32>
    %30 = vector.extract_strided_slice %4 {offsets = [1, 1, 0], sizes = [16, 32, 4], strides = [1, 1, 1]} : vector<18x34x4xbf16> to vector<16x32x4xbf16>
    %31 = vector.shape_cast %30 : vector<16x32x4xbf16> to vector<512x4xbf16>
    %c4 = arith.constant 4 : index
    %c0_20 = arith.constant 0 : index
    %c0_21 = arith.constant 0 : index
    %32 = vector.load %arg4[%c4, %c0_20, %c0_21] : memref<9x4x128xbf16, #tpu.memory_space<vmem>>, vector<1x4x128xbf16>
    %33 = vector.shape_cast %32 : vector<1x4x128xbf16> to vector<4x128xbf16>
    %cst_22 = arith.constant dense<0.000000e+00> : vector<512x128xf32>
    %34 = tpu.matmul %31, %33, %cst_22 {dimension_numbers = #tpu.dot_dimension_numbers<[1], [0], [0], [1], [0, 0, 1, 1], [], []>} : vector<512x4xbf16>, vector<4x128xbf16>, vector<512x128xf32> -> vector<512x128xf32>
    %35 = arith.addf %29, %34 : vector<512x128xf32>
    %36 = vector.extract_strided_slice %4 {offsets = [1, 2, 0], sizes = [16, 32, 4], strides = [1, 1, 1]} : vector<18x34x4xbf16> to vector<16x32x4xbf16>
    %37 = vector.shape_cast %36 : vector<16x32x4xbf16> to vector<512x4xbf16>
    %c5 = arith.constant 5 : index
    %c0_23 = arith.constant 0 : index
    %c0_24 = arith.constant 0 : index
    %38 = vector.load %arg4[%c5, %c0_23, %c0_24] : memref<9x4x128xbf16, #tpu.memory_space<vmem>>, vector<1x4x128xbf16>
    %39 = vector.shape_cast %38 : vector<1x4x128xbf16> to vector<4x128xbf16>
    %cst_25 = arith.constant dense<0.000000e+00> : vector<512x128xf32>
    %40 = tpu.matmul %37, %39, %cst_25 {dimension_numbers = #tpu.dot_dimension_numbers<[1], [0], [0], [1], [0, 0, 1, 1], [], []>} : vector<512x4xbf16>, vector<4x128xbf16>, vector<512x128xf32> -> vector<512x128xf32>
    %41 = arith.addf %35, %40 : vector<512x128xf32>
    %42 = vector.extract_strided_slice %4 {offsets = [2, 0, 0], sizes = [16, 32, 4], strides = [1, 1, 1]} : vector<18x34x4xbf16> to vector<16x32x4xbf16>
    %43 = vector.shape_cast %42 : vector<16x32x4xbf16> to vector<512x4xbf16>
    %c6 = arith.constant 6 : index
    %c0_26 = arith.constant 0 : index
    %c0_27 = arith.constant 0 : index
    %44 = vector.load %arg4[%c6, %c0_26, %c0_27] : memref<9x4x128xbf16, #tpu.memory_space<vmem>>, vector<1x4x128xbf16>
    %45 = vector.shape_cast %44 : vector<1x4x128xbf16> to vector<4x128xbf16>
    %cst_28 = arith.constant dense<0.000000e+00> : vector<512x128xf32>
    %46 = tpu.matmul %43, %45, %cst_28 {dimension_numbers = #tpu.dot_dimension_numbers<[1], [0], [0], [1], [0, 0, 1, 1], [], []>} : vector<512x4xbf16>, vector<4x128xbf16>, vector<512x128xf32> -> vector<512x128xf32>
    %47 = arith.addf %41, %46 : vector<512x128xf32>
    %48 = vector.extract_strided_slice %4 {offsets = [2, 1, 0], sizes = [16, 32, 4], strides = [1, 1, 1]} : vector<18x34x4xbf16> to vector<16x32x4xbf16>
    %49 = vector.shape_cast %48 : vector<16x32x4xbf16> to vector<512x4xbf16>
    %c7 = arith.constant 7 : index
    %c0_29 = arith.constant 0 : index
    %c0_30 = arith.constant 0 : index
    %50 = vector.load %arg4[%c7, %c0_29, %c0_30] : memref<9x4x128xbf16, #tpu.memory_space<vmem>>, vector<1x4x128xbf16>
    %51 = vector.shape_cast %50 : vector<1x4x128xbf16> to vector<4x128xbf16>
    %cst_31 = arith.constant dense<0.000000e+00> : vector<512x128xf32>
    %52 = tpu.matmul %49, %51, %cst_31 {dimension_numbers = #tpu.dot_dimension_numbers<[1], [0], [0], [1], [0, 0, 1, 1], [], []>} : vector<512x4xbf16>, vector<4x128xbf16>, vector<512x128xf32> -> vector<512x128xf32>
    %53 = arith.addf %47, %52 : vector<512x128xf32>
    %54 = vector.extract_strided_slice %4 {offsets = [2, 2, 0], sizes = [16, 32, 4], strides = [1, 1, 1]} : vector<18x34x4xbf16> to vector<16x32x4xbf16>
    %55 = vector.shape_cast %54 : vector<16x32x4xbf16> to vector<512x4xbf16>
    %c8 = arith.constant 8 : index
    %c0_32 = arith.constant 0 : index
    %c0_33 = arith.constant 0 : index
    %56 = vector.load %arg4[%c8, %c0_32, %c0_33] : memref<9x4x128xbf16, #tpu.memory_space<vmem>>, vector<1x4x128xbf16>
    %57 = vector.shape_cast %56 : vector<1x4x128xbf16> to vector<4x128xbf16>
    %cst_34 = arith.constant dense<0.000000e+00> : vector<512x128xf32>
    %58 = tpu.matmul %55, %57, %cst_34 {dimension_numbers = #tpu.dot_dimension_numbers<[1], [0], [0], [1], [0, 0, 1, 1], [], []>} : vector<512x4xbf16>, vector<4x128xbf16>, vector<512x128xf32> -> vector<512x128xf32>
    %59 = arith.addf %53, %58 : vector<512x128xf32>
    %60 = tpu.transpose %59, [1, 0] : vector<512x128xf32> -> vector<128x512xf32>
    %61 = vector.extract_strided_slice %60 {offsets = [0, 0], sizes = [8, 512], strides = [1, 1]} : vector<128x512xf32> to vector<8x512xf32>
    %c0_35 = arith.constant 0 : index
    %c0_36 = arith.constant 0 : index
    %62 = vector.load %arg5[%c0_35, %c0_36] : memref<8x1xf32, #tpu.memory_space<vmem>>, vector<8x1xf32>
    %63 = vector.broadcast %62 : vector<8x1xf32> to vector<8x512xf32>
    %64 = arith.mulf %61, %63 : vector<8x512xf32>
    %c0_37 = arith.constant 0 : index
    %c0_38 = arith.constant 0 : index
    %65 = vector.load %arg6[%c0_37, %c0_38] : memref<8x1xf32, #tpu.memory_space<vmem>>, vector<8x1xf32>
    %66 = vector.broadcast %65 : vector<8x1xf32> to vector<8x512xf32>
    %67 = arith.addf %64, %66 : vector<8x512xf32>
    %cst_39 = arith.constant 0.000000e+00 : f32
    %68 = vector.broadcast %cst_39 : f32 to vector<8x512xf32>
    %69 = arith.maximumf %67, %68 : vector<8x512xf32>
    %c0_40 = arith.constant 0 : index
    %c0_41 = arith.constant 0 : index
    %c0_42 = arith.constant 0 : index
    %70 = vector.load %arg7[%c0_40, %c0_41, %c0_42] : memref<1x8x512xf32, #tpu.memory_space<vmem>>, vector<1x8x512xf32>
    %71 = vector.shape_cast %70 : vector<1x8x512xf32> to vector<8x512xf32>
    %72 = vector.shape_cast %69 : vector<8x512xf32> to vector<1x8x512xf32>
    tpu.vector_store %arg7[%c0_40, %c0_41, %c0_42], %72 {strides = array<i32>} : memref<1x8x512xf32, #tpu.memory_space<vmem>>, vector<1x8x512xf32>,
    return
  }
  func.func @transform_0(%arg0: i32, %arg1: i32) -> (i32, i32, i32, i32) {
    %c0_i32 = arith.constant 0 : i32
    %c0_i32_0 = arith.constant 0 : i32
    %c0_i32_1 = arith.constant 0 : i32
    return %arg0, %arg1, %c0_i32, %c0_i32_0 : i32, i32, i32, i32
  }
  func.func @transform_1(%arg0: i32, %arg1: i32) -> (i32, i32, i32, i32) {
    %c1_i32 = arith.constant 1 : i32
    %0 = arith.addi %arg1, %c1_i32 : i32
    %c8_i32 = arith.constant 8 : i32
    %1 = arith.muli %0, %c8_i32 : i32
    %c0_i32 = arith.constant 0 : i32
    %c0_i32_0 = arith.constant 0 : i32
    %c0_i32_1 = arith.constant 0 : i32
    return %arg0, %1, %c0_i32, %c0_i32_0 : i32, i32, i32, i32
  }
  func.func @transform_2(%arg0: i32, %arg1: i32) -> (i32, i32, i32) {
    %c0_i32 = arith.constant 0 : i32
    %c0_i32_0 = arith.constant 0 : i32
    %c0_i32_1 = arith.constant 0 : i32
    %c0_i32_2 = arith.constant 0 : i32
    return %c0_i32, %c0_i32_0, %c0_i32_1 : i32, i32, i32
  }
  func.func @transform_3(%arg0: i32, %arg1: i32) -> (i32, i32) {
    %c0_i32 = arith.constant 0 : i32
    %c0_i32_0 = arith.constant 0 : i32
    %c0_i32_1 = arith.constant 0 : i32
    return %c0_i32, %c0_i32_0 : i32, i32
  }
  func.func @transform_4(%arg0: i32, %arg1: i32) -> (i32, i32) {
    %c0_i32 = arith.constant 0 : i32
    %c0_i32_0 = arith.constant 0 : i32
    %c0_i32_1 = arith.constant 0 : i32
    return %c0_i32, %c0_i32_0 : i32, i32
  }
  func.func @transform_5(%arg0: i32, %arg1: i32) -> (i32, i32, i32) {
    %c0_i32 = arith.constant 0 : i32
    %c0_i32_0 = arith.constant 0 : i32
    return %arg0, %c0_i32, %arg1 : i32, i32, i32
  }
}

</mosaic_0001>

<bundles_post_ra>
// kernel: up_forward.2
= control target key start
LH: loop header
LB: loop body
LE: loop exit
PB: predicated region body
PF: predicated region fallthrough
CT: control target
= control target key end

     0   :  { %s5204_s12 = smov 0   ;;  %s5206_s13 = smov 0   ;;  %s7044_s0 = inlined_call_operand.vmem [shape: bf16[2,34,34,4], index: 0, kind: input, shape index: {}, may-alias: {0,1}]   ;;  %s7045_s1 = inlined_call_operand.vmem [shape: bf16[2,34,34,4], index: 1, kind: input, shape index: {}, may-alias: {0,1}]   ;;  %s7046_s2 = inlined_call_operand.vmem [shape: bf16[9,4,128], index: 2, kind: input, shape index: {}]   ;;  %s7047_s3 = inlined_call_operand.vmem [shape: f32[2,2,8,128], index: 3, kind: output, shape index: {}]  }
   0x1   :  { %s5208_s14 = smov 0   ;;  %s5210_s15 = smov 0  }
   0x2   :  { %s5212_s16 = smov 0  }
   0x3 LB: > { %s22_s17 = sadd.s32 1, %s5174_s14  ;;  %s25_s18 = sadd.s32 1, %s5178_s15  ;;  %s5182_s16 = sphi %s5212_s16, %s13_s16   ;;  %s5178_s15 = sphi %s5210_s15, %s7352_s15   ;;  %s5174_s14 = sphi %s5208_s14, %s7351_s14   ;;  %s5170_s13 = sphi %s5206_s13, %s7350_s13   ;;  %s5166_s12 = sphi %s5204_s12, %s7349_s12  }
   0x4   : > { %p23_p0 = scmp.ge.s32.totalorder %s22_s17, 2  ;;  %p4484_p1 = scmp.ge.s32.totalorder %s5182_s16, 1 }
   0x5   : > { %p195_p2 = scmp.lt.s32.totalorder %s5182_s16, 5 }
   0x6   : > { %s7354_s17 = smov (%p23_p0, %s22_s17), 0  ;;  %s7356_s18 = smov (!%p23_p0, %s25_s18), %s5178_s15 }
   0x7   : > { %p196_p3 = pnand %p4484_p1, %p195_p2  ;;  %p27_p4 = scmp.ge.s32.totalorder %s7356_s18, 2 }
   0x9   : > { %s7358_s18 = smov (%p27_p4, %s7356_s18), 0  ;;  %199 = sbr.rel (%p196_p3) target bundleno = 1357 (0x54d), region = 32 }
   0xe   : > { %v4492_v0 = vld [vmem:[%s7046_s2 + $0x2] sm:$0x3]  ;;  %vm1282_vm0 = vcmask 1041408   ;;  %s5240_s21 = sshll.u32 %s5166_s12, 4  ;;  %p250_p5 = scmp.lt.s32.totalorder %s5170_s13, 1  ;;  %vm1185_vm3 = vcmask 31744  }
   0xf   : > { %v1284_v1 = vsel %vm1282_vm0, %v4492_v0, 0  ;;  %p252_p6 = scmp.lt.s32.totalorder %s5240_s21, 33  ;;  %v4701_v2 = vld [vmem:[%s7046_s2 + $0x4] sm:$0x3]  ;;  %v4734_v4 = vld [vmem:[%s7046_s2 + $0x6] sm:$0x3] }
  0x10   : > { %4997 = vmatpush.bf16.msra.mxu1 %v1284_v1  ;;  %4998 = vmatpush.bf16.msra.mxu2 %v1284_v1  ;;  %s7360_s13 = smov (!%p250_p5, %s5170_s13), 1  ;;  %v2305_v3 = vsel %vm1282_vm0, %v4701_v2, 0  ;;  %v379_v5 = vld [vmem:[%s7046_s2] sm:$0x3]  ;;  %v4775_v6 = vld [vmem:[%s7046_s2 + $0x8] sm:$0x3] }
  0x11   : > { %4999 = vmatpush.bf16.msra.mxu3 %v1284_v1  ;;  %1293 = vmatpush.bf16.msra.mxu0 %v1284_v1  ;;  %s253_s24 = scalar_select %p252_p6, %s5240_s21, 33  ;;  %v2559_v7 = vsel %vm1282_vm0, %v4734_v4, 0  ;;  %v1712_v8 = vsel %vm1282_vm0, %v379_v5, 0  ;;  %v2853_v9 = vsel %vm1282_vm0, %v4775_v6, 0  ;;  %vm380_vm1 = vsmask.f32 3328 }
  0x12   : > { %s5001_s25 = smul.u32 170, %s7360_s13  ;;  %vm381_vm2 = vsmask.f32 7440  ;;  %v7109_v36 = vmov 0  ;;  %vm1899_vm5 = vcmask 1042432   ;;  %vm1900_vm6 = vcmask 1046532  }
  0x13   : > { %s5000_s26 = smul.u32 5, %s253_s24  ;;  %vm5289_vm4 = vmor %vm380_vm1, %vm381_vm2  ;;  %s4996_s28 = sadd.s32 16, %s5240_s21 }
  0x14   : > { %2314 = vmatpush.bf16.msrb.mxu2 %v2305_v3  ;;  %1721 = vmatpush.bf16.msrb.mxu1 %v1712_v8  ;;  %v7110_v36 = vsel %vm5289_vm4, 4294967295, %v7109_v36  ;;  %vm5792_vm7 = vmor %vm1899_vm5, %vm1900_vm6  ;;  %p270_p7 = scmp.lt.s32.totalorder %s4996_s28, 33  ;;  %p282_p8 = scmp.lt.s32.totalorder %s5166_s12, 1 }
  0x15   : > { %s256_s6 = sadd.s32 %s5001_s25, %s5000_s26  ;;  %2568 = vmatpush.bf16.msrb.mxu3 %v2559_v7  ;;  %2862 = vmatpush.bf16.msrb.mxu0 %v2853_v9  ;;  %7111 = vst [vmem:[#allocation2_spill] sm:$0xff] %v7110_v36 }
  0x16   : > { %s4486_s7 = sshll.u32 %s256_s6, 2  ;;  %s7362_s28 = smov (!%p270_p7, %s4996_s28), 33 }
  0x17   : > { %s5269_s10 = scalar_lea.vmem %s7044_s0, %s4486_s7  ;;  %s5002_s21 = smul.u32 5, %s7362_s28 }
  0x18   : > { %v309_v10 = vld [vmem:[%s5269_s10 + $0x50] sm:$0xf]  ;;  %v310_v11 = vld [vmem:[%s5269_s10 + $0x54] sm:$0xf]  ;;  %v5274_v12 = vld [vmem:[%s5269_s10 + $0x58] sm:$0xf] }
  0x19   : > { %v560_v13 = vshrl.u32 %v309_v10, 16  ;;  %v563_v14 = vshll.u32 %v309_v10, 16  ;;  %v569_v15 = vshll.u32 %v310_v11, 16  ;;  %v573_v16 = vshrl.u32 %v310_v11, 16  ;;  %v329_v17 = vld [vmem:[%s5269_s10 + $0xa0] sm:$0xf]  ;;  %s274_s29 = sadd.s32 %s5002_s21, %s5001_s25 }
  0x1a   : > { %v579_v18 = vshll.u32 %v5274_v12, 16  ;;  %v330_v19 = vld [vmem:[%s5269_s10 + $0xa4] sm:$0xf]  ;;  %v5280_v20 = vld [vmem:[%s5269_s10 + $0xa8] sm:$0xf]  ;;  %v736_v21 = vshrl.u32 %v329_v17, 16 }
  0x1b   : > { %v562_v22 = vrot.slane %v560_v13, 4  ;;  %v565_v23 = vrot.slane %v563_v14, 5  ;;  %v571_v24 = vrot.slane %v569_v15, 5  ;;  %v575_v25 = vrot.slane %v573_v16, 4  ;;  %v349_v26 = vld [vmem:[%s5269_s10 + $0xf0] sm:$0xf] }
  0x1c   : > { %v5283_v27 = vrot.slane %v579_v18, 5  ;;  %v738_v28 = vrot.slane %v736_v21, 4  ;;  %v739_v29 = vshll.u32 %v329_v17, 16  ;;  %v745_v30 = vshll.u32 %v330_v19, 16  ;;  %v350_v35 = vld [vmem:[%s5269_s10 + $0xf4] sm:$0xf] }
  0x1d   : > { %v566_v31 = vor.u32 %v565_v23, %v562_v22  ;;  %v576_v32 = vor.u32 %v575_v25, %v571_v24  ;;  %v749_v33 = vshrl.u32 %v330_v19, 16  ;;  %v755_v34 = vshll.u32 %v5280_v20, 16  ;;  %v5296_v46 = vld [vmem:[%s5269_s10 + $0xf8] sm:$0xf]  ;;  %v289_v54 = vld [vmem:[%s5269_s10] sm:$0xf] }
  0x1e   : > { %v741_v37 = vrot.slane %v739_v29, 5  ;;  %v747_v38 = vrot.slane %v745_v30, 5  ;;  %v912_v39 = vshrl.u32 %v349_v26, 16  ;;  %v915_v40 = vshll.u32 %v349_v26, 16  ;;  %v290_v2 = vld [vmem:[%s5269_s10 + $0x4] sm:$0xf] }
  0x1f   : > { %v567_v41 = vrot.slane %v566_v31, 4  ;;  %v577_v42 = vrot.slane %v576_v32, 4  ;;  %v751_v43 = vrot.slane %v749_v33, 4  ;;  %v5293_v44 = vrot.slane %v755_v34, 5  ;;  %v5316_v8 = vld [vmem:[%s5269_s10 + $0x8] sm:$0xf] }
  0x20   : > { %v742_v45 = vor.u32 %v741_v37, %v738_v28  ;;  %v914_v47 = vrot.slane %v912_v39, 4  ;;  %v917_v48 = vrot.slane %v915_v40, 5  ;;  %v921_v49 = vshll.u32 %v350_v35, 16  ;;  %v312_v14 = vld [vmem:[%s5269_s10 + $0x5c] sm:$0xf]  ;;  %s4489_s30 = sshll.u32 %s274_s29, 2 }
  0x21   : > { %v572_v50 = vsel %vm5289_vm4, %v567_v41, %v571_v24  ;;  %v582_v51 = vsel %vm5289_vm4, %v577_v42, %v5283_v27  ;;  %v752_v52 = vor.u32 %v751_v43, %v747_v38  ;;  %v925_v53 = vshrl.u32 %v350_v35, 16  ;;  %v313_v23 = vld [vmem:[%s5269_s10 + $0x60] sm:$0x1]  ;;  %s6511_s25 = scalar_lea.vmem %s7045_s1, %s4489_s30  ;;  %s7364_s12 = smov (!%p282_p8, %s5166_s12), 1 }
  0x22   : > { %v1105_v55 = vunpack.c.l.b16 %v572_v50  ;;  %v1106_v56 = vunpack.c.l.b16 %v582_v51  ;;  %v743_v57 = vrot.slane %v742_v45, 4  ;;  %v918_v58 = vor.u32 %v917_v48, %v914_v47  ;;  %v333_v50 = vld [vmem:[%s5269_s10 + $0xb0] sm:$0x1]  ;;  %s4490_s6 = sshll.u32 %s7360_s13, 1 }
  0x23   : > { %v753_v59 = vrot.slane %v752_v52, 4  ;;  %v923_v60 = vrot.slane %v921_v49, 5  ;;  %v927_v61 = vrot.slane %v925_v53, 4  ;;  %v931_v62 = vshll.u32 %v5296_v46, 16  ;;  %s285_s7 = sadd.s32 %s4490_s6, %s7364_s12 }
  0x24   : > { %v5305_v63 = vpack.c.b16 %v1106_v56, %v1105_v55  ;;  %v748_v0 = vsel %vm5289_vm4, %v743_v57, %v747_v38  ;;  %v919_v1 = vrot.slane %v918_v58, 4  ;;  %v384_v3 = vshrl.u32 %v289_v54, 16  ;;  %v332_v38 = vld [vmem:[%s5269_s10 + $0xac] sm:$0xf]  ;;  %s4491_s8 = sshll.u32 %s285_s7, 3 }
  0x25   : > { %v758_v4 = vsel %vm5289_vm4, %v753_v59, %v5293_v44  ;;  %v1121_v5 = vunpack.c.l.b16 %v748_v0  ;;  %v928_v6 = vor.u32 %v927_v61, %v923_v60  ;;  %v5313_v7 = vrot.slane %v931_v62, 5  ;;  %v352_v59 = vld [vmem:[%s5269_s10 + $0xfc] sm:$0xf]  ;;  %s287_s11 = scalar_lea.vmem %s7047_s3, %s4491_s8 }
  0x26   : > { %7112 = vst [vmem:[#allocation3_spill] sm:$0xff] %v5305_v63  ;;  %4501 = vmatmul.msk.bf16.vlgmr.msra.gmra.mxu1 %vm1185_vm3, %v5305_v63  ;;  %v1122_v9 = vunpack.c.l.b16 %v758_v4  ;;  %v924_v10 = vsel %vm5289_vm4, %v919_v1, %v923_v60  ;;  %v386_v11 = vrot.slane %v384_v3, 4  ;;  %v387_v13 = vshll.u32 %v289_v54, 16  ;;  %v353_v3 = vld [vmem:[%s5269_s10 + $0x100] sm:$0x1] }
  0x27   : > { %v929_v15 = vrot.slane %v928_v6, 4  ;;  %v1137_v16 = vunpack.c.l.b16 %v924_v10  ;;  %v393_v17 = vshll.u32 %v290_v2, 16  ;;  %v397_v18 = vshrl.u32 %v290_v2, 16 }
  0x28   : > { %v5323_v19 = vpack.c.b16 %v1122_v9, %v1121_v5  ;;  %v389_v21 = vrot.slane %v387_v13, 5  ;;  %v403_v22 = vshll.u32 %v5316_v8, 16  ;;  %v583_v24 = vshrl.u32 %v5274_v12, 16 }
  0x29   : > { %v934_v25 = vsel %vm5289_vm4, %v929_v15, %v5313_v7  ;;  %v395_v26 = vrot.slane %v393_v17, 5  ;;  %v399_v28 = vrot.slane %v397_v18, 4  ;;  %v589_v29 = vshll.u32 %v312_v14, 16  ;;  %v292_v18 = vld [vmem:[%s5269_s10 + $0xc] sm:$0xf] }
  0x2a   : > { %4509 = vmatmul.msk.bf16.vlgmr.msra.gmra.mxu2 %vm1185_vm3, %v5323_v19  ;;  %v1138_v30 = vunpack.c.l.b16 %v934_v25  ;;  %v390_v31 = vor.u32 %v389_v21, %v386_v11  ;;  %v5333_v32 = vrot.slane %v403_v22, 5  ;;  %v585_v33 = vrot.slane %v583_v24, 4  ;;  %v314_v25 = vld [vmem:[%s5269_s10 + $0x64] sm:$0xf] }
  0x2b   : > { %v400_v34 = vor.u32 %v399_v28, %v395_v26  ;;  %v591_v35 = vrot.slane %v589_v29, 5  ;;  %v593_v37 = vshrl.u32 %v312_v14, 16  ;;  %v599_v12 = vshll.u32 %v313_v23, 16 }
  0x2c   : > { %v5336_v39 = vpack.c.b16 %v1138_v30, %v1137_v16  ;;  %v391_v40 = vrot.slane %v390_v31, 4  ;;  %v586_v41 = vor.u32 %v585_v33, %v5283_v27  ;;  %v759_v47 = vshrl.u32 %v5280_v20, 16 }
  0x2d   : > { %v401_v42 = vrot.slane %v400_v34, 4  ;;  %v595_v43 = vrot.slane %v593_v37, 4  ;;  %v601_v45 = vrot.slane %v599_v12, 5  ;;  %v765_v51 = vshll.u32 %v332_v38, 16 }
  0x2e   : > { %7113 = vst [vmem:[#allocation4_spill] sm:$0xff] %v5336_v39  ;;  %4517 = vmatmul.msk.bf16.vlgmr.msra.gmra.mxu3 %vm1185_vm3, %v5336_v39  ;;  %v396_v48 = vsel %vm5289_vm4, %v391_v40, %v395_v26  ;;  %v587_v49 = vrot.slane %v586_v41, 4  ;;  %v769_v52 = vshrl.u32 %v332_v38, 16  ;;  %v761_v55 = vrot.slane %v759_v47, 4  ;;  %v315_v40 = vld [vmem:[%s5269_s10 + $0x68] sm:$0xf] }
  0x2f   : > { %v406_v27 = vsel %vm5289_vm4, %v401_v42, %v5333_v32  ;;  %v1089_v53 = vunpack.c.l.b16 %v396_v48  ;;  %v596_v54 = vor.u32 %v595_v43, %v591_v35  ;;  %v767_v57 = vrot.slane %v765_v51, 5  ;;  %v334_v47 = vld [vmem:[%s5269_s10 + $0xb4] sm:$0xf] }
  0x30   : > { %v1090_v56 = vunpack.c.l.b16 %v406_v27  ;;  %v592_v20 = vsel %vm5289_vm4, %v587_v49, %v591_v35  ;;  %v771_v58 = vrot.slane %v769_v52, 4  ;;  %v762_v61 = vor.u32 %v761_v55, %v5293_v44 }
  0x31   : > { %v597_v60 = vrot.slane %v596_v54, 4  ;;  %v775_v62 = vshll.u32 %v333_v50, 16  ;;  %v1107_v1 = vunpack.c.l.b16 %v592_v20  ;;  %v935_v4 = vshrl.u32 %v5296_v46, 16  ;;  %v293_v46 = vld [vmem:[%s5269_s10 + $0x10] sm:$0x1] }
  0x32   : > { %v1153_v0 = vpack.c.b16 %v1090_v56, %v1089_v53  ;;  %v772_v2 = vor.u32 %v771_v58, %v767_v57  ;;  %v763_v6 = vrot.slane %v762_v61, 4  ;;  %v941_v10 = vshll.u32 %v352_v59, 16 }
  0x33   : > { %v602_v5 = vsel %vm5289_vm4, %v597_v60, %v601_v45  ;;  %v777_v9 = vrot.slane %v775_v62, 5  ;;  %v937_v13 = vrot.slane %v935_v4, 4  ;;  %v945_v14 = vshrl.u32 %v352_v59, 16 }
  0x34   : > { %4493 = vmatmul.msk.bf16.vlgmr.msra.gmra.mxu0 %vm1185_vm3, %v1153_v0  ;;  %v1108_v11 = vunpack.c.l.b16 %v602_v5  ;;  %v773_v44 = vrot.slane %v772_v2, 4  ;;  %v768_v15 = vsel %vm5289_vm4, %v763_v6, %v767_v57  ;;  %v943_v16 = vrot.slane %v941_v10, 5  ;;  %v335_v57 = vld [vmem:[%s5269_s10 + $0xb8] sm:$0xf]  ;;  %v354_v0 = vld [vmem:[%s5269_s10 + $0x104] sm:$0xf] }
  0x35   : > { %v951_v17 = vshll.u32 %v353_v3, 16  ;;  %v1123_v23 = vunpack.c.l.b16 %v768_v15  ;;  %v938_v24 = vor.u32 %v937_v13, %v5313_v7  ;;  %v947_v28 = vrot.slane %v945_v14, 4  ;;  %v5374_v7 = vld [vmem:[%s5269_s10 + $0x6c] sm:$0xf]  ;;  %v5392_v3 = vld [vmem:[%s5269_s10 + $0xbc] sm:$0xf] }
  0x36   : > { %v5361_v21 = vpack.c.b16 %v1108_v11, %v1107_v1  ;;  %v778_v22 = vsel %vm5289_vm4, %v773_v44, %v777_v9  ;;  %v407_v30 = vshrl.u32 %v5316_v8, 16  ;;  %v413_v33 = vshll.u32 %v292_v18, 16 }
  0x37   : > { %v1124_v26 = vunpack.c.l.b16 %v778_v22  ;;  %v953_v29 = vrot.slane %v951_v17, 5  ;;  %v939_v31 = vrot.slane %v938_v24, 4  ;;  %v417_v34 = vshrl.u32 %v292_v18, 16  ;;  %v355_v18 = vld [vmem:[%s5269_s10 + $0x108] sm:$0xf] }
  0x38   : > { %7114 = vst [vmem:[#allocation5_spill] sm:$0xff] %v5361_v21  ;;  %4502 = vmatmul.msk.bf16.gmra.mxu1 %vm1185_vm3, %v5361_v21  ;;  %v423_v35 = vshll.u32 %v293_v46, 16  ;;  %v948_v12 = vor.u32 %v947_v28, %v943_v16  ;;  %v409_v38 = vrot.slane %v407_v30, 4  ;;  %v604_v41 = vshrl.u32 %v314_v25, 16 }
  0x39   : > { %v5370_v37 = vpack.c.b16 %v1124_v26, %v1123_v23  ;;  %v944_v42 = vsel %vm5289_vm4, %v939_v31, %v943_v16  ;;  %v415_v8 = vrot.slane %v413_v33, 5  ;;  %v419_v43 = vrot.slane %v417_v34, 4  ;;  %v5403_v26 = vld [vmem:[%s5269_s10 + $0x10c] sm:$0xf]  ;;  %v294_v33 = vld [vmem:[%s5269_s10 + $0x14] sm:$0xf] }
  0x3a   : > { %v425_v45 = vrot.slane %v423_v35, 5  ;;  %v949_v48 = vrot.slane %v948_v12, 4  ;;  %v1139_v49 = vunpack.c.l.b16 %v944_v42  ;;  %v410_v50 = vor.u32 %v409_v38, %v5333_v32 }
  0x3b   : > { %4510 = vmatmul.msk.bf16.gmra.mxu2 %vm1185_vm3, %v5370_v37  ;;  %v606_v51 = vrot.slane %v604_v41, 4  ;;  %v420_v52 = vor.u32 %v419_v43, %v415_v8  ;;  %v607_v27 = vshll.u32 %v314_v25, 16  ;;  %v613_v53 = vshll.u32 %v315_v40, 16 }
  0x3c   : > { %v617_v54 = vshrl.u32 %v315_v40, 16  ;;  %v954_v55 = vsel %vm5289_vm4, %v949_v48, %v953_v29  ;;  %v411_v56 = vrot.slane %v410_v50, 4  ;;  %v623_v20 = vshll.u32 %v5374_v7, 16 }
  0x3d   : > { %v780_v58 = vshrl.u32 %v334_v47, 16  ;;  %v1140_v59 = vunpack.c.l.b16 %v954_v55  ;;  %v421_v60 = vrot.slane %v420_v52, 4  ;;  %v609_v61 = vrot.slane %v607_v27, 5  ;;  %v295_v27 = vld [vmem:[%s5269_s10 + $0x18] sm:$0xf] }
  0x3e   : > { %v615_v62 = vrot.slane %v613_v53, 5  ;;  %v416_v32 = vsel %vm5289_vm4, %v411_v56, %v415_v8  ;;  %v619_v1 = vrot.slane %v617_v54, 4  ;;  %v5389_v2 = vrot.slane %v623_v20, 5  ;;  %v5423_v56 = vld [vmem:[%s5269_s10 + $0x1c] sm:$0xf] }
  0x3f   : > { %v782_v4 = vrot.slane %v780_v58, 4  ;;  %v5394_v5 = vpack.c.b16 %v1140_v59, %v1139_v49  ;;  %v426_v6 = vsel %vm5289_vm4, %v421_v60, %v425_v45  ;;  %v1091_v9 = vunpack.c.l.b16 %v416_v32 }
  0x40   : > { %v610_v10 = vor.u32 %v609_v61, %v606_v51  ;;  %v1092_v11 = vunpack.c.l.b16 %v426_v6  ;;  %v620_v44 = vor.u32 %v619_v1, %v615_v62  ;;  %v783_v13 = vshll.u32 %v334_v47, 16 }
  0x41   : > { %7115 = vst [vmem:[#allocation6_spill] sm:$0xff] %v5394_v5  ;;  %v789_v14 = vshll.u32 %v335_v57, 16  ;;  %4518 = vmatmul.msk.bf16.gmra.mxu3 %vm1185_vm3, %v5394_v5  ;;  %v793_v16 = vshrl.u32 %v335_v57, 16  ;;  %v799_v17 = vshll.u32 %v5392_v3, 16  ;;  %v956_v46 = vshrl.u32 %v354_v0, 16 }
  0x42   : > { %v611_v15 = vrot.slane %v610_v10, 4  ;;  %v1154_v22 = vpack.c.b16 %v1092_v11, %v1091_v9  ;;  %v621_v23 = vrot.slane %v620_v44, 4  ;;  %v785_v24 = vrot.slane %v783_v13, 5  ;;  %v317_v9 = vld [vmem:[%s5269_s10 + $0x70] sm:$0xf] }
  0x43   : > { %v791_v25 = vrot.slane %v789_v14, 5  ;;  %v795_v29 = vrot.slane %v793_v16, 4  ;;  %v5407_v30 = vrot.slane %v799_v17, 5  ;;  %v958_v31 = vrot.slane %v956_v46, 4 }
  0x44   : > { %v616_v28 = vsel %vm5289_vm4, %v611_v15, %v615_v62  ;;  %4494 = vmatmul.msk.bf16.gmra.mxu0 %vm1185_vm3, %v1154_v22  ;;  %v626_v34 = vsel %vm5289_vm4, %v621_v23, %v5389_v2  ;;  %v786_v12 = vor.u32 %v785_v24, %v782_v4  ;;  %v959_v38 = vshll.u32 %v354_v0, 16  ;;  %v318_v15 = vld [vmem:[%s5269_s10 + $0x74] sm:$0x1] }
  0x45   : > { %v1109_v35 = vunpack.c.l.b16 %v616_v28  ;;  %v1110_v40 = vunpack.c.l.b16 %v626_v34  ;;  %v796_v41 = vor.u32 %v795_v29, %v791_v25  ;;  %v965_v42 = vshll.u32 %v355_v18, 16 }
  0x46   : > { %v969_v8 = vshrl.u32 %v355_v18, 16  ;;  %v787_v43 = vrot.slane %v786_v12, 4  ;;  %v961_v45 = vrot.slane %v959_v38, 5  ;;  %v975_v47 = vshll.u32 %v5403_v26, 16 }
  0x47   : > { %v428_v48 = vshrl.u32 %v294_v33, 16  ;;  %v5415_v49 = vpack.c.b16 %v1110_v40, %v1109_v35  ;;  %v797_v50 = vrot.slane %v796_v41, 4  ;;  %v967_v51 = vrot.slane %v965_v42, 5  ;;  %v338_v42 = vld [vmem:[%s5269_s10 + $0xc4] sm:$0x1] }
  0x48   : > { %v971_v52 = vrot.slane %v969_v8, 4  ;;  %v792_v53 = vsel %vm5289_vm4, %v787_v43, %v791_v25  ;;  %v962_v54 = vor.u32 %v961_v45, %v958_v31  ;;  %v5420_v55 = vrot.slane %v975_v47, 5  ;;  %v337_v31 = vld [vmem:[%s5269_s10 + $0xc0] sm:$0xf] }
  0x49   : > { %7116 = vst [vmem:[#allocation7_spill] sm:$0xff] %v5415_v49  ;;  %v430_v20 = vrot.slane %v428_v48, 4  ;;  %4503 = vmatmul.msk.bf16.gmra.mxu1 %vm1185_vm3, %v5415_v49  ;;  %v802_v57 = vsel %vm5289_vm4, %v797_v50, %v5407_v30  ;;  %v1125_v58 = vunpack.c.l.b16 %v792_v53  ;;  %v431_v60 = vshll.u32 %v294_v33, 16 }
  0x4a   : > { %v972_v59 = vor.u32 %v971_v52, %v967_v51  ;;  %v1126_v61 = vunpack.c.l.b16 %v802_v57  ;;  %v963_v62 = vrot.slane %v962_v54, 4  ;;  %v437_v0 = vshll.u32 %v295_v27, 16 }
  0x4b   : > { %v441_v32 = vshrl.u32 %v295_v27, 16  ;;  %v433_v4 = vrot.slane %v431_v60, 5  ;;  %v447_v6 = vshll.u32 %v5423_v56, 16  ;;  %v627_v10 = vshrl.u32 %v5374_v7, 16  ;;  %v357_v27 = vld [vmem:[%s5269_s10 + $0x110] sm:$0xf] }
  0x4c   : > { %v973_v1 = vrot.slane %v972_v59, 4  ;;  %v5433_v11 = vpack.c.b16 %v1126_v61, %v1125_v58  ;;  %v968_v44 = vsel %vm5289_vm4, %v963_v62, %v967_v51  ;;  %v439_v13 = vrot.slane %v437_v0, 5 }
  0x4d   : > { %v443_v14 = vrot.slane %v441_v32, 4  ;;  %v1141_v17 = vunpack.c.l.b16 %v968_v44  ;;  %v434_v18 = vor.u32 %v433_v4, %v430_v20  ;;  %v5441_v46 = vrot.slane %v447_v6, 5  ;;  %v358_v20 = vld [vmem:[%s5269_s10 + $0x114] sm:$0x1] }
  0x4e   : > { %v978_v16 = vsel %vm5289_vm4, %v973_v1, %v5420_v55  ;;  %4511 = vmatmul.msk.bf16.gmra.mxu2 %vm1185_vm3, %v5433_v11  ;;  %v629_v23 = vrot.slane %v627_v10, 4  ;;  %v633_v24 = vshll.u32 %v317_v9, 16  ;;  %v637_v28 = vshrl.u32 %v317_v9, 16 }
  0x4f   : > { %v1142_v7 = vunpack.c.l.b16 %v978_v16  ;;  %v444_v22 = vor.u32 %v443_v14, %v439_v13  ;;  %v435_v25 = vrot.slane %v434_v18, 4  ;;  %v643_v29 = vshll.u32 %v318_v15, 16  ;;  %v5471_v14 = vld [vmem:[%s5269_s10 + $0x20] sm:$0xf]  ;;  %v319_v18 = vld [vmem:[%s5269_s10 + $0x78] sm:$0xf] }
  0x50   : > { %v630_v35 = vor.u32 %v629_v23, %v5389_v2  ;;  %v635_v12 = vrot.slane %v633_v24, 5  ;;  %v639_v40 = vrot.slane %v637_v28, 4  ;;  %v803_v8 = vshrl.u32 %v5392_v3, 16 }
  0x51   : > { %v5446_v33 = vpack.c.b16 %v1142_v7, %v1141_v17  ;;  %v445_v34 = vrot.slane %v444_v22, 4  ;;  %v440_v38 = vsel %vm5289_vm4, %v435_v25, %v439_v13  ;;  %v645_v41 = vrot.slane %v643_v29, 5  ;;  %v5476_v17 = vld [vmem:[%s5269_s10 + $0x24] sm:$0x1] }
  0x52   : > { %v1093_v45 = vunpack.c.l.b16 %v440_v38  ;;  %v631_v2 = vrot.slane %v630_v35, 4  ;;  %v809_v47 = vshll.u32 %v337_v31, 16  ;;  %v640_v50 = vor.u32 %v639_v40, %v635_v12  ;;  %v320_v38 = vld [vmem:[%s5269_s10 + $0x7c] sm:$0xf] }
  0x53   : > { %7117 = vst [vmem:[#allocation8_spill] sm:$0xff] %v5446_v33  ;;  %4519 = vmatmul.msk.bf16.gmra.mxu3 %vm1185_vm3, %v5446_v33  ;;  %v450_v43 = vsel %vm5289_vm4, %v445_v34, %v5441_v46  ;;  %v805_v51 = vrot.slane %v803_v8, 4  ;;  %v813_v52 = vshrl.u32 %v337_v31, 16  ;;  %v819_v3 = vshll.u32 %v338_v42, 16  ;;  %v5492_v8 = vld [vmem:[%s5269_s10 + $0x80] sm:$0xf] }
  0x54   : > { %v1094_v48 = vunpack.c.l.b16 %v450_v43  ;;  %v636_v53 = vsel %vm5289_vm4, %v631_v2, %v635_v12  ;;  %v811_v54 = vrot.slane %v809_v47, 5  ;;  %v641_v58 = vrot.slane %v640_v50, 4 }
  0x55   : > { %v1111_v59 = vunpack.c.l.b16 %v636_v53  ;;  %v806_v60 = vor.u32 %v805_v51, %v5407_v30  ;;  %v815_v61 = vrot.slane %v813_v52, 4  ;;  %v821_v62 = vrot.slane %v819_v3, 5 }
  0x56   : > { %v5462_v57 = vpack.c.b16 %v1094_v48, %v1093_v45  ;;  %v979_v0 = vshrl.u32 %v5403_v26, 16  ;;  %v985_v32 = vshll.u32 %v357_v27, 16  ;;  %v646_v1 = vsel %vm5289_vm4, %v641_v58, %v645_v41  ;;  %v339_v48 = vld [vmem:[%s5269_s10 + $0xc8] sm:$0xf] }
  0x57   : > { %v807_v4 = vrot.slane %v806_v60, 4  ;;  %v989_v6 = vshrl.u32 %v357_v27, 16  ;;  %v995_v9 = vshll.u32 %v358_v20, 16  ;;  %v1112_v10 = vunpack.c.l.b16 %v646_v1 }
  0x58   : > { %4495 = vmatmul.msk.bf16.gmra.mxu0 %vm1185_vm3, %v5462_v57  ;;  %v816_v44 = vor.u32 %v815_v61, %v811_v54  ;;  %v981_v13 = vrot.slane %v979_v0, 4  ;;  %v987_v30 = vrot.slane %v985_v32, 5  ;;  %v451_v28 = vshrl.u32 %v5423_v56, 16  ;;  %v340_v61 = vld [vmem:[%s5269_s10 + $0xcc] sm:$0xf] }
  0x59   : > { %v812_v26 = vsel %vm5289_vm4, %v807_v4, %v811_v54  ;;  %v991_v15 = vrot.slane %v989_v6, 4  ;;  %v997_v16 = vrot.slane %v995_v9, 5  ;;  %v5479_v7 = vpack.c.b16 %v1112_v10, %v1111_v59 }
  0x5a   : > { %v817_v22 = vrot.slane %v816_v44, 4  ;;  %v1127_v23 = vunpack.c.l.b16 %v812_v26  ;;  %v982_v24 = vor.u32 %v981_v13, %v5420_v55  ;;  %v457_v29 = vshll.u32 %v5471_v14, 16  ;;  %v5514_v44 = vld [vmem:[%s5269_s10 + $0xd0] sm:$0xf] }
  0x5b   : > { %7118 = vst [vmem:[#allocation9_spill] sm:$0xff] %v5479_v7  ;;  %v992_v25 = vor.u32 %v991_v15, %v987_v30  ;;  %v461_v31 = vshrl.u32 %v5471_v14, 16  ;;  %4504 = vmatmul.msk.bf16.gmra.mxu1 %vm1185_vm3, %v5479_v7  ;;  %v467_v12 = vshll.u32 %v5476_v17, 16  ;;  %v648_v40 = vshrl.u32 %v319_v18, 16 }
  0x5c   : > { %v822_v34 = vsel %vm5289_vm4, %v817_v22, %v821_v62  ;;  %v983_v35 = vrot.slane %v982_v24, 4  ;;  %v453_v42 = vrot.slane %v451_v28, 4  ;;  %v459_v56 = vrot.slane %v457_v29, 5 }
  0x5d   : > { %v1128_v55 = vunpack.c.l.b16 %v822_v34  ;;  %v993_v41 = vrot.slane %v992_v25, 4  ;;  %v463_v45 = vrot.slane %v461_v31, 4  ;;  %v469_v2 = vrot.slane %v467_v12, 5 }
  0x5e   : > { %v988_v43 = vsel %vm5289_vm4, %v983_v35, %v987_v30  ;;  %v650_v47 = vrot.slane %v648_v40, 4  ;;  %v454_v27 = vor.u32 %v453_v42, %v5441_v46  ;;  %v651_v3 = vshll.u32 %v319_v18, 16  ;;  %v359_v46 = vld [vmem:[%s5269_s10 + $0x118] sm:$0xf]  ;;  %v360_v40 = vld [vmem:[%s5269_s10 + $0x11c] sm:$0xf] }
  0x5f   : > { %v5497_v50 = vpack.c.b16 %v1128_v55, %v1127_v23  ;;  %v998_v51 = vsel %vm5289_vm4, %v993_v41, %v997_v16  ;;  %v1143_v52 = vunpack.c.l.b16 %v988_v43  ;;  %v464_v54 = vor.u32 %v463_v45, %v459_v56  ;;  %v5532_v45 = vld [vmem:[%s5269_s10 + $0x28] sm:$0xf] }
  0x60   : > { %v1144_v53 = vunpack.c.l.b16 %v998_v51  ;;  %v657_v20 = vshll.u32 %v320_v38, 16  ;;  %v455_v58 = vrot.slane %v454_v27, 4  ;;  %v661_v59 = vshrl.u32 %v320_v38, 16 }
  0x61   : > { %4512 = vmatmul.msk.bf16.gmra.mxu2 %vm1185_vm3, %v5497_v50  ;;  %v667_v60 = vshll.u32 %v5492_v8, 16  ;;  %v824_v62 = vshrl.u32 %v339_v48, 16  ;;  %v465_v32 = vrot.slane %v464_v54, 4  ;;  %v653_v1 = vrot.slane %v651_v3, 5 }
  0x62   : > { %v5506_v0 = vpack.c.b16 %v1144_v53, %v1143_v52  ;;  %v659_v4 = vrot.slane %v657_v20, 5  ;;  %v460_v6 = vsel %vm5289_vm4, %v455_v58, %v459_v56  ;;  %v663_v9 = vrot.slane %v661_v59, 4  ;;  %v5529_v56 = vld [vmem:[%s5269_s10 + $0x120] sm:$0xf] }
  0x63   : > { %v5511_v10 = vrot.slane %v667_v60, 5  ;;  %v826_v13 = vrot.slane %v824_v62, 4  ;;  %v470_v30 = vsel %vm5289_vm4, %v465_v32, %v469_v2  ;;  %v1095_v26 = vunpack.c.l.b16 %v460_v6 }
  0x64   : > { %7119 = vst [vmem:[#allocation10_spill] sm:$0xff] %v5506_v0  ;;  %4520 = vmatmul.msk.bf16.gmra.mxu3 %vm1185_vm3, %v5506_v0  ;;  %v654_v15 = vor.u32 %v653_v1, %v650_v47  ;;  %v827_v16 = vshll.u32 %v339_v48, 16  ;;  %v1096_v18 = vunpack.c.l.b16 %v470_v30  ;;  %v664_v22 = vor.u32 %v663_v9, %v659_v4  ;;  %v5546_v1 = vld [vmem:[%s5269_s10 + $0x2c] sm:$0xf] }
  0x65   : > { %v833_v23 = vshll.u32 %v340_v61, 16  ;;  %v837_v24 = vshrl.u32 %v340_v61, 16  ;;  %v843_v29 = vshll.u32 %v5514_v44, 16  ;;  %v1000_v31 = vshrl.u32 %v359_v46, 16 }
  0x66   : > { %v655_v25 = vrot.slane %v654_v15, 4  ;;  %v829_v28 = vrot.slane %v827_v16, 5  ;;  %v5521_v34 = vpack.c.b16 %v1096_v18, %v1095_v26  ;;  %v665_v35 = vrot.slane %v664_v22, 4 }
  0x67   : > { %v835_v12 = vrot.slane %v833_v23, 5  ;;  %v839_v38 = vrot.slane %v837_v24, 4  ;;  %v5526_v42 = vrot.slane %v843_v29, 5  ;;  %v1002_v43 = vrot.slane %v1000_v31, 4  ;;  %v322_v31 = vld [vmem:[%s5269_s10 + $0x84] sm:$0xf] }
  0x68   : > { %v660_v55 = vsel %vm5289_vm4, %v655_v25, %v659_v4  ;;  %v830_v41 = vor.u32 %v829_v28, %v826_v13  ;;  %4496 = vmatmul.msk.bf16.gmra.mxu0 %vm1185_vm3, %v5521_v34  ;;  %v670_v2 = vsel %vm5289_vm4, %v665_v35, %v5511_v10  ;;  %v1003_v51 = vshll.u32 %v359_v46, 16  ;;  %v5549_v4 = vld [vmem:[%s5269_s10 + $0x30] sm:$0xf] }
  0x69   : > { %v1113_v47 = vunpack.c.l.b16 %v660_v55  ;;  %v840_v48 = vor.u32 %v839_v38, %v835_v12  ;;  %v1114_v52 = vunpack.c.l.b16 %v670_v2  ;;  %v1009_v53 = vshll.u32 %v360_v40, 16 }
  0x6a   : > { %v831_v27 = vrot.slane %v830_v41, 4  ;;  %v1013_v54 = vshrl.u32 %v360_v40, 16  ;;  %v1005_v20 = vrot.slane %v1003_v51, 5  ;;  %v1019_v58 = vshll.u32 %v5529_v56, 16  ;;  %v323_v41 = vld [vmem:[%s5269_s10 + $0x88] sm:$0x1] }
  0x6b   : > { %v841_v3 = vrot.slane %v840_v48, 4  ;;  %v472_v59 = vshrl.u32 %v5532_v45, 16  ;;  %v5541_v60 = vpack.c.b16 %v1114_v52, %v1113_v47  ;;  %v1011_v62 = vrot.slane %v1009_v53, 5 }
  0x6c   : > { %v836_v61 = vsel %vm5289_vm4, %v831_v27, %v835_v12  ;;  %v1015_v32 = vrot.slane %v1013_v54, 4  ;;  %v1006_v9 = vor.u32 %v1005_v20, %v1002_v43  ;;  %v5554_v13 = vrot.slane %v1019_v58, 5  ;;  %v342_v20 = vld [vmem:[%s5269_s10 + $0xd4] sm:$0xf] }
  0x6d   : > { %v846_v46 = vsel %vm5289_vm4, %v841_v3, %v5526_v42  ;;  %v1129_v6 = vunpack.c.l.b16 %v836_v61  ;;  %4505 = vmatmul.msk.bf16.gmra.mxu1 %vm1185_vm3, %v5541_v60  ;;  %v474_v15 = vrot.slane %v472_v59, 4  ;;  %v475_v16 = vshll.u32 %v5532_v45, 16 }
  0x6e   : > { %v1130_v30 = vunpack.c.l.b16 %v846_v46  ;;  %v1016_v26 = vor.u32 %v1015_v32, %v1011_v62  ;;  %v1007_v18 = vrot.slane %v1006_v9, 4  ;;  %v481_v22 = vshll.u32 %v5546_v1, 16  ;;  %v343_v9 = vld [vmem:[%s5269_s10 + $0xd8] sm:$0x1] }
  0x6f   : > { %v485_v23 = vshrl.u32 %v5546_v1, 16  ;;  %v491_v24 = vshll.u32 %v5549_v4, 16  ;;  %v477_v29 = vrot.slane %v475_v16, 5  ;;  %v671_v35 = vshrl.u32 %v5492_v8, 16 }
  0x70   : > { %v5562_v25 = vpack.c.b16 %v1130_v30, %v1129_v6  ;;  %v1017_v28 = vrot.slane %v1016_v26, 4  ;;  %v1012_v12 = vsel %vm5289_vm4, %v1007_v18, %v1011_v62  ;;  %v483_v38 = vrot.slane %v481_v22, 5 }
  0x71   : > { %v487_v40 = vrot.slane %v485_v23, 4  ;;  %v5568_v55 = vrot.slane %v491_v24, 5  ;;  %v1145_v2 = vunpack.c.l.b16 %v1012_v12  ;;  %v478_v47 = vor.u32 %v477_v29, %v474_v15 }
  0x72   : > { %4513 = vmatmul.msk.bf16.gmra.mxu2 %vm1185_vm3, %v5562_v25  ;;  %v1022_v43 = vsel %vm5289_vm4, %v1017_v28, %v5554_v13  ;;  %v673_v48 = vrot.slane %v671_v35, 4  ;;  %v677_v52 = vshll.u32 %v322_v31, 16  ;;  %v681_v27 = vshrl.u32 %v322_v31, 16  ;;  %v362_v28 = vld [vmem:[%s5269_s10 + $0x124] sm:$0xf] }
  0x73   : > { %v1146_v8 = vunpack.c.l.b16 %v1022_v43  ;;  %v488_v51 = vor.u32 %v487_v40, %v483_v38  ;;  %v479_v53 = vrot.slane %v478_v47, 4  ;;  %v687_v3 = vshll.u32 %v323_v41, 16  ;;  %v363_v41 = vld [vmem:[%s5269_s10 + $0x128] sm:$0x1] }
  0x74   : > { %v674_v54 = vor.u32 %v673_v48, %v5511_v10  ;;  %v679_v61 = vrot.slane %v677_v52, 5  ;;  %v683_v62 = vrot.slane %v681_v27, 4  ;;  %v847_v30 = vshrl.u32 %v5514_v44, 16 }
  0x75   : > { %v5578_v58 = vpack.c.b16 %v1146_v8, %v1145_v2  ;;  %v489_v59 = vrot.slane %v488_v51, 4  ;;  %v484_v32 = vsel %vm5289_vm4, %v479_v53, %v483_v38  ;;  %v689_v6 = vrot.slane %v687_v3, 5  ;;  %v5602_v3 = vld [vmem:[%s5269_s10 + $0x34] sm:$0xf] }
  0x76   : > { %v675_v46 = vrot.slane %v674_v54, 4  ;;  %v1097_v26 = vunpack.c.l.b16 %v484_v32  ;;  %v684_v15 = vor.u32 %v683_v62, %v679_v61  ;;  %v853_v16 = vshll.u32 %v342_v20, 16  ;;  %v5609_v62 = vld [vmem:[%s5269_s10 + $0x38] sm:$0x1] }
  0x77   : > { %7120 = vst [vmem:[#allocation11_spill] sm:$0xff] %v5578_v58  ;;  %4521 = vmatmul.msk.bf16.gmra.mxu3 %vm1185_vm3, %v5578_v58  ;;  %v494_v10 = vsel %vm5289_vm4, %v489_v59, %v5568_v55  ;;  %v849_v23 = vrot.slane %v847_v30, 4  ;;  %v857_v24 = vshrl.u32 %v342_v20, 16  ;;  %v863_v31 = vshll.u32 %v343_v9, 16 }
  0x78   : > { %v1098_v18 = vunpack.c.l.b16 %v494_v10  ;;  %v680_v22 = vsel %vm5289_vm4, %v675_v46, %v679_v61  ;;  %v685_v29 = vrot.slane %v684_v15, 4  ;;  %v855_v44 = vrot.slane %v853_v16, 5 }
  0x79   : > { %v1115_v12 = vunpack.c.l.b16 %v680_v22  ;;  %v850_v38 = vor.u32 %v849_v23, %v5526_v42  ;;  %v859_v40 = vrot.slane %v857_v24, 4  ;;  %v865_v2 = vrot.slane %v863_v31, 5  ;;  %v324_v23 = vld [vmem:[%s5269_s10 + $0x8c] sm:$0xf] }
  0x7a   : > { %v5592_v35 = vpack.c.b16 %v1098_v18, %v1097_v26  ;;  %v690_v43 = vsel %vm5289_vm4, %v685_v29, %v689_v6  ;;  %v1023_v47 = vshrl.u32 %v5529_v56, 16  ;;  %v1029_v48 = vshll.u32 %v362_v28, 16 }
  0x7b   : > { %v1116_v8 = vunpack.c.l.b16 %v690_v43  ;;  %v851_v51 = vrot.slane %v850_v38, 4  ;;  %v860_v52 = vor.u32 %v859_v40, %v855_v44  ;;  %v1033_v27 = vshrl.u32 %v362_v28, 16 }
  0x7c   : > { %7121 = vst [vmem:[#allocation12_spill] sm:$0xff] %v5592_v35  ;;  %4497 = vmatmul.msk.bf16.gmra.mxu0 %vm1185_vm3, %v5592_v35  ;;  %v1025_v53 = vrot.slane %v1023_v47, 4  ;;  %v1031_v54 = vrot.slane %v1029_v48, 5  ;;  %v1039_v42 = vshll.u32 %v363_v41, 16  ;;  %v495_v9 = vshrl.u32 %v5549_v4, 16 }
  0x7d   : > { %v5604_v20 = vpack.c.b16 %v1116_v8, %v1115_v12  ;;  %v856_v59 = vsel %vm5289_vm4, %v851_v51, %v855_v44  ;;  %v861_v61 = vrot.slane %v860_v52, 4  ;;  %v1035_v56 = vrot.slane %v1033_v27, 4  ;;  %v325_v44 = vld [vmem:[%s5269_s10 + $0x90] sm:$0xf]  ;;  %v5628_v41 = vld [vmem:[%s5269_s10 + $0x94] sm:$0xf] }
  0x7e   : > { %v1131_v32 = vunpack.c.l.b16 %v856_v59  ;;  %v1026_v46 = vor.u32 %v1025_v53, %v5554_v13  ;;  %v1041_v6 = vrot.slane %v1039_v42, 5  ;;  %v501_v26 = vshll.u32 %v5602_v3, 16  ;;  %v344_v59 = vld [vmem:[%s5269_s10 + $0xdc] sm:$0xf] }
  0x7f   : > { %4506 = vmatmul.msk.bf16.gmra.mxu1 %vm1185_vm3, %v5604_v20  ;;  %v866_v30 = vsel %vm5289_vm4, %v861_v61, %v865_v2  ;;  %v1036_v10 = vor.u32 %v1035_v56, %v1031_v54  ;;  %v505_v15 = vshrl.u32 %v5602_v3, 16  ;;  %v497_v22 = vrot.slane %v495_v9, 4  ;;  %v5642_v9 = vld [vmem:[%s5269_s10 + $0xe4] sm:$0xf] }
  0x80   : > { %v1132_v16 = vunpack.c.l.b16 %v866_v30  ;;  %v1027_v18 = vrot.slane %v1026_v46, 4  ;;  %v511_v13 = vshll.u32 %v5609_v62, 16  ;;  %v503_v28 = vrot.slane %v501_v26, 5 }
  0x81   : > { %v1037_v24 = vrot.slane %v1036_v10, 4  ;;  %v507_v29 = vrot.slane %v505_v15, 4  ;;  %v498_v38 = vor.u32 %v497_v22, %v5568_v55  ;;  %v692_v48 = vshrl.u32 %v324_v23, 16 }
  0x82   : > { %v5622_v31 = vpack.c.b16 %v1132_v16, %v1131_v32  ;;  %v1032_v12 = vsel %vm5289_vm4, %v1027_v18, %v1031_v54  ;;  %v513_v40 = vrot.slane %v511_v13, 5  ;;  %v695_v52 = vshll.u32 %v324_v23, 16 }
  0x83   : > { %v1042_v43 = vsel %vm5289_vm4, %v1037_v24, %v1041_v6  ;;  %v1147_v2 = vunpack.c.l.b16 %v1032_v12  ;;  %v508_v47 = vor.u32 %v507_v29, %v503_v28  ;;  %v499_v51 = vrot.slane %v498_v38, 4  ;;  %v345_v6 = vld [vmem:[%s5269_s10 + $0xe0] sm:$0xf] }
  0x84   : > { %7122 = vst [vmem:[#allocation13_spill] sm:$0xff] %v5622_v31  ;;  %4514 = vmatmul.msk.bf16.gmra.mxu2 %vm1185_vm3, %v5622_v31  ;;  %v1148_v8 = vunpack.c.l.b16 %v1042_v43  ;;  %v701_v27 = vshll.u32 %v325_v44, 16  ;;  %v694_v53 = vrot.slane %v692_v48, 4  ;;  %v705_v54 = vshrl.u32 %v325_v44, 16  ;;  %v364_v44 = vld [vmem:[%s5269_s10 + $0x12c] sm:$0xf] }
  0x85   : > { %v509_v55 = vrot.slane %v508_v47, 4  ;;  %v711_v42 = vshll.u32 %v5628_v41, 16  ;;  %v504_v56 = vsel %vm5289_vm4, %v499_v51, %v503_v28  ;;  %v697_v32 = vrot.slane %v695_v52, 5 }
  0x86   : > { %v5636_v61 = vpack.c.b16 %v1148_v8, %v1147_v2  ;;  %v703_v46 = vrot.slane %v701_v27, 5  ;;  %v1099_v10 = vunpack.c.l.b16 %v504_v56  ;;  %v707_v26 = vrot.slane %v705_v54, 4  ;;  %v365_v2 = vld [vmem:[%s5269_s10 + $0x130] sm:$0xf] }
  0x87   : > { %v514_v30 = vsel %vm5289_vm4, %v509_v55, %v513_v40  ;;  %v5646_v15 = vrot.slane %v711_v42, 5  ;;  %v698_v18 = vor.u32 %v697_v32, %v694_v53  ;;  %v868_v22 = vshrl.u32 %v344_v59, 16  ;;  %v5662_v55 = vld [vmem:[%s5269_s10 + $0x134] sm:$0xf] }
  0x88   : > { %7123 = vst [vmem:[#allocation14_spill] sm:$0xff] %v5636_v61  ;;  %4522 = vmatmul.msk.bf16.gmra.mxu3 %vm1185_vm3, %v5636_v61  ;;  %v1100_v16 = vunpack.c.l.b16 %v514_v30  ;;  %v871_v13 = vshll.u32 %v344_v59, 16  ;;  %v708_v23 = vor.u32 %v707_v26, %v703_v46  ;;  %v877_v24 = vshll.u32 %v345_v6, 16 }
  0x89   : > { %v881_v28 = vshrl.u32 %v345_v6, 16  ;;  %v887_v29 = vshll.u32 %v5642_v9, 16  ;;  %v699_v38 = vrot.slane %v698_v18, 4  ;;  %v870_v40 = vrot.slane %v868_v22, 4  ;;  %v5668_v6 = vld [vmem:[%s5269_s10 + $0x3c] sm:$0xf] }
  0x8a   : > { %v5652_v12 = vpack.c.b16 %v1100_v16, %v1099_v10  ;;  %v873_v43 = vrot.slane %v871_v13, 5  ;;  %v709_v47 = vrot.slane %v708_v23, 4  ;;  %v879_v48 = vrot.slane %v877_v24, 5 }
  0x8b   : > { %v883_v8 = vrot.slane %v881_v28, 4  ;;  %v5655_v51 = vrot.slane %v887_v29, 5  ;;  %v704_v52 = vsel %vm5289_vm4, %v699_v38, %v703_v46  ;;  %v1044_v53 = vshrl.u32 %v364_v44, 16  ;;  %v5676_v29 = vld [vmem:[%s5269_s10 + $0x40] sm:$0xf] }
  0x8c   : > { %7124 = vst [vmem:[#allocation15_spill] sm:$0xff] %v5652_v12  ;;  %4498 = vmatmul.msk.bf16.gmra.mxu0 %vm1185_vm3, %v5652_v12  ;;  %v874_v27 = vor.u32 %v873_v43, %v870_v40  ;;  %v1047_v54 = vshll.u32 %v364_v44, 16  ;;  %v714_v42 = vsel %vm5289_vm4, %v709_v47, %v5646_v15  ;;  %v1117_v59 = vunpack.c.l.b16 %v704_v52  ;;  %v5679_v44 = vld [vmem:[%s5269_s10 + $0x44] sm:$0xf] }
  0x8d   : > { %v884_v56 = vor.u32 %v883_v8, %v879_v48  ;;  %v1053_v32 = vshll.u32 %v365_v2, 16  ;;  %v1118_v30 = vunpack.c.l.b16 %v714_v42  ;;  %v1046_v26 = vrot.slane %v1044_v53, 4 }
  0x8e   : > { %v875_v10 = vrot.slane %v874_v27, 4  ;;  %v1049_v46 = vrot.slane %v1047_v54, 5  ;;  %v1057_v22 = vshrl.u32 %v365_v2, 16  ;;  %v1063_v13 = vshll.u32 %v5662_v55, 16 }
  0x8f   : > { %v885_v16 = vrot.slane %v884_v56, 4  ;;  %v1055_v18 = vrot.slane %v1053_v32, 5  ;;  %v5671_v23 = vpack.c.b16 %v1118_v30, %v1117_v59  ;;  %v516_v38 = vshrl.u32 %v5668_v6, 16  ;;  %v5694_v56 = vld [vmem:[%s5269_s10 + $0x98] sm:$0xf] }
  0x90   : > { %v880_v24 = vsel %vm5289_vm4, %v875_v10, %v879_v48  ;;  %v1050_v28 = vor.u32 %v1049_v46, %v1046_v26  ;;  %v1059_v2 = vrot.slane %v1057_v22, 4  ;;  %v5685_v47 = vrot.slane %v1063_v13, 5  ;;  %v5701_v26 = vld [vmem:[%s5269_s10 + $0x9c] sm:$0x1] }
  0x91   : > { %v890_v40 = vsel %vm5289_vm4, %v885_v16, %v5655_v51  ;;  %v1133_v43 = vunpack.c.l.b16 %v880_v24  ;;  %4507 = vmatmul.msk.bf16.gmra.mxu1 %vm1185_vm3, %v5671_v23  ;;  %v518_v52 = vrot.slane %v516_v38, 4  ;;  %v519_v27 = vshll.u32 %v5668_v6, 16 }
  0x92   : > { %v1134_v48 = vunpack.c.l.b16 %v890_v40  ;;  %v1051_v8 = vrot.slane %v1050_v28, 4  ;;  %v1060_v53 = vor.u32 %v1059_v2, %v1055_v18  ;;  %v525_v54 = vshll.u32 %v5676_v29, 16 }
  0x93   : > { %v529_v42 = vshrl.u32 %v5676_v29, 16  ;;  %v535_v59 = vshll.u32 %v5679_v44, 16  ;;  %v521_v10 = vrot.slane %v519_v27, 5  ;;  %v715_v46 = vshrl.u32 %v5628_v41, 16 }
  0x94   : > { %v5696_v32 = vpack.c.b16 %v1134_v48, %v1133_v43  ;;  %v1056_v30 = vsel %vm5289_vm4, %v1051_v8, %v1055_v18  ;;  %v1061_v16 = vrot.slane %v1060_v53, 4  ;;  %v527_v13 = vrot.slane %v525_v54, 5  ;;  %v347_v54 = vld [vmem:[%s5269_s10 + $0xe8] sm:$0xf] }
  0x95   : > { %v1149_v22 = vunpack.c.l.b16 %v1056_v30  ;;  %v531_v24 = vrot.slane %v529_v42, 4  ;;  %v522_v28 = vor.u32 %v521_v10, %v518_v52  ;;  %v5706_v38 = vrot.slane %v535_v59, 5 }
  0x96   : > { %7125 = vst [vmem:[#allocation16_spill] sm:$0xff] %v5696_v32  ;;  %4515 = vmatmul.msk.bf16.gmra.mxu2 %vm1185_vm3, %v5696_v32  ;;  %v717_v40 = vrot.slane %v715_v46, 4  ;;  %v721_v43 = vshll.u32 %v5694_v56, 16  ;;  %v1066_v18 = vsel %vm5289_vm4, %v1061_v16, %v5685_v47  ;;  %v725_v2 = vshrl.u32 %v5694_v56, 16 }
  0x97   : > { %v532_v41 = vor.u32 %v531_v24, %v527_v13  ;;  %v731_v48 = vshll.u32 %v5701_v26, 16  ;;  %v1150_v8 = vunpack.c.l.b16 %v1066_v18  ;;  %v523_v27 = vrot.slane %v522_v28, 4  ;;  %v348_v24 = vld [vmem:[%s5269_s10 + $0xec] sm:$0x1] }
  0x98   : > { %v718_v53 = vor.u32 %v717_v40, %v5646_v15  ;;  %v723_v52 = vrot.slane %v721_v43, 5  ;;  %v727_v59 = vrot.slane %v725_v2, 4  ;;  %v891_v61 = vshrl.u32 %v5642_v9, 16  ;;  %v367_v2 = vld [vmem:[%s5269_s10 + $0x138] sm:$0xf] }
  0x99   : > { %v533_v42 = vrot.slane %v532_v41, 4  ;;  %v733_v30 = vrot.slane %v731_v48, 5  ;;  %v5716_v10 = vpack.c.b16 %v1150_v8, %v1149_v22  ;;  %v528_v46 = vsel %vm5289_vm4, %v523_v27, %v527_v13 }
  0x9a   : > { %v719_v16 = vrot.slane %v718_v53, 4  ;;  %v1101_v15 = vunpack.c.l.b16 %v528_v46  ;;  %v728_v40 = vor.u32 %v727_v59, %v723_v52  ;;  %v897_v43 = vshll.u32 %v347_v54, 16  ;;  %v368_v46 = vld [vmem:[%s5269_s10 + $0x13c] sm:$0x1] }
  0x9b   : > { %7126 = vst [vmem:[#allocation17_spill] sm:$0xff] %v5716_v10  ;;  %v538_v28 = vsel %vm5289_vm4, %v533_v42, %v5706_v38  ;;  %4523 = vmatmul.msk.bf16.gmra.mxu3 %vm1185_vm3, %v5716_v10  ;;  %v893_v13 = vrot.slane %v891_v61, 4  ;;  %v901_v41 = vshrl.u32 %v347_v54, 16  ;;  %v907_v8 = vshll.u32 %v348_v24, 16 }
  0x9c   : > { %v1102_v22 = vunpack.c.l.b16 %v538_v28  ;;  %v724_v18 = vsel %vm5289_vm4, %v719_v16, %v723_v52  ;;  %v729_v48 = vrot.slane %v728_v40, 4  ;;  %v899_v9 = vrot.slane %v897_v43, 5 }
  0x9d   : > { %v1119_v53 = vunpack.c.l.b16 %v724_v18  ;;  %v894_v42 = vor.u32 %v893_v13, %v5655_v51  ;;  %v903_v59 = vrot.slane %v901_v41, 4  ;;  %v909_v10 = vrot.slane %v907_v8, 5 }
  0x9e   : > { %v5730_v27 = vpack.c.b16 %v1102_v22, %v1101_v15  ;;  %v734_v28 = vsel %vm5289_vm4, %v729_v48, %v733_v30  ;;  %v1067_v52 = vshrl.u32 %v5662_v55, 16  ;;  %v1073_v61 = vshll.u32 %v367_v2, 16  ;;  %v5740_v22 = vld [vmem:[%s5269_s10 + $0x48] sm:$0xf]  ;;  %v5749_v48 = vld [vmem:[%s5269_s10 + $0x4c] sm:$0x1] }
  0x9f   : > { %v1120_v54 = vunpack.c.l.b16 %v734_v28  ;;  %v895_v16 = vrot.slane %v894_v42, 4  ;;  %v904_v24 = vor.u32 %v903_v59, %v899_v9  ;;  %v1077_v15 = vshrl.u32 %v367_v2, 16 }
  0xa0   : > { %7127 = vst [vmem:[#allocation18_spill] sm:$0xff] %v5730_v27  ;;  %4499 = vmatmul.msk.bf16.gmra.mxu0 %vm1185_vm3, %v5730_v27  ;;  %v1069_v40 = vrot.slane %v1067_v52, 4  ;;  %v1075_v43 = vrot.slane %v1073_v61, 5  ;;  %v1083_v51 = vshll.u32 %v368_v46, 16  ;;  %v539_v59 = vshrl.u32 %v5679_v44, 16 }
  0xa1   : > { %v5744_v30 = vpack.c.b16 %v1120_v54, %v1119_v53  ;;  %v900_v55 = vsel %vm5289_vm4, %v895_v16, %v899_v9  ;;  %v905_v13 = vrot.slane %v904_v24, 4  ;;  %v1079_v41 = vrot.slane %v1077_v15, 4 }
  0xa2   : > { %v1135_v8 = vunpack.c.l.b16 %v900_v55  ;;  %v1070_v42 = vor.u32 %v1069_v40, %v5685_v47  ;;  %v1085_v2 = vrot.slane %v1083_v51, 5  ;;  %v545_v28 = vshll.u32 %v5740_v22, 16 }
  0xa3   : > { %v5742_v18 = vpop.f32.mrf.mxu1  ;;  %4508 = vmatmul.msk.bf16.gmra.mxu1 %vm1185_vm3, %v5744_v30  ;;  %v910_v53 = vsel %vm5289_vm4, %v905_v13, %v909_v10  ;;  %v1080_v46 = vor.u32 %v1079_v41, %v1075_v43  ;;  %v549_v9 = vshrl.u32 %v5740_v22, 16  ;;  %v541_v54 = vrot.slane %v539_v59, 4  ;;  %v4842_v13 = vld [vmem:[%s7046_s2 + $0xc] sm:$0x3] }
  0xa4   : > { %v1136_v52 = vunpack.c.l.b16 %v910_v53  ;;  %v1071_v61 = vrot.slane %v1070_v42, 4  ;;  %v555_v16 = vshll.u32 %v5749_v48, 16  ;;  %v547_v24 = vrot.slane %v545_v28, 5 }
  0xa5   : > { %v1081_v47 = vrot.slane %v1080_v46, 4  ;;  %v551_v15 = vrot.slane %v549_v9, 4  ;;  %v542_v10 = vor.u32 %v541_v54, %v5706_v38  ;;  %v4809_v38 = vld [vmem:[%s7046_s2 + $0xa] sm:$0x3]  ;;  %v5043_v46 = vld [vmem:[%s5269_s10] sm:$0xf] }
  0xa6   : > { %v5760_v40 = vpack.c.b16 %v1136_v52, %v1135_v8  ;;  %v1076_v51 = vsel %vm5289_vm4, %v1071_v61, %v1075_v43  ;;  %v557_v55 = vrot.slane %v555_v16, 5  ;;  %v4883_v8 = vld [vmem:[%s7046_s2 + $0xe] sm:$0x3]  ;;  %v5044_v52 = vld [vmem:[%s5269_s10 + $0x4] sm:$0xf] }
  0xa7   : > { %v1086_v41 = vsel %vm5289_vm4, %v1081_v47, %v1085_v2  ;;  %v1151_v42 = vunpack.c.l.b16 %v1076_v51  ;;  %v552_v59 = vor.u32 %v551_v15, %v547_v24  ;;  %v543_v53 = vrot.slane %v542_v10, 4  ;;  %v5045_v54 = vld [vmem:[%s5269_s10 + $0x8] sm:$0xf]  ;;  %v4917_v15 = vld [vmem:[%s7046_s2 + $0x10] sm:$0x3] }
  0xa8   : > { %7128 = vst [vmem:[#allocation19_spill] sm:$0xff] %v5760_v40  ;;  %4516 = vmatmul.msk.bf16.gmra.mxu2 %vm1185_vm3, %v5760_v40  ;;  %v1152_v43 = vunpack.c.l.b16 %v1086_v41  ;;  %v4685_v2 = vrot.slane %v5043_v46, 9  ;;  %v1904_v61 = vrot.slane %v5044_v52, 5  ;;  %v1907_v16 = vrot.slane %v5045_v54, 5 }
  0xa9   : > { %v553_v9 = vrot.slane %v552_v59, 4  ;;  %v3371_v47 = vsel %vm1282_vm0, %v4842_v13, 0  ;;  %v548_v10 = vsel %vm5289_vm4, %v543_v53, %v547_v24  ;;  %v3665_v59 = vsel %vm1282_vm0, %v4883_v8, 0 }
  0xaa   : > { %v5787_v51 = vpack.c.b16 %v1152_v43, %v1151_v42  ;;  %3380 = vmatpush.bf16.msra.mxu2 %v3371_v47  ;;  %v3117_v13 = vsel %vm1282_vm0, %v4809_v38, 0  ;;  %v1103_v43 = vunpack.c.l.b16 %v548_v10  ;;  %v1906_v52 = vrot.slane %v1904_v61, 4  ;;  %3674 = vmatpush.bf16.msra.mxu3 %v3665_v59  ;;  %v4959_v47 = vld [vmem:[%s5269_s10] sm:$0xff] }
  0xab   : > { %v5779_v28 = vpop.f32.mrf.mxu1  ;;  %v558_v42 = vsel %vm5289_vm4, %v553_v9, %v557_v55  ;;  %3126 = vmatpush.bf16.msra.mxu1 %v3117_v13  ;;  %v3929_v53 = vsel %vm1282_vm0, %v4917_v15, 0  ;;  %v1905_v8 = vsel %vm5792_vm7, %v4685_v2, %v1904_v61  ;;  %v5046_v13 = vld [vmem:[%s5269_s10 + $0xc] sm:$0xf] }
  0xac   : > { %7129 = vst [vmem:[#allocation20_spill] sm:$0xff] %v5787_v51  ;;  %4524 = vmatmul.msk.bf16.gmra.mxu3 %vm1185_vm3, %v5787_v51  ;;  %v1104_v24 = vunpack.c.l.b16 %v558_v42  ;;  %v1908_v38 = vsel %vm5792_vm7, %v1906_v52, %v1907_v16  ;;  %3938 = vmatpush.bf16.msra.mxu0 %v3929_v53  ;;  %v2112_v15 = vunpack.c.l.b16 %v1905_v8  ;;  %v1910_v42 = vrot.slane %v5046_v13, 5  ;;  %v4961_v52 = vld [vmem:[%s5269_s10 + $0x14] sm:$0xff] }
  0xad   : > { %v5797_v46 = vpop.f32.mrf.mxu2  ;;  %v2113_v10 = vunpack.c.l.b16 %v1908_v38  ;;  %v1909_v53 = vrot.slane %v1907_v16, 4  ;;  %v5047_v38 = vld [vmem:[%s5269_s10 + $0x10] sm:$0x1]  ;;  %v4960_v16 = vld [vmem:[%s5269_s10 + $0x8] sm:$0xff] }
  0xae   : > { %7132 = vst [vmem:[#allocation21_spill] sm:$0xff] %v5797_v46  ;;  %v5809_v55 = vpack.c.b16 %v1104_v24, %v1103_v43  ;;  %v1912_v8 = vrot.slane %v1910_v42, 4 }
  0xaf   : > { %v2176_v61 = vpack.c.b16 %v2113_v10, %v2112_v15 }
  0xb0   : > { %7133 = vst [vmem:[#allocation22_spill] sm:$0xff] %v5809_v55  ;;  %4500 = vmatmul.msk.bf16.gmra.mxu0 %vm1185_vm3, %v5809_v55 }
  0xb1   : > { %v5811_v9 = vpop.f32.mrf.mxu0  ;;  %v5813_v54 = vpop.f32.mrf.mxu3 }
  0xb2   : > { %7134 = vst [vmem:[#allocation23_spill] sm:$0xff] %v5813_v54  ;;  %v1913_v54 = vrot.slane %v5047_v38, 5 }
  0xb3   : > { %4653 = vmatmul.msk.bf16.vlgmr.msrb.gmra.mxu1 %vm1185_vm3, %v4959_v47  ;;  %v1911_v47 = vsel %vm5792_vm7, %v1909_v53, %v1910_v42 }
  0xb4   : > { %v1914_v15 = vsel %vm5792_vm7, %v1912_v8, %v1913_v54  ;;  %v5048_v54 = vld [vmem:[%s5269_s10 + $0x18] sm:$0xf]  ;;  %v4962_v8 = vld [vmem:[%s5269_s10 + $0x1c] sm:$0xff] }
  0xb5   : > { %v5818_v59 = vpop.f32.mrf.mxu2  ;;  %v5820_v2 = vpop.f32.mrf.mxu1  ;;  %v2115_v13 = vunpack.c.l.b16 %v1914_v15  ;;  %v1917_v53 = vrot.slane %v5048_v54, 5  ;;  %v5050_v15 = vld [vmem:[%s5269_s10 + $0x1c] sm:$0xf] }
  0xb6   : > { %7135 = vst [vmem:[#allocation24_spill] sm:$0xff] %v5818_v59  ;;  %v1920_v59 = vrot.slane %v5050_v15, 5 }
  0xb8   : > { %4702 = vmatmul.msk.bf16.vlgmr.msrb.gmra.mxu2 %vm1185_vm3, %v2176_v61  ;;  %v2114_v61 = vunpack.c.l.b16 %v1911_v47  ;;  %v1919_v47 = vrot.slane %v1917_v53, 4 }
  0xb9   : > { %v5824_v43 = vpop.f32.mrf.mxu0  ;;  %v5828_v24 = vpop.f32.mrf.mxu3 }
  0xba   : > { %7136 = vst [vmem:[#allocation25_spill] sm:$0xff] %v5828_v24  ;;  %v2177_v24 = vpack.c.b16 %v2115_v13, %v2114_v61  ;;  %v1921_v61 = vsel %vm5792_vm7, %v1919_v47, %v1920_v59  ;;  %v4963_v47 = vld [vmem:[%s5269_s10 + $0x28] sm:$0xff] }
  0xbc   : > { %4743 = vmatmul.msk.bf16.vlgmr.msrb.gmra.mxu3 %vm1185_vm3, %v4961_v52 }
  0xbd   : > { %v5831_v36 = vpop.f32.mrf.mxu1 }
  0xbe   : > { %v5833_v51 = vpop.f32.mrf.mxu2 }
  0xbf   : > { %7137 = vst [vmem:[#allocation26_spill] sm:$0xff] %v5833_v51 }
  0xc0   : > { %4776 = vmatmul.msk.bf16.vlgmr.msrb.gmra.mxu0 %vm1185_vm3, %v5462_v57  ;;  %v5049_v57 = vld [vmem:[%s5269_s10 + $0x14] sm:$0xf] }
  0xc1   : > { %v5840_v10 = vpop.f32.mrf.mxu0  ;;  %v4686_v51 = vrot.slane %v5049_v57, 9  ;;  %v2117_v57 = vunpack.c.l.b16 %v1921_v61  ;;  %v1926_v61 = vrot.slane %v5476_v17, 5 }
  0xc3   : > { %4654 = vmatmul.msk.bf16.gmra.mxu1 %vm1185_vm3, %v4960_v16  ;;  %v1918_v16 = vsel %vm5792_vm7, %v4686_v51, %v1917_v53  ;;  %v1923_v51 = vrot.slane %v5471_v14, 5 }
  0xc4   : > { %v5845_v38 = vpop.f32.mrf.mxu3  ;;  %v2116_v54 = vunpack.c.l.b16 %v1918_v16 }
  0xc5   : > { %7138 = vst [vmem:[#allocation27_spill] sm:$0xff] %v5845_v38  ;;  %v1925_v16 = vrot.slane %v1923_v51, 4 }
  0xc6   : > { %v5848_v58 = vpop.f32.mrf.mxu1  ;;  %v5850_v42 = vpop.f32.mrf.mxu2 }
  0xc7   : > { %7139 = vst [vmem:[#allocation28_spill] sm:$0xff] %v5850_v42  ;;  %v5877_v42 = vpack.c.b16 %v2117_v57, %v2116_v54  ;;  %v1927_v54 = vsel %vm5792_vm7, %v1925_v16, %v1926_v61  ;;  %v4687_v61 = vrot.slane %v5532_v45, 9 }
  0xc8   : > { %4703 = vmatmul.msk.bf16.gmra.mxu2 %vm1185_vm3, %v2177_v24  ;;  %v2119_v17 = vunpack.c.l.b16 %v1927_v54  ;;  %v1933_v54 = vrot.slane %v5549_v4, 5 }
  0xc9   : > { %v5855_v0 = vpop.f32.mrf.mxu0  ;;  %7143 = vst [vmem:[#allocation32_spill] sm:$0xff] %v5877_v42 }
  0xcc   : > { %v5859_v38 = vpop.f32.mrf.mxu3  ;;  %4744 = vmatmul.msk.bf16.gmra.mxu3 %vm1185_vm3, %v4962_v8 }
  0xcd   : > { %7140 = vst [vmem:[#allocation29_spill] sm:$0xff] %v5859_v38 }
  0xce   : > { %v5866_v24 = vpop.f32.mrf.mxu1 }
  0xd0   : > { %4777 = vmatmul.msk.bf16.gmra.mxu0 %vm1185_vm3, %v5521_v34  ;;  %v1922_v34 = vrot.slane %v1920_v59, 4 }
  0xd1   : > { %v5868_v13 = vpop.f32.mrf.mxu2 }
  0xd2   : > { %7141 = vst [vmem:[#allocation30_spill] sm:$0xff] %v5868_v13  ;;  %v1924_v14 = vsel %vm5792_vm7, %v1922_v34, %v1923_v51  ;;  %v1930_v51 = vrot.slane %v5546_v1, 5  ;;  %v4964_v34 = vld [vmem:[%s5269_s10 + $0x30] sm:$0xff] }
  0xd3   : > { %4655 = vmatmul.msk.bf16.gmra.mxu1 %vm1185_vm3, %v4961_v52  ;;  %v2118_v59 = vunpack.c.l.b16 %v1924_v14 }
  0xd4   : > { %v1932_v14 = vrot.slane %v1930_v51, 4  ;;  %v1931_v1 = vsel %vm5792_vm7, %v4687_v61, %v1930_v51  ;;  %v1936_v51 = vrot.slane %v5602_v3, 5 }
  0xd5   : > { %v5872_v15 = vpop.f32.mrf.mxu0  ;;  %v2120_v45 = vunpack.c.l.b16 %v1931_v1  ;;  %v1939_v1 = vrot.slane %v5609_v62, 5 }
  0xd6   : > { %v5875_v38 = vpop.f32.mrf.mxu3 }
  0xd7   : > { %7142 = vst [vmem:[#allocation31_spill] sm:$0xff] %v5875_v38 }
  0xd8   : > { %v5880_v53 = vpop.f32.mrf.mxu1  ;;  %4704 = vmatmul.msk.bf16.gmra.mxu2 %vm1185_vm3, %v5877_v42  ;;  %v5906_v42 = vpack.c.b16 %v2119_v17, %v2118_v59  ;;  %v1934_v17 = vsel %vm5792_vm7, %v1932_v14, %v1933_v54  ;;  %v4965_v14 = vld [vmem:[%s5269_s10 + $0x3c] sm:$0xff] }
  0xd9   : > { %v5885_v13 = vpop.f32.mrf.mxu2  ;;  %v2121_v4 = vunpack.c.l.b16 %v1934_v17  ;;  %v1935_v17 = vrot.slane %v1933_v54, 4 }
  0xda   : > { %7144 = vst [vmem:[#allocation33_spill] sm:$0xff] %v5885_v13 }
  0xdb   : > { %7147 = vst [vmem:[#allocation36_spill] sm:$0xff] %v5906_v42  ;;  %v1937_v3 = vsel %vm5792_vm7, %v1935_v17, %v1936_v51 }
  0xdc   : > { %4745 = vmatmul.msk.bf16.gmra.mxu3 %vm1185_vm3, %v4963_v47  ;;  %v2122_v54 = vunpack.c.l.b16 %v1937_v3 }
  0xdd   : > { %v5888_v33 = vpop.f32.mrf.mxu0 }
  0xde   : > { %v5890_v52 = vpop.f32.mrf.mxu3 }
  0xdf   : > { %7145 = vst [vmem:[#allocation34_spill] sm:$0xff] %v5890_v52 }
  0xe0   : > { %v5897_v57 = vpop.f32.mrf.mxu1  ;;  %4778 = vmatmul.msk.bf16.gmra.mxu0 %vm1185_vm3, %v5592_v35 }
  0xe3   : > { %4656 = vmatmul.msk.bf16.gmra.mxu1 %vm1185_vm3, %v4962_v8 }
  0xe4   : > { %v5901_v38 = vpop.f32.mrf.mxu2 }
  0xe5   : > { %7146 = vst [vmem:[#allocation35_spill] sm:$0xff] %v5901_v38  ;;  %v5904_v52 = vpop.f32.mrf.mxu0 }
  0xe7   : > { %v5908_v13 = vpop.f32.mrf.mxu3 }
  0xe8   : > { %7148 = vst [vmem:[#allocation37_spill] sm:$0xff] %v5908_v13  ;;  %4705 = vmatmul.msk.bf16.gmra.mxu2 %vm1185_vm3, %v5906_v42 }
  0xea   : > { %v5914_v16 = vpop.f32.mrf.mxu1 }
  0xec   : > { %v5918_v8 = vpop.f32.mrf.mxu2  ;;  %4746 = vmatmul.msk.bf16.gmra.mxu3 %vm1185_vm3, %v4964_v34 }
  0xed   : > { %7149 = vst [vmem:[#allocation38_spill] sm:$0xff] %v5918_v8  ;;  %v5921_v59 = vpop.f32.mrf.mxu0  ;;  %v5936_v8 = vpack.c.b16 %v2121_v4, %v2120_v45 }
  0xef   : > { %v5927_v13 = vpop.f32.mrf.mxu3  ;;  %7152 = vst [vmem:[#allocation41_spill] sm:$0xff] %v5936_v8 }
  0xf0   : > { %7150 = vst [vmem:[#allocation39_spill] sm:$0xff] %v5927_v13  ;;  %4779 = vmatmul.msk.bf16.gmra.mxu0 %vm1185_vm3, %v5652_v12  ;;  %v1938_v12 = vrot.slane %v1936_v51, 4  ;;  %v1943_v51 = vrot.slane %v5676_v29, 5 }
  0xf2   : > { %v5931_v42 = vpop.f32.mrf.mxu1  ;;  %v1940_v45 = vsel %vm5792_vm7, %v1938_v12, %v1939_v1  ;;  %v4966_v1 = vld [vmem:[%s5269_s10 + $0x44] sm:$0xff]  ;;  %v1945_v3 = vrot.slane %v1943_v51, 4 }
  0xf3   : > { %4657 = vmatmul.msk.bf16.gmra.mxu1 %vm1185_vm3, %v4963_v47 }
  0xf5   : > { %v5934_v35 = vpop.f32.mrf.mxu2 }
  0xf6   : > { %7151 = vst [vmem:[#allocation40_spill] sm:$0xff] %v5934_v35 }
  0xf8   : > { %4706 = vmatmul.msk.bf16.gmra.mxu2 %vm1185_vm3, %v5936_v8 }
  0xf9   : > { %v5939_v61 = vpop.f32.mrf.mxu0 }
  0xfa   : > { %v5944_v13 = vpop.f32.mrf.mxu3 }
  0xfb   : > { %7153 = vst [vmem:[#allocation42_spill] sm:$0xff] %v5944_v13  ;;  %v2123_v13 = vunpack.c.l.b16 %v1940_v45  ;;  %v1946_v45 = vrot.slane %v5679_v44, 5 }
  0xfc   : > { %v5947_v38 = vpop.f32.mrf.mxu1  ;;  %4747 = vmatmul.msk.bf16.gmra.mxu3 %vm1185_vm3, %v4965_v14 }
  0xfd   : > { %v5950_v47 = vpop.f32.mrf.mxu2  ;;  %v5963_v8 = vpack.c.b16 %v2123_v13, %v2122_v54  ;;  %v1947_v13 = vsel %vm5792_vm7, %v1945_v3, %v1946_v45  ;;  %v4967_v3 = vld [vmem:[%s5269_s10 + $0x50] sm:$0xff] }
  0xfe   : > { %7154 = vst [vmem:[#allocation43_spill] sm:$0xff] %v5950_v47  ;;  %v2125_v44 = vunpack.c.l.b16 %v1947_v13  ;;  %v1948_v13 = vrot.slane %v1946_v45, 4 }
  0xff   : > { %7156 = vst [vmem:[#allocation45_spill] sm:$0xff] %v5963_v8 }
 0x100   : > { %4780 = vmatmul.msk.bf16.gmra.mxu0 %vm1185_vm3, %v5730_v27 }
 0x101   : > { %v5956_v4 = vpop.f32.mrf.mxu0 }
 0x102   : > { %v5960_v62 = vpop.f32.mrf.mxu3 }
 0x103   : > { %7155 = vst [vmem:[#allocation44_spill] sm:$0xff] %v5960_v62  ;;  %4658 = vmatmul.msk.bf16.gmra.mxu1 %vm1185_vm3, %v4964_v34  ;;  %v4688_v62 = vrot.slane %v5668_v6, 9 }
 0x104   : > { %v5965_v47 = vpop.f32.mrf.mxu1 }
 0x105   : > { %v1944_v29 = vsel %vm5792_vm7, %v4688_v62, %v1943_v51  ;;  %v1949_v62 = vrot.slane %v5740_v22, 5 }
 0x106   : > { %v2124_v6 = vunpack.c.l.b16 %v1944_v29  ;;  %v1952_v29 = vrot.slane %v5749_v48, 5 }
 0x107   : > { %v5968_v17 = vpop.f32.mrf.mxu2  ;;  %v1950_v22 = vsel %vm5792_vm7, %v1948_v13, %v1949_v62 }
 0x108   : > { %7157 = vst [vmem:[#allocation46_spill] sm:$0xff] %v5968_v17  ;;  %4707 = vmatmul.msk.bf16.gmra.mxu2 %vm1185_vm3, %v5963_v8  ;;  %v5995_v17 = vpack.c.b16 %v2125_v44, %v2124_v6  ;;  %v2126_v45 = vunpack.c.l.b16 %v1950_v22  ;;  %v5052_v22 = vld [vmem:[%s5269_s10 + $0x50] sm:$0xf] }
 0x109   : > { %v5970_v12 = vpop.f32.mrf.mxu0 }
 0x10a   : > { %7161 = vst [vmem:[#allocation50_spill] sm:$0xff] %v5995_v17 }
 0x10b   : > { %v5977_v34 = vpop.f32.mrf.mxu3 }
 0x10c   : > { %7158 = vst [vmem:[#allocation47_spill] sm:$0xff] %v5977_v34  ;;  %4748 = vmatmul.msk.bf16.gmra.mxu3 %vm1185_vm3, %v4966_v1 }
 0x10e   : > { %v5986_v27 = vpop.f32.mrf.mxu1 }
 0x10f   : > { %v5984_v54 = vpop.f32.mrf.mxu2 }
 0x110   : > { %7159 = vst [vmem:[#allocation48_spill] sm:$0xff] %v5984_v54  ;;  %4781 = vmatmul.msk.bf16.gmra.mxu0 %vm1185_vm3, %v5809_v55  ;;  %v1951_v55 = vrot.slane %v1949_v62, 4 }
 0x111   : > { %v5990_v8 = vpop.f32.mrf.mxu0 }
 0x112   : > { %v1953_v6 = vsel %vm5792_vm7, %v1951_v55, %v1952_v29  ;;  %v5051_v55 = vld [vmem:[%s5269_s10 + $0x54] sm:$0xf] }
 0x113   : > { %4659 = vmatmul.msk.bf16.gmra.mxu1 %vm1185_vm3, %v4965_v14  ;;  %v5993_v34 = vpop.f32.mrf.mxu3  ;;  %v1956_v29 = vrot.slane %v5051_v55, 5 }
 0x114   : > { %7160 = vst [vmem:[#allocation49_spill] sm:$0xff] %v5993_v34  ;;  %v2127_v34 = vunpack.c.l.b16 %v1953_v6  ;;  %v4689_v6 = vrot.slane %v5052_v22, 9 }
 0x115   : > { %v1958_v35 = vrot.slane %v1956_v29, 4 }
 0x116   : > { %v5998_v51 = vpop.f32.mrf.mxu1  ;;  %v6024_v62 = vpack.c.b16 %v2127_v34, %v2126_v45  ;;  %v1957_v45 = vsel %vm5792_vm7, %v4689_v6, %v1956_v29  ;;  %v5054_v29 = vld [vmem:[%s5269_s10 + $0x5c] sm:$0xf] }
 0x117   : > { %7162 = vst [vmem:[#allocation51_spill] sm:$0xff] %v5998_v51  ;;  %v2128_v22 = vunpack.c.l.b16 %v1957_v45  ;;  %v1962_v6 = vrot.slane %v5054_v29, 5 }
 0x118   : > { %4708 = vmatmul.msk.bf16.gmra.mxu2 %vm1185_vm3, %v5995_v17  ;;  %7167 = vst [vmem:[#allocation56_spill] sm:$0xff] %v6024_v62 }
 0x119   : > { %v6003_v54 = vpop.f32.mrf.mxu2  ;;  %v1964_v51 = vrot.slane %v1962_v6, 4 }
 0x11a   : > { %7163 = vst [vmem:[#allocation52_spill] sm:$0xff] %v6003_v54 }
 0x11c   : > { %4749 = vmatmul.msk.bf16.gmra.mxu3 %vm1185_vm3, %v4967_v3 }
 0x11d   : > { %v6006_v14 = vpop.f32.mrf.mxu0 }
 0x11e   : > { %v6013_v44 = vpop.f32.mrf.mxu3 }
 0x11f   : > { %7164 = vst [vmem:[#allocation53_spill] sm:$0xff] %v6013_v44  ;;  %v4968_v44 = vld [vmem:[%s5269_s10 + $0x58] sm:$0xff] }
 0x120   : > { %4782 = vmatmul.msk.bf16.gmra.mxu0 %vm1185_vm3, %v5305_v63  ;;  %v6017_v48 = vpop.f32.mrf.mxu1 }
 0x121   : > { %7165 = vst [vmem:[#allocation54_spill] sm:$0xff] %v6017_v48  ;;  %v6019_v17 = vpop.f32.mrf.mxu2  ;;  %v5055_v48 = vld [vmem:[%s5269_s10 + $0x60] sm:$0x1] }
 0x122   : > { %7166 = vst [vmem:[#allocation55_spill] sm:$0xff] %v6019_v17  ;;  %v5053_v17 = vld [vmem:[%s5269_s10 + $0x58] sm:$0xf]  ;;  %v1965_v45 = vrot.slane %v5055_v48, 5 }
 0x123   : > { %4660 = vmatmul.msk.bf16.gmra.mxu1 %vm1185_vm3, %v4966_v1  ;;  %v1959_v1 = vrot.slane %v5053_v17, 5 }
 0x125   : > { %v6022_v54 = vpop.f32.mrf.mxu0  ;;  %v1960_v55 = vsel %vm5792_vm7, %v1958_v35, %v1959_v1 }
 0x126   : > { %v6027_v13 = vpop.f32.mrf.mxu3 }
 0x127   : > { %7168 = vst [vmem:[#allocation57_spill] sm:$0xff] %v6027_v13 }
 0x128   : > { %4709 = vmatmul.msk.bf16.gmra.mxu2 %vm1185_vm3, %v6024_v62  ;;  %v6032_v63 = vpop.f32.mrf.mxu1  ;;  %v2129_v62 = vunpack.c.l.b16 %v1960_v55  ;;  %v1961_v55 = vrot.slane %v1959_v1, 4 }
 0x129   : > { %7169 = vst [vmem:[#allocation58_spill] sm:$0xff] %v6032_v63 }
 0x12a   : > { %v6052_v63 = vpack.c.b16 %v2129_v62, %v2128_v22  ;;  %v1963_v29 = vsel %vm5792_vm7, %v1961_v55, %v1962_v6  ;;  %v5056_v55 = vld [vmem:[%s5269_s10 + $0x68] sm:$0xf] }
 0x12b   : > { %v6036_v46 = vpop.f32.mrf.mxu2 }
 0x12c   : > { %7170 = vst [vmem:[#allocation59_spill] sm:$0xff] %v6036_v46  ;;  %4750 = vmatmul.msk.bf16.gmra.mxu3 %vm1185_vm3, %v4968_v44 }
 0x12d   : > { %v6039_v34 = vpop.f32.mrf.mxu0  ;;  %7173 = vst [vmem:[#allocation62_spill] sm:$0xff] %v6052_v63 }
 0x12f   : > { %v6045_v13 = vpop.f32.mrf.mxu3 }
 0x130   : > { %7171 = vst [vmem:[#allocation60_spill] sm:$0xff] %v6045_v13  ;;  %4783 = vmatmul.msk.bf16.gmra.mxu0 %vm1185_vm3, %v5361_v21  ;;  %v1723_v17 = vpop.f32.mrf.mxu1  ;;  %v4969_v13 = vld [vmem:[%s5269_s10 + $0x64] sm:$0xff] }
 0x133   : > { %v6049_v46 = vpop.f32.mrf.mxu2  ;;  %4661 = vmatmul.msk.bf16.gmra.mxu1 %vm1185_vm3, %v4967_v3 }
 0x134   : > { %7172 = vst [vmem:[#allocation61_spill] sm:$0xff] %v6049_v46  ;;  %v1724_v46 = vadd.f32 %v1723_v17, %v5811_v9  ;;  %v2130_v9 = vunpack.c.l.b16 %v1963_v29 }
 0x135   : > { %v6054_v5 = vpop.f32.mrf.mxu0 }
 0x137   : > { %v6057_v35 = vpop.f32.mrf.mxu3 }
 0x138   : > { %7174 = vst [vmem:[#allocation63_spill] sm:$0xff] %v6057_v35  ;;  %4710 = vmatmul.msk.bf16.gmra.mxu2 %vm1185_vm3, %v6052_v63  ;;  %v1725_v21 = vpop.f32.mrf.mxu1  ;;  %v1966_v35 = vsel %vm5792_vm7, %v1964_v51, %v1965_v45 }
 0x139   : > { %v2131_v17 = vunpack.c.l.b16 %v1966_v35  ;;  %v4970_v35 = vld [vmem:[%s5269_s10 + $0x6c] sm:$0xff] }
 0x13b   : > { %v2316_v3 = vpop.f32.mrf.mxu2  ;;  %v6075_v51 = vpack.c.b16 %v2131_v17, %v2130_v9 }
 0x13c   : > { %4751 = vmatmul.msk.bf16.gmra.mxu3 %vm1185_vm3, %v4969_v13  ;;  %v2476_v62 = vadd.f32 %v2316_v3, %v1724_v46  ;;  %v1726_v46 = vadd.f32 %v1725_v21, %v5824_v43  ;;  %v5057_v21 = vld [vmem:[%s5269_s10 + $0x64] sm:$0xf] }
 0x13d   : > { %v2864_v22 = vpop.f32.mrf.mxu0  ;;  %v4690_v43 = vrot.slane %v5057_v21, 9 }
 0x13f   : > { %v2570_v63 = vpop.f32.mrf.mxu3 }
 0x140   : > { %4784 = vmatmul.msk.bf16.gmra.mxu0 %vm1185_vm3, %v5415_v49  ;;  %v2730_v48 = vadd.f32 %v2570_v63, %v2476_v62  ;;  %v1728_v1 = vpop.f32.mrf.mxu1  ;;  %v1969_v49 = vrot.slane %v5056_v55, 5 }
 0x142   : > { %v6072_v3 = vadd.f32 %v2864_v22, %v2730_v48  ;;  %v1971_v22 = vrot.slane %v1969_v49, 4  ;;  %v5058_v48 = vld [vmem:[%s5269_s10 + $0x6c] sm:$0xf] }
 0x143   : > { %v2318_v39 = vpop.f32.mrf.mxu2  ;;  %4662 = vmatmul.msk.bf16.gmra.mxu1 %vm1185_vm3, %v4968_v44  ;;  %v1729_v44 = vadd.f32 %v1728_v1, %v5840_v10 }
 0x144   : > { %7175 = vst [vmem:[#allocation64_spill] sm:$0xff] %v6072_v3  ;;  %v2477_v6 = vadd.f32 %v2318_v39, %v1726_v46  ;;  %v1972_v3 = vrot.slane %v5058_v48, 5 }
 0x145   : > { %v2866_v45 = vpop.f32.mrf.mxu0 }
 0x146   : > { %v1973_v55 = vsel %vm5792_vm7, %v1971_v22, %v1972_v3 }
 0x147   : > { %v2572_v63 = vpop.f32.mrf.mxu3 }
 0x148   : > { %v2731_v62 = vadd.f32 %v2572_v63, %v2477_v6  ;;  %4711 = vmatmul.msk.bf16.gmra.mxu2 %vm1185_vm3, %v6075_v51  ;;  %v1730_v29 = vpop.f32.mrf.mxu1  ;;  %v1970_v6 = vsel %vm5792_vm7, %v4690_v43, %v1969_v49 }
 0x149   : > { %v2132_v1 = vunpack.c.l.b16 %v1970_v6  ;;  %v4971_v6 = vld [vmem:[%s5269_s10 + $0x78] sm:$0xff] }
 0x14a   : > { %v6084_v39 = vadd.f32 %v2866_v45, %v2731_v62  ;;  %v2133_v45 = vunpack.c.l.b16 %v1973_v55  ;;  %v1731_v62 = vadd.f32 %v1730_v29, %v5855_v0  ;;  %v1974_v29 = vrot.slane %v1972_v3, 4 }
 0x14b   : > { %v2321_v9 = vpop.f32.mrf.mxu2 }
 0x14c   : > { %7176 = vst [vmem:[#allocation65_spill] sm:$0xff] %v6084_v39  ;;  %4752 = vmatmul.msk.bf16.gmra.mxu3 %vm1185_vm3, %v4970_v35  ;;  %v2478_v17 = vadd.f32 %v2321_v9, %v1729_v44  ;;  %v6097_v43 = vpack.c.b16 %v2133_v45, %v2132_v1  ;;  %v5059_v9 = vld [vmem:[%s5269_s10 + $0x70] sm:$0xf] }
 0x14d   : > { %v2869_v46 = vpop.f32.mrf.mxu0  ;;  %v1975_v39 = vrot.slane %v5059_v9, 5 }
 0x14f   : > { %v2575_v63 = vpop.f32.mrf.mxu3 }
 0x150   : > { %4785 = vmatmul.msk.bf16.gmra.mxu0 %vm1185_vm3, %v5479_v7  ;;  %v2732_v21 = vadd.f32 %v2575_v63, %v2478_v17  ;;  %v1733_v10 = vpop.f32.mrf.mxu1  ;;  %v5060_v63 = vld [vmem:[%s5269_s10 + $0x74] sm:$0x1] }
 0x151   : > { %v1978_v0 = vrot.slane %v5060_v63, 5 }
 0x152   : > { %v6094_v48 = vadd.f32 %v2869_v46, %v2732_v21  ;;  %v1977_v46 = vrot.slane %v1975_v39, 4  ;;  %v1734_v21 = vadd.f32 %v1733_v10, %v5872_v15 }
 0x153   : > { %v2323_v44 = vpop.f32.mrf.mxu2  ;;  %4663 = vmatmul.msk.bf16.gmra.mxu1 %vm1185_vm3, %v4969_v13 }
 0x154   : > { %v2479_v49 = vadd.f32 %v2323_v44, %v1731_v62  ;;  %v1979_v44 = vsel %vm5792_vm7, %v1977_v46, %v1978_v0  ;;  %v5061_v46 = vld [vmem:[%s5269_s10 + $0x7c] sm:$0xf] }
 0x155   : > { %v2871_v22 = vpop.f32.mrf.mxu0 }
 0x157   : > { %v2577_v7 = vpop.f32.mrf.mxu3 }
 0x158   : > { %v2733_v17 = vadd.f32 %v2577_v7, %v2479_v49  ;;  %4712 = vmatmul.msk.bf16.gmra.mxu2 %vm1185_vm3, %v6097_v43  ;;  %v1735_v55 = vpop.f32.mrf.mxu1  ;;  %v1976_v7 = vsel %vm5792_vm7, %v1974_v29, %v1975_v39 }
 0x159   : > { %v2134_v10 = vunpack.c.l.b16 %v1976_v7  ;;  %v1736_v9 = vadd.f32 %v1735_v55, %v5888_v33  ;;  %v4972_v7 = vld [vmem:[%s5269_s10 + $0x80] sm:$0xff]  ;;  %v5062_v33 = vld [vmem:[%s5269_s10 + $0x78] sm:$0xf] }
 0x15a   : > { %v6105_v13 = vadd.f32 %v2871_v22, %v2733_v17  ;;  %v2135_v22 = vunpack.c.l.b16 %v1979_v44  ;;  %v4691_v55 = vrot.slane %v5062_v33, 9 }
 0x15b   : > { %v2326_v1 = vpop.f32.mrf.mxu2 }
 0x15c   : > { %4753 = vmatmul.msk.bf16.gmra.mxu3 %vm1185_vm3, %v4971_v6  ;;  %v2480_v45 = vadd.f32 %v2326_v1, %v1734_v21  ;;  %v6118_v0 = vpack.c.b16 %v2135_v22, %v2134_v10  ;;  %v1982_v21 = vrot.slane %v5061_v46, 5 }
 0x15d   : > { %v2874_v62 = vpop.f32.mrf.mxu0 }
 0x15f   : > { %v2580_v49 = vpop.f32.mrf.mxu3 }
 0x160   : > { %4786 = vmatmul.msk.bf16.gmra.mxu0 %vm1185_vm3, %v5541_v60  ;;  %v2734_v3 = vadd.f32 %v2580_v49, %v2480_v45  ;;  %v1738_v15 = vpop.f32.mrf.mxu1  ;;  %v5063_v49 = vld [vmem:[%s5269_s10 + $0x80] sm:$0xf] }
 0x162   : > { %v6115_v17 = vadd.f32 %v2874_v62, %v2734_v3  ;;  %v1984_v62 = vrot.slane %v1982_v21, 4  ;;  %v1985_v3 = vrot.slane %v5063_v49, 5 }
 0x163   : > { %v2328_v63 = vpop.f32.mrf.mxu2  ;;  %4664 = vmatmul.msk.bf16.gmra.mxu1 %vm1185_vm3, %v4970_v35  ;;  %v1739_v35 = vadd.f32 %v1738_v15, %v5904_v52 }
 0x164   : > { %7177 = vst [vmem:[#allocation66_spill] sm:$0xff] %v6115_v17  ;;  %v2481_v39 = vadd.f32 %v2328_v63, %v1736_v9  ;;  %v1986_v46 = vsel %vm5792_vm7, %v1984_v62, %v1985_v3 }
 0x165   : > { %v2876_v29 = vpop.f32.mrf.mxu0 }
 0x167   : > { %v2582_v1 = vpop.f32.mrf.mxu3 }
 0x168   : > { %v2735_v45 = vadd.f32 %v2582_v1, %v2481_v39  ;;  %4713 = vmatmul.msk.bf16.gmra.mxu2 %vm1185_vm3, %v6118_v0  ;;  %v1740_v44 = vpop.f32.mrf.mxu1  ;;  %v1983_v39 = vsel %vm5792_vm7, %v4691_v55, %v1982_v21 }
 0x169   : > { %v2136_v15 = vunpack.c.l.b16 %v1983_v39  ;;  %v4973_v39 = vld [vmem:[%s5269_s10 + $0x8c] sm:$0xff] }
 0x16a   : > { %v6127_v9 = vadd.f32 %v2876_v29, %v2735_v45  ;;  %v2137_v29 = vunpack.c.l.b16 %v1986_v46  ;;  %v1741_v45 = vadd.f32 %v1740_v44, %v5921_v59  ;;  %v1987_v44 = vrot.slane %v1985_v3, 4 }
 0x16b   : > { %v2331_v10 = vpop.f32.mrf.mxu2 }
 0x16c   : > { %7178 = vst [vmem:[#allocation67_spill] sm:$0xff] %v6127_v9  ;;  %4754 = vmatmul.msk.bf16.gmra.mxu3 %vm1185_vm3, %v4972_v7  ;;  %v2482_v22 = vadd.f32 %v2331_v10, %v1739_v35  ;;  %v6140_v55 = vpack.c.b16 %v2137_v29, %v2136_v15  ;;  %v5064_v10 = vld [vmem:[%s5269_s10 + $0x84] sm:$0xf] }
 0x16d   : > { %v2879_v63 = vpop.f32.mrf.mxu0  ;;  %v1988_v9 = vrot.slane %v5064_v10, 5 }
 0x16f   : > { %v2585_v1 = vpop.f32.mrf.mxu3 }
 0x170   : > { %4787 = vmatmul.msk.bf16.gmra.mxu0 %vm1185_vm3, %v5604_v20  ;;  %v2736_v33 = vadd.f32 %v2585_v1, %v2482_v22  ;;  %v1743_v52 = vpop.f32.mrf.mxu1  ;;  %v5065_v1 = vld [vmem:[%s5269_s10 + $0x88] sm:$0x1] }
 0x171   : > { %v1991_v59 = vrot.slane %v5065_v1, 5 }
 0x172   : > { %v6137_v49 = vadd.f32 %v2879_v63, %v2736_v33  ;;  %v1990_v63 = vrot.slane %v1988_v9, 4  ;;  %v1744_v33 = vadd.f32 %v1743_v52, %v5939_v61 }
 0x173   : > { %v2333_v35 = vpop.f32.mrf.mxu2  ;;  %4665 = vmatmul.msk.bf16.gmra.mxu1 %vm1185_vm3, %v4971_v6 }
 0x174   : > { %v2483_v21 = vadd.f32 %v2333_v35, %v1741_v45  ;;  %v1992_v35 = vsel %vm5792_vm7, %v1990_v63, %v1991_v59  ;;  %v5066_v63 = vld [vmem:[%s5269_s10 + $0x90] sm:$0xf] }
 0x175   : > { %v2881_v62 = vpop.f32.mrf.mxu0 }
 0x177   : > { %v2587_v17 = vpop.f32.mrf.mxu3 }
 0x178   : > { %v2737_v22 = vadd.f32 %v2587_v17, %v2483_v21  ;;  %4714 = vmatmul.msk.bf16.gmra.mxu2 %vm1185_vm3, %v6140_v55  ;;  %v1745_v46 = vpop.f32.mrf.mxu1  ;;  %v1989_v17 = vsel %vm5792_vm7, %v1987_v44, %v1988_v9 }
 0x179   : > { %v2138_v52 = vunpack.c.l.b16 %v1989_v17  ;;  %v1746_v10 = vadd.f32 %v1745_v46, %v5956_v4  ;;  %v4974_v17 = vld [vmem:[%s5269_s10 + $0x94] sm:$0xff]  ;;  %v5067_v4 = vld [vmem:[%s5269_s10 + $0x8c] sm:$0xf] }
 0x17a   : > { %v6148_v6 = vadd.f32 %v2881_v62, %v2737_v22  ;;  %v2139_v62 = vunpack.c.l.b16 %v1992_v35  ;;  %v4692_v46 = vrot.slane %v5067_v4, 9 }
 0x17b   : > { %v2336_v15 = vpop.f32.mrf.mxu2 }
 0x17c   : > { %4755 = vmatmul.msk.bf16.gmra.mxu3 %vm1185_vm3, %v4973_v39  ;;  %v2484_v29 = vadd.f32 %v2336_v15, %v1744_v33  ;;  %v6161_v59 = vpack.c.b16 %v2139_v62, %v2138_v52  ;;  %v1995_v33 = vrot.slane %v5066_v63, 5 }
 0x17d   : > { %v2884_v45 = vpop.f32.mrf.mxu0 }
 0x17f   : > { %v2590_v21 = vpop.f32.mrf.mxu3 }
 0x180   : > { %4788 = vmatmul.msk.bf16.gmra.mxu0 %vm1185_vm3, %v5671_v23  ;;  %v2738_v3 = vadd.f32 %v2590_v21, %v2484_v29  ;;  %v1748_v61 = vpop.f32.mrf.mxu1  ;;  %v5068_v21 = vld [vmem:[%s5269_s10 + $0x94] sm:$0xf] }
 0x182   : > { %v6158_v22 = vadd.f32 %v2884_v45, %v2738_v3  ;;  %v1997_v45 = vrot.slane %v1995_v33, 4  ;;  %v1998_v3 = vrot.slane %v5068_v21, 5 }
 0x183   : > { %v2338_v1 = vpop.f32.mrf.mxu2  ;;  %4666 = vmatmul.msk.bf16.gmra.mxu1 %vm1185_vm3, %v4972_v7  ;;  %v1749_v7 = vadd.f32 %v1748_v61, %v5970_v12 }
 0x184   : > { %7179 = vst [vmem:[#allocation68_spill] sm:$0xff] %v6158_v22  ;;  %v2485_v9 = vadd.f32 %v2338_v1, %v1746_v10  ;;  %v1999_v63 = vsel %vm5792_vm7, %v1997_v45, %v1998_v3 }
 0x185   : > { %v2886_v44 = vpop.f32.mrf.mxu0 }
 0x187   : > { %v2592_v15 = vpop.f32.mrf.mxu3 }
 0x188   : > { %v2739_v29 = vadd.f32 %v2592_v15, %v2485_v9  ;;  %4715 = vmatmul.msk.bf16.gmra.mxu2 %vm1185_vm3, %v6161_v59  ;;  %v1750_v35 = vpop.f32.mrf.mxu1  ;;  %v1996_v9 = vsel %vm5792_vm7, %v4692_v46, %v1995_v33 }
 0x189   : > { %v2140_v61 = vunpack.c.l.b16 %v1996_v9 }
 0x18a   : > { %v6170_v10 = vadd.f32 %v2886_v44, %v2739_v29  ;;  %v2141_v44 = vunpack.c.l.b16 %v1999_v63  ;;  %v1751_v29 = vadd.f32 %v1750_v35, %v5990_v8  ;;  %v2004_v8 = vrot.slane %v5701_v26, 5 }
 0x18b   : > { %v2341_v52 = vpop.f32.mrf.mxu2  ;;  %v2000_v35 = vrot.slane %v1998_v3, 4 }
 0x18c   : > { %7180 = vst [vmem:[#allocation69_spill] sm:$0xff] %v6170_v10  ;;  %4756 = vmatmul.msk.bf16.gmra.mxu3 %vm1185_vm3, %v4974_v17  ;;  %v2486_v62 = vadd.f32 %v2341_v52, %v1749_v7  ;;  %v6183_v46 = vpack.c.b16 %v2141_v44, %v2140_v61  ;;  %v2001_v52 = vrot.slane %v5694_v56, 5 }
 0x18d   : > { %v2889_v1 = vpop.f32.mrf.mxu0 }
 0x18f   : > { %v2595_v15 = vpop.f32.mrf.mxu3 }
 0x190   : > { %4789 = vmatmul.msk.bf16.gmra.mxu0 %vm1185_vm3, %v5744_v30  ;;  %v2740_v4 = vadd.f32 %v2595_v15, %v2486_v62  ;;  %v1753_v12 = vpop.f32.mrf.mxu1  ;;  %v4975_v62 = vld [vmem:[%s5269_s10 + $0xa0] sm:$0xff] }
 0x191   : > { %v1754_v63 = vadd.f32 %v1753_v12, %v6006_v14 }
 0x192   : > { %v6180_v21 = vadd.f32 %v2889_v1, %v2740_v4  ;;  %v2003_v1 = vrot.slane %v2001_v52, 4 }
 0x193   : > { %v2343_v7 = vpop.f32.mrf.mxu2  ;;  %4667 = vmatmul.msk.bf16.gmra.mxu1 %vm1185_vm3, %v4973_v39 }
 0x194   : > { %v2487_v33 = vadd.f32 %v2343_v7, %v1751_v29  ;;  %v2005_v61 = vsel %vm5792_vm7, %v2003_v1, %v2004_v8  ;;  %v5069_v8 = vld [vmem:[%s5269_s10 + $0xa4] sm:$0xf] }
 0x195   : > { %v2891_v45 = vpop.f32.mrf.mxu0  ;;  %v2143_v3 = vunpack.c.l.b16 %v2005_v61 }
 0x197   : > { %v2597_v10 = vpop.f32.mrf.mxu3 }
 0x198   : > { %v2741_v22 = vadd.f32 %v2597_v10, %v2487_v33  ;;  %4716 = vmatmul.msk.bf16.gmra.mxu2 %vm1185_vm3, %v6183_v46  ;;  %v1755_v9 = vpop.f32.mrf.mxu1  ;;  %v2002_v10 = vsel %vm5792_vm7, %v2000_v35, %v2001_v52  ;;  %v2008_v35 = vrot.slane %v5069_v8, 5 }
 0x199   : > { %v1756_v12 = vadd.f32 %v1755_v9, %v6022_v54  ;;  %v5070_v54 = vld [vmem:[%s5269_s10 + $0xa0] sm:$0xf] }
 0x19a   : > { %v6191_v39 = vadd.f32 %v2891_v45, %v2741_v22  ;;  %v2142_v22 = vunpack.c.l.b16 %v2002_v10  ;;  %v4693_v9 = vrot.slane %v5070_v54, 9  ;;  %v5071_v10 = vld [vmem:[%s5269_s10 + $0xa8] sm:$0xf] }
 0x19b   : > { %v2346_v15 = vpop.f32.mrf.mxu2  ;;  %v2011_v61 = vrot.slane %v5071_v10, 5  ;;  %v5072_v10 = vld [vmem:[%s5269_s10 + $0xac] sm:$0xf] }
 0x19c   : > { %4757 = vmatmul.msk.bf16.gmra.mxu3 %vm1185_vm3, %v4975_v62  ;;  %v2488_v4 = vadd.f32 %v2346_v15, %v1754_v63  ;;  %v6204_v45 = vpack.c.b16 %v2143_v3, %v2142_v22  ;;  %v4976_v15 = vld [vmem:[%s5269_s10 + $0xa8] sm:$0xff] }
 0x19d   : > { %v2894_v56 = vpop.f32.mrf.mxu0 }
 0x19f   : > { %v2600_v44 = vpop.f32.mrf.mxu3 }
 0x1a0   : > { %4790 = vmatmul.msk.bf16.gmra.mxu0 %vm1185_vm3, %v5323_v19  ;;  %v2742_v26 = vadd.f32 %v2600_v44, %v2488_v4  ;;  %v1758_v14 = vpop.f32.mrf.mxu1 }
 0x1a2   : > { %v6201_v29 = vadd.f32 %v2894_v56, %v2742_v26  ;;  %v2010_v56 = vrot.slane %v2008_v35, 4 }
 0x1a3   : > { %v2348_v7 = vpop.f32.mrf.mxu2  ;;  %4668 = vmatmul.msk.bf16.gmra.mxu1 %vm1185_vm3, %v4974_v17  ;;  %v1759_v17 = vadd.f32 %v1758_v14, %v6039_v34 }
 0x1a4   : > { %v2489_v33 = vadd.f32 %v2348_v7, %v1756_v12  ;;  %v2009_v12 = vsel %vm5792_vm7, %v4693_v9, %v2008_v35  ;;  %v2012_v7 = vsel %vm5792_vm7, %v2010_v56, %v2011_v61 }
 0x1a5   : > { %v2896_v52 = vpop.f32.mrf.mxu0  ;;  %v2144_v14 = vunpack.c.l.b16 %v2009_v12  ;;  %v4977_v12 = vld [vmem:[%s5269_s10 + $0xb4] sm:$0xff] }
 0x1a7   : > { %v2602_v1 = vpop.f32.mrf.mxu3 }
 0x1a8   : > { %v2743_v63 = vadd.f32 %v2602_v1, %v2489_v33  ;;  %4717 = vmatmul.msk.bf16.gmra.mxu2 %vm1185_vm3, %v6204_v45  ;;  %v1760_v4 = vpop.f32.mrf.mxu1 }
 0x1a9   : > { %v1761_v1 = vadd.f32 %v1760_v4, %v6054_v5  ;;  %v2013_v4 = vrot.slane %v2011_v61, 4 }
 0x1aa   : > { %v6213_v44 = vadd.f32 %v2896_v52, %v2743_v63  ;;  %v2145_v52 = vunpack.c.l.b16 %v2012_v7 }
 0x1ab   : > { %v2351_v26 = vpop.f32.mrf.mxu2 }
 0x1ac   : > { %4758 = vmatmul.msk.bf16.gmra.mxu3 %vm1185_vm3, %v4976_v15  ;;  %v2490_v22 = vadd.f32 %v2351_v26, %v1759_v17  ;;  %v6226_v9 = vpack.c.b16 %v2145_v52, %v2144_v14  ;;  %v2014_v17 = vrot.slane %v5072_v10, 5 }
 0x1ad   : > { %v2899_v3 = vpop.f32.mrf.mxu0 }
 0x1af   : > { %v2605_v33 = vpop.f32.mrf.mxu3 }
 0x1b0   : > { %4791 = vmatmul.msk.bf16.gmra.mxu0 %vm1185_vm3, %v5370_v37  ;;  %v2744_v8 = vadd.f32 %v2605_v33, %v2490_v22  ;;  %v1763_v34 = vpop.f32.mrf.mxu1  ;;  %v5073_v33 = vld [vmem:[%s5269_s10 + $0xb0] sm:$0x1] }
 0x1b1   : > { %v2017_v5 = vrot.slane %v5073_v33, 5 }
 0x1b2   : > { %v6223_v63 = vadd.f32 %v2899_v3, %v2744_v8  ;;  %v2016_v3 = vrot.slane %v2014_v17, 4  ;;  %v1764_v8 = vadd.f32 %v1763_v34, %v5742_v18 }
 0x1b3   : > { %v2353_v54 = vpop.f32.mrf.mxu2  ;;  %4669 = vmatmul.msk.bf16.gmra.mxu1 %vm1185_vm3, %v4975_v62 }
 0x1b4   : > { %v2491_v35 = vadd.f32 %v2353_v54, %v1761_v1  ;;  %v2015_v54 = vsel %vm5792_vm7, %v2013_v4, %v2014_v17 }
 0x1b5   : > { %v2901_v56 = vpop.f32.mrf.mxu0  ;;  %v2146_v34 = vunpack.c.l.b16 %v2015_v54  ;;  %v4978_v54 = vld [vmem:[%s5269_s10 + $0xbc] sm:$0xff] }
 0x1b7   : > { %v2607_v26 = vpop.f32.mrf.mxu3 }
 0x1b8   : > { %v2745_v22 = vadd.f32 %v2607_v26, %v2491_v35  ;;  %4718 = vmatmul.msk.bf16.gmra.mxu2 %vm1185_vm3, %v6226_v9  ;;  %v1765_v7 = vpop.f32.mrf.mxu1  ;;  %v2018_v35 = vsel %vm5792_vm7, %v2016_v3, %v2017_v5  ;;  %v5074_v3 = vld [vmem:[%s5269_s10 + $0xb8] sm:$0xf] }
 0x1b9   : > { %v1766_v26 = vadd.f32 %v1765_v7, %v5779_v28  ;;  %v5075_v28 = vld [vmem:[%s5269_s10 + $0xb4] sm:$0xf] }
 0x1ba   : > { %v6234_v62 = vadd.f32 %v2901_v56, %v2745_v22  ;;  %v2147_v56 = vunpack.c.l.b16 %v2018_v35  ;;  %v4694_v7 = vrot.slane %v5075_v28, 9 }
 0x1bb   : > { %v2356_v14 = vpop.f32.mrf.mxu2 }
 0x1bc   : > { %4759 = vmatmul.msk.bf16.gmra.mxu3 %vm1185_vm3, %v4977_v12  ;;  %v2492_v52 = vadd.f32 %v2356_v14, %v1764_v8  ;;  %v6247_v5 = vpack.c.b16 %v2147_v56, %v2146_v34  ;;  %v2021_v8 = vrot.slane %v5074_v3, 5 }
 0x1bd   : > { %v2904_v1 = vpop.f32.mrf.mxu0 }
 0x1bf   : > { %v2610_v10 = vpop.f32.mrf.mxu3 }
 0x1c0   : > { %4792 = vmatmul.msk.bf16.gmra.mxu0 %vm1185_vm3, %v5433_v11  ;;  %v2746_v61 = vadd.f32 %v2610_v10, %v2492_v52  ;;  %v1768_v18 = vpop.f32.mrf.mxu1  ;;  %v5076_v10 = vld [vmem:[%s5269_s10 + $0xbc] sm:$0xf] }
 0x1c2   : > { %v6244_v22 = vadd.f32 %v2904_v1, %v2746_v61  ;;  %v2023_v1 = vrot.slane %v2021_v8, 4  ;;  %v2024_v61 = vrot.slane %v5076_v10, 5 }
 0x1c3   : > { %v2358_v33 = vpop.f32.mrf.mxu2  ;;  %4670 = vmatmul.msk.bf16.gmra.mxu1 %vm1185_vm3, %v4976_v15  ;;  %v1769_v15 = vadd.f32 %v1768_v18, %v5820_v2 }
 0x1c4   : > { %7181 = vst [vmem:[#allocation70_spill] sm:$0xff] %v6244_v22  ;;  %v2493_v17 = vadd.f32 %v2358_v33, %v1766_v26  ;;  %v2025_v3 = vsel %vm5792_vm7, %v2023_v1, %v2024_v61 }
 0x1c5   : > { %v2906_v4 = vpop.f32.mrf.mxu0 }
 0x1c7   : > { %v2612_v14 = vpop.f32.mrf.mxu3 }
 0x1c8   : > { %v2747_v52 = vadd.f32 %v2612_v14, %v2493_v17  ;;  %4719 = vmatmul.msk.bf16.gmra.mxu2 %vm1185_vm3, %v6247_v5  ;;  %v1770_v35 = vpop.f32.mrf.mxu1  ;;  %v2022_v17 = vsel %vm5792_vm7, %v4694_v7, %v2021_v8 }
 0x1c9   : > { %v2148_v18 = vunpack.c.l.b16 %v2022_v17  ;;  %v4979_v17 = vld [vmem:[%s5269_s10 + $0xc8] sm:$0xff] }
 0x1ca   : > { %v6256_v26 = vadd.f32 %v2906_v4, %v2747_v52  ;;  %v2149_v4 = vunpack.c.l.b16 %v2025_v3  ;;  %v1771_v52 = vadd.f32 %v1770_v35, %v5831_v36  ;;  %v2026_v35 = vrot.slane %v2024_v61, 4 }
 0x1cb   : > { %v2361_v34 = vpop.f32.mrf.mxu2 }
 0x1cc   : > { %7182 = vst [vmem:[#allocation71_spill] sm:$0xff] %v6256_v26  ;;  %4760 = vmatmul.msk.bf16.gmra.mxu3 %vm1185_vm3, %v4978_v54  ;;  %v2494_v56 = vadd.f32 %v2361_v34, %v1769_v15  ;;  %v6269_v7 = vpack.c.b16 %v2149_v4, %v2148_v18  ;;  %v5077_v34 = vld [vmem:[%s5269_s10 + $0xc0] sm:$0xf] }
 0x1cd   : > { %v2909_v33 = vpop.f32.mrf.mxu0  ;;  %v2027_v26 = vrot.slane %v5077_v34, 5 }
 0x1cf   : > { %v2615_v14 = vpop.f32.mrf.mxu3 }
 0x1d0   : > { %4793 = vmatmul.msk.bf16.gmra.mxu0 %vm1185_vm3, %v5497_v50  ;;  %v2748_v28 = vadd.f32 %v2615_v14, %v2494_v56  ;;  %v1773_v2 = vpop.f32.mrf.mxu1  ;;  %v5078_v14 = vld [vmem:[%s5269_s10 + $0xc4] sm:$0x1] }
 0x1d1   : > { %v2030_v36 = vrot.slane %v5078_v14, 5 }
 0x1d2   : > { %v6266_v10 = vadd.f32 %v2909_v33, %v2748_v28  ;;  %v2029_v33 = vrot.slane %v2027_v26, 4  ;;  %v1774_v28 = vadd.f32 %v1773_v2, %v5848_v58 }
 0x1d3   : > { %v2363_v15 = vpop.f32.mrf.mxu2  ;;  %4671 = vmatmul.msk.bf16.gmra.mxu1 %vm1185_vm3, %v4977_v12 }
 0x1d4   : > { %v2495_v8 = vadd.f32 %v2363_v15, %v1771_v52  ;;  %v2031_v15 = vsel %vm5792_vm7, %v2029_v33, %v2030_v36  ;;  %v5079_v33 = vld [vmem:[%s5269_s10 + $0xcc] sm:$0xf] }
 0x1d5   : > { %v2911_v1 = vpop.f32.mrf.mxu0 }
 0x1d7   : > { %v2617_v22 = vpop.f32.mrf.mxu3 }
 0x1d8   : > { %v2749_v56 = vadd.f32 %v2617_v22, %v2495_v8  ;;  %4720 = vmatmul.msk.bf16.gmra.mxu2 %vm1185_vm3, %v6269_v7  ;;  %v1775_v3 = vpop.f32.mrf.mxu1  ;;  %v2028_v22 = vsel %vm5792_vm7, %v2026_v35, %v2027_v26 }
 0x1d9   : > { %v2150_v2 = vunpack.c.l.b16 %v2028_v22  ;;  %v1776_v34 = vadd.f32 %v1775_v3, %v5866_v24  ;;  %v4980_v22 = vld [vmem:[%s5269_s10 + $0xd0] sm:$0xff]  ;;  %v5080_v24 = vld [vmem:[%s5269_s10 + $0xc8] sm:$0xf] }
 0x1da   : > { %v6277_v12 = vadd.f32 %v2911_v1, %v2749_v56  ;;  %v2151_v1 = vunpack.c.l.b16 %v2031_v15  ;;  %v4695_v3 = vrot.slane %v5080_v24, 9 }
 0x1db   : > { %v2366_v18 = vpop.f32.mrf.mxu2 }
 0x1dc   : > { %7183 = vst [vmem:[#allocation72_spill] sm:$0xff] %v6277_v12  ;;  %4761 = vmatmul.msk.bf16.gmra.mxu3 %vm1185_vm3, %v4979_v17  ;;  %v2496_v4 = vadd.f32 %v2366_v18, %v1774_v28  ;;  %v6290_v36 = vpack.c.b16 %v2151_v1, %v2150_v2  ;;  %v2034_v28 = vrot.slane %v5079_v33, 5 }
 0x1dd   : > { %v2914_v52 = vpop.f32.mrf.mxu0 }
 0x1df   : > { %v2620_v8 = vpop.f32.mrf.mxu3 }
 0x1e0   : > { %4794 = vmatmul.msk.bf16.gmra.mxu0 %vm1185_vm3, %v5562_v25  ;;  %v2750_v61 = vadd.f32 %v2620_v8, %v2496_v4  ;;  %v1778_v58 = vpop.f32.mrf.mxu1  ;;  %v5081_v8 = vld [vmem:[%s5269_s10 + $0xd0] sm:$0xf] }
 0x1e2   : > { %v6287_v56 = vadd.f32 %v2914_v52, %v2750_v61  ;;  %v2036_v52 = vrot.slane %v2034_v28, 4  ;;  %v2037_v61 = vrot.slane %v5081_v8, 5 }
 0x1e3   : > { %v2368_v14 = vpop.f32.mrf.mxu2  ;;  %4672 = vmatmul.msk.bf16.gmra.mxu1 %vm1185_vm3, %v4978_v54  ;;  %v1779_v54 = vadd.f32 %v1778_v58, %v5880_v53 }
 0x1e4   : > { %7184 = vst [vmem:[#allocation73_spill] sm:$0xff] %v6287_v56  ;;  %v2497_v26 = vadd.f32 %v2368_v14, %v1776_v34  ;;  %v2038_v33 = vsel %vm5792_vm7, %v2036_v52, %v2037_v61 }
 0x1e5   : > { %v2916_v35 = vpop.f32.mrf.mxu0 }
 0x1e7   : > { %v2622_v18 = vpop.f32.mrf.mxu3 }
 0x1e8   : > { %v2751_v4 = vadd.f32 %v2622_v18, %v2497_v26  ;;  %4721 = vmatmul.msk.bf16.gmra.mxu2 %vm1185_vm3, %v6290_v36  ;;  %v1780_v15 = vpop.f32.mrf.mxu1  ;;  %v2035_v26 = vsel %vm5792_vm7, %v4695_v3, %v2034_v28 }
 0x1e9   : > { %v2152_v58 = vunpack.c.l.b16 %v2035_v26  ;;  %v4981_v26 = vld [vmem:[%s5269_s10 + $0xdc] sm:$0xff] }
 0x1ea   : > { %v6299_v34 = vadd.f32 %v2916_v35, %v2751_v4  ;;  %v2153_v35 = vunpack.c.l.b16 %v2038_v33  ;;  %v1781_v4 = vadd.f32 %v1780_v15, %v5897_v57  ;;  %v2039_v15 = vrot.slane %v2037_v61, 4 }
 0x1eb   : > { %v2371_v2 = vpop.f32.mrf.mxu2 }
 0x1ec   : > { %7185 = vst [vmem:[#allocation74_spill] sm:$0xff] %v6299_v34  ;;  %4762 = vmatmul.msk.bf16.gmra.mxu3 %vm1185_vm3, %v4980_v22  ;;  %v2498_v1 = vadd.f32 %v2371_v2, %v1779_v54  ;;  %v6312_v3 = vpack.c.b16 %v2153_v35, %v2152_v58  ;;  %v5082_v2 = vld [vmem:[%s5269_s10 + $0xd4] sm:$0xf] }
 0x1ed   : > { %v2919_v14 = vpop.f32.mrf.mxu0  ;;  %v2040_v34 = vrot.slane %v5082_v2, 5 }
 0x1ef   : > { %v2625_v18 = vpop.f32.mrf.mxu3 }
 0x1f0   : > { %4795 = vmatmul.msk.bf16.gmra.mxu0 %vm1185_vm3, %v5622_v31  ;;  %v2752_v24 = vadd.f32 %v2625_v18, %v2498_v1  ;;  %v1783_v53 = vpop.f32.mrf.mxu1  ;;  %v5083_v18 = vld [vmem:[%s5269_s10 + $0xd8] sm:$0x1] }
 0x1f1   : > { %v2043_v57 = vrot.slane %v5083_v18, 5 }
 0x1f2   : > { %v6309_v8 = vadd.f32 %v2919_v14, %v2752_v24  ;;  %v2042_v14 = vrot.slane %v2040_v34, 4  ;;  %v1784_v24 = vadd.f32 %v1783_v53, %v5914_v16 }
 0x1f3   : > { %v2373_v54 = vpop.f32.mrf.mxu2  ;;  %4673 = vmatmul.msk.bf16.gmra.mxu1 %vm1185_vm3, %v4979_v17 }
 0x1f4   : > { %7186 = vst [vmem:[#allocation75_spill] sm:$0xff] %v6309_v8  ;;  %v2499_v28 = vadd.f32 %v2373_v54, %v1781_v4  ;;  %v2044_v54 = vsel %vm5792_vm7, %v2042_v14, %v2043_v57  ;;  %v5084_v14 = vld [vmem:[%s5269_s10 + $0xe0] sm:$0xf]  ;;  %v371_v8 = vld [vmem:[%s6511_s25 + $0x8] sm:$0xf] }
 0x1f5   : > { %v2921_v52 = vpop.f32.mrf.mxu0 }
 0x1f7   : > { %v2627_v56 = vpop.f32.mrf.mxu3 }
 0x1f8   : > { %v2753_v1 = vadd.f32 %v2627_v56, %v2499_v28  ;;  %4722 = vmatmul.msk.bf16.gmra.mxu2 %vm1185_vm3, %v6312_v3  ;;  %v1785_v33 = vpop.f32.mrf.mxu1  ;;  %v2041_v56 = vsel %vm5792_vm7, %v2039_v15, %v2040_v34 }
 0x1f9   : > { %v2154_v53 = vunpack.c.l.b16 %v2041_v56  ;;  %v1786_v2 = vadd.f32 %v1785_v33, %v5931_v42  ;;  %v4982_v56 = vld [vmem:[%s5269_s10 + $0xe4] sm:$0xff]  ;;  %v5085_v42 = vld [vmem:[%s5269_s10 + $0xdc] sm:$0xf] }
 0x1fa   : > { %v6320_v17 = vadd.f32 %v2921_v52, %v2753_v1  ;;  %v2155_v52 = vunpack.c.l.b16 %v2044_v54  ;;  %v4696_v33 = vrot.slane %v5085_v42, 9 }
 0x1fb   : > { %v2376_v58 = vpop.f32.mrf.mxu2 }
 0x1fc   : > { %7187 = vst [vmem:[#allocation76_spill] sm:$0xff] %v6320_v17  ;;  %4763 = vmatmul.msk.bf16.gmra.mxu3 %vm1185_vm3, %v4981_v26  ;;  %v2500_v35 = vadd.f32 %v2376_v58, %v1784_v24  ;;  %v6333_v57 = vpack.c.b16 %v2155_v52, %v2154_v53  ;;  %v2047_v24 = vrot.slane %v5084_v14, 5 }
 0x1fd   : > { %v2924_v4 = vpop.f32.mrf.mxu0 }
 0x1fe   : > { %7189 = vst [vmem:[#allocation78_spill] sm:$0xff] %v6333_v57 }
 0x1ff   : > { %v2630_v28 = vpop.f32.mrf.mxu3 }
 0x200   : > { %4796 = vmatmul.msk.bf16.gmra.mxu0 %vm1185_vm3, %v5696_v32  ;;  %v2754_v61 = vadd.f32 %v2630_v28, %v2500_v35  ;;  %v1788_v16 = vpop.f32.mrf.mxu1  ;;  %v5086_v28 = vld [vmem:[%s5269_s10 + $0xe4] sm:$0xf] }
 0x202   : > { %v6330_v1 = vadd.f32 %v2924_v4, %v2754_v61  ;;  %v2049_v4 = vrot.slane %v2047_v24, 4  ;;  %v2050_v61 = vrot.slane %v5086_v28, 5 }
 0x203   : > { %v2378_v18 = vpop.f32.mrf.mxu2  ;;  %4674 = vmatmul.msk.bf16.gmra.mxu1 %vm1185_vm3, %v4980_v22  ;;  %v1789_v22 = vadd.f32 %v1788_v16, %v5947_v38 }
 0x204   : > { %7188 = vst [vmem:[#allocation77_spill] sm:$0xff] %v6330_v1  ;;  %v2501_v34 = vadd.f32 %v2378_v18, %v1786_v2  ;;  %v2051_v14 = vsel %vm5792_vm7, %v2049_v4, %v2050_v61 }
 0x205   : > { %v2926_v15 = vpop.f32.mrf.mxu0 }
 0x207   : > { %v2632_v58 = vpop.f32.mrf.mxu3 }
 0x208   : > { %v2755_v35 = vadd.f32 %v2632_v58, %v2501_v34  ;;  %4723 = vmatmul.msk.bf16.gmra.mxu2 %vm1185_vm3, %v6333_v57  ;;  %v1790_v54 = vpop.f32.mrf.mxu1  ;;  %v2048_v34 = vsel %vm5792_vm7, %v4696_v33, %v2047_v24 }
 0x209   : > { %v2156_v16 = vunpack.c.l.b16 %v2048_v34  ;;  %v4983_v34 = vld [vmem:[%s5269_s10 + $0xf0] sm:$0xff] }
 0x20a   : > { %v6342_v2 = vadd.f32 %v2926_v15, %v2755_v35  ;;  %v2157_v15 = vunpack.c.l.b16 %v2051_v14  ;;  %v1791_v35 = vadd.f32 %v1790_v54, %v5965_v47  ;;  %v2052_v54 = vrot.slane %v2050_v61, 4 }
 0x20b   : > { %v2381_v53 = vpop.f32.mrf.mxu2 }
 0x20c   : > { %7190 = vst [vmem:[#allocation79_spill] sm:$0xff] %v6342_v2  ;;  %4764 = vmatmul.msk.bf16.gmra.mxu3 %vm1185_vm3, %v4982_v56  ;;  %v2502_v52 = vadd.f32 %v2381_v53, %v1789_v22  ;;  %v6355_v33 = vpack.c.b16 %v2157_v15, %v2156_v16  ;;  %v5087_v53 = vld [vmem:[%s5269_s10 + $0xe8] sm:$0xf] }
 0x20d   : > { %v2929_v18 = vpop.f32.mrf.mxu0  ;;  %v2053_v2 = vrot.slane %v5087_v53, 5  ;;  %v7194_v53 = vld [vmem:[#allocation4_spill] sm:$0xff] }
 0x20e   : > { %7192 = vst [vmem:[#allocation81_spill] sm:$0xff] %v6355_v33 }
 0x20f   : > { %v2635_v58 = vpop.f32.mrf.mxu3 }
 0x210   : > { %4797 = vmatmul.msk.bf16.gmra.mxu0 %vm1185_vm3, %v5760_v40  ;;  %v2756_v42 = vadd.f32 %v2635_v58, %v2502_v52  ;;  %v1793_v38 = vpop.f32.mrf.mxu1  ;;  %v5088_v58 = vld [vmem:[%s5269_s10 + $0xec] sm:$0x1] }
 0x211   : > { %v2056_v47 = vrot.slane %v5088_v58, 5 }
 0x212   : > { %v6352_v28 = vadd.f32 %v2929_v18, %v2756_v42  ;;  %v2055_v18 = vrot.slane %v2053_v2, 4  ;;  %v1794_v42 = vadd.f32 %v1793_v38, %v5986_v27 }
 0x213   : > { %v2383_v22 = vpop.f32.mrf.mxu2  ;;  %4675 = vmatmul.msk.bf16.gmra.mxu1 %vm1185_vm3, %v4981_v26 }
 0x214   : > { %7191 = vst [vmem:[#allocation80_spill] sm:$0xff] %v6352_v28  ;;  %v2503_v24 = vadd.f32 %v2383_v22, %v1791_v35  ;;  %v2057_v22 = vsel %vm5792_vm7, %v2055_v18, %v2056_v47  ;;  %v5089_v18 = vld [vmem:[%s5269_s10 + $0xf4] sm:$0xf]  ;;  %v7198_v28 = vld [vmem:[#allocation54_spill] sm:$0xff] }
 0x215   : > { %v2931_v4 = vpop.f32.mrf.mxu0 }
 0x217   : > { %v2637_v1 = vpop.f32.mrf.mxu3 }
 0x218   : > { %v2757_v52 = vadd.f32 %v2637_v1, %v2503_v24  ;;  %4724 = vmatmul.msk.bf16.gmra.mxu2 %vm1185_vm3, %v6355_v33  ;;  %v1795_v14 = vpop.f32.mrf.mxu1  ;;  %v2054_v1 = vsel %vm5792_vm7, %v2052_v54, %v2053_v2 }
 0x219   : > { %v2158_v38 = vunpack.c.l.b16 %v2054_v1  ;;  %v4984_v1 = vld [vmem:[%s5269_s10 + $0xf8] sm:$0xff] }
 0x21a   : > { %v6363_v26 = vadd.f32 %v2931_v4, %v2757_v52  ;;  %v2159_v4 = vunpack.c.l.b16 %v2057_v22  ;;  %v7195_v52 = vld [vmem:[#allocation51_spill] sm:$0xff] }
 0x21b   : > { %v2386_v16 = vpop.f32.mrf.mxu2  ;;  %v1796_v58 = vadd.f32 %v1795_v14, %v7195_v52  ;;  %v5090_v14 = vld [vmem:[%s5269_s10 + $0xf0] sm:$0xf]  ;;  %v5091_v52 = vld [vmem:[%s5269_s10 + $0xf8] sm:$0xf] }
 0x21c   : > { %7193 = vst [vmem:[#allocation82_spill] sm:$0xff] %v6363_v26  ;;  %4765 = vmatmul.msk.bf16.gmra.mxu3 %vm1185_vm3, %v4983_v34  ;;  %v2504_v15 = vadd.f32 %v2386_v16, %v1794_v42  ;;  %v6376_v47 = vpack.c.b16 %v2159_v4, %v2158_v38  ;;  %v2060_v26 = vrot.slane %v5089_v18, 5 }
 0x21d   : > { %v2934_v35 = vpop.f32.mrf.mxu0 }
 0x21e   : > { %7197 = vst [vmem:[#allocation83_spill] sm:$0xff] %v6376_v47 }
 0x21f   : > { %v2640_v24 = vpop.f32.mrf.mxu3 }
 0x220   : > { %4798 = vmatmul.msk.bf16.gmra.mxu0 %vm1185_vm3, %v7194_v53  ;;  %v2758_v61 = vadd.f32 %v2640_v24, %v2504_v15  ;;  %v1798_v27 = vpop.f32.mrf.mxu1  ;;  %v5092_v53 = vld [vmem:[%s5269_s10 + $0xfc] sm:$0xf] }
 0x222   : > { %v6373_v42 = vadd.f32 %v2934_v35, %v2758_v61  ;;  %v4697_v35 = vrot.slane %v5090_v14, 9  ;;  %v2062_v61 = vrot.slane %v2060_v26, 4  ;;  %v7200_v14 = vld [vmem:[#allocation6_spill] sm:$0xff] }
 0x223   : > { %v2388_v16 = vpop.f32.mrf.mxu2  ;;  %4676 = vmatmul.msk.bf16.gmra.mxu1 %vm1185_vm3, %v4982_v56  ;;  %v1799_v56 = vadd.f32 %v1798_v27, %v7198_v28 }
 0x224   : > { %7196 = vst [vmem:[#allocation51_spill] sm:$0xff] %v6373_v42  ;;  %v2505_v2 = vadd.f32 %v2388_v16, %v1796_v58  ;;  %v2063_v42 = vrot.slane %v5091_v52, 5 }
 0x225   : > { %v2936_v54 = vpop.f32.mrf.mxu0 }
 0x226   : > { %v2064_v18 = vsel %vm5792_vm7, %v2062_v61, %v2063_v42 }
 0x227   : > { %v2642_v15 = vpop.f32.mrf.mxu3 }
 0x228   : > { %v2759_v24 = vadd.f32 %v2642_v15, %v2505_v2  ;;  %4725 = vmatmul.msk.bf16.gmra.mxu2 %vm1185_vm3, %v6376_v47  ;;  %v1800_v22 = vpop.f32.mrf.mxu1  ;;  %v2061_v2 = vsel %vm5792_vm7, %v4697_v35, %v2060_v26  ;;  %v2066_v47 = vrot.slane %v5092_v53, 5 }
 0x229   : > { %v2160_v27 = vunpack.c.l.b16 %v2061_v2  ;;  %v4985_v2 = vld [vmem:[%s5269_s10 + $0x104] sm:$0xff] }
 0x22a   : > { %v6385_v58 = vadd.f32 %v2936_v54, %v2759_v24  ;;  %v2161_v54 = vunpack.c.l.b16 %v2064_v18  ;;  %v7201_v24 = vld [vmem:[#allocation58_spill] sm:$0xff] }
 0x22b   : > { %v2391_v38 = vpop.f32.mrf.mxu2 }
 0x22c   : > { %7199 = vst [vmem:[#allocation54_spill] sm:$0xff] %v6385_v58  ;;  %4766 = vmatmul.msk.bf16.gmra.mxu3 %vm1185_vm3, %v4984_v1  ;;  %v2506_v4 = vadd.f32 %v2391_v38, %v1799_v56  ;;  %v1801_v56 = vadd.f32 %v1800_v22, %v7201_v24  ;;  %v6398_v35 = vpack.c.b16 %v2161_v54, %v2160_v27  ;;  %v7204_v24 = vld [vmem:[#allocation21_spill] sm:$0xff] }
 0x22d   : > { %v2939_v16 = vpop.f32.mrf.mxu0 }
 0x22e   : > { %7203 = vst [vmem:[#allocation84_spill] sm:$0xff] %v6398_v35 }
 0x22f   : > { %v2645_v15 = vpop.f32.mrf.mxu3 }
 0x230   : > { %4799 = vmatmul.msk.bf16.gmra.mxu0 %vm1185_vm3, %v7200_v14  ;;  %v2760_v52 = vadd.f32 %v2645_v15, %v2506_v4  ;;  %v1803_v28 = vpop.f32.mrf.mxu1  ;;  %v5093_v15 = vld [vmem:[%s5269_s10 + $0x100] sm:$0x1] }
 0x231   : > { %v2069_v22 = vrot.slane %v5093_v15, 5  ;;  %v7207_v15 = vld [vmem:[#allocation24_spill] sm:$0xff] }
 0x232   : > { %v6395_v38 = vadd.f32 %v2939_v16, %v2760_v52  ;;  %v2065_v16 = vrot.slane %v2063_v42, 4  ;;  %v2068_v52 = vrot.slane %v2066_v47, 4 }
 0x233   : > { %v2393_v58 = vpop.f32.mrf.mxu2  ;;  %4677 = vmatmul.msk.bf16.gmra.mxu1 %vm1185_vm3, %v4983_v34 }
 0x234   : > { %7202 = vst [vmem:[#allocation58_spill] sm:$0xff] %v6395_v38  ;;  %v2507_v26 = vadd.f32 %v2393_v58, %v1801_v56  ;;  %v1804_v38 = vadd.f32 %v1803_v28, %v7204_v24  ;;  %v2070_v54 = vsel %vm5792_vm7, %v2068_v52, %v2069_v22  ;;  %v5094_v52 = vld [vmem:[%s5269_s10 + $0x108] sm:$0xf] }
 0x235   : > { %v2941_v61 = vpop.f32.mrf.mxu0 }
 0x237   : > { %v2647_v14 = vpop.f32.mrf.mxu3 }
 0x238   : > { %v2761_v4 = vadd.f32 %v2647_v14, %v2507_v26  ;;  %4726 = vmatmul.msk.bf16.gmra.mxu2 %vm1185_vm3, %v6398_v35  ;;  %v1805_v18 = vpop.f32.mrf.mxu1  ;;  %v2067_v14 = vsel %vm5792_vm7, %v2065_v16, %v2066_v47  ;;  %v7206_v26 = vld [vmem:[#allocation8_spill] sm:$0xff] }
 0x23a   : > { %v6406_v34 = vadd.f32 %v2941_v61, %v2761_v4  ;;  %v2162_v61 = vunpack.c.l.b16 %v2067_v14  ;;  %v2163_v4 = vunpack.c.l.b16 %v2070_v54  ;;  %v4986_v14 = vld [vmem:[%s5269_s10 + $0x10c] sm:$0xff] }
 0x23b   : > { %v2396_v58 = vpop.f32.mrf.mxu2 }
 0x23c   : > { %7205 = vst [vmem:[#allocation21_spill] sm:$0xff] %v6406_v34  ;;  %4767 = vmatmul.msk.bf16.gmra.mxu3 %vm1185_vm3, %v4985_v2  ;;  %v2508_v27 = vadd.f32 %v2396_v58, %v1804_v38  ;;  %v1806_v38 = vadd.f32 %v1805_v18, %v7207_v15  ;;  %v6419_v22 = vpack.c.b16 %v2163_v4, %v2162_v61  ;;  %v2073_v34 = vrot.slane %v5094_v52, 5  ;;  %v5095_v18 = vld [vmem:[%s5269_s10 + $0x104] sm:$0xf]  ;;  %v5096_v15 = vld [vmem:[%s5269_s10 + $0x10c] sm:$0xf] }
 0x23d   : > { %v2944_v53 = vpop.f32.mrf.mxu0 }
 0x23e   : > { %7209 = vst [vmem:[#allocation85_spill] sm:$0xff] %v6419_v22 }
 0x23f   : > { %v2650_v56 = vpop.f32.mrf.mxu3 }
 0x240   : > { %4800 = vmatmul.msk.bf16.gmra.mxu0 %vm1185_vm3, %v7206_v26  ;;  %v2762_v42 = vadd.f32 %v2650_v56, %v2508_v27  ;;  %v1808_v28 = vpop.f32.mrf.mxu1  ;;  %v7210_v26 = vld [vmem:[#allocation26_spill] sm:$0xff] }
 0x242   : > { %v6416_v24 = vadd.f32 %v2944_v53, %v2762_v42  ;;  %v4698_v53 = vrot.slane %v5095_v18, 9  ;;  %v2075_v42 = vrot.slane %v2073_v34, 4  ;;  %v7212_v18 = vld [vmem:[#allocation10_spill] sm:$0xff] }
 0x243   : > { %v2398_v58 = vpop.f32.mrf.mxu2  ;;  %4678 = vmatmul.msk.bf16.gmra.mxu1 %vm1185_vm3, %v4984_v1  ;;  %v1809_v1 = vadd.f32 %v1808_v28, %v7210_v26 }
 0x244   : > { %7208 = vst [vmem:[#allocation24_spill] sm:$0xff] %v6416_v24  ;;  %v2509_v47 = vadd.f32 %v2398_v58, %v1806_v38  ;;  %v2076_v24 = vrot.slane %v5096_v15, 5 }
 0x245   : > { %v2946_v16 = vpop.f32.mrf.mxu0 }
 0x246   : > { %v2077_v52 = vsel %vm5792_vm7, %v2075_v42, %v2076_v24 }
 0x247   : > { %v2652_v27 = vpop.f32.mrf.mxu3 }
 0x248   : > { %v2763_v56 = vadd.f32 %v2652_v27, %v2509_v47  ;;  %4727 = vmatmul.msk.bf16.gmra.mxu2 %vm1185_vm3, %v6419_v22  ;;  %v1810_v54 = vpop.f32.mrf.mxu1  ;;  %v2074_v47 = vsel %vm5792_vm7, %v4698_v53, %v2073_v34  ;;  %v5097_v22 = vld [vmem:[%s5269_s10 + $0x110] sm:$0xf] }
 0x249   : > { %v2164_v28 = vunpack.c.l.b16 %v2074_v47  ;;  %v2079_v35 = vrot.slane %v5097_v22, 5  ;;  %v4987_v47 = vld [vmem:[%s5269_s10 + $0x118] sm:$0xff] }
 0x24a   : > { %v6428_v38 = vadd.f32 %v2946_v16, %v2763_v56  ;;  %v2165_v16 = vunpack.c.l.b16 %v2077_v52  ;;  %v7213_v56 = vld [vmem:[#allocation28_spill] sm:$0xff] }
 0x24b   : > { %v2401_v61 = vpop.f32.mrf.mxu2 }
 0x24c   : > { %7211 = vst [vmem:[#allocation26_spill] sm:$0xff] %v6428_v38  ;;  %4768 = vmatmul.msk.bf16.gmra.mxu3 %vm1185_vm3, %v4986_v14  ;;  %v2510_v4 = vadd.f32 %v2401_v61, %v1809_v1  ;;  %v1811_v1 = vadd.f32 %v1810_v54, %v7213_v56  ;;  %v6441_v53 = vpack.c.b16 %v2165_v16, %v2164_v28  ;;  %v7216_v56 = vld [vmem:[#allocation30_spill] sm:$0xff] }
 0x24d   : > { %v2949_v58 = vpop.f32.mrf.mxu0 }
 0x24e   : > { %7215 = vst [vmem:[#allocation86_spill] sm:$0xff] %v6441_v53 }
 0x24f   : > { %v2655_v27 = vpop.f32.mrf.mxu3 }
 0x250   : > { %4801 = vmatmul.msk.bf16.gmra.mxu0 %vm1185_vm3, %v7212_v18  ;;  %v2764_v15 = vadd.f32 %v2655_v27, %v2510_v4  ;;  %v1813_v26 = vpop.f32.mrf.mxu1  ;;  %v5098_v27 = vld [vmem:[%s5269_s10 + $0x114] sm:$0x1] }
 0x251   : > { %v2082_v54 = vrot.slane %v5098_v27, 5  ;;  %v7219_v27 = vld [vmem:[#allocation33_spill] sm:$0xff] }
 0x252   : > { %v6438_v61 = vadd.f32 %v2949_v58, %v2764_v15  ;;  %v2078_v58 = vrot.slane %v2076_v24, 4  ;;  %v2081_v15 = vrot.slane %v2079_v35, 4 }
 0x253   : > { %v2403_v38 = vpop.f32.mrf.mxu2  ;;  %4679 = vmatmul.msk.bf16.gmra.mxu1 %vm1185_vm3, %v4985_v2 }
 0x254   : > { %7214 = vst [vmem:[#allocation28_spill] sm:$0xff] %v6438_v61  ;;  %v2511_v34 = vadd.f32 %v2403_v38, %v1811_v1  ;;  %v1814_v61 = vadd.f32 %v1813_v26, %v7216_v56  ;;  %v2083_v16 = vsel %vm5792_vm7, %v2081_v15, %v2082_v54  ;;  %v5099_v15 = vld [vmem:[%s5269_s10 + $0x11c] sm:$0xf] }
 0x255   : > { %v2951_v42 = vpop.f32.mrf.mxu0 }
 0x257   : > { %v2657_v18 = vpop.f32.mrf.mxu3 }
 0x258   : > { %v2765_v4 = vadd.f32 %v2657_v18, %v2511_v34  ;;  %4728 = vmatmul.msk.bf16.gmra.mxu2 %vm1185_vm3, %v6441_v53  ;;  %v1815_v52 = vpop.f32.mrf.mxu1  ;;  %v2080_v18 = vsel %vm5792_vm7, %v2078_v58, %v2079_v35  ;;  %v7218_v34 = vld [vmem:[#allocation11_spill] sm:$0xff] }
 0x25a   : > { %v6449_v2 = vadd.f32 %v2951_v42, %v2765_v4  ;;  %v2166_v42 = vunpack.c.l.b16 %v2080_v18  ;;  %v2167_v4 = vunpack.c.l.b16 %v2083_v16  ;;  %v6468_v18 = vld [vmem:[%s5269_s10 + $0x120] sm:$0xff] }
 0x25b   : > { %v2406_v38 = vpop.f32.mrf.mxu2 }
 0x25c   : > { %7217 = vst [vmem:[#allocation30_spill] sm:$0xff] %v6449_v2  ;;  %4769 = vmatmul.msk.bf16.gmra.mxu3 %vm1185_vm3, %v4987_v47  ;;  %v2512_v28 = vadd.f32 %v2406_v38, %v1814_v61  ;;  %v1816_v61 = vadd.f32 %v1815_v52, %v7219_v27  ;;  %v6462_v54 = vpack.c.b16 %v2167_v4, %v2166_v42  ;;  %v5101_v27 = vld [vmem:[%s5269_s10 + $0x120] sm:$0xf] }
 0x25d   : > { %v2954_v22 = vpop.f32.mrf.mxu0 }
 0x25e   : > { %7221 = vst [vmem:[#allocation87_spill] sm:$0xff] %v6462_v54 }
 0x25f   : > { %v2660_v1 = vpop.f32.mrf.mxu3 }
 0x260   : > { %4802 = vmatmul.msk.bf16.gmra.mxu0 %vm1185_vm3, %v7218_v34  ;;  %v2766_v24 = vadd.f32 %v2660_v1, %v2512_v28  ;;  %v1818_v26 = vpop.f32.mrf.mxu1  ;;  %v2086_v28 = vrot.slane %v5099_v15, 5 }
 0x262   : > { %v6459_v56 = vadd.f32 %v2954_v22, %v2766_v24  ;;  %v5100_v22 = vld [vmem:[%s5269_s10 + $0x118] sm:$0xf]  ;;  %v2088_v24 = vrot.slane %v2086_v28, 4 }
 0x263   : > { %v2408_v38 = vpop.f32.mrf.mxu2  ;;  %4680 = vmatmul.msk.bf16.gmra.mxu1 %vm1185_vm3, %v4986_v14  ;;  %v4699_v16 = vrot.slane %v5100_v22, 9  ;;  %v2089_v14 = vrot.slane %v5101_v27, 5 }
 0x264   : > { %7220 = vst [vmem:[#allocation33_spill] sm:$0xff] %v6459_v56  ;;  %v2513_v35 = vadd.f32 %v2408_v38, %v1816_v61  ;;  %v7222_v61 = vld [vmem:[#allocation35_spill] sm:$0xff]  ;;  %v7224_v56 = vld [vmem:[#allocation14_spill] sm:$0xff] }
 0x265   : > { %v2956_v58 = vpop.f32.mrf.mxu0  ;;  %v1819_v42 = vadd.f32 %v1818_v26, %v7222_v61  ;;  %v2090_v22 = vsel %vm5792_vm7, %v2088_v24, %v2089_v14  ;;  %v5102_v24 = vld [vmem:[%s5269_s10 + $0x124] sm:$0xf] }
 0x266   : > { %v2169_v61 = vunpack.c.l.b16 %v2090_v22 }
 0x267   : > { %v2662_v1 = vpop.f32.mrf.mxu3 }
 0x268   : > { %v2767_v2 = vadd.f32 %v2662_v1, %v2513_v35  ;;  %4729 = vmatmul.msk.bf16.gmra.mxu2 %vm1185_vm3, %v6462_v54  ;;  %v1820_v52 = vpop.f32.mrf.mxu1  ;;  %v2087_v1 = vsel %vm5792_vm7, %v4699_v16, %v2086_v28 }
 0x26a   : > { %v6474_v4 = vadd.f32 %v2956_v58, %v2767_v2  ;;  %v2168_v58 = vunpack.c.l.b16 %v2087_v1  ;;  %v5103_v1 = vld [vmem:[%s5269_s10 + $0x128] sm:$0x1] }
 0x26b   : > { %v2411_v38 = vpop.f32.mrf.mxu2  ;;  %v2095_v22 = vrot.slane %v5103_v1, 5 }
 0x26c   : > { %7223 = vst [vmem:[#allocation35_spill] sm:$0xff] %v6474_v4  ;;  %4770 = vmatmul.msk.bf16.gmra.mxu3 %vm1185_vm3, %v6468_v18  ;;  %v2514_v35 = vadd.f32 %v2411_v38, %v1819_v42  ;;  %v7225_v42 = vld [vmem:[#allocation38_spill] sm:$0xff]  ;;  %v6488_v16 = vpack.c.b16 %v2169_v61, %v2168_v58 }
 0x26d   : > { %v2959_v15 = vpop.f32.mrf.mxu0  ;;  %v1821_v38 = vadd.f32 %v1820_v52, %v7225_v42  ;;  %v6495_v52 = vld [vmem:[%s5269_s10 + $0x12c] sm:$0xff] }
 0x26e   : > { %7227 = vst [vmem:[#allocation88_spill] sm:$0xff] %v6488_v16 }
 0x26f   : > { %v2665_v27 = vpop.f32.mrf.mxu3 }
 0x270   : > { %4803 = vmatmul.msk.bf16.gmra.mxu0 %vm1185_vm3, %v7224_v56  ;;  %v2768_v2 = vadd.f32 %v2665_v27, %v2514_v35  ;;  %v1823_v26 = vpop.f32.mrf.mxu1  ;;  %v2092_v56 = vrot.slane %v5102_v24, 5 }
 0x272   : > { %v6485_v4 = vadd.f32 %v2959_v15, %v2768_v2  ;;  %v2091_v2 = vrot.slane %v2089_v14, 4 }
 0x273   : > { %v2413_v34 = vpop.f32.mrf.mxu2  ;;  %4681 = vmatmul.msk.bf16.gmra.mxu1 %vm1185_vm3, %v4987_v47  ;;  %v2094_v47 = vrot.slane %v2092_v56, 4 }
 0x274   : > { %7226 = vst [vmem:[#allocation38_spill] sm:$0xff] %v6485_v4  ;;  %v2515_v28 = vadd.f32 %v2413_v34, %v1821_v38  ;;  %v7228_v34 = vld [vmem:[#allocation40_spill] sm:$0xff] }
 0x275   : > { %v2961_v35 = vpop.f32.mrf.mxu0  ;;  %v1824_v58 = vadd.f32 %v1823_v26, %v7228_v34  ;;  %v2096_v24 = vsel %vm5792_vm7, %v2094_v47, %v2095_v22  ;;  %v370_v34 = vld [vmem:[%s6511_s25 + $0x4] sm:$0xf]  ;;  %v7231_v22 = vld [vmem:[#allocation43_spill] sm:$0xff] }
 0x276   : > { %v2808_v53 = vshrl.u32 %v370_v34, 16 }
 0x277   : > { %v2667_v27 = vpop.f32.mrf.mxu3 }
 0x278   : > { %v2769_v54 = vadd.f32 %v2667_v27, %v2515_v28  ;;  %4730 = vmatmul.msk.bf16.gmra.mxu2 %vm1185_vm3, %v6488_v16  ;;  %v1825_v15 = vpop.f32.mrf.mxu1  ;;  %v2093_v28 = vsel %vm5792_vm7, %v2091_v2, %v2092_v56  ;;  %v7230_v27 = vld [vmem:[#allocation17_spill] sm:$0xff]  ;;  %v369_v2 = vld [vmem:[%s6511_s25] sm:$0xf]  ;;  %v2810_v17 = vrot.slane %v2808_v53, 4 }
 0x279   : > { %v2170_v26 = vunpack.c.l.b16 %v2093_v28  ;;  %v1826_v47 = vadd.f32 %v1825_v15, %v7231_v22  ;;  %v2798_v4 = vshll.u32 %v369_v2, 16 }
 0x27a   : > { %v6500_v42 = vadd.f32 %v2961_v35, %v2769_v54  ;;  %v2171_v35 = vunpack.c.l.b16 %v2096_v24  ;;  %v2795_v24 = vshrl.u32 %v369_v2, 16 }
 0x27b   : > { %v2416_v61 = vpop.f32.mrf.mxu2 }
 0x27c   : > { %7229 = vst [vmem:[#allocation40_spill] sm:$0xff] %v6500_v42  ;;  %4771 = vmatmul.msk.bf16.gmra.mxu3 %vm1185_vm3, %v6495_v52  ;;  %v2516_v38 = vadd.f32 %v2416_v61, %v1824_v58  ;;  %v6522_v42 = vpack.c.b16 %v2171_v35, %v2170_v26  ;;  %v2797_v26 = vrot.slane %v2795_v24, 4  ;;  %v2800_v35 = vrot.slane %v2798_v4, 5 }
 0x27d   : > { %v2964_v14 = vpop.f32.mrf.mxu0  ;;  %v2814_v24 = vshll.u32 %v371_v8, 16 }
 0x27e   : > { %7233 = vst [vmem:[#allocation89_spill] sm:$0xff] %v6522_v42 }
 0x27f   : > { %v2670_v54 = vpop.f32.mrf.mxu3 }
 0x280   : > { %4804 = vmatmul.msk.bf16.gmra.mxu0 %vm1185_vm3, %v7230_v27  ;;  %v2770_v1 = vadd.f32 %v2670_v54, %v2516_v38  ;;  %v1828_v56 = vpop.f32.mrf.mxu1  ;;  %v2804_v27 = vshll.u32 %v370_v34, 16  ;;  %v5104_v54 = vld [vmem:[%s5269_s10 + $0x130] sm:$0xf] }
 0x281   : > { %v2099_v16 = vrot.slane %v5104_v54, 5  ;;  %v7234_v54 = vld [vmem:[#allocation46_spill] sm:$0xff] }
 0x282   : > { %v6518_v58 = vadd.f32 %v2964_v14, %v2770_v1  ;;  %v6528_v1 = vld [vmem:[%s5269_s10 + $0x134] sm:$0xff]  ;;  %v2806_v22 = vrot.slane %v2804_v27, 5  ;;  %v1829_v34 = vadd.f32 %v1828_v56, %v7234_v54 }
 0x283   : > { %v2418_v61 = vpop.f32.mrf.mxu2  ;;  %4682 = vmatmul.msk.bf16.gmra.mxu1 %vm1185_vm3, %v6468_v18 }
 0x284   : > { %7232 = vst [vmem:[#allocation43_spill] sm:$0xff] %v6518_v58  ;;  %v2517_v28 = vadd.f32 %v2418_v61, %v1826_v47  ;;  %v5105_v47 = vld [vmem:[%s5269_s10 + $0x12c] sm:$0xf]  ;;  %v2101_v61 = vrot.slane %v2099_v16, 4  ;;  %v5106_v58 = vld [vmem:[%s5269_s10 + $0x134] sm:$0xf]  ;;  %v2811_v53 = vor.u32 %v2810_v17, %v2806_v22 }
 0x285   : > { %v2966_v38 = vpop.f32.mrf.mxu0  ;;  %v4700_v2 = vrot.slane %v5105_v47, 9  ;;  %v2102_v40 = vrot.slane %v5106_v58, 5  ;;  %v7236_v47 = vld [vmem:[#allocation20_spill] sm:$0xff] }
 0x287   : > { %v2672_v15 = vpop.f32.mrf.mxu3  ;;  %v2100_v27 = vsel %vm5792_vm7, %v4700_v2, %v2099_v16  ;;  %v2103_v58 = vsel %vm5792_vm7, %v2101_v61, %v2102_v40  ;;  %v372_v2 = vld [vmem:[%s6511_s25 + $0xc] sm:$0xf] }
 0x288   : > { %v2771_v14 = vadd.f32 %v2672_v15, %v2517_v28  ;;  %4731 = vmatmul.msk.bf16.gmra.mxu2 %vm1185_vm3, %v6522_v42  ;;  %v1830_v18 = vpop.f32.mrf.mxu1  ;;  %v2801_v42 = vor.u32 %v2800_v35, %v2797_v26  ;;  %v2172_v54 = vunpack.c.l.b16 %v2100_v27  ;;  %v2812_v35 = vrot.slane %v2811_v53, 4 }
 0x28a   : > { %v6534_v28 = vadd.f32 %v2966_v38, %v2771_v14  ;;  %v2802_v26 = vrot.slane %v2801_v42, 4  ;;  %v2818_v42 = vshrl.u32 %v371_v8, 16 }
 0x28b   : > { %v2421_v33 = vpop.f32.mrf.mxu2 }
 0x28c   : > { %7235 = vst [vmem:[#allocation46_spill] sm:$0xff] %v6534_v28  ;;  %4772 = vmatmul.msk.bf16.gmra.mxu3 %vm1185_vm3, %v6528_v1  ;;  %v2518_v15 = vadd.f32 %v2421_v33, %v1829_v34  ;;  %v2173_v33 = vunpack.c.l.b16 %v2103_v58  ;;  %v2816_v34 = vrot.slane %v2814_v24, 5  ;;  %v7237_v28 = vld [vmem:[#allocation48_spill] sm:$0xff]  ;;  %v2807_v58 = vsel %vm5289_vm4, %v2802_v26, %v2806_v22 }
 0x28d   : > { %v2969_v4 = vpop.f32.mrf.mxu0  ;;  %v1831_v16 = vadd.f32 %v1830_v18, %v7237_v28  ;;  %v5107_v18 = vld [vmem:[%s5269_s10 + $0x138] sm:$0xf]  ;;  %v2820_v26 = vrot.slane %v2818_v42, 4 }
 0x28e   : > { %v2817_v24 = vsel %vm5289_vm4, %v2812_v35, %v2816_v34  ;;  %v2105_v28 = vrot.slane %v5107_v18, 5  ;;  %v7241_v18 = vld [vmem:[#allocation52_spill] sm:$0xff] }
 0x28f   : > { %v2675_v56 = vpop.f32.mrf.mxu3  ;;  %v2841_v22 = vunpack.c.l.b16 %v2817_v24 }
 0x290   : > { %4805 = vmatmul.msk.bf16.gmra.mxu0 %vm1185_vm3, %v7236_v47  ;;  %v2772_v38 = vadd.f32 %v2675_v56, %v2518_v15  ;;  %v1833_v14 = vpop.f32.mrf.mxu1  ;;  %v6550_v15 = vpack.c.b16 %v2173_v33, %v2172_v54  ;;  %v2828_v56 = vshrl.u32 %v372_v2, 16  ;;  %v4991_v54 = vld [vmem:[%s6511_s25] sm:$0xff]  ;;  %v2840_v33 = vunpack.c.l.b16 %v2807_v58 }
 0x291   : > { %v1834_v31 = vadd.f32 %v1833_v14, %v7241_v18 }
 0x292   : > { %v6546_v32 = vadd.f32 %v2969_v4, %v2772_v38  ;;  %7239 = vst [vmem:[#allocation90_spill] sm:$0xff] %v6550_v15  ;;  %v2824_v4 = vshll.u32 %v372_v2, 16  ;;  %v5108_v38 = vld [vmem:[%s5269_s10 + $0x13c] sm:$0x1]  ;;  %v2830_v57 = vrot.slane %v2828_v56, 4 }
 0x293   : > { %v2423_v17 = vpop.f32.mrf.mxu2  ;;  %4683 = vmatmul.msk.bf16.gmra.mxu1 %vm1185_vm3, %v6495_v52  ;;  %v373_v2 = vld [vmem:[%s6511_s25 + $0x10] sm:$0x1] }
 0x294   : > { %7238 = vst [vmem:[#allocation48_spill] sm:$0xff] %v6546_v32  ;;  %v2519_v61 = vadd.f32 %v2423_v17, %v1831_v16  ;;  %v2108_v32 = vrot.slane %v5108_v38, 5  ;;  %v2104_v16 = vrot.slane %v2102_v40, 4  ;;  %v2107_v17 = vrot.slane %v2105_v28, 4 }
 0x295   : > { %v2971_v53 = vpop.f32.mrf.mxu0  ;;  %v2826_v35 = vrot.slane %v2824_v4, 5  ;;  %v2834_v4 = vshll.u32 %v373_v2, 16 }
 0x296   : > { %v2106_v42 = vsel %vm5792_vm7, %v2104_v16, %v2105_v28  ;;  %v2109_v40 = vsel %vm5792_vm7, %v2107_v17, %v2108_v32 }
 0x297   : > { %v2677_v52 = vpop.f32.mrf.mxu3  ;;  %v2831_v24 = vor.u32 %v2830_v57, %v2826_v35  ;;  %v2174_v56 = vunpack.c.l.b16 %v2106_v42 }
 0x298   : > { %v2773_v47 = vadd.f32 %v2677_v52, %v2519_v61  ;;  %4732 = vmatmul.msk.bf16.gmra.mxu2 %vm1185_vm3, %v6550_v15  ;;  %v1835_v8 = vpop.f32.mrf.mxu1  ;;  %v6566_v61 = vpack.c.b16 %v2841_v22, %v2840_v33  ;;  %v2821_v15 = vor.u32 %v2820_v26, %v2816_v34  ;;  %v2836_v33 = vrot.slane %v2834_v4, 5  ;;  %v7242_v22 = vld [vmem:[#allocation55_spill] sm:$0xff] }
 0x299   : > { %v2832_v34 = vrot.slane %v2831_v24, 4  ;;  %v1836_v26 = vadd.f32 %v1835_v8, %v7242_v22  ;;  %v4992_v8 = vld [vmem:[%s6511_s25 + $0x8] sm:$0xff] }
 0x29a   : > { %v6563_v12 = vadd.f32 %v2971_v53, %v2773_v47 }
 0x29b   : > { %v2426_v38 = vpop.f32.mrf.mxu2 }
 0x29c   : > { %4773 = vmatmul.msk.bf16.gmra.mxu3 %vm1185_vm3, %v4991_v54  ;;  %v2520_v52 = vadd.f32 %v2426_v38, %v1834_v31  ;;  %v2175_v54 = vunpack.c.l.b16 %v2109_v40  ;;  %v2822_v31 = vrot.slane %v2821_v15, 4  ;;  %v2837_v15 = vsel %vm5289_vm4, %v2832_v34, %v2836_v33  ;;  %v7244_v34 = vld [vmem:[#allocation61_spill] sm:$0xff] }
 0x29d   : > { %v2974_v58 = vpop.f32.mrf.mxu0 }
 0x29e   : > { %v6579_v57 = vpack.c.b16 %v2175_v54, %v2174_v56  ;;  %v2827_v18 = vsel %vm5289_vm4, %v2822_v31, %v2826_v35 }
 0x29f   : > { %v2680_v14 = vpop.f32.mrf.mxu3 }
 0x2a0   : > { %4806 = vmatmul.msk.bf16.gmra.mxu0 %vm1185_vm3, %v6566_v61  ;;  %v2774_v47 = vadd.f32 %v2680_v14, %v2520_v52  ;;  %v1838_v53 = vpop.f32.mrf.mxu1  ;;  %v2842_v52 = vunpack.c.l.b16 %v2827_v18 }
 0x2a2   : > { %v6575_v28 = vadd.f32 %v2974_v58, %v2774_v47  ;;  %v2843_v58 = vunpack.c.l.b16 %v2837_v15  ;;  %v5109_v15 = vld [vmem:[%s5269_s10 + $0x28] sm:$0xff] }
 0x2a3   : > { %v2428_v16 = vpop.f32.mrf.mxu2  ;;  %4684 = vmatmul.msk.bf16.gmra.mxu1 %vm1185_vm3, %v6528_v1  ;;  %v7243_v1 = vld [vmem:[#allocation59_spill] sm:$0xff] }
 0x2a4   : > { %v2521_v32 = vadd.f32 %v2428_v16, %v1836_v26  ;;  %v1839_v40 = vadd.f32 %v1838_v53, %v7243_v1  ;;  %v6592_v35 = vpack.c.b16 %v2843_v58, %v2842_v52  ;;  %v7245_v26 = vld [vmem:[#allocation32_spill] sm:$0xff] }
 0x2a5   : > { %v2976_v17 = vpop.f32.mrf.mxu0 }
 0x2a7   : > { %v2682_v2 = vpop.f32.mrf.mxu3 }
 0x2a8   : > { %v2775_v38 = vadd.f32 %v2682_v2, %v2521_v32  ;;  %4733 = vmatmul.msk.bf16.gmra.mxu2 %vm1185_vm3, %v6579_v57  ;;  %v1840_v42 = vpop.f32.mrf.mxu1 }
 0x2a9   : > { %v1841_v33 = vadd.f32 %v1840_v42, %v7244_v34  ;;  %v7247_v42 = vld [vmem:[#allocation12_spill] sm:$0xff] }
 0x2aa   : > { %v6589_v24 = vadd.f32 %v2976_v17, %v2775_v38  ;;  %v7246_v38 = vld [vmem:[#allocation23_spill] sm:$0xff] }
 0x2ab   : > { %v2431_v4 = vpop.f32.mrf.mxu2 }
 0x2ac   : > { %4774 = vmatmul.msk.bf16.gmra.mxu3 %vm1185_vm3, %v4992_v8  ;;  %v2522_v14 = vadd.f32 %v2431_v4, %v1839_v40 }
 0x2ad   : > { %v2979_v47 = vpop.f32.mrf.mxu0 }
 0x2af   : > { %v2685_v56 = vpop.f32.mrf.mxu3 }
 0x2b0   : > { %4807 = vmatmul.msk.bf16.gmra.mxu0 %vm1185_vm3, %v6592_v35  ;;  %v2776_v54 = vadd.f32 %v2685_v56, %v2522_v14  ;;  %v1843_v31 = vpop.f32.mrf.mxu1  ;;  %v7248_v14 = vld [vmem:[#allocation41_spill] sm:$0xff] }
 0x2b1   : > { %v1844_v8 = vadd.f32 %v1843_v31, %v7246_v38  ;;  %v7251_v38 = vld [vmem:[#allocation27_spill] sm:$0xff] }
 0x2b2   : > { %v6597_v22 = vadd.f32 %v2979_v47, %v2776_v54  ;;  %v7249_v54 = vld [vmem:[#allocation25_spill] sm:$0xff] }
 0x2b3   : > { %v2433_v53 = vpop.f32.mrf.mxu2  ;;  %4810 = vmatmul.msk.bf16.vlgmr.msra.gmra.mxu1 %vm1185_vm3, %v7245_v26 }
 0x2b4   : > { %v2523_v16 = vadd.f32 %v2433_v53, %v1841_v33  ;;  %v7250_v53 = vld [vmem:[#allocation36_spill] sm:$0xff] }
 0x2b5   : > { %v2981_v32 = vpop.f32.mrf.mxu0 }
 0x2b7   : > { %v2687_v17 = vpop.f32.mrf.mxu3 }
 0x2b8   : > { %v2777_v18 = vadd.f32 %v2687_v17, %v2523_v16  ;;  %4851 = vmatmul.msk.bf16.vlgmr.msra.gmra.mxu2 %vm1185_vm3, %v5109_v15  ;;  %v1845_v2 = vpop.f32.mrf.mxu1 }
 0x2b9   : > { %v1846_v34 = vadd.f32 %v1845_v2, %v7249_v54  ;;  %v7252_v2 = vld [vmem:[#allocation15_spill] sm:$0xff] }
 0x2ba   : > { %v6604_v52 = vadd.f32 %v2981_v32, %v2777_v18  ;;  %v5110_v18 = vld [vmem:[%s5269_s10 + $0x30] sm:$0xff] }
 0x2bb   : > { %v2436_v58 = vpop.f32.mrf.mxu2 }
 0x2bc   : > { %4884 = vmatmul.msk.bf16.vlgmr.msra.gmra.mxu3 %vm1185_vm3, %v7247_v42  ;;  %v2524_v1 = vadd.f32 %v2436_v58, %v1844_v8 }
 0x2bd   : > { %v2984_v40 = vpop.f32.mrf.mxu0 }
 0x2bf   : > { %v2690_v4 = vpop.f32.mrf.mxu3 }
 0x2c0   : > { %4918 = vmatmul.msk.bf16.vlgmr.msra.gmra.mxu0 %vm1185_vm3, %v7248_v14  ;;  %v2778_v47 = vadd.f32 %v2690_v4, %v2524_v1  ;;  %v1848_v56 = vpop.f32.mrf.mxu1 }
 0x2c1   : > { %v1849_v8 = vadd.f32 %v1848_v56, %v7251_v38  ;;  %v5111_v38 = vld [vmem:[%s5269_s10 + $0x3c] sm:$0xff] }
 0x2c2   : > { %v6611_v33 = vadd.f32 %v2984_v40, %v2778_v47  ;;  %v7253_v47 = vld [vmem:[#allocation45_spill] sm:$0xff] }
 0x2c3   : > { %v2438_v31 = vpop.f32.mrf.mxu2  ;;  %4811 = vmatmul.msk.bf16.gmra.mxu1 %vm1185_vm3, %v7250_v53 }
 0x2c4   : > { %v2525_v26 = vadd.f32 %v2438_v31, %v1846_v34  ;;  %v7254_v31 = vld [vmem:[#allocation29_spill] sm:$0xff] }
 0x2c5   : > { %v2986_v16 = vpop.f32.mrf.mxu0 }
 0x2c7   : > { %v2692_v32 = vpop.f32.mrf.mxu3 }
 0x2c8   : > { %v2779_v17 = vadd.f32 %v2692_v32, %v2525_v26  ;;  %4852 = vmatmul.msk.bf16.gmra.mxu2 %vm1185_vm3, %v5110_v18  ;;  %v1850_v15 = vpop.f32.mrf.mxu1 }
 0x2c9   : > { %v1851_v53 = vadd.f32 %v1850_v15, %v7254_v31  ;;  %v7258_v15 = vld [vmem:[#allocation18_spill] sm:$0xff] }
 0x2ca   : > { %v6618_v58 = vadd.f32 %v2986_v16, %v2779_v17  ;;  %v7259_v31 = vld [vmem:[#allocation50_spill] sm:$0xff] }
 0x2cb   : > { %v2441_v42 = vpop.f32.mrf.mxu2 }
 0x2cc   : > { %4885 = vmatmul.msk.bf16.gmra.mxu3 %vm1185_vm3, %v7252_v2  ;;  %v2526_v1 = vadd.f32 %v2441_v42, %v1849_v8  ;;  %v7256_v42 = vld [vmem:[#allocation31_spill] sm:$0xff] }
 0x2cd   : > { %v2989_v40 = vpop.f32.mrf.mxu0 }
 0x2cf   : > { %v2695_v4 = vpop.f32.mrf.mxu3 }
 0x2d0   : > { %4919 = vmatmul.msk.bf16.gmra.mxu0 %vm1185_vm3, %v7253_v47  ;;  %v2780_v54 = vadd.f32 %v2695_v4, %v2526_v1  ;;  %v1853_v34 = vpop.f32.mrf.mxu1 }
 0x2d1   : > { %v1854_v2 = vadd.f32 %v1853_v34, %v7256_v42 }
 0x2d2   : > { %v6625_v26 = vadd.f32 %v2989_v40, %v2780_v54 }
 0x2d3   : > { %v2443_v56 = vpop.f32.mrf.mxu2  ;;  %4812 = vmatmul.msk.bf16.gmra.mxu1 %vm1185_vm3, %v7248_v14 }
 0x2d4   : > { %7255 = vst [vmem:[#allocation2_spill] sm:$0xff] %v6625_v26  ;;  %v2527_v16 = vadd.f32 %v2443_v56, %v1851_v53 }
 0x2d5   : > { %v2991_v32 = vpop.f32.mrf.mxu0 }
 0x2d7   : > { %v2697_v17 = vpop.f32.mrf.mxu3 }
 0x2d8   : > { %v2781_v18 = vadd.f32 %v2697_v17, %v2527_v16  ;;  %4853 = vmatmul.msk.bf16.gmra.mxu2 %vm1185_vm3, %v5111_v38  ;;  %v1855_v8 = vpop.f32.mrf.mxu1  ;;  %v7260_v16 = vld [vmem:[#allocation34_spill] sm:$0xff] }
 0x2d9   : > { %v1856_v17 = vadd.f32 %v1855_v8, %v7260_v16  ;;  %v7264_v8 = vld [vmem:[#allocation22_spill] sm:$0xff]  ;;  %v7265_v16 = vld [vmem:[#allocation56_spill] sm:$0xff] }
 0x2da   : > { %v6632_v1 = vadd.f32 %v2991_v32, %v2781_v18 }
 0x2db   : > { %v2446_v4 = vpop.f32.mrf.mxu2 }
 0x2dc   : > { %7257 = vst [vmem:[#allocation52_spill] sm:$0xff] %v6632_v1  ;;  %4886 = vmatmul.msk.bf16.gmra.mxu3 %vm1185_vm3, %v7258_v15  ;;  %v2528_v40 = vadd.f32 %v2446_v4, %v1854_v2  ;;  %v5112_v2 = vld [vmem:[%s5269_s10 + $0x44] sm:$0xff]  ;;  %v7262_v1 = vld [vmem:[#allocation37_spill] sm:$0xff] }
 0x2dd   : > { %v2994_v54 = vpop.f32.mrf.mxu0 }
 0x2df   : > { %v2700_v14 = vpop.f32.mrf.mxu3 }
 0x2e0   : > { %4920 = vmatmul.msk.bf16.gmra.mxu0 %vm1185_vm3, %v7259_v31  ;;  %v2782_v53 = vadd.f32 %v2700_v14, %v2528_v40  ;;  %v1858_v56 = vpop.f32.mrf.mxu1 }
 0x2e1   : > { %v1859_v26 = vadd.f32 %v1858_v56, %v7262_v1 }
 0x2e2   : > { %v6639_v38 = vadd.f32 %v2994_v54, %v2782_v53 }
 0x2e3   : > { %v2448_v34 = vpop.f32.mrf.mxu2  ;;  %4813 = vmatmul.msk.bf16.gmra.mxu1 %vm1185_vm3, %v7253_v47 }
 0x2e4   : > { %7261 = vst [vmem:[#allocation55_spill] sm:$0xff] %v6639_v38  ;;  %v2529_v32 = vadd.f32 %v2448_v34, %v1856_v17 }
 0x2e5   : > { %v2996_v18 = vpop.f32.mrf.mxu0 }
 0x2e7   : > { %v2702_v42 = vpop.f32.mrf.mxu3 }
 0x2e8   : > { %v2783_v15 = vadd.f32 %v2702_v42, %v2529_v32  ;;  %4854 = vmatmul.msk.bf16.gmra.mxu2 %vm1185_vm3, %v5112_v2  ;;  %v1860_v4 = vpop.f32.mrf.mxu1  ;;  %v7266_v32 = vld [vmem:[#allocation39_spill] sm:$0xff] }
 0x2e9   : > { %v1861_v42 = vadd.f32 %v1860_v4, %v7266_v32  ;;  %v7270_v4 = vld [vmem:[#allocation3_spill] sm:$0xff]  ;;  %v7271_v32 = vld [vmem:[#allocation62_spill] sm:$0xff] }
 0x2ea   : > { %v6646_v40 = vadd.f32 %v2996_v18, %v2783_v15 }
 0x2eb   : > { %v2451_v14 = vpop.f32.mrf.mxu2 }
 0x2ec   : > { %7263 = vst [vmem:[#allocation59_spill] sm:$0xff] %v6646_v40  ;;  %4887 = vmatmul.msk.bf16.gmra.mxu3 %vm1185_vm3, %v7264_v8  ;;  %v2530_v54 = vadd.f32 %v2451_v14, %v1859_v26  ;;  %v5113_v26 = vld [vmem:[%s5269_s10 + $0x50] sm:$0xff]  ;;  %v7268_v40 = vld [vmem:[#allocation42_spill] sm:$0xff] }
 0x2ed   : > { %v2999_v53 = vpop.f32.mrf.mxu0 }
 0x2ef   : > { %v2705_v47 = vpop.f32.mrf.mxu3 }
 0x2f0   : > { %4921 = vmatmul.msk.bf16.gmra.mxu0 %vm1185_vm3, %v7265_v16  ;;  %v2784_v17 = vadd.f32 %v2705_v47, %v2530_v54  ;;  %v1863_v34 = vpop.f32.mrf.mxu1 }
 0x2f1   : > { %v1864_v38 = vadd.f32 %v1863_v34, %v7268_v40 }
 0x2f2   : > { %v6653_v2 = vadd.f32 %v2999_v53, %v2784_v17 }
 0x2f3   : > { %v2453_v1 = vpop.f32.mrf.mxu2  ;;  %4814 = vmatmul.msk.bf16.gmra.mxu1 %vm1185_vm3, %v7259_v31 }
 0x2f4   : > { %7267 = vst [vmem:[#allocation61_spill] sm:$0xff] %v6653_v2  ;;  %v2531_v56 = vadd.f32 %v2453_v1, %v1861_v42 }
 0x2f5   : > { %v3001_v18 = vpop.f32.mrf.mxu0 }
 0x2f7   : > { %v2707_v15 = vpop.f32.mrf.mxu3 }
 0x2f8   : > { %v2785_v8 = vadd.f32 %v2707_v15, %v2531_v56  ;;  %4855 = vmatmul.msk.bf16.gmra.mxu2 %vm1185_vm3, %v5113_v26  ;;  %v1865_v14 = vpop.f32.mrf.mxu1  ;;  %v7272_v56 = vld [vmem:[#allocation44_spill] sm:$0xff] }
 0x2f9   : > { %v1866_v15 = vadd.f32 %v1865_v14, %v7272_v56  ;;  %v7275_v14 = vld [vmem:[#allocation5_spill] sm:$0xff] }
 0x2fa   : > { %v6660_v54 = vadd.f32 %v3001_v18, %v2785_v8 }
 0x2fb   : > { %v2456_v47 = vpop.f32.mrf.mxu2 }
 0x2fc   : > { %7269 = vst [vmem:[#allocation32_spill] sm:$0xff] %v6660_v54  ;;  %4888 = vmatmul.msk.bf16.gmra.mxu3 %vm1185_vm3, %v7270_v4  ;;  %v2532_v53 = vadd.f32 %v2456_v47, %v1864_v38  ;;  %v5114_v38 = vld [vmem:[%s5269_s10 + $0x58] sm:$0xff]  ;;  %v7273_v54 = vld [vmem:[#allocation47_spill] sm:$0xff] }
 0x2fd   : > { %v3004_v17 = vpop.f32.mrf.mxu0 }
 0x2ff   : > { %v2710_v31 = vpop.f32.mrf.mxu3 }
 0x300   : > { %4922 = vmatmul.msk.bf16.gmra.mxu0 %vm1185_vm3, %v7271_v32  ;;  %v2786_v42 = vadd.f32 %v2710_v31, %v2532_v53  ;;  %v1868_v1 = vpop.f32.mrf.mxu1 }
 0x301   : > { %v1869_v2 = vadd.f32 %v1868_v1, %v7273_v54 }
 0x302   : > { %v6667_v26 = vadd.f32 %v3004_v17, %v2786_v42 }
 0x303   : > { %v2458_v40 = vpop.f32.mrf.mxu2  ;;  %4815 = vmatmul.msk.bf16.gmra.mxu1 %vm1185_vm3, %v7265_v16 }
 0x304   : > { %v2533_v34 = vadd.f32 %v2458_v40, %v1866_v15  ;;  %v7276_v40 = vld [vmem:[#allocation49_spill] sm:$0xff] }
 0x305   : > { %v3006_v18 = vpop.f32.mrf.mxu0 }
 0x307   : > { %v2712_v8 = vpop.f32.mrf.mxu3 }
 0x308   : > { %v2787_v4 = vadd.f32 %v2712_v8, %v2533_v34  ;;  %4856 = vmatmul.msk.bf16.gmra.mxu2 %vm1185_vm3, %v5114_v38  ;;  %v1870_v47 = vpop.f32.mrf.mxu1 }
 0x309   : > { %v1871_v34 = vadd.f32 %v1870_v47, %v7276_v40  ;;  %v7279_v47 = vld [vmem:[#allocation7_spill] sm:$0xff] }
 0x30a   : > { %v6674_v53 = vadd.f32 %v3006_v18, %v2787_v4 }
 0x30b   : > { %v2461_v31 = vpop.f32.mrf.mxu2 }
 0x30c   : > { %7274 = vst [vmem:[#allocation23_spill] sm:$0xff] %v6674_v53  ;;  %4889 = vmatmul.msk.bf16.gmra.mxu3 %vm1185_vm3, %v7275_v14  ;;  %v2534_v17 = vadd.f32 %v2461_v31, %v1869_v2  ;;  %v5115_v2 = vld [vmem:[%s5269_s10 + $0x64] sm:$0xff]  ;;  %v7277_v14 = vld [vmem:[#allocation53_spill] sm:$0xff] }
 0x30d   : > { %v3009_v42 = vpop.f32.mrf.mxu0 }
 0x30f   : > { %v2715_v16 = vpop.f32.mrf.mxu3 }
 0x310   : > { %4923 = vmatmul.msk.bf16.gmra.mxu0 %vm1185_vm3, %v6075_v51  ;;  %v2788_v56 = vadd.f32 %v2715_v16, %v2534_v17  ;;  %v1873_v15 = vpop.f32.mrf.mxu1 }
 0x311   : > { %v1874_v53 = vadd.f32 %v1873_v15, %v7277_v14 }
 0x312   : > { %v6681_v8 = vadd.f32 %v3009_v42, %v2788_v56 }
 0x313   : > { %v2463_v54 = vpop.f32.mrf.mxu2  ;;  %4816 = vmatmul.msk.bf16.gmra.mxu1 %vm1185_vm3, %v7271_v32 }
 0x314   : > { %v2535_v1 = vadd.f32 %v2463_v54, %v1871_v34  ;;  %v7280_v54 = vld [vmem:[#allocation57_spill] sm:$0xff] }
 0x315   : > { %v3011_v18 = vpop.f32.mrf.mxu0 }
 0x317   : > { %v2717_v4 = vpop.f32.mrf.mxu3 }
 0x318   : > { %v2789_v38 = vadd.f32 %v2717_v4, %v2535_v1  ;;  %4857 = vmatmul.msk.bf16.gmra.mxu2 %vm1185_vm3, %v5115_v2  ;;  %v1875_v31 = vpop.f32.mrf.mxu1 }
 0x319   : > { %v1876_v1 = vadd.f32 %v1875_v31, %v7280_v54  ;;  %v7284_v31 = vld [vmem:[#allocation9_spill] sm:$0xff] }
 0x31a   : > { %v6688_v17 = vadd.f32 %v3011_v18, %v2789_v38 }
 0x31b   : > { %v2466_v16 = vpop.f32.mrf.mxu2 }
 0x31c   : > { %7278 = vst [vmem:[#allocation12_spill] sm:$0xff] %v6688_v17  ;;  %4890 = vmatmul.msk.bf16.gmra.mxu3 %vm1185_vm3, %v7279_v47  ;;  %v2536_v42 = vadd.f32 %v2466_v16, %v1874_v53  ;;  %v5116_v53 = vld [vmem:[%s5269_s10 + $0x6c] sm:$0xff] }
 0x31d   : > { %v3014_v56 = vpop.f32.mrf.mxu0  ;;  %v7282_v47 = vld [vmem:[#allocation60_spill] sm:$0xff] }
 0x31f   : > { %v2720_v32 = vpop.f32.mrf.mxu3 }
 0x320   : > { %4924 = vmatmul.msk.bf16.gmra.mxu0 %vm1185_vm3, %v6097_v43  ;;  %v2790_v40 = vadd.f32 %v2720_v32, %v2536_v42  ;;  %v1878_v34 = vpop.f32.mrf.mxu1 }
 0x321   : > { %v1879_v17 = vadd.f32 %v1878_v34, %v7282_v47 }
 0x322   : > { %v6695_v4 = vadd.f32 %v3014_v56, %v2790_v40 }
 0x323   : > { %v2468_v15 = vpop.f32.mrf.mxu2  ;;  %4817 = vmatmul.msk.bf16.gmra.mxu1 %vm1185_vm3, %v6075_v51 }
 0x324   : > { %7281 = vst [vmem:[#allocation41_spill] sm:$0xff] %v6695_v4  ;;  %v2537_v18 = vadd.f32 %v2468_v15, %v1876_v1  ;;  %v7285_v15 = vld [vmem:[#allocation64_spill] sm:$0xff] }
 0x325   : > { %v3016_v38 = vpop.f32.mrf.mxu0 }
 0x327   : > { %v2722_v2 = vpop.f32.mrf.mxu3 }
 0x328   : > { %v2791_v14 = vadd.f32 %v2722_v2, %v2537_v18  ;;  %4858 = vmatmul.msk.bf16.gmra.mxu2 %vm1185_vm3, %v5116_v53  ;;  %v1880_v16 = vpop.f32.mrf.mxu1  ;;  %v7286_v2 = vld [vmem:[#allocation63_spill] sm:$0xff] }
 0x329   : > { %v1881_v53 = vadd.f32 %v1880_v16, %v7286_v2 }
 0x32a   : > { %v6702_v42 = vadd.f32 %v3016_v38, %v2791_v14 }
 0x32b   : > { %v2471_v32 = vpop.f32.mrf.mxu2 }
 0x32c   : > { %7283 = vst [vmem:[#allocation25_spill] sm:$0xff] %v6702_v42  ;;  %4891 = vmatmul.msk.bf16.gmra.mxu3 %vm1185_vm3, %v7284_v31  ;;  %v2538_v56 = vadd.f32 %v2471_v32, %v1879_v17  ;;  %v5117_v31 = vld [vmem:[%s5269_s10 + $0x78] sm:$0xff] }
 0x32d   : > { %v3019_v40 = vpop.f32.mrf.mxu0 }
 0x32f   : > { %v2725_v51 = vpop.f32.mrf.mxu3 }
 0x330   : > { %4925 = vmatmul.msk.bf16.gmra.mxu0 %vm1185_vm3, %v6118_v0  ;;  %v2792_v54 = vadd.f32 %v2725_v51, %v2538_v56  ;;  %v3128_v1 = vpop.f32.mrf.mxu1  ;;  %v7287_v56 = vld [vmem:[#allocation65_spill] sm:$0xff] }
 0x331   : > { %v3288_v18 = vadd.f32 %v3128_v1, %v7285_v15 }
 0x332   : > { %v6710_v34 = vadd.f32 %v3019_v40, %v2792_v54 }
 0x333   : > { %v2473_v38 = vpop.f32.mrf.mxu2  ;;  %4818 = vmatmul.msk.bf16.gmra.mxu1 %vm1185_vm3, %v6097_v43 }
 0x334   : > { %v2539_v14 = vadd.f32 %v2473_v38, %v1881_v53 }
 0x335   : > { %v3021_v47 = vpop.f32.mrf.mxu0 }
 0x337   : > { %v2727_v17 = vpop.f32.mrf.mxu3 }
 0x338   : > { %v2793_v32 = vadd.f32 %v2727_v17, %v2539_v14  ;;  %4859 = vmatmul.msk.bf16.gmra.mxu2 %vm1185_vm3, %v5117_v31  ;;  %v3130_v42 = vpop.f32.mrf.mxu1 }
 0x339   : > { %v3289_v51 = vadd.f32 %v3130_v42, %v7287_v56 }
 0x33a   : > { %v6717_v4 = vadd.f32 %v3021_v47, %v2793_v32 }
 0x33b   : > { %v3382_v1 = vpop.f32.mrf.mxu2 }
 0x33c   : > { %4892 = vmatmul.msk.bf16.gmra.mxu3 %vm1185_vm3, %v5541_v60  ;;  %v3542_v16 = vadd.f32 %v3382_v1, %v3288_v18  ;;  %v5118_v60 = vld [vmem:[%s5269_s10 + $0x80] sm:$0xff] }
 0x33d   : > { %v3940_v40 = vpop.f32.mrf.mxu0 }
 0x33f   : > { %v3676_v43 = vpop.f32.mrf.mxu3 }
 0x340   : > { %4926 = vmatmul.msk.bf16.gmra.mxu0 %vm1185_vm3, %v6140_v55  ;;  %v3836_v54 = vadd.f32 %v3676_v43, %v3542_v16  ;;  %v3133_v15 = vpop.f32.mrf.mxu1 }
 0x341   : > { %v3290_v2 = vadd.f32 %v3133_v15, %v6094_v48 }
 0x342   : > { %v4100_v53 = vadd.f32 %v3940_v40, %v3836_v54 }
 0x343   : > { %v3384_v38 = vpop.f32.mrf.mxu2  ;;  %4819 = vmatmul.msk.bf16.gmra.mxu1 %vm1185_vm3, %v6118_v0 }
 0x344   : > { %v3543_v42 = vadd.f32 %v3384_v38, %v3289_v51  ;;  %v4234_v1 = vmul.f32 %v4100_v53, %v4100_v53  ;;  %v7288_v38 = vld [vmem:[#allocation66_spill] sm:$0xff] }
 0x345   : > { %v3942_v14 = vpop.f32.mrf.mxu0 }
 0x347   : > { %v3678_v47 = vpop.f32.mrf.mxu3 }
 0x348   : > { %v3837_v17 = vadd.f32 %v3678_v47, %v3543_v42  ;;  %4860 = vmatmul.msk.bf16.gmra.mxu2 %vm1185_vm3, %v5118_v60  ;;  %v3135_v18 = vpop.f32.mrf.mxu1 }
 0x349   : > { %v3291_v32 = vadd.f32 %v3135_v18, %v6105_v13 }
 0x34a   : > { %v4101_v31 = vadd.f32 %v3942_v14, %v3837_v17 }
 0x34b   : > { %v3387_v56 = vpop.f32.mrf.mxu2 }
 0x34c   : > { %v4164_v16 = vadd.f32 %v4101_v31, %v4100_v53  ;;  %v4235_v48 = vmul.f32 %v4101_v31, %v4101_v31  ;;  %4893 = vmatmul.msk.bf16.gmra.mxu3 %vm1185_vm3, %v5604_v20  ;;  %v3544_v40 = vadd.f32 %v3387_v56, %v3290_v2  ;;  %v5119_v31 = vld [vmem:[%s5269_s10 + $0x8c] sm:$0xff] }
 0x34d   : > { %v3945_v0 = vpop.f32.mrf.mxu0 }
 0x34e   : > { %v4298_v51 = vadd.f32 %v4235_v48, %v4234_v1  ;;  %v7289_v1 = vld [vmem:[#allocation67_spill] sm:$0xff] }
 0x34f   : > { %v3681_v43 = vpop.f32.mrf.mxu3 }
 0x350   : > { %4927 = vmatmul.msk.bf16.gmra.mxu0 %vm1185_vm3, %v6161_v59  ;;  %v3838_v54 = vadd.f32 %v3681_v43, %v3544_v40  ;;  %v3138_v15 = vpop.f32.mrf.mxu1 }
 0x351   : > { %v3292_v13 = vadd.f32 %v3138_v15, %v7288_v38 }
 0x352   : > { %v4102_v42 = vadd.f32 %v3945_v0, %v3838_v54 }
 0x353   : > { %v3389_v14 = vpop.f32.mrf.mxu2  ;;  %4820 = vmatmul.msk.bf16.gmra.mxu1 %vm1185_vm3, %v6140_v55 }
 0x354   : > { %v4165_v53 = vadd.f32 %v4164_v16, %v4102_v42  ;;  %v4236_v47 = vmul.f32 %v4102_v42, %v4102_v42  ;;  %v3545_v20 = vadd.f32 %v3389_v14, %v3291_v32 }
 0x355   : > { %v3947_v2 = vpop.f32.mrf.mxu0 }
 0x356   : > { %v4299_v17 = vadd.f32 %v4298_v51, %v4236_v47 }
 0x357   : > { %v3683_v60 = vpop.f32.mrf.mxu3 }
 0x358   : > { %v3839_v18 = vadd.f32 %v3683_v60, %v3545_v20  ;;  %4861 = vmatmul.msk.bf16.gmra.mxu2 %vm1185_vm3, %v5119_v31  ;;  %v3140_v56 = vpop.f32.mrf.mxu1 }
 0x359   : > { %v3293_v48 = vadd.f32 %v3140_v56, %v7289_v1 }
 0x35a   : > { %v4103_v40 = vadd.f32 %v3947_v2, %v3839_v18  ;;  %v5120_v18 = vld [vmem:[%s5269_s10 + $0x94] sm:$0xff] }
 0x35b   : > { %v3392_v43 = vpop.f32.mrf.mxu2 }
 0x35c   : > { %v4166_v0 = vadd.f32 %v4165_v53, %v4103_v40  ;;  %v4237_v54 = vmul.f32 %v4103_v40, %v4103_v40  ;;  %4894 = vmatmul.msk.bf16.gmra.mxu3 %vm1185_vm3, %v5671_v23  ;;  %v3546_v55 = vadd.f32 %v3392_v43, %v3292_v13 }
 0x35d   : > { %v3950_v16 = vpop.f32.mrf.mxu0 }
 0x35e   : > { %v4300_v32 = vadd.f32 %v4299_v17, %v4237_v54 }
 0x35f   : > { %v3686_v51 = vpop.f32.mrf.mxu3 }
 0x360   : > { %4928 = vmatmul.msk.bf16.gmra.mxu0 %vm1185_vm3, %v6183_v46  ;;  %v3840_v15 = vadd.f32 %v3686_v51, %v3546_v55  ;;  %v3143_v38 = vpop.f32.mrf.mxu1 }
 0x361   : > { %v3294_v42 = vadd.f32 %v3143_v38, %v6137_v49 }
 0x362   : > { %v4104_v14 = vadd.f32 %v3950_v16, %v3840_v15 }
 0x363   : > { %v3394_v47 = vpop.f32.mrf.mxu2  ;;  %4821 = vmatmul.msk.bf16.gmra.mxu1 %vm1185_vm3, %v6161_v59 }
 0x364   : > { %v4167_v53 = vadd.f32 %v4166_v0, %v4104_v14  ;;  %v4238_v20 = vmul.f32 %v4104_v14, %v4104_v14  ;;  %v3547_v23 = vadd.f32 %v3394_v47, %v3293_v48 }
 0x365   : > { %v3952_v13 = vpop.f32.mrf.mxu0 }
 0x366   : > { %v4301_v2 = vadd.f32 %v4300_v32, %v4238_v20  ;;  %v7290_v32 = vld [vmem:[#allocation68_spill] sm:$0xff] }
 0x367   : > { %v3688_v17 = vpop.f32.mrf.mxu3 }
 0x368   : > { %v3841_v60 = vadd.f32 %v3688_v17, %v3547_v23  ;;  %4862 = vmatmul.msk.bf16.gmra.mxu2 %vm1185_vm3, %v5120_v18  ;;  %v3145_v31 = vpop.f32.mrf.mxu1  ;;  %v5121_v23 = vld [vmem:[%s5269_s10 + $0xa0] sm:$0xff] }
 0x369   : > { %v3295_v56 = vadd.f32 %v3145_v31, %v6148_v6 }
 0x36a   : > { %v4105_v1 = vadd.f32 %v3952_v13, %v3841_v60 }
 0x36b   : > { %v3397_v49 = vpop.f32.mrf.mxu2 }
 0x36c   : > { %v4168_v40 = vadd.f32 %v4167_v53, %v4105_v1  ;;  %v4239_v43 = vmul.f32 %v4105_v1, %v4105_v1  ;;  %4895 = vmatmul.msk.bf16.gmra.mxu3 %vm1185_vm3, %v5744_v30  ;;  %v3548_v59 = vadd.f32 %v3397_v49, %v3294_v42 }
 0x36d   : > { %v3955_v0 = vpop.f32.mrf.mxu0 }
 0x36e   : > { %v4302_v48 = vadd.f32 %v4301_v2, %v4239_v43  ;;  %v7291_v2 = vld [vmem:[#allocation69_spill] sm:$0xff] }
 0x36f   : > { %v3691_v54 = vpop.f32.mrf.mxu3 }
 0x370   : > { %4929 = vmatmul.msk.bf16.gmra.mxu0 %vm1185_vm3, %v6204_v45  ;;  %v3842_v55 = vadd.f32 %v3691_v54, %v3548_v59  ;;  %v3148_v16 = vpop.f32.mrf.mxu1 }
 0x371   : > { %v3296_v51 = vadd.f32 %v3148_v16, %v7290_v32 }
 0x372   : > { %v4106_v6 = vadd.f32 %v3955_v0, %v3842_v55 }
 0x373   : > { %v3399_v15 = vpop.f32.mrf.mxu2  ;;  %4822 = vmatmul.msk.bf16.gmra.mxu1 %vm1185_vm3, %v6183_v46 }
 0x374   : > { %v4169_v38 = vadd.f32 %v4168_v40, %v4106_v6  ;;  %v4240_v14 = vmul.f32 %v4106_v6, %v4106_v6  ;;  %v3549_v30 = vadd.f32 %v3399_v15, %v3295_v56 }
 0x375   : > { %v3957_v42 = vpop.f32.mrf.mxu0 }
 0x376   : > { %v4303_v47 = vadd.f32 %v4302_v48, %v4240_v14 }
 0x377   : > { %v3693_v53 = vpop.f32.mrf.mxu3 }
 0x378   : > { %v3843_v20 = vadd.f32 %v3693_v53, %v3549_v30  ;;  %4863 = vmatmul.msk.bf16.gmra.mxu2 %vm1185_vm3, %v5121_v23  ;;  %v3150_v13 = vpop.f32.mrf.mxu1 }
 0x379   : > { %v3297_v17 = vadd.f32 %v3150_v13, %v7291_v2 }
 0x37a   : > { %v4107_v60 = vadd.f32 %v3957_v42, %v3843_v20 }
 0x37b   : > { %v3402_v18 = vpop.f32.mrf.mxu2 }
 0x37c   : > { %v4170_v31 = vadd.f32 %v4169_v38, %v4107_v60  ;;  %v4241_v1 = vmul.f32 %v4107_v60, %v4107_v60  ;;  %4896 = vmatmul.msk.bf16.gmra.mxu3 %vm1185_vm3, %v5323_v19  ;;  %v3550_v46 = vadd.f32 %v3402_v18, %v3296_v51  ;;  %v5122_v38 = vld [vmem:[%s5269_s10 + $0xa8] sm:$0xff] }
 0x37d   : > { %v3960_v49 = vpop.f32.mrf.mxu0 }
 0x37e   : > { %v4304_v56 = vadd.f32 %v4303_v47, %v4241_v1 }
 0x37f   : > { %v3696_v40 = vpop.f32.mrf.mxu3 }
 0x380   : > { %4930 = vmatmul.msk.bf16.gmra.mxu0 %vm1185_vm3, %v6226_v9  ;;  %v3844_v43 = vadd.f32 %v3696_v40, %v3550_v46  ;;  %v3153_v59 = vpop.f32.mrf.mxu1 }
 0x381   : > { %v3298_v0 = vadd.f32 %v3153_v59, %v6180_v21 }
 0x382   : > { %v4108_v48 = vadd.f32 %v3960_v49, %v3844_v43  ;;  %v5123_v43 = vld [vmem:[%s5269_s10 + $0xb4] sm:$0xff] }
 0x383   : > { %v3404_v54 = vpop.f32.mrf.mxu2  ;;  %4823 = vmatmul.msk.bf16.gmra.mxu1 %vm1185_vm3, %v6204_v45 }
 0x384   : > { %v4171_v55 = vadd.f32 %v4170_v31, %v4108_v48  ;;  %v4242_v16 = vmul.f32 %v4108_v48, %v4108_v48  ;;  %v3551_v19 = vadd.f32 %v3404_v54, %v3297_v17 }
 0x385   : > { %v3962_v32 = vpop.f32.mrf.mxu0 }
 0x386   : > { %v4305_v51 = vadd.f32 %v4304_v56, %v4242_v16 }
 0x387   : > { %v3698_v6 = vpop.f32.mrf.mxu3 }
 0x388   : > { %v3845_v15 = vadd.f32 %v3698_v6, %v3551_v19  ;;  %4864 = vmatmul.msk.bf16.gmra.mxu2 %vm1185_vm3, %v5122_v38  ;;  %v3155_v14 = vpop.f32.mrf.mxu1 }
 0x389   : > { %v3299_v30 = vadd.f32 %v3155_v14, %v6191_v39 }
 0x38a   : > { %v4109_v42 = vadd.f32 %v3962_v32, %v3845_v15 }
 0x38b   : > { %v3407_v21 = vpop.f32.mrf.mxu2 }
 0x38c   : > { %v4172_v47 = vadd.f32 %v4171_v55, %v4109_v42  ;;  %v4243_v53 = vmul.f32 %v4109_v42, %v4109_v42  ;;  %4897 = vmatmul.msk.bf16.gmra.mxu3 %vm1185_vm3, %v5370_v37  ;;  %v3552_v45 = vadd.f32 %v3407_v21, %v3298_v0 }
 0x38d   : > { %v3965_v20 = vpop.f32.mrf.mxu0 }
 0x38e   : > { %v4306_v23 = vadd.f32 %v4305_v51, %v4243_v53 }
 0x38f   : > { %v3701_v13 = vpop.f32.mrf.mxu3 }
 0x390   : > { %4931 = vmatmul.msk.bf16.gmra.mxu0 %vm1185_vm3, %v6247_v5  ;;  %v3846_v2 = vadd.f32 %v3701_v13, %v3552_v45  ;;  %v3158_v17 = vpop.f32.mrf.mxu1  ;;  %v5124_v45 = vld [vmem:[%s5269_s10 + $0xbc] sm:$0xff] }
 0x391   : > { %v3300_v60 = vadd.f32 %v3158_v17, %v6201_v29 }
 0x392   : > { %v4110_v39 = vadd.f32 %v3965_v20, %v3846_v2 }
 0x393   : > { %v3409_v18 = vpop.f32.mrf.mxu2  ;;  %4824 = vmatmul.msk.bf16.gmra.mxu1 %vm1185_vm3, %v6226_v9 }
 0x394   : > { %v4173_v31 = vadd.f32 %v4172_v47, %v4110_v39  ;;  %v4244_v1 = vmul.f32 %v4110_v39, %v4110_v39  ;;  %v3553_v37 = vadd.f32 %v3409_v18, %v3299_v30 }
 0x395   : > { %v3967_v46 = vpop.f32.mrf.mxu0 }
 0x396   : > { %v4307_v49 = vadd.f32 %v4306_v23, %v4244_v1 }
 0x397   : > { %v3703_v56 = vpop.f32.mrf.mxu3 }
 0x398   : > { %v3847_v40 = vadd.f32 %v3703_v56, %v3553_v37  ;;  %4865 = vmatmul.msk.bf16.gmra.mxu2 %vm1185_vm3, %v5123_v43  ;;  %v3160_v59 = vpop.f32.mrf.mxu1  ;;  %v7292_v37 = vld [vmem:[#allocation70_spill] sm:$0xff] }
 0x399   : > { %v3301_v0 = vadd.f32 %v3160_v59, %v6213_v44 }
 0x39a   : > { %v4111_v48 = vadd.f32 %v3967_v46, %v3847_v40 }
 0x39b   : > { %v3412_v29 = vpop.f32.mrf.mxu2 }
 0x39c   : > { %v4174_v54 = vadd.f32 %v4173_v31, %v4111_v48  ;;  %v4245_v55 = vmul.f32 %v4111_v48, %v4111_v48  ;;  %4898 = vmatmul.msk.bf16.gmra.mxu3 %vm1185_vm3, %v5433_v11  ;;  %v3554_v9 = vadd.f32 %v3412_v29, %v3300_v60  ;;  %v5125_v29 = vld [vmem:[%s5269_s10 + $0xc8] sm:$0xff] }
 0x39d   : > { %v3970_v16 = vpop.f32.mrf.mxu0 }
 0x39e   : > { %v4308_v19 = vadd.f32 %v4307_v49, %v4245_v55  ;;  %v7293_v55 = vld [vmem:[#allocation71_spill] sm:$0xff] }
 0x39f   : > { %v3706_v32 = vpop.f32.mrf.mxu3 }
 0x3a0   : > { %4932 = vmatmul.msk.bf16.gmra.mxu0 %vm1185_vm3, %v6269_v7  ;;  %v3848_v51 = vadd.f32 %v3706_v32, %v3554_v9  ;;  %v3163_v6 = vpop.f32.mrf.mxu1 }
 0x3a1   : > { %v3302_v15 = vadd.f32 %v3163_v6, %v6223_v63 }
 0x3a2   : > { %v4112_v44 = vadd.f32 %v3970_v16, %v3848_v51 }
 0x3a3   : > { %v3414_v38 = vpop.f32.mrf.mxu2  ;;  %4825 = vmatmul.msk.bf16.gmra.mxu1 %vm1185_vm3, %v6247_v5 }
 0x3a4   : > { %v4175_v14 = vadd.f32 %v4174_v54, %v4112_v44  ;;  %v4246_v30 = vmul.f32 %v4112_v44, %v4112_v44  ;;  %v3555_v11 = vadd.f32 %v3414_v38, %v3301_v0 }
 0x3a5   : > { %v3972_v42 = vpop.f32.mrf.mxu0 }
 0x3a6   : > { %v4309_v21 = vadd.f32 %v4308_v19, %v4246_v30 }
 0x3a7   : > { %v3708_v47 = vpop.f32.mrf.mxu3 }
 0x3a8   : > { %v3849_v53 = vadd.f32 %v3708_v47, %v3555_v11  ;;  %4866 = vmatmul.msk.bf16.gmra.mxu2 %vm1185_vm3, %v5124_v45  ;;  %v3165_v20 = vpop.f32.mrf.mxu1 }
 0x3a9   : > { %v3303_v23 = vadd.f32 %v3165_v20, %v6234_v62 }
 0x3aa   : > { %v4113_v13 = vadd.f32 %v3972_v42, %v3849_v53 }
 0x3ab   : > { %v3417_v63 = vpop.f32.mrf.mxu2 }
 0x3ac   : > { %v4176_v2 = vadd.f32 %v4175_v14, %v4113_v13  ;;  %v4247_v17 = vmul.f32 %v4113_v13, %v4113_v13  ;;  %4899 = vmatmul.msk.bf16.gmra.mxu3 %vm1185_vm3, %v5497_v50  ;;  %v3556_v5 = vadd.f32 %v3417_v63, %v3302_v15  ;;  %v5126_v13 = vld [vmem:[%s5269_s10 + $0xd0] sm:$0xff] }
 0x3ad   : > { %v3975_v60 = vpop.f32.mrf.mxu0 }
 0x3ae   : > { %v4310_v39 = vadd.f32 %v4309_v21, %v4247_v17 }
 0x3af   : > { %v3711_v18 = vpop.f32.mrf.mxu3 }
 0x3b0   : > { %4933 = vmatmul.msk.bf16.gmra.mxu0 %vm1185_vm3, %v6290_v36  ;;  %v3850_v31 = vadd.f32 %v3711_v18, %v3556_v5  ;;  %v3168_v1 = vpop.f32.mrf.mxu1  ;;  %v7295_v18 = vld [vmem:[#allocation13_spill] sm:$0xff] }
 0x3b1   : > { %v3304_v46 = vadd.f32 %v3168_v1, %v7292_v37 }
 0x3b2   : > { %v4114_v62 = vadd.f32 %v3975_v60, %v3850_v31 }
 0x3b3   : > { %v3419_v49 = vpop.f32.mrf.mxu2  ;;  %4826 = vmatmul.msk.bf16.gmra.mxu1 %vm1185_vm3, %v6269_v7 }
 0x3b4   : > { %v4177_v56 = vadd.f32 %v4176_v2, %v4114_v62  ;;  %v4248_v40 = vmul.f32 %v4114_v62, %v4114_v62  ;;  %v3557_v50 = vadd.f32 %v3419_v49, %v3303_v23  ;;  %v7294_v2 = vld [vmem:[#allocation72_spill] sm:$0xff] }
 0x3b5   : > { %v3977_v43 = vpop.f32.mrf.mxu0 }
 0x3b6   : > { %v4311_v59 = vadd.f32 %v4310_v39, %v4248_v40 }
 0x3b7   : > { %v3713_v0 = vpop.f32.mrf.mxu3 }
 0x3b8   : > { %v3851_v48 = vadd.f32 %v3713_v0, %v3557_v50  ;;  %4867 = vmatmul.msk.bf16.gmra.mxu2 %vm1185_vm3, %v5125_v29  ;;  %v3170_v54 = vpop.f32.mrf.mxu1 }
 0x3b9   : > { %v3305_v9 = vadd.f32 %v3170_v54, %v7293_v55 }
 0x3ba   : > { %v4115_v16 = vadd.f32 %v3977_v43, %v3851_v48 }
 0x3bb   : > { %v3422_v19 = vpop.f32.mrf.mxu2 }
 0x3bc   : > { %v4178_v32 = vadd.f32 %v4177_v56, %v4115_v16  ;;  %v4249_v51 = vmul.f32 %v4115_v16, %v4115_v16  ;;  %4900 = vmatmul.msk.bf16.gmra.mxu3 %vm1185_vm3, %v5562_v25  ;;  %v3558_v7 = vadd.f32 %v3422_v19, %v3304_v46  ;;  %v7296_v46 = vld [vmem:[#allocation78_spill] sm:$0xff]  ;;  %v7297_v56 = vld [vmem:[#allocation73_spill] sm:$0xff] }
 0x3bd   : > { %v3980_v6 = vpop.f32.mrf.mxu0  ;;  %v5127_v16 = vld [vmem:[%s5269_s10 + $0xdc] sm:$0xff] }
 0x3be   : > { %v4312_v15 = vadd.f32 %v4311_v59, %v4249_v51 }
 0x3bf   : > { %v3716_v44 = vpop.f32.mrf.mxu3 }
 0x3c0   : > { %4934 = vmatmul.msk.bf16.gmra.mxu0 %vm1185_vm3, %v6312_v3  ;;  %v3852_v38 = vadd.f32 %v3716_v44, %v3558_v7  ;;  %v3173_v14 = vpop.f32.mrf.mxu1 }
 0x3c1   : > { %v3306_v30 = vadd.f32 %v3173_v14, %v6266_v10 }
 0x3c2   : > { %v4116_v11 = vadd.f32 %v3980_v6, %v3852_v38  ;;  %v7299_v38 = vld [vmem:[#allocation16_spill] sm:$0xff] }
 0x3c3   : > { %v3424_v42 = vpop.f32.mrf.mxu2  ;;  %4827 = vmatmul.msk.bf16.gmra.mxu1 %vm1185_vm3, %v6290_v36 }
 0x3c4   : > { %v4179_v21 = vadd.f32 %v4178_v32, %v4116_v11  ;;  %v4250_v47 = vmul.f32 %v4116_v11, %v4116_v11  ;;  %v3559_v25 = vadd.f32 %v3424_v42, %v3305_v9  ;;  %v7298_v32 = vld [vmem:[#allocation74_spill] sm:$0xff]  ;;  %v7300_v42 = vld [vmem:[#allocation81_spill] sm:$0xff] }
 0x3c5   : > { %v3982_v53 = vpop.f32.mrf.mxu0 }
 0x3c6   : > { %v4313_v45 = vadd.f32 %v4312_v15, %v4250_v47 }
 0x3c7   : > { %v3718_v20 = vpop.f32.mrf.mxu3 }
 0x3c8   : > { %v3853_v23 = vadd.f32 %v3718_v20, %v3559_v25  ;;  %4868 = vmatmul.msk.bf16.gmra.mxu2 %vm1185_vm3, %v5126_v13  ;;  %v3175_v63 = vpop.f32.mrf.mxu1  ;;  %v7301_v25 = vld [vmem:[#allocation75_spill] sm:$0xff] }
 0x3c9   : > { %v3307_v17 = vadd.f32 %v3175_v63, %v7294_v2 }
 0x3ca   : > { %v4117_v5 = vadd.f32 %v3982_v53, %v3853_v23 }
 0x3cb   : > { %v3427_v10 = vpop.f32.mrf.mxu2 }
 0x3cc   : > { %v4180_v60 = vadd.f32 %v4179_v21, %v4117_v5  ;;  %v4251_v39 = vmul.f32 %v4117_v5, %v4117_v5  ;;  %4901 = vmatmul.msk.bf16.gmra.mxu3 %vm1185_vm3, %v7295_v18  ;;  %v3560_v36 = vadd.f32 %v3427_v10, %v3306_v30  ;;  %v7302_v18 = vld [vmem:[#allocation76_spill] sm:$0xff] }
 0x3cd   : > { %v3985_v31 = vpop.f32.mrf.mxu0 }
 0x3ce   : > { %v4314_v1 = vadd.f32 %v4313_v45, %v4251_v39 }
 0x3cf   : > { %v3721_v37 = vpop.f32.mrf.mxu3 }
 0x3d0   : > { %4935 = vmatmul.msk.bf16.gmra.mxu0 %vm1185_vm3, %v7296_v46  ;;  %v3854_v62 = vadd.f32 %v3721_v37, %v3560_v36  ;;  %v3178_v49 = vpop.f32.mrf.mxu1 }
 0x3d1   : > { %v3308_v40 = vadd.f32 %v3178_v49, %v7297_v56  ;;  %v7303_v49 = vld [vmem:[#allocation19_spill] sm:$0xff] }
 0x3d2   : > { %v4118_v50 = vadd.f32 %v3985_v31, %v3854_v62 }
 0x3d3   : > { %v3429_v43 = vpop.f32.mrf.mxu2  ;;  %4828 = vmatmul.msk.bf16.gmra.mxu1 %vm1185_vm3, %v6312_v3 }
 0x3d4   : > { %v4181_v59 = vadd.f32 %v4180_v60, %v4118_v50  ;;  %v4252_v0 = vmul.f32 %v4118_v50, %v4118_v50  ;;  %v3561_v48 = vadd.f32 %v3429_v43, %v3307_v17  ;;  %v5128_v60 = vld [vmem:[%s5269_s10 + $0xe4] sm:$0xff] }
 0x3d5   : > { %v3987_v29 = vpop.f32.mrf.mxu0  ;;  %v7304_v43 = vld [vmem:[#allocation83_spill] sm:$0xff] }
 0x3d6   : > { %v4315_v54 = vadd.f32 %v4314_v1, %v4252_v0 }
 0x3d7   : > { %v3723_v55 = vpop.f32.mrf.mxu3 }
 0x3d8   : > { %v3855_v9 = vadd.f32 %v3723_v55, %v3561_v48  ;;  %4869 = vmatmul.msk.bf16.gmra.mxu2 %vm1185_vm3, %v5127_v16  ;;  %v3180_v19 = vpop.f32.mrf.mxu1  ;;  %v7305_v48 = vld [vmem:[#allocation77_spill] sm:$0xff] }
 0x3d9   : > { %v3309_v51 = vadd.f32 %v3180_v19, %v7298_v32 }
 0x3da   : > { %v4119_v7 = vadd.f32 %v3987_v29, %v3855_v9 }
 0x3db   : > { %v3432_v6 = vpop.f32.mrf.mxu2 }
 0x3dc   : > { %v4182_v15 = vadd.f32 %v4181_v59, %v4119_v7  ;;  %v4253_v44 = vmul.f32 %v4119_v7, %v4119_v7  ;;  %4902 = vmatmul.msk.bf16.gmra.mxu3 %vm1185_vm3, %v7299_v38  ;;  %v3562_v3 = vadd.f32 %v3432_v6, %v3308_v40  ;;  %v7306_v38 = vld [vmem:[#allocation79_spill] sm:$0xff] }
 0x3dd   : > { %v3990_v14 = vpop.f32.mrf.mxu0 }
 0x3de   : > { %v4316_v30 = vadd.f32 %v4315_v54, %v4253_v44 }
 0x3df   : > { %v3726_v11 = vpop.f32.mrf.mxu3 }
 0x3e0   : > { %4936 = vmatmul.msk.bf16.gmra.mxu0 %vm1185_vm3, %v7300_v42  ;;  %v3856_v21 = vadd.f32 %v3726_v11, %v3562_v3  ;;  %v3183_v47 = vpop.f32.mrf.mxu1 }
 0x3e1   : > { %v3310_v53 = vadd.f32 %v3183_v47, %v7301_v25  ;;  %v7307_v47 = vld [vmem:[#allocation4_spill] sm:$0xff] }
 0x3e2   : > { %v4120_v45 = vadd.f32 %v3990_v14, %v3856_v21 }
 0x3e3   : > { %v3434_v20 = vpop.f32.mrf.mxu2  ;;  %4829 = vmatmul.msk.bf16.gmra.mxu1 %vm1185_vm3, %v7296_v46 }
 0x3e4   : > { %v4183_v23 = vadd.f32 %v4182_v15, %v4120_v45  ;;  %v4254_v13 = vmul.f32 %v4120_v45, %v4120_v45  ;;  %v3563_v63 = vadd.f32 %v3434_v20, %v3309_v51  ;;  %v5129_v15 = vld [vmem:[%s5269_s10 + $0xf0] sm:$0xff] }
 0x3e5   : > { %v3992_v2 = vpop.f32.mrf.mxu0  ;;  %v7308_v20 = vld [vmem:[#allocation84_spill] sm:$0xff] }
 0x3e6   : > { %v4317_v17 = vadd.f32 %v4316_v30, %v4254_v13 }
 0x3e7   : > { %v3728_v5 = vpop.f32.mrf.mxu3 }
 0x3e8   : > { %v3857_v10 = vadd.f32 %v3728_v5, %v3563_v63  ;;  %4870 = vmatmul.msk.bf16.gmra.mxu2 %vm1185_vm3, %v5128_v60  ;;  %v3185_v39 = vpop.f32.mrf.mxu1  ;;  %v7309_v63 = vld [vmem:[#allocation80_spill] sm:$0xff] }
 0x3e9   : > { %v3311_v36 = vadd.f32 %v3185_v39, %v7302_v18 }
 0x3ea   : > { %v4121_v31 = vadd.f32 %v3992_v2, %v3857_v10 }
 0x3eb   : > { %v3437_v1 = vpop.f32.mrf.mxu2 }
 0x3ec   : > { %v4184_v37 = vadd.f32 %v4183_v23, %v4121_v31  ;;  %v4255_v62 = vmul.f32 %v4121_v31, %v4121_v31  ;;  %4903 = vmatmul.msk.bf16.gmra.mxu3 %vm1185_vm3, %v7303_v49  ;;  %v3564_v46 = vadd.f32 %v3437_v1, %v3310_v53  ;;  %v7310_v49 = vld [vmem:[#allocation82_spill] sm:$0xff] }
 0x3ed   : > { %v3995_v56 = vpop.f32.mrf.mxu0 }
 0x3ee   : > { %v4318_v40 = vadd.f32 %v4317_v17, %v4255_v62 }
 0x3ef   : > { %v3731_v50 = vpop.f32.mrf.mxu3 }
 0x3f0   : > { %4937 = vmatmul.msk.bf16.gmra.mxu0 %vm1185_vm3, %v7304_v43  ;;  %v3858_v59 = vadd.f32 %v3731_v50, %v3564_v46  ;;  %v3188_v0 = vpop.f32.mrf.mxu1 }
 0x3f1   : > { %v3312_v29 = vadd.f32 %v3188_v0, %v7305_v48  ;;  %v7311_v0 = vld [vmem:[#allocation6_spill] sm:$0xff] }
 0x3f2   : > { %v4122_v54 = vadd.f32 %v3995_v56, %v3858_v59 }
 0x3f3   : > { %v3439_v55 = vpop.f32.mrf.mxu2  ;;  %4830 = vmatmul.msk.bf16.gmra.mxu1 %vm1185_vm3, %v7300_v42 }
 0x3f4   : > { %v4185_v9 = vadd.f32 %v4184_v37, %v4122_v54  ;;  %v4256_v16 = vmul.f32 %v4122_v54, %v4122_v54  ;;  %v3565_v19 = vadd.f32 %v3439_v55, %v3311_v36  ;;  %v5130_v37 = vld [vmem:[%s5269_s10 + $0xf8] sm:$0xff] }
 0x3f5   : > { %v3997_v32 = vpop.f32.mrf.mxu0  ;;  %v7312_v55 = vld [vmem:[#allocation85_spill] sm:$0xff] }
 0x3f6   : > { %v4319_v51 = vadd.f32 %v4318_v40, %v4256_v16 }
 0x3f7   : > { %v3733_v7 = vpop.f32.mrf.mxu3 }
 0x3f8   : > { %v3859_v6 = vadd.f32 %v3733_v7, %v3565_v19  ;;  %4871 = vmatmul.msk.bf16.gmra.mxu2 %vm1185_vm3, %v5129_v15  ;;  %v3190_v44 = vpop.f32.mrf.mxu1  ;;  %v7313_v19 = vld [vmem:[#allocation51_spill] sm:$0xff] }
 0x3f9   : > { %v3313_v3 = vadd.f32 %v3190_v44, %v7306_v38 }
 0x3fa   : > { %v4123_v14 = vadd.f32 %v3997_v32, %v3859_v6 }
 0x3fb   : > { %v3442_v30 = vpop.f32.mrf.mxu2 }
 0x3fc   : > { %v4186_v11 = vadd.f32 %v4185_v9, %v4123_v14  ;;  %v4257_v21 = vmul.f32 %v4123_v14, %v4123_v14  ;;  %4904 = vmatmul.msk.bf16.gmra.mxu3 %vm1185_vm3, %v7307_v47  ;;  %v3566_v42 = vadd.f32 %v3442_v30, %v3312_v29  ;;  %v7314_v47 = vld [vmem:[#allocation54_spill] sm:$0xff] }
 0x3fd   : > { %v4000_v25 = vpop.f32.mrf.mxu0 }
 0x3fe   : > { %v4320_v53 = vadd.f32 %v4319_v51, %v4257_v21 }
 0x3ff   : > { %v3736_v45 = vpop.f32.mrf.mxu3 }
 0x400   : > { %4938 = vmatmul.msk.bf16.gmra.mxu0 %vm1185_vm3, %v7308_v20  ;;  %v3860_v23 = vadd.f32 %v3736_v45, %v3566_v42  ;;  %v3193_v13 = vpop.f32.mrf.mxu1 }
 0x401   : > { %v3314_v2 = vadd.f32 %v3193_v13, %v7309_v63  ;;  %v7315_v13 = vld [vmem:[#allocation8_spill] sm:$0xff] }
 0x402   : > { %v4124_v17 = vadd.f32 %v4000_v25, %v3860_v23 }
 0x403   : > { %v3444_v5 = vpop.f32.mrf.mxu2  ;;  %4831 = vmatmul.msk.bf16.gmra.mxu1 %vm1185_vm3, %v7304_v43 }
 0x404   : > { %v4187_v10 = vadd.f32 %v4186_v11, %v4124_v17  ;;  %v4258_v60 = vmul.f32 %v4124_v17, %v4124_v17  ;;  %v3567_v39 = vadd.f32 %v3444_v5, %v3313_v3  ;;  %v5131_v11 = vld [vmem:[%s5269_s10 + $0x104] sm:$0xff] }
 0x405   : > { %v4002_v18 = vpop.f32.mrf.mxu0  ;;  %v7316_v5 = vld [vmem:[#allocation86_spill] sm:$0xff] }
 0x406   : > { %v4321_v36 = vadd.f32 %v4320_v53, %v4258_v60 }
 0x407   : > { %v3738_v31 = vpop.f32.mrf.mxu3 }
 0x408   : > { %v3861_v1 = vadd.f32 %v3738_v31, %v3567_v39  ;;  %4872 = vmatmul.msk.bf16.gmra.mxu2 %vm1185_vm3, %v5130_v37  ;;  %v3195_v62 = vpop.f32.mrf.mxu1  ;;  %v7317_v39 = vld [vmem:[#allocation58_spill] sm:$0xff] }
 0x409   : > { %v3315_v46 = vadd.f32 %v3195_v62, %v7310_v49 }
 0x40a   : > { %v4125_v56 = vadd.f32 %v4002_v18, %v3861_v1 }
 0x40b   : > { %v3447_v40 = vpop.f32.mrf.mxu2 }
 0x40c   : > { %v4188_v50 = vadd.f32 %v4187_v10, %v4125_v56  ;;  %v4259_v59 = vmul.f32 %v4125_v56, %v4125_v56  ;;  %4905 = vmatmul.msk.bf16.gmra.mxu3 %vm1185_vm3, %v7311_v0  ;;  %v3568_v43 = vadd.f32 %v3447_v40, %v3314_v2  ;;  %v7318_v0 = vld [vmem:[#allocation21_spill] sm:$0xff] }
 0x40d   : > { %v4005_v48 = vpop.f32.mrf.mxu0 }
 0x40e   : > { %v4322_v29 = vadd.f32 %v4321_v36, %v4259_v59 }
 0x40f   : > { %v3741_v54 = vpop.f32.mrf.mxu3 }
 0x410   : > { %4939 = vmatmul.msk.bf16.gmra.mxu0 %vm1185_vm3, %v7312_v55  ;;  %v3862_v9 = vadd.f32 %v3741_v54, %v3568_v43  ;;  %v3198_v16 = vpop.f32.mrf.mxu1 }
 0x411   : > { %v3316_v32 = vadd.f32 %v3198_v16, %v7313_v19  ;;  %v7319_v16 = vld [vmem:[#allocation10_spill] sm:$0xff] }
 0x412   : > { %v4126_v51 = vadd.f32 %v4005_v48, %v3862_v9 }
 0x413   : > { %v3449_v7 = vpop.f32.mrf.mxu2  ;;  %4832 = vmatmul.msk.bf16.gmra.mxu1 %vm1185_vm3, %v7308_v20 }
 0x414   : > { %v4189_v6 = vadd.f32 %v4188_v50, %v4126_v51  ;;  %v4260_v15 = vmul.f32 %v4126_v51, %v4126_v51  ;;  %v3569_v44 = vadd.f32 %v3449_v7, %v3315_v46  ;;  %v5132_v50 = vld [vmem:[%s5269_s10 + $0x10c] sm:$0xff] }
 0x415   : > { %v4007_v38 = vpop.f32.mrf.mxu0  ;;  %v7320_v7 = vld [vmem:[#allocation87_spill] sm:$0xff] }
 0x416   : > { %v4323_v3 = vadd.f32 %v4322_v29, %v4260_v15 }
 0x417   : > { %v3743_v14 = vpop.f32.mrf.mxu3 }
 0x418   : > { %v3863_v30 = vadd.f32 %v3743_v14, %v3569_v44  ;;  %4873 = vmatmul.msk.bf16.gmra.mxu2 %vm1185_vm3, %v5131_v11  ;;  %v3200_v21 = vpop.f32.mrf.mxu1  ;;  %v7321_v44 = vld [vmem:[#allocation24_spill] sm:$0xff] }
 0x419   : > { %v3317_v42 = vadd.f32 %v3200_v21, %v7314_v47 }
 0x41a   : > { %v4127_v25 = vadd.f32 %v4007_v38, %v3863_v30 }
 0x41b   : > { %v3452_v53 = vpop.f32.mrf.mxu2 }
 0x41c   : > { %v4190_v45 = vadd.f32 %v4189_v6, %v4127_v25  ;;  %v4261_v23 = vmul.f32 %v4127_v25, %v4127_v25  ;;  %4906 = vmatmul.msk.bf16.gmra.mxu3 %vm1185_vm3, %v7315_v13  ;;  %v3570_v20 = vadd.f32 %v3452_v53, %v3316_v32  ;;  %v7322_v13 = vld [vmem:[#allocation26_spill] sm:$0xff] }
 0x41d   : > { %v4010_v63 = vpop.f32.mrf.mxu0 }
 0x41e   : > { %v4324_v2 = vadd.f32 %v4323_v3, %v4261_v23 }
 0x41f   : > { %v3746_v17 = vpop.f32.mrf.mxu3 }
 0x420   : > { %4940 = vmatmul.msk.bf16.gmra.mxu0 %vm1185_vm3, %v7316_v5  ;;  %v3864_v10 = vadd.f32 %v3746_v17, %v3570_v20  ;;  %v3203_v60 = vpop.f32.mrf.mxu1 }
 0x421   : > { %v3318_v18 = vadd.f32 %v3203_v60, %v7317_v39  ;;  %v7323_v60 = vld [vmem:[#allocation11_spill] sm:$0xff] }
 0x422   : > { %v4128_v36 = vadd.f32 %v4010_v63, %v3864_v10 }
 0x423   : > { %v3454_v31 = vpop.f32.mrf.mxu2  ;;  %4833 = vmatmul.msk.bf16.gmra.mxu1 %vm1185_vm3, %v7312_v55 }
 0x424   : > { %v4191_v1 = vadd.f32 %v4190_v45, %v4128_v36  ;;  %v4262_v37 = vmul.f32 %v4128_v36, %v4128_v36  ;;  %v3571_v62 = vadd.f32 %v3454_v31, %v3317_v42  ;;  %v5133_v45 = vld [vmem:[%s5269_s10 + $0x118] sm:$0xff]  ;;  %v7324_v31 = vld [vmem:[#allocation88_spill] sm:$0xff] }
 0x425   : > { %v4012_v49 = vpop.f32.mrf.mxu0 }
 0x426   : > { %v4325_v46 = vadd.f32 %v4324_v2, %v4262_v37 }
 0x427   : > { %v3748_v56 = vpop.f32.mrf.mxu3 }
 0x428   : > { %v3865_v40 = vadd.f32 %v3748_v56, %v3571_v62  ;;  %4874 = vmatmul.msk.bf16.gmra.mxu2 %vm1185_vm3, %v5132_v50  ;;  %v3205_v59 = vpop.f32.mrf.mxu1  ;;  %v7325_v62 = vld [vmem:[#allocation28_spill] sm:$0xff] }
 0x429   : > { %v3319_v43 = vadd.f32 %v3205_v59, %v7318_v0 }
 0x42a   : > { %v4129_v48 = vadd.f32 %v4012_v49, %v3865_v40 }
 0x42b   : > { %v3457_v29 = vpop.f32.mrf.mxu2 }
 0x42c   : > { %v4192_v54 = vadd.f32 %v4191_v1, %v4129_v48  ;;  %v4263_v9 = vmul.f32 %v4129_v48, %v4129_v48  ;;  %4907 = vmatmul.msk.bf16.gmra.mxu3 %vm1185_vm3, %v7319_v16  ;;  %v3572_v55 = vadd.f32 %v3457_v29, %v3318_v18  ;;  %v7326_v16 = vld [vmem:[#allocation30_spill] sm:$0xff] }
 0x42d   : > { %v4015_v19 = vpop.f32.mrf.mxu0 }
 0x42e   : > { %v4326_v32 = vadd.f32 %v4325_v46, %v4263_v9 }
 0x42f   : > { %v3751_v51 = vpop.f32.mrf.mxu3 }
 0x430   : > { %4941 = vmatmul.msk.bf16.gmra.mxu0 %vm1185_vm3, %v7320_v7  ;;  %v3866_v6 = vadd.f32 %v3751_v51, %v3572_v55  ;;  %v3208_v15 = vpop.f32.mrf.mxu1 }
 0x431   : > { %v3320_v38 = vadd.f32 %v3208_v15, %v7321_v44  ;;  %v7327_v15 = vld [vmem:[#allocation14_spill] sm:$0xff] }
 0x432   : > { %v4130_v3 = vadd.f32 %v4015_v19, %v3866_v6 }
 0x433   : > { %v3459_v14 = vpop.f32.mrf.mxu2  ;;  %4834 = vmatmul.msk.bf16.gmra.mxu1 %vm1185_vm3, %v7316_v5 }
 0x434   : > { %v4193_v30 = vadd.f32 %v4192_v54, %v4130_v3  ;;  %v4264_v11 = vmul.f32 %v4130_v3, %v4130_v3  ;;  %v3573_v21 = vadd.f32 %v3459_v14, %v3319_v43  ;;  %v5134_v54 = vld [vmem:[%s5269_s10 + $0x120] sm:$0xff]  ;;  %v7328_v14 = vld [vmem:[#allocation89_spill] sm:$0xff] }
 0x435   : > { %v4017_v47 = vpop.f32.mrf.mxu0 }
 0x436   : > { %v4327_v42 = vadd.f32 %v4326_v32, %v4264_v11 }
 0x437   : > { %v3753_v25 = vpop.f32.mrf.mxu3 }
 0x438   : > { %v3867_v53 = vadd.f32 %v3753_v25, %v3573_v21  ;;  %4875 = vmatmul.msk.bf16.gmra.mxu2 %vm1185_vm3, %v5133_v45  ;;  %v3210_v23 = vpop.f32.mrf.mxu1  ;;  %v7329_v21 = vld [vmem:[#allocation33_spill] sm:$0xff] }
 0x439   : > { %v3321_v20 = vadd.f32 %v3210_v23, %v7322_v13 }
 0x43a   : > { %v4131_v63 = vadd.f32 %v4017_v47, %v3867_v53 }
 0x43b   : > { %v3462_v2 = vpop.f32.mrf.mxu2 }
 0x43c   : > { %v4194_v17 = vadd.f32 %v4193_v30, %v4131_v63  ;;  %v4265_v10 = vmul.f32 %v4131_v63, %v4131_v63  ;;  %4908 = vmatmul.msk.bf16.gmra.mxu3 %vm1185_vm3, %v7323_v60  ;;  %v3574_v5 = vadd.f32 %v3462_v2, %v3320_v38  ;;  %v7330_v60 = vld [vmem:[#allocation35_spill] sm:$0xff] }
 0x43d   : > { %v4020_v39 = vpop.f32.mrf.mxu0 }
 0x43e   : > { %v4328_v18 = vadd.f32 %v4327_v42, %v4265_v10 }
 0x43f   : > { %v3756_v36 = vpop.f32.mrf.mxu3 }
 0x440   : > { %4942 = vmatmul.msk.bf16.gmra.mxu0 %vm1185_vm3, %v7324_v31  ;;  %v3868_v1 = vadd.f32 %v3756_v36, %v3574_v5  ;;  %v3213_v37 = vpop.f32.mrf.mxu1 }
 0x441   : > { %v3322_v49 = vadd.f32 %v3213_v37, %v7325_v62  ;;  %v7331_v37 = vld [vmem:[#allocation17_spill] sm:$0xff] }
 0x442   : > { %v4132_v46 = vadd.f32 %v4020_v39, %v3868_v1 }
 0x443   : > { %v3464_v56 = vpop.f32.mrf.mxu2  ;;  %4835 = vmatmul.msk.bf16.gmra.mxu1 %vm1185_vm3, %v7320_v7 }
 0x444   : > { %v4195_v40 = vadd.f32 %v4194_v17, %v4132_v46  ;;  %v4266_v50 = vmul.f32 %v4132_v46, %v4132_v46  ;;  %v3575_v59 = vadd.f32 %v3464_v56, %v3321_v20  ;;  %v5135_v17 = vld [vmem:[%s5269_s10 + $0x12c] sm:$0xff]  ;;  %v7332_v56 = vld [vmem:[#allocation90_spill] sm:$0xff] }
 0x445   : > { %v4022_v0 = vpop.f32.mrf.mxu0 }
 0x446   : > { %v4329_v43 = vadd.f32 %v4328_v18, %v4266_v50 }
 0x447   : > { %v3758_v48 = vpop.f32.mrf.mxu3 }
 0x448   : > { %v3869_v29 = vadd.f32 %v3758_v48, %v3575_v59  ;;  %4876 = vmatmul.msk.bf16.gmra.mxu2 %vm1185_vm3, %v5134_v54  ;;  %v3215_v9 = vpop.f32.mrf.mxu1  ;;  %v7333_v59 = vld [vmem:[#allocation38_spill] sm:$0xff] }
 0x449   : > { %v3323_v55 = vadd.f32 %v3215_v9, %v7326_v16 }
 0x44a   : > { %v4133_v19 = vadd.f32 %v4022_v0, %v3869_v29 }
 0x44b   : > { %v3467_v32 = vpop.f32.mrf.mxu2 }
 0x44c   : > { %v4196_v51 = vadd.f32 %v4195_v40, %v4133_v19  ;;  %v4267_v6 = vmul.f32 %v4133_v19, %v4133_v19  ;;  %4909 = vmatmul.msk.bf16.gmra.mxu3 %vm1185_vm3, %v7327_v15  ;;  %v3576_v7 = vadd.f32 %v3467_v32, %v3322_v49  ;;  %v7334_v15 = vld [vmem:[#allocation40_spill] sm:$0xff] }
 0x44d   : > { %v4025_v44 = vpop.f32.mrf.mxu0 }
 0x44e   : > { %v4330_v38 = vadd.f32 %v4329_v43, %v4267_v6 }
 0x44f   : > { %v3761_v3 = vpop.f32.mrf.mxu3 }
 0x450   : > { %4943 = vmatmul.msk.bf16.gmra.mxu0 %vm1185_vm3, %v7328_v14  ;;  %v3870_v30 = vadd.f32 %v3761_v3, %v3576_v7  ;;  %v3218_v11 = vpop.f32.mrf.mxu1 }
 0x451   : > { %v3324_v47 = vadd.f32 %v3218_v11, %v7329_v21  ;;  %v5137_v21 = vld [vmem:[%s6511_s25 + $0x4] sm:$0xf] }
 0x452   : > { %v4134_v42 = vadd.f32 %v4025_v44, %v3870_v30  ;;  %v7335_v30 = vld [vmem:[#allocation20_spill] sm:$0xff] }
 0x453   : > { %v3469_v25 = vpop.f32.mrf.mxu2  ;;  %4836 = vmatmul.msk.bf16.gmra.mxu1 %vm1185_vm3, %v7324_v31 }
 0x454   : > { %v4197_v53 = vadd.f32 %v4196_v51, %v4134_v42  ;;  %v4268_v45 = vmul.f32 %v4134_v42, %v4134_v42  ;;  %v3577_v23 = vadd.f32 %v3469_v25, %v3323_v55  ;;  %v5136_v51 = vld [vmem:[%s5269_s10 + $0x134] sm:$0xff] }
 0x455   : > { %v4027_v13 = vpop.f32.mrf.mxu0 }
 0x456   : > { %v4331_v20 = vadd.f32 %v4330_v38, %v4268_v45  ;;  %v5138_v45 = vld [vmem:[%s6511_s25] sm:$0xf] }
 0x457   : > { %v3763_v63 = vpop.f32.mrf.mxu3 }
 0x458   : > { %v3871_v2 = vadd.f32 %v3763_v63, %v3577_v23  ;;  %4877 = vmatmul.msk.bf16.gmra.mxu2 %vm1185_vm3, %v5135_v17  ;;  %v3220_v10 = vpop.f32.mrf.mxu1  ;;  %v4808_v23 = vrot.slane %v5138_v45, 9  ;;  %v7338_v45 = vld [vmem:[#allocation48_spill] sm:$0xff] }
 0x459   : > { %v3325_v5 = vadd.f32 %v3220_v10, %v7330_v60  ;;  %v7336_v10 = vld [vmem:[#allocation43_spill] sm:$0xff] }
 0x45a   : > { %v4135_v39 = vadd.f32 %v4027_v13, %v3871_v2  ;;  %v5139_v2 = vld [vmem:[%s6511_s25 + $0x8] sm:$0xf] }
 0x45b   : > { %v3472_v18 = vpop.f32.mrf.mxu2  ;;  %v3094_v17 = vrot.slane %v5139_v2, 5 }
 0x45c   : > { %v4198_v36 = vadd.f32 %v4197_v53, %v4135_v39  ;;  %v4269_v1 = vmul.f32 %v4135_v39, %v4135_v39  ;;  %4910 = vmatmul.msk.bf16.gmra.mxu3 %vm1185_vm3, %v7331_v37  ;;  %v3578_v31 = vadd.f32 %v3472_v18, %v3324_v47  ;;  %v3091_v47 = vrot.slane %v5137_v21, 5 }
 0x45d   : > { %v4030_v62 = vpop.f32.mrf.mxu0 }
 0x45e   : > { %v4332_v49 = vadd.f32 %v4331_v20, %v4269_v1  ;;  %v3093_v63 = vrot.slane %v3091_v47, 4  ;;  %v3092_v18 = vsel %vm5792_vm7, %v4808_v23, %v3091_v47 }
 0x45f   : > { %v3766_v46 = vpop.f32.mrf.mxu3 }
 0x460   : > { %4944 = vmatmul.msk.bf16.gmra.mxu0 %vm1185_vm3, %v7332_v56  ;;  %v3872_v40 = vadd.f32 %v3766_v46, %v3578_v31  ;;  %v3223_v50 = vpop.f32.mrf.mxu1  ;;  %v3095_v31 = vsel %vm5792_vm7, %v3093_v63, %v3094_v17 }
 0x461   : > { %v3326_v0 = vadd.f32 %v3223_v50, %v7333_v59  ;;  %v3105_v50 = vunpack.c.l.b16 %v3095_v31 }
 0x462   : > { %v4136_v43 = vadd.f32 %v4030_v62, %v3872_v40  ;;  %v3104_v40 = vunpack.c.l.b16 %v3092_v18 }
 0x463   : > { %v3474_v48 = vpop.f32.mrf.mxu2  ;;  %4837 = vmatmul.msk.bf16.gmra.mxu1 %vm1185_vm3, %v7328_v14 }
 0x464   : > { %v4199_v29 = vadd.f32 %v4198_v36, %v4136_v43  ;;  %v4270_v54 = vmul.f32 %v4136_v43, %v4136_v43  ;;  %v3579_v9 = vadd.f32 %v3474_v48, %v3325_v5  ;;  %v7337_v43 = vld [vmem:[#allocation46_spill] sm:$0xff] }
 0x465   : > { %v4032_v16 = vpop.f32.mrf.mxu0 }
 0x466   : > { %v4333_v55 = vadd.f32 %v4332_v49, %v4270_v54  ;;  %v6926_v54 = vpack.c.b16 %v3105_v50, %v3104_v40 }
 0x467   : > { %v3768_v19 = vpop.f32.mrf.mxu3 }
 0x468   : > { %v3873_v32 = vadd.f32 %v3768_v19, %v3579_v9  ;;  %4878 = vmatmul.msk.bf16.gmra.mxu2 %vm1185_vm3, %v5136_v51  ;;  %v3225_v6 = vpop.f32.mrf.mxu1  ;;  %v5141_v51 = vld [vmem:[%s6511_s25 + $0xc] sm:$0xf] }
 0x469   : > { %v3327_v7 = vadd.f32 %v3225_v6, %v7334_v15  ;;  %v3097_v6 = vrot.slane %v5141_v51, 5  ;;  %v6935_v15 = vld [vmem:[%s6511_s25 + $0x18] sm:$0xf] }
 0x46a   : > { %v4137_v44 = vadd.f32 %v4032_v16, %v3873_v32  ;;  %v6929_v16 = vld [vmem:[%s6511_s25 + $0x14] sm:$0xf]  ;;  %v3620_v21 = vshrl.u32 %v6935_v15, 16 }
 0x46b   : > { %v3477_v38 = vpop.f32.mrf.mxu2 }
 0x46c   : > { %v4200_v3 = vadd.f32 %v4199_v29, %v4137_v44  ;;  %v4271_v14 = vmul.f32 %v4137_v44, %v4137_v44  ;;  %4911 = vmatmul.msk.bf16.gmra.mxu3 %vm1185_vm3, %v7335_v30  ;;  %v3580_v11 = vadd.f32 %v3477_v38, %v3326_v0  ;;  %v5140_v0 = vld [vmem:[%s6511_s25] sm:$0xff]  ;;  %v3607_v38 = vshrl.u32 %v6929_v16, 16 }
 0x46d   : > { %v4035_v42 = vpop.f32.mrf.mxu0  ;;  %v3096_v30 = vrot.slane %v3094_v17, 4 }
 0x46e   : > { %v4334_v25 = vadd.f32 %v4333_v55, %v4271_v14 }
 0x46f   : > { %v3771_v53 = vpop.f32.mrf.mxu3  ;;  %v3098_v17 = vsel %vm5792_vm7, %v3096_v30, %v3097_v6  ;;  %v4916_v30 = vrot.slane %v6929_v16, 9 }
 0x470   : > { %4945 = vmatmul.msk.bf16.gmra.mxu0 %vm1185_vm3, %v6579_v57  ;;  %v3874_v13 = vadd.f32 %v3771_v53, %v3580_v11  ;;  %v3228_v20 = vpop.f32.mrf.mxu1  ;;  %v3616_v11 = vshll.u32 %v6935_v15, 16 }
 0x471   : > { %v3328_v60 = vadd.f32 %v3228_v20, %v7336_v10  ;;  %v3609_v20 = vrot.slane %v3607_v38, 4  ;;  %v6964_v38 = vld [vmem:[%s6511_s25 + $0x20] sm:$0xf] }
 0x472   : > { %v4138_v5 = vadd.f32 %v4035_v42, %v3874_v13  ;;  %v3099_v42 = vrot.slane %v3097_v6, 4  ;;  %v3618_v10 = vrot.slane %v3616_v11, 5 }
 0x473   : > { %v3479_v39 = vpop.f32.mrf.mxu2  ;;  %4838 = vmatmul.msk.bf16.gmra.mxu1 %vm1185_vm3, %v7332_v56 }
 0x474   : > { %v4201_v36 = vadd.f32 %v4200_v3, %v4138_v5  ;;  %v4272_v1 = vmul.f32 %v4138_v5, %v4138_v5  ;;  %v3581_v37 = vadd.f32 %v3479_v39, %v3327_v7  ;;  %v3610_v3 = vshll.u32 %v6929_v16, 16 }
 0x475   : > { %v4037_v62 = vpop.f32.mrf.mxu0 }
 0x476   : > { %v4335_v49 = vadd.f32 %v4334_v25, %v4272_v1  ;;  %v5142_v25 = vld [vmem:[%s6511_s25 + $0x10] sm:$0x1]  ;;  %v3612_v63 = vrot.slane %v3610_v3, 5  ;;  %v6952_v1 = vld [vmem:[%s6511_s25 + $0x1c] sm:$0xf] }
 0x477   : > { %v3773_v46 = vpop.f32.mrf.mxu3  ;;  %v3100_v53 = vrot.slane %v5142_v25, 5  ;;  %v3626_v50 = vshll.u32 %v6952_v1, 16 }
 0x478   : > { %v3875_v59 = vadd.f32 %v3773_v46, %v3581_v37  ;;  %4879 = vmatmul.msk.bf16.gmra.mxu2 %vm1185_vm3, %v5140_v0  ;;  %v3230_v56 = vpop.f32.mrf.mxu1  ;;  %v3106_v46 = vunpack.c.l.b16 %v3098_v17  ;;  %v5143_v0 = vld [vmem:[%s6511_s25 + $0x8] sm:$0xff] }
 0x479   : > { %v3329_v48 = vadd.f32 %v3230_v56, %v7337_v43 }
 0x47a   : > { %v4139_v29 = vadd.f32 %v4037_v62, %v3875_v59  ;;  %v3613_v62 = vor.u32 %v3612_v63, %v3609_v20 }
 0x47b   : > { %v3482_v9 = vpop.f32.mrf.mxu2 }
 0x47c   : > { %v4202_v55 = vadd.f32 %v4201_v36, %v4139_v29  ;;  %v4273_v19 = vmul.f32 %v4139_v29, %v4139_v29  ;;  %4912 = vmatmul.msk.bf16.gmra.mxu3 %vm1185_vm3, %v6566_v61  ;;  %v3582_v32 = vadd.f32 %v3482_v9, %v3328_v60  ;;  %v3622_v60 = vrot.slane %v3620_v21, 4 }
 0x47d   : > { %v4040_v7 = vpop.f32.mrf.mxu0  ;;  %v3101_v36 = vsel %vm5792_vm7, %v3099_v42, %v3100_v53  ;;  %v3614_v29 = vrot.slane %v3613_v62, 4  ;;  %v3906_v53 = vrot.slane %v6952_v1, 5 }
 0x47e   : > { %v4336_v44 = vadd.f32 %v4335_v49, %v4273_v19  ;;  %v3623_v40 = vor.u32 %v3622_v60, %v3618_v10 }
 0x47f   : > { %v3776_v14 = vpop.f32.mrf.mxu3 }
 0x480   : > { %4946 = vmatmul.msk.bf16.gmra.mxu0 %vm1185_vm3, %v6926_v54  ;;  %v3876_v61 = vadd.f32 %v3776_v14, %v3582_v32  ;;  %v3233_v47 = vpop.f32.mrf.mxu1  ;;  %v3624_v19 = vrot.slane %v3623_v40, 4  ;;  %v3628_v32 = vrot.slane %v3626_v50, 5 }
 0x481   : > { %v3330_v23 = vadd.f32 %v3233_v47, %v7338_v45  ;;  %v3640_v47 = vshrl.u32 %v6964_v38, 16 }
 0x482   : > { %v4140_v13 = vadd.f32 %v4040_v7, %v3876_v61  ;;  %v3629_v21 = vsel %vm5289_vm4, %v3624_v19, %v3628_v32  ;;  %v3630_v61 = vshrl.u32 %v6952_v1, 16  ;;  %v378_v1 = vld [vmem:[%s6511_s25 + $0x24] sm:$0x1] }
 0x483   : > { %v3484_v2 = vpop.f32.mrf.mxu2  ;;  %4839 = vmatmul.msk.bf16.gmra.mxu1 %vm1185_vm3, %v6579_v57  ;;  %v3107_v57 = vunpack.c.l.b16 %v3101_v36 }
 0x484   : > { %v4203_v5 = vadd.f32 %v4202_v55, %v4140_v13  ;;  %v4274_v39 = vmul.f32 %v4140_v13, %v4140_v13  ;;  %v3583_v18 = vadd.f32 %v3484_v2, %v3329_v48  ;;  %v3653_v13 = vunpack.c.l.b16 %v3629_v21 }
 0x485   : > { %v4042_v37 = vpop.f32.mrf.mxu0  ;;  %v6958_v9 = vpack.c.b16 %v3107_v57, %v3106_v46  ;;  %v3632_v2 = vrot.slane %v3630_v61, 4  ;;  %v3908_v61 = vrot.slane %v3906_v53, 4 }
 0x486   : > { %v4337_v31 = vadd.f32 %v4336_v44, %v4274_v39  ;;  %v3903_v44 = vrot.slane %v6935_v15, 5 }
 0x487   : > { %v3778_v49 = vpop.f32.mrf.mxu3 }
 0x488   : > { %v3877_v59 = vadd.f32 %v3778_v49, %v3583_v18  ;;  %4880 = vmatmul.msk.bf16.gmra.mxu2 %vm1185_vm3, %v5143_v0  ;;  %v3235_v56 = vpop.f32.mrf.mxu1  ;;  %v3905_v25 = vrot.slane %v3903_v44, 4  ;;  %v3904_v63 = vsel %vm5792_vm7, %v4916_v30, %v3903_v44  ;;  %v4993_v18 = vld [vmem:[%s6511_s25 + $0x14] sm:$0xff]  ;;  %v3909_v44 = vrot.slane %v6964_v38, 5 }
 0x489   : > { %v3331_v43 = vadd.f32 %v3235_v56, %v6563_v12  ;;  %v3619_v12 = vsel %vm5289_vm4, %v3614_v29, %v3618_v10  ;;  %v3642_v10 = vrot.slane %v3640_v47, 4  ;;  %v3916_v62 = vunpack.c.l.b16 %v3904_v63 }
 0x48a   : > { %v4141_v48 = vadd.f32 %v4042_v37, %v3877_v59  ;;  %v3646_v59 = vshll.u32 %v378_v1, 16  ;;  %v3912_v47 = vrot.slane %v378_v1, 5  ;;  %v3910_v27 = vsel %vm5792_vm7, %v3908_v61, %v3909_v44 }
 0x48b   : > { %v3487_v55 = vpop.f32.mrf.mxu2 }
 0x48c   : > { %v4204_v51 = vadd.f32 %v4203_v5, %v4141_v48  ;;  %v4275_v6 = vmul.f32 %v4141_v48, %v4141_v48  ;;  %4913 = vmatmul.msk.bf16.gmra.mxu3 %vm1185_vm3, %v6592_v35  ;;  %v3584_v7 = vadd.f32 %v3487_v55, %v3330_v23  ;;  %v3636_v35 = vshll.u32 %v6964_v38, 16 }
 0x48d   : > { %v4045_v3 = vpop.f32.mrf.mxu0  ;;  %v3652_v23 = vunpack.c.l.b16 %v3619_v12 }
 0x48e   : > { %v4338_v14 = vadd.f32 %v4337_v31, %v4275_v6  ;;  %v3638_v17 = vrot.slane %v3636_v35, 5  ;;  %v3911_v35 = vrot.slane %v3909_v44, 4 }
 0x48f   : > { %v3781_v11 = vpop.f32.mrf.mxu3  ;;  %v3656_v40 = vpack.c.b16 %v3653_v13, %v3652_v23  ;;  %v4994_v23 = vld [vmem:[%s6511_s25 + $0x1c] sm:$0xff] }
 0x490   : > { %4947 = vmatmul.msk.bf16.gmra.mxu0 %vm1185_vm3, %v6958_v9  ;;  %v3878_v15 = vadd.f32 %v3781_v11, %v3584_v7  ;;  %v3238_v42 = vpop.f32.mrf.mxu1  ;;  %v3643_v46 = vor.u32 %v3642_v10, %v3638_v17 }
 0x491   : > { %v3332_v16 = vadd.f32 %v3238_v42, %v6575_v28  ;;  %v3907_v28 = vsel %vm5792_vm7, %v3905_v25, %v3906_v53 }
 0x492   : > { %v4142_v45 = vadd.f32 %v4045_v3, %v3878_v15  ;;  %v3917_v49 = vunpack.c.l.b16 %v3907_v28  ;;  %v3644_v55 = vrot.slane %v3643_v46, 4 }
 0x493   : > { %v3489_v20 = vpop.f32.mrf.mxu2  ;;  %4840 = vmatmul.msk.bf16.gmra.mxu1 %vm1185_vm3, %v6926_v54  ;;  %v3633_v54 = vor.u32 %v3632_v2, %v3628_v32  ;;  %v3648_v32 = vrot.slane %v3646_v59, 5 }
 0x494   : > { %v4205_v60 = vadd.f32 %v4204_v51, %v4142_v45  ;;  %v4276_v5 = vmul.f32 %v4142_v45, %v4142_v45  ;;  %v3585_v39 = vadd.f32 %v3489_v20, %v3331_v43  ;;  %v3920_v43 = vpack.c.b16 %v3917_v49, %v3916_v62 }
 0x495   : > { %v4047_v36 = vpop.f32.mrf.mxu0  ;;  %v3634_v29 = vrot.slane %v3633_v54, 4  ;;  %v3649_v11 = vsel %vm5289_vm4, %v3644_v55, %v3648_v32 }
 0x496   : > { %v4339_v37 = vadd.f32 %v4338_v14, %v4276_v5  ;;  %v3655_v13 = vunpack.c.l.b16 %v3649_v11 }
 0x497   : > { %v3783_v31 = vpop.f32.mrf.mxu3  ;;  %v3639_v30 = vsel %vm5289_vm4, %v3634_v29, %v3638_v17 }
 0x498   : > { %v3879_v57 = vadd.f32 %v3783_v31, %v3585_v39  ;;  %4881 = vmatmul.msk.bf16.gmra.mxu2 %vm1185_vm3, %v4993_v18  ;;  %v3240_v50 = vpop.f32.mrf.mxu1  ;;  %v3654_v42 = vunpack.c.l.b16 %v3639_v30 }
 0x499   : > { %v3333_v0 = vadd.f32 %v3240_v50, %v6589_v24 }
 0x49a   : > { %v4143_v56 = vadd.f32 %v4047_v36, %v3879_v57  ;;  %v3657_v17 = vpack.c.b16 %v3655_v13, %v3654_v42 }
 0x49b   : > { %v3492_v48 = vpop.f32.mrf.mxu2 }
 0x49c   : > { %v4206_v19 = vadd.f32 %v4205_v60, %v4143_v56  ;;  %v4277_v51 = vmul.f32 %v4143_v56, %v4143_v56  ;;  %4914 = vmatmul.msk.bf16.gmra.mxu3 %vm1185_vm3, %v3656_v40  ;;  %v3586_v6 = vadd.f32 %v3492_v48, %v3332_v16 }
 0x49d   : > { %v4050_v7 = vpop.f32.mrf.mxu0 }
 0x49e   : > { %v4340_v3 = vadd.f32 %v4339_v37, %v4277_v51 }
 0x49f   : > { %v3786_v14 = vpop.f32.mrf.mxu3 }
 0x4a0   : > { %4948 = vmatmul.msk.bf16.gmra.mxu0 %vm1185_vm3, %v3920_v43  ;;  %v3880_v24 = vadd.f32 %v3786_v14, %v3586_v6  ;;  %v3243_v12 = vpop.f32.mrf.mxu1 }
 0x4a1   : > { %v3334_v21 = vadd.f32 %v3243_v12, %v6597_v22  ;;  %v3913_v22 = vsel %vm5792_vm7, %v3911_v35, %v3912_v47  ;;  %v7339_v12 = vld [vmem:[#allocation2_spill] sm:$0xff] }
 0x4a2   : > { %v4144_v15 = vadd.f32 %v4050_v7, %v3880_v24  ;;  %v3919_v10 = vunpack.c.l.b16 %v3913_v22 }
 0x4a3   : > { %v3494_v38 = vpop.f32.mrf.mxu2  ;;  %4841 = vmatmul.msk.bf16.gmra.mxu1 %vm1185_vm3, %v6958_v9  ;;  %v3918_v9 = vunpack.c.l.b16 %v3910_v27 }
 0x4a4   : > { %v4207_v25 = vadd.f32 %v4206_v19, %v4144_v15  ;;  %v4278_v16 = vmul.f32 %v4144_v15, %v4144_v15  ;;  %v3587_v45 = vadd.f32 %v3494_v38, %v3333_v0 }
 0x4a5   : > { %v4052_v20 = vpop.f32.mrf.mxu0  ;;  %v3921_v1 = vpack.c.b16 %v3919_v10, %v3918_v9  ;;  %v7341_v10 = vld [vmem:[#allocation55_spill] sm:$0xff] }
 0x4a6   : > { %v4341_v53 = vadd.f32 %v4340_v3, %v4278_v16  ;;  %v7340_v16 = vld [vmem:[#allocation52_spill] sm:$0xff] }
 0x4a7   : > { %v3788_v63 = vpop.f32.mrf.mxu3 }
 0x4a8   : > { %v3881_v2 = vadd.f32 %v3788_v63, %v3587_v45  ;;  %4882 = vmatmul.msk.bf16.gmra.mxu2 %vm1185_vm3, %v4994_v23  ;;  %v3245_v60 = vpop.f32.mrf.mxu1 }
 0x4a9   : > { %v3335_v5 = vadd.f32 %v3245_v60, %v6604_v52 }
 0x4aa   : > { %v4145_v39 = vadd.f32 %v4052_v20, %v3881_v2 }
 0x4ab   : > { %v3497_v18 = vpop.f32.mrf.mxu2 }
 0x4ac   : > { %v4208_v28 = vadd.f32 %v4207_v25, %v4145_v39  ;;  %v4279_v36 = vmul.f32 %v4145_v39, %v4145_v39  ;;  %4915 = vmatmul.msk.bf16.gmra.mxu3 %vm1185_vm3, %v3657_v17  ;;  %v3588_v41 = vadd.f32 %v3497_v18, %v3334_v21 }
 0x4ad   : > { %v4055_v37 = vpop.f32.mrf.mxu0 }
 0x4ae   : > { %v4342_v31 = vadd.f32 %v4341_v53, %v4279_v36 }
 0x4af   : > { %v3791_v62 = vpop.f32.mrf.mxu3 }
 0x4b0   : > { %4949 = vmatmul.msk.bf16.gmra.mxu0 %vm1185_vm3, %v3921_v1  ;;  %v3882_v49 = vadd.f32 %v3791_v62, %v3588_v41  ;;  %v3248_v54 = vpop.f32.mrf.mxu1 }
 0x4b1   : > { %v3336_v46 = vadd.f32 %v3248_v54, %v6611_v33 }
 0x4b2   : > { %v4146_v57 = vadd.f32 %v4055_v37, %v3882_v49 }
 0x4b3   : > { %v3499_v40 = vpop.f32.mrf.mxu2 }
 0x4b4   : > { %v4209_v52 = vadd.f32 %v4208_v28, %v4146_v57  ;;  %v4280_v50 = vmul.f32 %v4146_v57, %v4146_v57  ;;  %v3589_v59 = vadd.f32 %v3499_v40, %v3335_v5 }
 0x4b5   : > { %v4057_v0 = vpop.f32.mrf.mxu0 }
 0x4b6   : > { %v4343_v56 = vadd.f32 %v4342_v31, %v4280_v50 }
 0x4b7   : > { %v3793_v43 = vpop.f32.mrf.mxu3 }
 0x4b8   : > { %v3883_v48 = vadd.f32 %v3793_v43, %v3589_v59  ;;  %v3250_v29 = vpop.f32.mrf.mxu1 }
 0x4b9   : > { %v3337_v55 = vadd.f32 %v3250_v29, %v6618_v58 }
 0x4ba   : > { %v4147_v19 = vadd.f32 %v4057_v0, %v3883_v48  ;;  %v7342_v48 = vld [vmem:[#allocation59_spill] sm:$0xff] }
 0x4bb   : > { %v3502_v51 = vpop.f32.mrf.mxu2 }
 0x4bc   : > { %v4210_v6 = vadd.f32 %v4209_v52, %v4147_v19  ;;  %v4281_v32 = vmul.f32 %v4147_v19, %v4147_v19  ;;  %v3590_v7 = vadd.f32 %v3502_v51, %v3336_v46 }
 0x4bd   : > { %v4060_v44 = vpop.f32.mrf.mxu0 }
 0x4be   : > { %v4344_v3 = vadd.f32 %v4343_v56, %v4281_v32 }
 0x4bf   : > { %v3796_v33 = vpop.f32.mrf.mxu3 }
 0x4c0   : > { %v3884_v14 = vadd.f32 %v3796_v33, %v3590_v7  ;;  %v3253_v24 = vpop.f32.mrf.mxu1 }
 0x4c1   : > { %v3338_v30 = vadd.f32 %v3253_v24, %v7339_v12  ;;  %v7343_v24 = vld [vmem:[#allocation61_spill] sm:$0xff] }
 0x4c2   : > { %v4148_v11 = vadd.f32 %v4060_v44, %v3884_v14 }
 0x4c3   : > { %v3504_v21 = vpop.f32.mrf.mxu2 }
 0x4c4   : > { %v4211_v61 = vadd.f32 %v4210_v6, %v4148_v11  ;;  %v4282_v35 = vmul.f32 %v4148_v11, %v4148_v11  ;;  %v3591_v47 = vadd.f32 %v3504_v21, %v3337_v55 }
 0x4c5   : > { %v4062_v15 = vpop.f32.mrf.mxu0 }
 0x4c6   : > { %v4345_v38 = vadd.f32 %v4344_v3, %v4282_v35 }
 0x4c7   : > { %v3798_v58 = vpop.f32.mrf.mxu3 }
 0x4c8   : > { %v3885_v42 = vadd.f32 %v3798_v58, %v3591_v47  ;;  %v3255_v25 = vpop.f32.mrf.mxu1 }
 0x4c9   : > { %v3339_v45 = vadd.f32 %v3255_v25, %v7340_v16  ;;  %v7344_v25 = vld [vmem:[#allocation32_spill] sm:$0xff] }
 0x4ca   : > { %v4149_v23 = vadd.f32 %v4062_v15, %v3885_v42 }
 0x4cb   : > { %v3507_v13 = vpop.f32.mrf.mxu2 }
 0x4cc   : > { %v4212_v20 = vadd.f32 %v4211_v61, %v4149_v23  ;;  %v4283_v27 = vmul.f32 %v4149_v23, %v4149_v23  ;;  %v3592_v22 = vadd.f32 %v3507_v13, %v3338_v30 }
 0x4cd   : > { %v4065_v53 = vpop.f32.mrf.mxu0 }
 0x4ce   : > { %v4346_v63 = vadd.f32 %v4345_v38, %v4283_v27 }
 0x4cf   : > { %v3801_v2 = vpop.f32.mrf.mxu3 }
 0x4d0   : > { %v3886_v17 = vadd.f32 %v3801_v2, %v3592_v22  ;;  %v3258_v9 = vpop.f32.mrf.mxu1 }
 0x4d1   : > { %v3340_v60 = vadd.f32 %v3258_v9, %v7341_v10 }
 0x4d2   : > { %v4150_v5 = vadd.f32 %v4065_v53, %v3886_v17 }
 0x4d3   : > { %v3509_v39 = vpop.f32.mrf.mxu2 }
 0x4d4   : > { %v4213_v18 = vadd.f32 %v4212_v20, %v4150_v5  ;;  %v4284_v28 = vmul.f32 %v4150_v5, %v4150_v5  ;;  %v3593_v36 = vadd.f32 %v3509_v39, %v3339_v45 }
 0x4d5   : > { %v4067_v1 = vpop.f32.mrf.mxu0 }
 0x4d6   : > { %v4347_v41 = vadd.f32 %v4346_v63, %v4284_v28 }
 0x4d7   : > { %v3803_v37 = vpop.f32.mrf.mxu3 }
 0x4d8   : > { %v3887_v31 = vadd.f32 %v3803_v37, %v3593_v36  ;;  %v3260_v62 = vpop.f32.mrf.mxu1 }
 0x4d9   : > { %v3341_v29 = vadd.f32 %v3260_v62, %v7342_v48 }
 0x4da   : > { %v4151_v49 = vadd.f32 %v4067_v1, %v3887_v31  ;;  %v7345_v31 = vld [vmem:[#allocation23_spill] sm:$0xff] }
 0x4db   : > { %v3512_v54 = vpop.f32.mrf.mxu2 }
 0x4dc   : > { %v4214_v46 = vadd.f32 %v4213_v18, %v4151_v49  ;;  %v4285_v57 = vmul.f32 %v4151_v49, %v4151_v49  ;;  %v3594_v40 = vadd.f32 %v3512_v54, %v3340_v60 }
 0x4dd   : > { %v4070_v52 = vpop.f32.mrf.mxu0 }
 0x4de   : > { %v4348_v50 = vadd.f32 %v4347_v41, %v4285_v57 }
 0x4df   : > { %v3806_v59 = vpop.f32.mrf.mxu3 }
 0x4e0   : > { %v3888_v0 = vadd.f32 %v3806_v59, %v3594_v40  ;;  %v3263_v56 = vpop.f32.mrf.mxu1 }
 0x4e1   : > { %v3342_v12 = vadd.f32 %v3263_v56, %v7343_v24 }
 0x4e2   : > { %v4152_v43 = vadd.f32 %v4070_v52, %v3888_v0 }
 0x4e3   : > { %v3514_v55 = vpop.f32.mrf.mxu2 }
 0x4e4   : > { %v4215_v19 = vadd.f32 %v4214_v46, %v4152_v43  ;;  %v4286_v51 = vmul.f32 %v4152_v43, %v4152_v43  ;;  %v3595_v6 = vadd.f32 %v3514_v55, %v3341_v29 }
 0x4e5   : > { %v4072_v32 = vpop.f32.mrf.mxu0 }
 0x4e6   : > { %v4349_v7 = vadd.f32 %v4348_v50, %v4286_v51 }
 0x4e7   : > { %v3808_v44 = vpop.f32.mrf.mxu3 }
 0x4e8   : > { %v3889_v3 = vadd.f32 %v3808_v44, %v3595_v6  ;;  %v3265_v33 = vpop.f32.mrf.mxu1 }
 0x4e9   : > { %v3343_v16 = vadd.f32 %v3265_v33, %v7344_v25 }
 0x4ea   : > { %v4153_v14 = vadd.f32 %v4072_v32, %v3889_v3  ;;  %v7346_v3 = vld [vmem:[#allocation12_spill] sm:$0xff] }
 0x4eb   : > { %v3517_v30 = vpop.f32.mrf.mxu2 }
 0x4ec   : > { %v4216_v11 = vadd.f32 %v4215_v19, %v4153_v14  ;;  %v4287_v21 = vmul.f32 %v4153_v14, %v4153_v14  ;;  %v3596_v61 = vadd.f32 %v3517_v30, %v3342_v12 }
 0x4ed   : > { %v4075_v35 = vpop.f32.mrf.mxu0 }
 0x4ee   : > { %v4350_v47 = vadd.f32 %v4349_v7, %v4287_v21 }
 0x4ef   : > { %v3811_v15 = vpop.f32.mrf.mxu3 }
 0x4f0   : > { %v3890_v38 = vadd.f32 %v3811_v15, %v3596_v61  ;;  %v3268_v58 = vpop.f32.mrf.mxu1 }
 0x4f1   : > { %v3344_v9 = vadd.f32 %v3268_v58, %v6667_v26 }
 0x4f2   : > { %v4154_v42 = vadd.f32 %v4075_v35, %v3890_v38 }
 0x4f3   : > { %v3519_v45 = vpop.f32.mrf.mxu2 }
 0x4f4   : > { %v4217_v23 = vadd.f32 %v4216_v11, %v4154_v42  ;;  %v4288_v13 = vmul.f32 %v4154_v42, %v4154_v42  ;;  %v3597_v20 = vadd.f32 %v3519_v45, %v3343_v16 }
 0x4f5   : > { %v4077_v27 = vpop.f32.mrf.mxu0 }
 0x4f6   : > { %v4351_v22 = vadd.f32 %v4350_v47, %v4288_v13  ;;  %v7347_v47 = vld [vmem:[#allocation41_spill] sm:$0xff] }
 0x4f7   : > { %v3813_v53 = vpop.f32.mrf.mxu3 }
 0x4f8   : > { %v3891_v63 = vadd.f32 %v3813_v53, %v3597_v20  ;;  %v3270_v2 = vpop.f32.mrf.mxu1 }
 0x4f9   : > { %v3345_v62 = vadd.f32 %v3270_v2, %v7345_v31 }
 0x4fa   : > { %v4155_v17 = vadd.f32 %v4077_v27, %v3891_v63 }
 0x4fb   : > { %v3522_v10 = vpop.f32.mrf.mxu2 }
 0x4fc   : > { %v4218_v60 = vadd.f32 %v4217_v23, %v4155_v17  ;;  %v4289_v5 = vmul.f32 %v4155_v17, %v4155_v17  ;;  %v3598_v39 = vadd.f32 %v3522_v10, %v3344_v9 }
 0x4fd   : > { %v4080_v18 = vpop.f32.mrf.mxu0 }
 0x4fe   : > { %v4352_v28 = vadd.f32 %v4351_v22, %v4289_v5  ;;  %v7348_v22 = vld [vmem:[#allocation25_spill] sm:$0xff] }
 0x4ff   : > { %v3816_v36 = vpop.f32.mrf.mxu3 }
 0x500   : > { %v3892_v1 = vadd.f32 %v3816_v36, %v3598_v39  ;;  %v3273_v41 = vpop.f32.mrf.mxu1 }
 0x501   : > { %v3346_v56 = vadd.f32 %v3273_v41, %v6681_v8 }
 0x502   : > { %v4156_v37 = vadd.f32 %v4080_v18, %v3892_v1 }
 0x503   : > { %v3524_v49 = vpop.f32.mrf.mxu2 }
 0x504   : > { %v4219_v54 = vadd.f32 %v4218_v60, %v4156_v37  ;;  %v4290_v46 = vmul.f32 %v4156_v37, %v4156_v37  ;;  %v3599_v57 = vadd.f32 %v3524_v49, %v3345_v62 }
 0x505   : > { %v4082_v40 = vpop.f32.mrf.mxu0 }
 0x506   : > { %v4353_v52 = vadd.f32 %v4352_v28, %v4290_v46 }
 0x507   : > { %v3818_v50 = vpop.f32.mrf.mxu3 }
 0x508   : > { %v3893_v26 = vadd.f32 %v3818_v50, %v3599_v57  ;;  %v3275_v59 = vpop.f32.mrf.mxu1 }
 0x509   : > { %v3347_v33 = vadd.f32 %v3275_v59, %v7346_v3 }
 0x50a   : > { %v4157_v0 = vadd.f32 %v4082_v40, %v3893_v26 }
 0x50b   : > { %v3527_v43 = vpop.f32.mrf.mxu2 }
 0x50c   : > { %v4220_v48 = vadd.f32 %v4219_v54, %v4157_v0  ;;  %v4291_v29 = vmul.f32 %v4157_v0, %v4157_v0  ;;  %v3600_v55 = vadd.f32 %v3527_v43, %v3346_v56 }
 0x50d   : > { %v4085_v19 = vpop.f32.mrf.mxu0 }
 0x50e   : > { %v4354_v51 = vadd.f32 %v4353_v52, %v4291_v29 }
 0x50f   : > { %v3821_v6 = vpop.f32.mrf.mxu3 }
 0x510   : > { %v3894_v32 = vadd.f32 %v3821_v6, %v3600_v55  ;;  %v3278_v7 = vpop.f32.mrf.mxu1 }
 0x511   : > { %v3348_v15 = vadd.f32 %v3278_v7, %v7347_v47 }
 0x512   : > { %v4158_v44 = vadd.f32 %v4085_v19, %v3894_v32 }
 0x513   : > { %v3529_v14 = vpop.f32.mrf.mxu2 }
 0x514   : > { %v4221_v24 = vadd.f32 %v4220_v48, %v4158_v44  ;;  %v4292_v12 = vmul.f32 %v4158_v44, %v4158_v44  ;;  %v3601_v30 = vadd.f32 %v3529_v14, %v3347_v33 }
 0x515   : > { %v4087_v11 = vpop.f32.mrf.mxu0 }
 0x516   : > { %v4355_v21 = vadd.f32 %v4354_v51, %v4292_v12 }
 0x517   : > { %v3823_v61 = vpop.f32.mrf.mxu3 }
 0x518   : > { %v3895_v8 = vadd.f32 %v3823_v61, %v3601_v30  ;;  %v3280_v38 = vpop.f32.mrf.mxu1 }
 0x519   : > { %v3349_v53 = vadd.f32 %v3280_v38, %v7348_v22 }
 0x51a   : > { %v4159_v35 = vadd.f32 %v4087_v11, %v3895_v8 }
 0x51b   : > { %v3532_v58 = vpop.f32.mrf.mxu2 }
 0x51c   : > { %v4222_v42 = vadd.f32 %v4221_v24, %v4159_v35  ;;  %v4293_v25 = vmul.f32 %v4159_v35, %v4159_v35  ;;  %v3602_v16 = vadd.f32 %v3532_v58, %v3348_v15 }
 0x51d   : > { %v4090_v45 = vpop.f32.mrf.mxu0 }
 0x51e   : > { %v4356_v23 = vadd.f32 %v4355_v21, %v4293_v25 }
 0x51f   : > { %v3826_v13 = vpop.f32.mrf.mxu3 }
 0x520   : > { %v3896_v20 = vadd.f32 %v3826_v13, %v3602_v16  ;;  %v3283_v10 = vpop.f32.mrf.mxu1 }
 0x521   : > { %v3350_v36 = vadd.f32 %v3283_v10, %v6710_v34 }
 0x522   : > { %v4160_v27 = vadd.f32 %v4090_v45, %v3896_v20 }
 0x523   : > { %v3534_v63 = vpop.f32.mrf.mxu2 }
 0x524   : > { %v4223_v2 = vadd.f32 %v4222_v42, %v4160_v27  ;;  %v4294_v17 = vmul.f32 %v4160_v27, %v4160_v27  ;;  %v3603_v9 = vadd.f32 %v3534_v63, %v3349_v53 }
 0x525   : > { %v4092_v60 = vpop.f32.mrf.mxu0 }
 0x526   : > { %v4357_v5 = vadd.f32 %v4356_v23, %v4294_v17 }
 0x527   : > { %v3828_v39 = vpop.f32.mrf.mxu3 }
 0x528   : > { %v3897_v18 = vadd.f32 %v3828_v39, %v3603_v9  ;;  %v3285_v49 = vpop.f32.mrf.mxu1 }
 0x529   : > { %v3351_v52 = vadd.f32 %v3285_v49, %v6717_v4 }
 0x52a   : > { %v4161_v28 = vadd.f32 %v4092_v60, %v3897_v18 }
 0x52b   : > { %v3537_v1 = vpop.f32.mrf.mxu2 }
 0x52c   : > { %v4224_v41 = vadd.f32 %v4223_v2, %v4161_v28  ;;  %v4295_v37 = vmul.f32 %v4161_v28, %v4161_v28  ;;  %v3604_v31 = vadd.f32 %v3537_v1, %v3350_v36 }
 0x52d   : > { %v4095_v54 = vpop.f32.mrf.mxu0 }
 0x52e   : > { %v4358_v62 = vadd.f32 %v4357_v5, %v4295_v37 }
 0x52f   : > { %v3831_v46 = vpop.f32.mrf.mxu3 }
 0x530   : > { %v3898_v57 = vadd.f32 %v3831_v46, %v3604_v31 }
 0x532   : > { %v4162_v40 = vadd.f32 %v4095_v54, %v3898_v57 }
 0x533   : > { %v3539_v50 = vpop.f32.mrf.mxu2 }
 0x534   : > { %v4225_v26 = vadd.f32 %v4224_v41, %v4162_v40  ;;  %v4296_v59 = vmul.f32 %v4162_v40, %v4162_v40  ;;  %v3605_v0 = vadd.f32 %v3539_v50, %v3351_v52 }
 0x535   : > { %v4097_v48 = vpop.f32.mrf.mxu0 }
 0x536   : > { %v4359_v34 = vadd.f32 %v4358_v62, %v4296_v59 }
 0x537   : > { %v3833_v56 = vpop.f32.mrf.mxu3 }
 0x538   : > { %v3899_v43 = vadd.f32 %v3833_v56, %v3605_v0 }
 0x53a   : > { %v4163_v29 = vadd.f32 %v4097_v48, %v3899_v43 }
 0x53c   : > { %v4226_v55 = vadd.f32 %v4225_v26, %v4163_v29  ;;  %v4297_v19 = vmul.f32 %v4163_v29, %v4163_v29 }
 0x53e   : > { %v4227_v51 = vrot.slane %v4226_v55, 4  ;;  %v4360_v6 = vadd.f32 %v4359_v34, %v4297_v19 }
 0x540   : > { %v4228_v32 = vadd.f32 %v4227_v51, %v4226_v55  ;;  %v4361_v7 = vrot.slane %v4360_v6, 4 }
 0x542   : > { %v4229_v4 = vrot.slane %v4228_v32, 2  ;;  %v4362_v44 = vadd.f32 %v4361_v7, %v4360_v6 }
 0x544   : > { %v4230_v3 = vadd.f32 %v4229_v4, %v4228_v32  ;;  %v4363_v33 = vrot.slane %v4362_v44, 2 }
 0x546   : > { %v4231_v14 = vrot.slane %v4230_v3, 1  ;;  %v4364_v24 = vadd.f32 %v4363_v33, %v4362_v44 }
 0x548   : > { %v4232_v12 = vadd.f32 %v4231_v14, %v4230_v3  ;;  %v4365_v30 = vrot.slane %v4364_v24, 1 }
 0x54a   : > { %4233 = vst [vmem:[%s287_s11] sm:$0x1] %v4232_v12  ;;  %v4366_v11 = vadd.f32 %v4365_v30, %v4364_v24 }
 0x54c   : > { %4367 = vst [vmem:[%s287_s11 + $0x1] sm:$0x1] %v4366_v11 }
 0x54d PF: > { %s13_s16 = sadd.s32 1, %s5182_s16   ;;  %s7349_s12 = smov %s5174_s14 }
 0x54e   : > { %p10_p9 = scmp.ge.s32.totalorder %s13_s16, 6   ;;  %s7350_s13 = smov %s5178_s15 }
 0x54f   : > { %s7351_s14 = smov %s7354_s17  ;;  %s7352_s15 = smov %s7358_s18 }
 0x550   :  { %12 = sbr.rel (!%p10_p9) target bundleno = 3 (0x3), region = 73 }

// kernel: up_forward.3
= control target key start
LH: loop header
LB: loop body
LE: loop exit
PB: predicated region body
PF: predicated region fallthrough
CT: control target
= control target key end

     0   :  { %s5233_s18 = smov 0   ;;  %s5235_s19 = smov 0   ;;  %s7081_s0 = inlined_call_operand.vmem [shape: bf16[2,34,34,4], index: 0, kind: input, shape index: {}, may-alias: {0,1}]   ;;  %s7082_s1 = inlined_call_operand.vmem [shape: bf16[2,34,34,4], index: 1, kind: input, shape index: {}, may-alias: {0,1}]   ;;  %s7083_s2 = inlined_call_operand.vmem [shape: bf16[9,4,128], index: 2, kind: input, shape index: {}]   ;;  %s7084_s3 = inlined_call_operand.vmem [shape: f32[8,1], index: 3, kind: input, shape index: {}]   ;;  %s7085_s4 = inlined_call_operand.vmem [shape: f32[8,1], index: 4, kind: input, shape index: {}]   ;;  %s7086_s5 = inlined_call_operand.vmem [shape: f32[2,8,1024], index: 5, kind: output, shape index: {}]  }
   0x1   :  { %s5237_s20 = smov 0   ;;  %s5239_s21 = smov 0  }
   0x2   :  { %s5241_s22 = smov 0  }
   0x3 LB: > { %s24_s23 = sadd.s32 1, %s5192_s20  ;;  %s27_s24 = sadd.s32 1, %s5196_s21  ;;  %s5200_s22 = sphi %s5241_s22, %s15_s22   ;;  %s5196_s21 = sphi %s5239_s21, %s7389_s21   ;;  %s5192_s20 = sphi %s5237_s20, %s7388_s20   ;;  %s5188_s19 = sphi %s5235_s19, %s7387_s19   ;;  %s5184_s18 = sphi %s5233_s18, %s7386_s18  }
   0x4   : > { %p25_p0 = scmp.ge.s32.totalorder %s24_s23, 2  ;;  %p4497_p1 = scmp.ge.s32.totalorder %s5200_s22, 1 }
   0x5   : > { %p245_p2 = scmp.lt.s32.totalorder %s5200_s22, 5 }
   0x6   : > { %s7391_s23 = smov (%p25_p0, %s24_s23), 0  ;;  %s7393_s24 = smov (!%p25_p0, %s27_s24), %s5196_s21 }
   0x7   : > { %p246_p3 = pnand %p4497_p1, %p245_p2  ;;  %p29_p4 = scmp.ge.s32.totalorder %s7393_s24, 2 }
   0x9   : > { %s7395_s24 = smov (%p29_p4, %s7393_s24), 0  ;;  %249 = sbr.rel (%p246_p3) target bundleno = 1444 (0x5a4), region = 40 }
   0xe   : > { %v4506_v0 = vld [vmem:[%s7083_s2 + $0x2] sm:$0x3]  ;;  %vm1339_vm0 = vcmask 1041408   ;;  %s5269_s27 = sshll.u32 %s5184_s18, 4  ;;  %p305_p5 = scmp.lt.s32.totalorder %s5188_s19, 1  ;;  %vm1242_vm3 = vcmask 31744  }
   0xf   : > { %v1341_v1 = vsel %vm1339_vm0, %v4506_v0, 0  ;;  %p307_p6 = scmp.lt.s32.totalorder %s5269_s27, 33  ;;  %v4715_v2 = vld [vmem:[%s7083_s2 + $0x4] sm:$0x3]  ;;  %v4748_v4 = vld [vmem:[%s7083_s2 + $0x6] sm:$0x3] }
  0x10   : > { %5011 = vmatpush.bf16.msra.mxu1 %v1341_v1  ;;  %5012 = vmatpush.bf16.msra.mxu2 %v1341_v1  ;;  %s7397_s19 = smov (!%p305_p5, %s5188_s19), 1  ;;  %v2362_v3 = vsel %vm1339_vm0, %v4715_v2, 0  ;;  %v436_v5 = vld [vmem:[%s7083_s2] sm:$0x3]  ;;  %v4789_v6 = vld [vmem:[%s7083_s2 + $0x8] sm:$0x3] }
  0x11   : > { %5013 = vmatpush.bf16.msra.mxu3 %v1341_v1  ;;  %1350 = vmatpush.bf16.msra.mxu0 %v1341_v1  ;;  %s308_s30 = scalar_select %p307_p6, %s5269_s27, 33  ;;  %v2616_v7 = vsel %vm1339_vm0, %v4748_v4, 0  ;;  %v1769_v8 = vsel %vm1339_vm0, %v436_v5, 0  ;;  %v2910_v9 = vsel %vm1339_vm0, %v4789_v6, 0  ;;  %vm437_vm1 = vsmask.f32 3328 }
  0x12   : > { %s5015_s6 = smul.u32 170, %s7397_s19  ;;  %vm438_vm2 = vsmask.f32 7440  ;;  %v7148_v36 = vmov 0  ;;  %vm1956_vm5 = vcmask 1042432   ;;  %vm1957_vm6 = vcmask 1046532  }
  0x13   : > { %s5014_s7 = smul.u32 5, %s308_s30  ;;  %vm5318_vm4 = vmor %vm437_vm1, %vm438_vm2  ;;  %s5010_s11 = sadd.s32 16, %s5269_s27 }
  0x14   : > { %2371 = vmatpush.bf16.msrb.mxu2 %v2362_v3  ;;  %1778 = vmatpush.bf16.msrb.mxu1 %v1769_v8  ;;  %v7149_v36 = vsel %vm5318_vm4, 4294967295, %v7148_v36  ;;  %vm5821_vm7 = vmor %vm1956_vm5, %vm1957_vm6  ;;  %p325_p7 = scmp.lt.s32.totalorder %s5010_s11, 33  ;;  %s4503_s28 = sshll.u32 %s5184_s18, 2 }
  0x15   : > { %s311_s14 = sadd.s32 %s5015_s6, %s5014_s7  ;;  %2625 = vmatpush.bf16.msrb.mxu3 %v2616_v7  ;;  %2919 = vmatpush.bf16.msrb.mxu0 %v2910_v9  ;;  %7150 = vst [vmem:[#allocation2_spill] sm:$0xff] %v7149_v36  ;;  %p338_p8 = scmp.lt.s32.totalorder %s4503_s28, 7 }
  0x16   : > { %s4499_s15 = sshll.u32 %s311_s14, 2  ;;  %s7399_s11 = smov (!%p325_p7, %s5010_s11), 33 }
  0x17   : > { %s5298_s25 = scalar_lea.vmem %s7081_s0, %s4499_s15  ;;  %s5016_s27 = smul.u32 5, %s7399_s11 }
  0x18   : > { %v366_v10 = vld [vmem:[%s5298_s25 + $0x50] sm:$0xf]  ;;  %v367_v11 = vld [vmem:[%s5298_s25 + $0x54] sm:$0xf]  ;;  %v5303_v12 = vld [vmem:[%s5298_s25 + $0x58] sm:$0xf] }
  0x19   : > { %v617_v13 = vshrl.u32 %v366_v10, 16  ;;  %v620_v14 = vshll.u32 %v366_v10, 16  ;;  %v626_v15 = vshll.u32 %v367_v11, 16  ;;  %v630_v16 = vshrl.u32 %v367_v11, 16  ;;  %v386_v17 = vld [vmem:[%s5298_s25 + $0xa0] sm:$0xf]  ;;  %s329_s12 = sadd.s32 %s5016_s27, %s5015_s6 }
  0x1a   : > { %v636_v18 = vshll.u32 %v5303_v12, 16  ;;  %v387_v19 = vld [vmem:[%s5298_s25 + $0xa4] sm:$0xf]  ;;  %v5309_v20 = vld [vmem:[%s5298_s25 + $0xa8] sm:$0xf]  ;;  %v793_v21 = vshrl.u32 %v386_v17, 16 }
  0x1b   : > { %v619_v22 = vrot.slane %v617_v13, 4  ;;  %v622_v23 = vrot.slane %v620_v14, 5  ;;  %v628_v24 = vrot.slane %v626_v15, 5  ;;  %v632_v25 = vrot.slane %v630_v16, 4  ;;  %v406_v26 = vld [vmem:[%s5298_s25 + $0xf0] sm:$0xf] }
  0x1c   : > { %v5312_v27 = vrot.slane %v636_v18, 5  ;;  %v795_v28 = vrot.slane %v793_v21, 4  ;;  %v796_v29 = vshll.u32 %v386_v17, 16  ;;  %v802_v30 = vshll.u32 %v387_v19, 16  ;;  %v407_v35 = vld [vmem:[%s5298_s25 + $0xf4] sm:$0xf] }
  0x1d   : > { %v623_v31 = vor.u32 %v622_v23, %v619_v22  ;;  %v633_v32 = vor.u32 %v632_v25, %v628_v24  ;;  %v806_v33 = vshrl.u32 %v387_v19, 16  ;;  %v812_v34 = vshll.u32 %v5309_v20, 16  ;;  %v5325_v46 = vld [vmem:[%s5298_s25 + $0xf8] sm:$0xf]  ;;  %v346_v54 = vld [vmem:[%s5298_s25] sm:$0xf] }
  0x1e   : > { %v798_v37 = vrot.slane %v796_v29, 5  ;;  %v804_v38 = vrot.slane %v802_v30, 5  ;;  %v969_v39 = vshrl.u32 %v406_v26, 16  ;;  %v972_v40 = vshll.u32 %v406_v26, 16  ;;  %v347_v2 = vld [vmem:[%s5298_s25 + $0x4] sm:$0xf] }
  0x1f   : > { %v624_v41 = vrot.slane %v623_v31, 4  ;;  %v634_v42 = vrot.slane %v633_v32, 4  ;;  %v808_v43 = vrot.slane %v806_v33, 4  ;;  %v5322_v44 = vrot.slane %v812_v34, 5  ;;  %v5345_v8 = vld [vmem:[%s5298_s25 + $0x8] sm:$0xf] }
  0x20   : > { %v799_v45 = vor.u32 %v798_v37, %v795_v28  ;;  %v971_v47 = vrot.slane %v969_v39, 4  ;;  %v974_v48 = vrot.slane %v972_v40, 5  ;;  %v978_v49 = vshll.u32 %v407_v35, 16  ;;  %v369_v14 = vld [vmem:[%s5298_s25 + $0x5c] sm:$0xf]  ;;  %s4502_s13 = sshll.u32 %s329_s12, 2 }
  0x21   : > { %v629_v50 = vsel %vm5318_vm4, %v624_v41, %v628_v24  ;;  %v639_v51 = vsel %vm5318_vm4, %v634_v42, %v5312_v27  ;;  %v809_v52 = vor.u32 %v808_v43, %v804_v38  ;;  %v982_v53 = vshrl.u32 %v407_v35, 16  ;;  %v370_v23 = vld [vmem:[%s5298_s25 + $0x60] sm:$0x1]  ;;  %s6540_s6 = scalar_lea.vmem %s7082_s1, %s4502_s13  ;;  %s7401_s28 = smov (!%p338_p8, %s4503_s28), 7 }
  0x22   : > { %v1162_v55 = vunpack.c.l.b16 %v629_v50  ;;  %v1163_v56 = vunpack.c.l.b16 %v639_v51  ;;  %v800_v57 = vrot.slane %v799_v45, 4  ;;  %v975_v58 = vor.u32 %v974_v48, %v971_v47  ;;  %v390_v50 = vld [vmem:[%s5298_s25 + $0xb0] sm:$0x1]  ;;  %s4504_s29 = sshll.u32 %s7397_s19, 3 }
  0x23   : > { %v810_v59 = vrot.slane %v809_v52, 4  ;;  %v980_v60 = vrot.slane %v978_v49, 5  ;;  %v984_v61 = vrot.slane %v982_v53, 4  ;;  %v988_v62 = vshll.u32 %v5325_v46, 16  ;;  %s341_s30 = sadd.s32 %s4504_s29, %s7401_s28 }
  0x24   : > { %v5334_v63 = vpack.c.b16 %v1163_v56, %v1162_v55  ;;  %v805_v0 = vsel %vm5318_vm4, %v800_v57, %v804_v38  ;;  %v976_v1 = vrot.slane %v975_v58, 4  ;;  %v441_v3 = vshrl.u32 %v346_v54, 16  ;;  %v389_v38 = vld [vmem:[%s5298_s25 + $0xac] sm:$0xf]  ;;  %s4505_s7 = sshll.u32 %s341_s30, 3 }
  0x25   : > { %v815_v4 = vsel %vm5318_vm4, %v810_v59, %v5322_v44  ;;  %v1178_v5 = vunpack.c.l.b16 %v805_v0  ;;  %v985_v6 = vor.u32 %v984_v61, %v980_v60  ;;  %v5342_v7 = vrot.slane %v988_v62, 5  ;;  %v409_v59 = vld [vmem:[%s5298_s25 + $0xfc] sm:$0xf]  ;;  %s343_s18 = scalar_lea.vmem %s7086_s5, %s4505_s7 }
  0x26   : > { %7151 = vst [vmem:[#allocation3_spill] sm:$0xff] %v5334_v63  ;;  %4515 = vmatmul.msk.bf16.vlgmr.msra.gmra.mxu1 %vm1242_vm3, %v5334_v63  ;;  %v1179_v9 = vunpack.c.l.b16 %v815_v4  ;;  %v981_v10 = vsel %vm5318_vm4, %v976_v1, %v980_v60  ;;  %v443_v11 = vrot.slane %v441_v3, 4  ;;  %v444_v13 = vshll.u32 %v346_v54, 16  ;;  %v410_v3 = vld [vmem:[%s5298_s25 + $0x100] sm:$0x1] }
  0x27   : > { %v986_v15 = vrot.slane %v985_v6, 4  ;;  %v1194_v16 = vunpack.c.l.b16 %v981_v10  ;;  %v450_v17 = vshll.u32 %v347_v2, 16  ;;  %v454_v18 = vshrl.u32 %v347_v2, 16 }
  0x28   : > { %v5352_v19 = vpack.c.b16 %v1179_v9, %v1178_v5  ;;  %v446_v21 = vrot.slane %v444_v13, 5  ;;  %v460_v22 = vshll.u32 %v5345_v8, 16  ;;  %v640_v24 = vshrl.u32 %v5303_v12, 16 }
  0x29   : > { %v991_v25 = vsel %vm5318_vm4, %v986_v15, %v5342_v7  ;;  %v452_v26 = vrot.slane %v450_v17, 5  ;;  %v456_v28 = vrot.slane %v454_v18, 4  ;;  %v646_v29 = vshll.u32 %v369_v14, 16  ;;  %v349_v18 = vld [vmem:[%s5298_s25 + $0xc] sm:$0xf] }
  0x2a   : > { %4523 = vmatmul.msk.bf16.vlgmr.msra.gmra.mxu2 %vm1242_vm3, %v5352_v19  ;;  %v1195_v30 = vunpack.c.l.b16 %v991_v25  ;;  %v447_v31 = vor.u32 %v446_v21, %v443_v11  ;;  %v5362_v32 = vrot.slane %v460_v22, 5  ;;  %v642_v33 = vrot.slane %v640_v24, 4  ;;  %v371_v25 = vld [vmem:[%s5298_s25 + $0x64] sm:$0xf] }
  0x2b   : > { %v457_v34 = vor.u32 %v456_v28, %v452_v26  ;;  %v648_v35 = vrot.slane %v646_v29, 5  ;;  %v650_v37 = vshrl.u32 %v369_v14, 16  ;;  %v656_v12 = vshll.u32 %v370_v23, 16 }
  0x2c   : > { %v5365_v39 = vpack.c.b16 %v1195_v30, %v1194_v16  ;;  %v448_v40 = vrot.slane %v447_v31, 4  ;;  %v643_v41 = vor.u32 %v642_v33, %v5312_v27  ;;  %v816_v47 = vshrl.u32 %v5309_v20, 16 }
  0x2d   : > { %v458_v42 = vrot.slane %v457_v34, 4  ;;  %v652_v43 = vrot.slane %v650_v37, 4  ;;  %v658_v45 = vrot.slane %v656_v12, 5  ;;  %v822_v51 = vshll.u32 %v389_v38, 16 }
  0x2e   : > { %7152 = vst [vmem:[#allocation4_spill] sm:$0xff] %v5365_v39  ;;  %4531 = vmatmul.msk.bf16.vlgmr.msra.gmra.mxu3 %vm1242_vm3, %v5365_v39  ;;  %v453_v48 = vsel %vm5318_vm4, %v448_v40, %v452_v26  ;;  %v644_v49 = vrot.slane %v643_v41, 4  ;;  %v826_v52 = vshrl.u32 %v389_v38, 16  ;;  %v818_v55 = vrot.slane %v816_v47, 4  ;;  %v372_v40 = vld [vmem:[%s5298_s25 + $0x68] sm:$0xf] }
  0x2f   : > { %v463_v27 = vsel %vm5318_vm4, %v458_v42, %v5362_v32  ;;  %v1146_v53 = vunpack.c.l.b16 %v453_v48  ;;  %v653_v54 = vor.u32 %v652_v43, %v648_v35  ;;  %v824_v57 = vrot.slane %v822_v51, 5  ;;  %v391_v47 = vld [vmem:[%s5298_s25 + $0xb4] sm:$0xf] }
  0x30   : > { %v1147_v56 = vunpack.c.l.b16 %v463_v27  ;;  %v649_v20 = vsel %vm5318_vm4, %v644_v49, %v648_v35  ;;  %v828_v58 = vrot.slane %v826_v52, 4  ;;  %v819_v61 = vor.u32 %v818_v55, %v5322_v44 }
  0x31   : > { %v654_v60 = vrot.slane %v653_v54, 4  ;;  %v832_v62 = vshll.u32 %v390_v50, 16  ;;  %v1164_v1 = vunpack.c.l.b16 %v649_v20  ;;  %v992_v4 = vshrl.u32 %v5325_v46, 16  ;;  %v350_v46 = vld [vmem:[%s5298_s25 + $0x10] sm:$0x1] }
  0x32   : > { %v1210_v0 = vpack.c.b16 %v1147_v56, %v1146_v53  ;;  %v829_v2 = vor.u32 %v828_v58, %v824_v57  ;;  %v820_v6 = vrot.slane %v819_v61, 4  ;;  %v998_v10 = vshll.u32 %v409_v59, 16 }
  0x33   : > { %v659_v5 = vsel %vm5318_vm4, %v654_v60, %v658_v45  ;;  %v834_v9 = vrot.slane %v832_v62, 5  ;;  %v994_v13 = vrot.slane %v992_v4, 4  ;;  %v1002_v14 = vshrl.u32 %v409_v59, 16 }
  0x34   : > { %4507 = vmatmul.msk.bf16.vlgmr.msra.gmra.mxu0 %vm1242_vm3, %v1210_v0  ;;  %v1165_v11 = vunpack.c.l.b16 %v659_v5  ;;  %v830_v44 = vrot.slane %v829_v2, 4  ;;  %v825_v15 = vsel %vm5318_vm4, %v820_v6, %v824_v57  ;;  %v1000_v16 = vrot.slane %v998_v10, 5  ;;  %v392_v57 = vld [vmem:[%s5298_s25 + $0xb8] sm:$0xf]  ;;  %v411_v0 = vld [vmem:[%s5298_s25 + $0x104] sm:$0xf] }
  0x35   : > { %v1008_v17 = vshll.u32 %v410_v3, 16  ;;  %v1180_v23 = vunpack.c.l.b16 %v825_v15  ;;  %v995_v24 = vor.u32 %v994_v13, %v5342_v7  ;;  %v1004_v28 = vrot.slane %v1002_v14, 4  ;;  %v5403_v7 = vld [vmem:[%s5298_s25 + $0x6c] sm:$0xf]  ;;  %v5421_v3 = vld [vmem:[%s5298_s25 + $0xbc] sm:$0xf] }
  0x36   : > { %v5390_v21 = vpack.c.b16 %v1165_v11, %v1164_v1  ;;  %v835_v22 = vsel %vm5318_vm4, %v830_v44, %v834_v9  ;;  %v464_v30 = vshrl.u32 %v5345_v8, 16  ;;  %v470_v33 = vshll.u32 %v349_v18, 16 }
  0x37   : > { %v1181_v26 = vunpack.c.l.b16 %v835_v22  ;;  %v1010_v29 = vrot.slane %v1008_v17, 5  ;;  %v996_v31 = vrot.slane %v995_v24, 4  ;;  %v474_v34 = vshrl.u32 %v349_v18, 16  ;;  %v412_v18 = vld [vmem:[%s5298_s25 + $0x108] sm:$0xf] }
  0x38   : > { %7153 = vst [vmem:[#allocation5_spill] sm:$0xff] %v5390_v21  ;;  %4516 = vmatmul.msk.bf16.gmra.mxu1 %vm1242_vm3, %v5390_v21  ;;  %v480_v35 = vshll.u32 %v350_v46, 16  ;;  %v1005_v12 = vor.u32 %v1004_v28, %v1000_v16  ;;  %v466_v38 = vrot.slane %v464_v30, 4  ;;  %v661_v41 = vshrl.u32 %v371_v25, 16 }
  0x39   : > { %v5399_v37 = vpack.c.b16 %v1181_v26, %v1180_v23  ;;  %v1001_v42 = vsel %vm5318_vm4, %v996_v31, %v1000_v16  ;;  %v472_v8 = vrot.slane %v470_v33, 5  ;;  %v476_v43 = vrot.slane %v474_v34, 4  ;;  %v5432_v26 = vld [vmem:[%s5298_s25 + $0x10c] sm:$0xf]  ;;  %v351_v33 = vld [vmem:[%s5298_s25 + $0x14] sm:$0xf] }
  0x3a   : > { %v482_v45 = vrot.slane %v480_v35, 5  ;;  %v1006_v48 = vrot.slane %v1005_v12, 4  ;;  %v1196_v49 = vunpack.c.l.b16 %v1001_v42  ;;  %v467_v50 = vor.u32 %v466_v38, %v5362_v32 }
  0x3b   : > { %4524 = vmatmul.msk.bf16.gmra.mxu2 %vm1242_vm3, %v5399_v37  ;;  %v663_v51 = vrot.slane %v661_v41, 4  ;;  %v477_v52 = vor.u32 %v476_v43, %v472_v8  ;;  %v664_v27 = vshll.u32 %v371_v25, 16  ;;  %v670_v53 = vshll.u32 %v372_v40, 16 }
  0x3c   : > { %v674_v54 = vshrl.u32 %v372_v40, 16  ;;  %v1011_v55 = vsel %vm5318_vm4, %v1006_v48, %v1010_v29  ;;  %v468_v56 = vrot.slane %v467_v50, 4  ;;  %v680_v20 = vshll.u32 %v5403_v7, 16 }
  0x3d   : > { %v837_v58 = vshrl.u32 %v391_v47, 16  ;;  %v1197_v59 = vunpack.c.l.b16 %v1011_v55  ;;  %v478_v60 = vrot.slane %v477_v52, 4  ;;  %v666_v61 = vrot.slane %v664_v27, 5  ;;  %v352_v27 = vld [vmem:[%s5298_s25 + $0x18] sm:$0xf] }
  0x3e   : > { %v672_v62 = vrot.slane %v670_v53, 5  ;;  %v473_v32 = vsel %vm5318_vm4, %v468_v56, %v472_v8  ;;  %v676_v1 = vrot.slane %v674_v54, 4  ;;  %v5418_v2 = vrot.slane %v680_v20, 5  ;;  %v5452_v56 = vld [vmem:[%s5298_s25 + $0x1c] sm:$0xf] }
  0x3f   : > { %v839_v4 = vrot.slane %v837_v58, 4  ;;  %v5423_v5 = vpack.c.b16 %v1197_v59, %v1196_v49  ;;  %v483_v6 = vsel %vm5318_vm4, %v478_v60, %v482_v45  ;;  %v1148_v9 = vunpack.c.l.b16 %v473_v32 }
  0x40   : > { %v667_v10 = vor.u32 %v666_v61, %v663_v51  ;;  %v1149_v11 = vunpack.c.l.b16 %v483_v6  ;;  %v677_v44 = vor.u32 %v676_v1, %v672_v62  ;;  %v840_v13 = vshll.u32 %v391_v47, 16 }
  0x41   : > { %7154 = vst [vmem:[#allocation6_spill] sm:$0xff] %v5423_v5  ;;  %v846_v14 = vshll.u32 %v392_v57, 16  ;;  %4532 = vmatmul.msk.bf16.gmra.mxu3 %vm1242_vm3, %v5423_v5  ;;  %v850_v16 = vshrl.u32 %v392_v57, 16  ;;  %v856_v17 = vshll.u32 %v5421_v3, 16  ;;  %v1013_v46 = vshrl.u32 %v411_v0, 16 }
  0x42   : > { %v668_v15 = vrot.slane %v667_v10, 4  ;;  %v1211_v22 = vpack.c.b16 %v1149_v11, %v1148_v9  ;;  %v678_v23 = vrot.slane %v677_v44, 4  ;;  %v842_v24 = vrot.slane %v840_v13, 5  ;;  %v374_v9 = vld [vmem:[%s5298_s25 + $0x70] sm:$0xf] }
  0x43   : > { %v848_v25 = vrot.slane %v846_v14, 5  ;;  %v852_v29 = vrot.slane %v850_v16, 4  ;;  %v5436_v30 = vrot.slane %v856_v17, 5  ;;  %v1015_v31 = vrot.slane %v1013_v46, 4 }
  0x44   : > { %v673_v28 = vsel %vm5318_vm4, %v668_v15, %v672_v62  ;;  %4508 = vmatmul.msk.bf16.gmra.mxu0 %vm1242_vm3, %v1211_v22  ;;  %v683_v34 = vsel %vm5318_vm4, %v678_v23, %v5418_v2  ;;  %v843_v12 = vor.u32 %v842_v24, %v839_v4  ;;  %v1016_v38 = vshll.u32 %v411_v0, 16  ;;  %v375_v15 = vld [vmem:[%s5298_s25 + $0x74] sm:$0x1] }
  0x45   : > { %v1166_v35 = vunpack.c.l.b16 %v673_v28  ;;  %v1167_v40 = vunpack.c.l.b16 %v683_v34  ;;  %v853_v41 = vor.u32 %v852_v29, %v848_v25  ;;  %v1022_v42 = vshll.u32 %v412_v18, 16 }
  0x46   : > { %v1026_v8 = vshrl.u32 %v412_v18, 16  ;;  %v844_v43 = vrot.slane %v843_v12, 4  ;;  %v1018_v45 = vrot.slane %v1016_v38, 5  ;;  %v1032_v47 = vshll.u32 %v5432_v26, 16 }
  0x47   : > { %v485_v48 = vshrl.u32 %v351_v33, 16  ;;  %v5444_v49 = vpack.c.b16 %v1167_v40, %v1166_v35  ;;  %v854_v50 = vrot.slane %v853_v41, 4  ;;  %v1024_v51 = vrot.slane %v1022_v42, 5  ;;  %v395_v42 = vld [vmem:[%s5298_s25 + $0xc4] sm:$0x1] }
  0x48   : > { %v1028_v52 = vrot.slane %v1026_v8, 4  ;;  %v849_v53 = vsel %vm5318_vm4, %v844_v43, %v848_v25  ;;  %v1019_v54 = vor.u32 %v1018_v45, %v1015_v31  ;;  %v5449_v55 = vrot.slane %v1032_v47, 5  ;;  %v394_v31 = vld [vmem:[%s5298_s25 + $0xc0] sm:$0xf] }
  0x49   : > { %7155 = vst [vmem:[#allocation7_spill] sm:$0xff] %v5444_v49  ;;  %v487_v20 = vrot.slane %v485_v48, 4  ;;  %4517 = vmatmul.msk.bf16.gmra.mxu1 %vm1242_vm3, %v5444_v49  ;;  %v859_v57 = vsel %vm5318_vm4, %v854_v50, %v5436_v30  ;;  %v1182_v58 = vunpack.c.l.b16 %v849_v53  ;;  %v488_v60 = vshll.u32 %v351_v33, 16 }
  0x4a   : > { %v1029_v59 = vor.u32 %v1028_v52, %v1024_v51  ;;  %v1183_v61 = vunpack.c.l.b16 %v859_v57  ;;  %v1020_v62 = vrot.slane %v1019_v54, 4  ;;  %v494_v0 = vshll.u32 %v352_v27, 16 }
  0x4b   : > { %v498_v32 = vshrl.u32 %v352_v27, 16  ;;  %v490_v4 = vrot.slane %v488_v60, 5  ;;  %v504_v6 = vshll.u32 %v5452_v56, 16  ;;  %v684_v10 = vshrl.u32 %v5403_v7, 16  ;;  %v414_v27 = vld [vmem:[%s5298_s25 + $0x110] sm:$0xf] }
  0x4c   : > { %v1030_v1 = vrot.slane %v1029_v59, 4  ;;  %v5462_v11 = vpack.c.b16 %v1183_v61, %v1182_v58  ;;  %v1025_v44 = vsel %vm5318_vm4, %v1020_v62, %v1024_v51  ;;  %v496_v13 = vrot.slane %v494_v0, 5 }
  0x4d   : > { %v500_v14 = vrot.slane %v498_v32, 4  ;;  %v1198_v17 = vunpack.c.l.b16 %v1025_v44  ;;  %v491_v18 = vor.u32 %v490_v4, %v487_v20  ;;  %v5470_v46 = vrot.slane %v504_v6, 5  ;;  %v415_v20 = vld [vmem:[%s5298_s25 + $0x114] sm:$0x1] }
  0x4e   : > { %v1035_v16 = vsel %vm5318_vm4, %v1030_v1, %v5449_v55  ;;  %4525 = vmatmul.msk.bf16.gmra.mxu2 %vm1242_vm3, %v5462_v11  ;;  %v686_v23 = vrot.slane %v684_v10, 4  ;;  %v690_v24 = vshll.u32 %v374_v9, 16  ;;  %v694_v28 = vshrl.u32 %v374_v9, 16 }
  0x4f   : > { %v1199_v7 = vunpack.c.l.b16 %v1035_v16  ;;  %v501_v22 = vor.u32 %v500_v14, %v496_v13  ;;  %v492_v25 = vrot.slane %v491_v18, 4  ;;  %v700_v29 = vshll.u32 %v375_v15, 16  ;;  %v5500_v14 = vld [vmem:[%s5298_s25 + $0x20] sm:$0xf]  ;;  %v376_v18 = vld [vmem:[%s5298_s25 + $0x78] sm:$0xf] }
  0x50   : > { %v687_v35 = vor.u32 %v686_v23, %v5418_v2  ;;  %v692_v12 = vrot.slane %v690_v24, 5  ;;  %v696_v40 = vrot.slane %v694_v28, 4  ;;  %v860_v8 = vshrl.u32 %v5421_v3, 16 }
  0x51   : > { %v5475_v33 = vpack.c.b16 %v1199_v7, %v1198_v17  ;;  %v502_v34 = vrot.slane %v501_v22, 4  ;;  %v497_v38 = vsel %vm5318_vm4, %v492_v25, %v496_v13  ;;  %v702_v41 = vrot.slane %v700_v29, 5  ;;  %v5505_v17 = vld [vmem:[%s5298_s25 + $0x24] sm:$0x1] }
  0x52   : > { %v1150_v45 = vunpack.c.l.b16 %v497_v38  ;;  %v688_v2 = vrot.slane %v687_v35, 4  ;;  %v866_v47 = vshll.u32 %v394_v31, 16  ;;  %v697_v50 = vor.u32 %v696_v40, %v692_v12  ;;  %v377_v38 = vld [vmem:[%s5298_s25 + $0x7c] sm:$0xf] }
  0x53   : > { %7156 = vst [vmem:[#allocation8_spill] sm:$0xff] %v5475_v33  ;;  %4533 = vmatmul.msk.bf16.gmra.mxu3 %vm1242_vm3, %v5475_v33  ;;  %v507_v43 = vsel %vm5318_vm4, %v502_v34, %v5470_v46  ;;  %v862_v51 = vrot.slane %v860_v8, 4  ;;  %v870_v52 = vshrl.u32 %v394_v31, 16  ;;  %v876_v3 = vshll.u32 %v395_v42, 16  ;;  %v5521_v8 = vld [vmem:[%s5298_s25 + $0x80] sm:$0xf] }
  0x54   : > { %v1151_v48 = vunpack.c.l.b16 %v507_v43  ;;  %v693_v53 = vsel %vm5318_vm4, %v688_v2, %v692_v12  ;;  %v868_v54 = vrot.slane %v866_v47, 5  ;;  %v698_v58 = vrot.slane %v697_v50, 4 }
  0x55   : > { %v1168_v59 = vunpack.c.l.b16 %v693_v53  ;;  %v863_v60 = vor.u32 %v862_v51, %v5436_v30  ;;  %v872_v61 = vrot.slane %v870_v52, 4  ;;  %v878_v62 = vrot.slane %v876_v3, 5 }
  0x56   : > { %v5491_v57 = vpack.c.b16 %v1151_v48, %v1150_v45  ;;  %v1036_v0 = vshrl.u32 %v5432_v26, 16  ;;  %v1042_v32 = vshll.u32 %v414_v27, 16  ;;  %v703_v1 = vsel %vm5318_vm4, %v698_v58, %v702_v41  ;;  %v396_v48 = vld [vmem:[%s5298_s25 + $0xc8] sm:$0xf] }
  0x57   : > { %v864_v4 = vrot.slane %v863_v60, 4  ;;  %v1046_v6 = vshrl.u32 %v414_v27, 16  ;;  %v1052_v9 = vshll.u32 %v415_v20, 16  ;;  %v1169_v10 = vunpack.c.l.b16 %v703_v1 }
  0x58   : > { %4509 = vmatmul.msk.bf16.gmra.mxu0 %vm1242_vm3, %v5491_v57  ;;  %v873_v44 = vor.u32 %v872_v61, %v868_v54  ;;  %v1038_v13 = vrot.slane %v1036_v0, 4  ;;  %v1044_v30 = vrot.slane %v1042_v32, 5  ;;  %v508_v28 = vshrl.u32 %v5452_v56, 16  ;;  %v397_v61 = vld [vmem:[%s5298_s25 + $0xcc] sm:$0xf] }
  0x59   : > { %v869_v26 = vsel %vm5318_vm4, %v864_v4, %v868_v54  ;;  %v1048_v15 = vrot.slane %v1046_v6, 4  ;;  %v1054_v16 = vrot.slane %v1052_v9, 5  ;;  %v5508_v7 = vpack.c.b16 %v1169_v10, %v1168_v59 }
  0x5a   : > { %v874_v22 = vrot.slane %v873_v44, 4  ;;  %v1184_v23 = vunpack.c.l.b16 %v869_v26  ;;  %v1039_v24 = vor.u32 %v1038_v13, %v5449_v55  ;;  %v514_v29 = vshll.u32 %v5500_v14, 16  ;;  %v5543_v44 = vld [vmem:[%s5298_s25 + $0xd0] sm:$0xf] }
  0x5b   : > { %7157 = vst [vmem:[#allocation9_spill] sm:$0xff] %v5508_v7  ;;  %v1049_v25 = vor.u32 %v1048_v15, %v1044_v30  ;;  %v518_v31 = vshrl.u32 %v5500_v14, 16  ;;  %4518 = vmatmul.msk.bf16.gmra.mxu1 %vm1242_vm3, %v5508_v7  ;;  %v524_v12 = vshll.u32 %v5505_v17, 16  ;;  %v705_v40 = vshrl.u32 %v376_v18, 16 }
  0x5c   : > { %v879_v34 = vsel %vm5318_vm4, %v874_v22, %v878_v62  ;;  %v1040_v35 = vrot.slane %v1039_v24, 4  ;;  %v510_v42 = vrot.slane %v508_v28, 4  ;;  %v516_v56 = vrot.slane %v514_v29, 5 }
  0x5d   : > { %v1185_v55 = vunpack.c.l.b16 %v879_v34  ;;  %v1050_v41 = vrot.slane %v1049_v25, 4  ;;  %v520_v45 = vrot.slane %v518_v31, 4  ;;  %v526_v2 = vrot.slane %v524_v12, 5 }
  0x5e   : > { %v1045_v43 = vsel %vm5318_vm4, %v1040_v35, %v1044_v30  ;;  %v707_v47 = vrot.slane %v705_v40, 4  ;;  %v511_v27 = vor.u32 %v510_v42, %v5470_v46  ;;  %v708_v3 = vshll.u32 %v376_v18, 16  ;;  %v416_v46 = vld [vmem:[%s5298_s25 + $0x118] sm:$0xf]  ;;  %v417_v40 = vld [vmem:[%s5298_s25 + $0x11c] sm:$0xf] }
  0x5f   : > { %v5526_v50 = vpack.c.b16 %v1185_v55, %v1184_v23  ;;  %v1055_v51 = vsel %vm5318_vm4, %v1050_v41, %v1054_v16  ;;  %v1200_v52 = vunpack.c.l.b16 %v1045_v43  ;;  %v521_v54 = vor.u32 %v520_v45, %v516_v56  ;;  %v5561_v45 = vld [vmem:[%s5298_s25 + $0x28] sm:$0xf] }
  0x60   : > { %v1201_v53 = vunpack.c.l.b16 %v1055_v51  ;;  %v714_v20 = vshll.u32 %v377_v38, 16  ;;  %v512_v58 = vrot.slane %v511_v27, 4  ;;  %v718_v59 = vshrl.u32 %v377_v38, 16 }
  0x61   : > { %4526 = vmatmul.msk.bf16.gmra.mxu2 %vm1242_vm3, %v5526_v50  ;;  %v724_v60 = vshll.u32 %v5521_v8, 16  ;;  %v881_v62 = vshrl.u32 %v396_v48, 16  ;;  %v522_v32 = vrot.slane %v521_v54, 4  ;;  %v710_v1 = vrot.slane %v708_v3, 5 }
  0x62   : > { %v5535_v0 = vpack.c.b16 %v1201_v53, %v1200_v52  ;;  %v716_v4 = vrot.slane %v714_v20, 5  ;;  %v517_v6 = vsel %vm5318_vm4, %v512_v58, %v516_v56  ;;  %v720_v9 = vrot.slane %v718_v59, 4  ;;  %v5558_v56 = vld [vmem:[%s5298_s25 + $0x120] sm:$0xf] }
  0x63   : > { %v5540_v10 = vrot.slane %v724_v60, 5  ;;  %v883_v13 = vrot.slane %v881_v62, 4  ;;  %v527_v30 = vsel %vm5318_vm4, %v522_v32, %v526_v2  ;;  %v1152_v26 = vunpack.c.l.b16 %v517_v6 }
  0x64   : > { %7158 = vst [vmem:[#allocation10_spill] sm:$0xff] %v5535_v0  ;;  %4534 = vmatmul.msk.bf16.gmra.mxu3 %vm1242_vm3, %v5535_v0  ;;  %v711_v15 = vor.u32 %v710_v1, %v707_v47  ;;  %v884_v16 = vshll.u32 %v396_v48, 16  ;;  %v1153_v18 = vunpack.c.l.b16 %v527_v30  ;;  %v721_v22 = vor.u32 %v720_v9, %v716_v4  ;;  %v5575_v1 = vld [vmem:[%s5298_s25 + $0x2c] sm:$0xf] }
  0x65   : > { %v890_v23 = vshll.u32 %v397_v61, 16  ;;  %v894_v24 = vshrl.u32 %v397_v61, 16  ;;  %v900_v29 = vshll.u32 %v5543_v44, 16  ;;  %v1057_v31 = vshrl.u32 %v416_v46, 16 }
  0x66   : > { %v712_v25 = vrot.slane %v711_v15, 4  ;;  %v886_v28 = vrot.slane %v884_v16, 5  ;;  %v5550_v34 = vpack.c.b16 %v1153_v18, %v1152_v26  ;;  %v722_v35 = vrot.slane %v721_v22, 4 }
  0x67   : > { %v892_v12 = vrot.slane %v890_v23, 5  ;;  %v896_v38 = vrot.slane %v894_v24, 4  ;;  %v5555_v42 = vrot.slane %v900_v29, 5  ;;  %v1059_v43 = vrot.slane %v1057_v31, 4  ;;  %v379_v31 = vld [vmem:[%s5298_s25 + $0x84] sm:$0xf] }
  0x68   : > { %v717_v55 = vsel %vm5318_vm4, %v712_v25, %v716_v4  ;;  %v887_v41 = vor.u32 %v886_v28, %v883_v13  ;;  %4510 = vmatmul.msk.bf16.gmra.mxu0 %vm1242_vm3, %v5550_v34  ;;  %v727_v2 = vsel %vm5318_vm4, %v722_v35, %v5540_v10  ;;  %v1060_v51 = vshll.u32 %v416_v46, 16  ;;  %v5578_v4 = vld [vmem:[%s5298_s25 + $0x30] sm:$0xf] }
  0x69   : > { %v1170_v47 = vunpack.c.l.b16 %v717_v55  ;;  %v897_v48 = vor.u32 %v896_v38, %v892_v12  ;;  %v1171_v52 = vunpack.c.l.b16 %v727_v2  ;;  %v1066_v53 = vshll.u32 %v417_v40, 16 }
  0x6a   : > { %v888_v27 = vrot.slane %v887_v41, 4  ;;  %v1070_v54 = vshrl.u32 %v417_v40, 16  ;;  %v1062_v20 = vrot.slane %v1060_v51, 5  ;;  %v1076_v58 = vshll.u32 %v5558_v56, 16  ;;  %v380_v41 = vld [vmem:[%s5298_s25 + $0x88] sm:$0x1] }
  0x6b   : > { %v898_v3 = vrot.slane %v897_v48, 4  ;;  %v529_v59 = vshrl.u32 %v5561_v45, 16  ;;  %v5570_v60 = vpack.c.b16 %v1171_v52, %v1170_v47  ;;  %v1068_v62 = vrot.slane %v1066_v53, 5 }
  0x6c   : > { %v893_v61 = vsel %vm5318_vm4, %v888_v27, %v892_v12  ;;  %v1072_v32 = vrot.slane %v1070_v54, 4  ;;  %v1063_v9 = vor.u32 %v1062_v20, %v1059_v43  ;;  %v5583_v13 = vrot.slane %v1076_v58, 5  ;;  %v399_v20 = vld [vmem:[%s5298_s25 + $0xd4] sm:$0xf] }
  0x6d   : > { %v903_v46 = vsel %vm5318_vm4, %v898_v3, %v5555_v42  ;;  %v1186_v6 = vunpack.c.l.b16 %v893_v61  ;;  %4519 = vmatmul.msk.bf16.gmra.mxu1 %vm1242_vm3, %v5570_v60  ;;  %v531_v15 = vrot.slane %v529_v59, 4  ;;  %v532_v16 = vshll.u32 %v5561_v45, 16 }
  0x6e   : > { %v1187_v30 = vunpack.c.l.b16 %v903_v46  ;;  %v1073_v26 = vor.u32 %v1072_v32, %v1068_v62  ;;  %v1064_v18 = vrot.slane %v1063_v9, 4  ;;  %v538_v22 = vshll.u32 %v5575_v1, 16  ;;  %v400_v9 = vld [vmem:[%s5298_s25 + $0xd8] sm:$0x1] }
  0x6f   : > { %v542_v23 = vshrl.u32 %v5575_v1, 16  ;;  %v548_v24 = vshll.u32 %v5578_v4, 16  ;;  %v534_v29 = vrot.slane %v532_v16, 5  ;;  %v728_v35 = vshrl.u32 %v5521_v8, 16 }
  0x70   : > { %v5591_v25 = vpack.c.b16 %v1187_v30, %v1186_v6  ;;  %v1074_v28 = vrot.slane %v1073_v26, 4  ;;  %v1069_v12 = vsel %vm5318_vm4, %v1064_v18, %v1068_v62  ;;  %v540_v38 = vrot.slane %v538_v22, 5 }
  0x71   : > { %v544_v40 = vrot.slane %v542_v23, 4  ;;  %v5597_v55 = vrot.slane %v548_v24, 5  ;;  %v1202_v2 = vunpack.c.l.b16 %v1069_v12  ;;  %v535_v47 = vor.u32 %v534_v29, %v531_v15 }
  0x72   : > { %4527 = vmatmul.msk.bf16.gmra.mxu2 %vm1242_vm3, %v5591_v25  ;;  %v1079_v43 = vsel %vm5318_vm4, %v1074_v28, %v5583_v13  ;;  %v730_v48 = vrot.slane %v728_v35, 4  ;;  %v734_v52 = vshll.u32 %v379_v31, 16  ;;  %v738_v27 = vshrl.u32 %v379_v31, 16  ;;  %v419_v28 = vld [vmem:[%s5298_s25 + $0x124] sm:$0xf] }
  0x73   : > { %v1203_v8 = vunpack.c.l.b16 %v1079_v43  ;;  %v545_v51 = vor.u32 %v544_v40, %v540_v38  ;;  %v536_v53 = vrot.slane %v535_v47, 4  ;;  %v744_v3 = vshll.u32 %v380_v41, 16  ;;  %v420_v41 = vld [vmem:[%s5298_s25 + $0x128] sm:$0x1] }
  0x74   : > { %v731_v54 = vor.u32 %v730_v48, %v5540_v10  ;;  %v736_v61 = vrot.slane %v734_v52, 5  ;;  %v740_v62 = vrot.slane %v738_v27, 4  ;;  %v904_v30 = vshrl.u32 %v5543_v44, 16 }
  0x75   : > { %v5607_v58 = vpack.c.b16 %v1203_v8, %v1202_v2  ;;  %v546_v59 = vrot.slane %v545_v51, 4  ;;  %v541_v32 = vsel %vm5318_vm4, %v536_v53, %v540_v38  ;;  %v746_v6 = vrot.slane %v744_v3, 5  ;;  %v5631_v3 = vld [vmem:[%s5298_s25 + $0x34] sm:$0xf] }
  0x76   : > { %v732_v46 = vrot.slane %v731_v54, 4  ;;  %v1154_v26 = vunpack.c.l.b16 %v541_v32  ;;  %v741_v15 = vor.u32 %v740_v62, %v736_v61  ;;  %v910_v16 = vshll.u32 %v399_v20, 16  ;;  %v5638_v62 = vld [vmem:[%s5298_s25 + $0x38] sm:$0x1] }
  0x77   : > { %7159 = vst [vmem:[#allocation11_spill] sm:$0xff] %v5607_v58  ;;  %4535 = vmatmul.msk.bf16.gmra.mxu3 %vm1242_vm3, %v5607_v58  ;;  %v551_v10 = vsel %vm5318_vm4, %v546_v59, %v5597_v55  ;;  %v906_v23 = vrot.slane %v904_v30, 4  ;;  %v914_v24 = vshrl.u32 %v399_v20, 16  ;;  %v920_v31 = vshll.u32 %v400_v9, 16 }
  0x78   : > { %v1155_v18 = vunpack.c.l.b16 %v551_v10  ;;  %v737_v22 = vsel %vm5318_vm4, %v732_v46, %v736_v61  ;;  %v742_v29 = vrot.slane %v741_v15, 4  ;;  %v912_v44 = vrot.slane %v910_v16, 5 }
  0x79   : > { %v1172_v12 = vunpack.c.l.b16 %v737_v22  ;;  %v907_v38 = vor.u32 %v906_v23, %v5555_v42  ;;  %v916_v40 = vrot.slane %v914_v24, 4  ;;  %v922_v2 = vrot.slane %v920_v31, 5  ;;  %v381_v23 = vld [vmem:[%s5298_s25 + $0x8c] sm:$0xf] }
  0x7a   : > { %v5621_v35 = vpack.c.b16 %v1155_v18, %v1154_v26  ;;  %v747_v43 = vsel %vm5318_vm4, %v742_v29, %v746_v6  ;;  %v1080_v47 = vshrl.u32 %v5558_v56, 16  ;;  %v1086_v48 = vshll.u32 %v419_v28, 16 }
  0x7b   : > { %v1173_v8 = vunpack.c.l.b16 %v747_v43  ;;  %v908_v51 = vrot.slane %v907_v38, 4  ;;  %v917_v52 = vor.u32 %v916_v40, %v912_v44  ;;  %v1090_v27 = vshrl.u32 %v419_v28, 16 }
  0x7c   : > { %7160 = vst [vmem:[#allocation12_spill] sm:$0xff] %v5621_v35  ;;  %4511 = vmatmul.msk.bf16.gmra.mxu0 %vm1242_vm3, %v5621_v35  ;;  %v1082_v53 = vrot.slane %v1080_v47, 4  ;;  %v1088_v54 = vrot.slane %v1086_v48, 5  ;;  %v1096_v42 = vshll.u32 %v420_v41, 16  ;;  %v552_v9 = vshrl.u32 %v5578_v4, 16 }
  0x7d   : > { %v5633_v20 = vpack.c.b16 %v1173_v8, %v1172_v12  ;;  %v913_v59 = vsel %vm5318_vm4, %v908_v51, %v912_v44  ;;  %v918_v61 = vrot.slane %v917_v52, 4  ;;  %v1092_v56 = vrot.slane %v1090_v27, 4  ;;  %v382_v44 = vld [vmem:[%s5298_s25 + $0x90] sm:$0xf]  ;;  %v5657_v41 = vld [vmem:[%s5298_s25 + $0x94] sm:$0xf] }
  0x7e   : > { %v1188_v32 = vunpack.c.l.b16 %v913_v59  ;;  %v1083_v46 = vor.u32 %v1082_v53, %v5583_v13  ;;  %v1098_v6 = vrot.slane %v1096_v42, 5  ;;  %v558_v26 = vshll.u32 %v5631_v3, 16  ;;  %v401_v59 = vld [vmem:[%s5298_s25 + $0xdc] sm:$0xf] }
  0x7f   : > { %4520 = vmatmul.msk.bf16.gmra.mxu1 %vm1242_vm3, %v5633_v20  ;;  %v923_v30 = vsel %vm5318_vm4, %v918_v61, %v922_v2  ;;  %v1093_v10 = vor.u32 %v1092_v56, %v1088_v54  ;;  %v562_v15 = vshrl.u32 %v5631_v3, 16  ;;  %v554_v22 = vrot.slane %v552_v9, 4  ;;  %v5671_v9 = vld [vmem:[%s5298_s25 + $0xe4] sm:$0xf] }
  0x80   : > { %v1189_v16 = vunpack.c.l.b16 %v923_v30  ;;  %v1084_v18 = vrot.slane %v1083_v46, 4  ;;  %v568_v13 = vshll.u32 %v5638_v62, 16  ;;  %v560_v28 = vrot.slane %v558_v26, 5 }
  0x81   : > { %v1094_v24 = vrot.slane %v1093_v10, 4  ;;  %v564_v29 = vrot.slane %v562_v15, 4  ;;  %v555_v38 = vor.u32 %v554_v22, %v5597_v55  ;;  %v749_v48 = vshrl.u32 %v381_v23, 16 }
  0x82   : > { %v5651_v31 = vpack.c.b16 %v1189_v16, %v1188_v32  ;;  %v1089_v12 = vsel %vm5318_vm4, %v1084_v18, %v1088_v54  ;;  %v570_v40 = vrot.slane %v568_v13, 5  ;;  %v752_v52 = vshll.u32 %v381_v23, 16 }
  0x83   : > { %v1099_v43 = vsel %vm5318_vm4, %v1094_v24, %v1098_v6  ;;  %v1204_v2 = vunpack.c.l.b16 %v1089_v12  ;;  %v565_v47 = vor.u32 %v564_v29, %v560_v28  ;;  %v556_v51 = vrot.slane %v555_v38, 4  ;;  %v402_v6 = vld [vmem:[%s5298_s25 + $0xe0] sm:$0xf] }
  0x84   : > { %7161 = vst [vmem:[#allocation13_spill] sm:$0xff] %v5651_v31  ;;  %4528 = vmatmul.msk.bf16.gmra.mxu2 %vm1242_vm3, %v5651_v31  ;;  %v1205_v8 = vunpack.c.l.b16 %v1099_v43  ;;  %v758_v27 = vshll.u32 %v382_v44, 16  ;;  %v751_v53 = vrot.slane %v749_v48, 4  ;;  %v762_v54 = vshrl.u32 %v382_v44, 16  ;;  %v421_v44 = vld [vmem:[%s5298_s25 + $0x12c] sm:$0xf] }
  0x85   : > { %v566_v55 = vrot.slane %v565_v47, 4  ;;  %v768_v42 = vshll.u32 %v5657_v41, 16  ;;  %v561_v56 = vsel %vm5318_vm4, %v556_v51, %v560_v28  ;;  %v754_v32 = vrot.slane %v752_v52, 5 }
  0x86   : > { %v5665_v61 = vpack.c.b16 %v1205_v8, %v1204_v2  ;;  %v760_v46 = vrot.slane %v758_v27, 5  ;;  %v1156_v10 = vunpack.c.l.b16 %v561_v56  ;;  %v764_v26 = vrot.slane %v762_v54, 4  ;;  %v422_v2 = vld [vmem:[%s5298_s25 + $0x130] sm:$0xf] }
  0x87   : > { %v571_v30 = vsel %vm5318_vm4, %v566_v55, %v570_v40  ;;  %v5675_v15 = vrot.slane %v768_v42, 5  ;;  %v755_v18 = vor.u32 %v754_v32, %v751_v53  ;;  %v925_v22 = vshrl.u32 %v401_v59, 16  ;;  %v5691_v55 = vld [vmem:[%s5298_s25 + $0x134] sm:$0xf] }
  0x88   : > { %7162 = vst [vmem:[#allocation14_spill] sm:$0xff] %v5665_v61  ;;  %4536 = vmatmul.msk.bf16.gmra.mxu3 %vm1242_vm3, %v5665_v61  ;;  %v1157_v16 = vunpack.c.l.b16 %v571_v30  ;;  %v928_v13 = vshll.u32 %v401_v59, 16  ;;  %v765_v23 = vor.u32 %v764_v26, %v760_v46  ;;  %v934_v24 = vshll.u32 %v402_v6, 16 }
  0x89   : > { %v938_v28 = vshrl.u32 %v402_v6, 16  ;;  %v944_v29 = vshll.u32 %v5671_v9, 16  ;;  %v756_v38 = vrot.slane %v755_v18, 4  ;;  %v927_v40 = vrot.slane %v925_v22, 4  ;;  %v5697_v6 = vld [vmem:[%s5298_s25 + $0x3c] sm:$0xf] }
  0x8a   : > { %v5681_v12 = vpack.c.b16 %v1157_v16, %v1156_v10  ;;  %v930_v43 = vrot.slane %v928_v13, 5  ;;  %v766_v47 = vrot.slane %v765_v23, 4  ;;  %v936_v48 = vrot.slane %v934_v24, 5 }
  0x8b   : > { %v940_v8 = vrot.slane %v938_v28, 4  ;;  %v5684_v51 = vrot.slane %v944_v29, 5  ;;  %v761_v52 = vsel %vm5318_vm4, %v756_v38, %v760_v46  ;;  %v1101_v53 = vshrl.u32 %v421_v44, 16  ;;  %v5705_v29 = vld [vmem:[%s5298_s25 + $0x40] sm:$0xf] }
  0x8c   : > { %7163 = vst [vmem:[#allocation15_spill] sm:$0xff] %v5681_v12  ;;  %4512 = vmatmul.msk.bf16.gmra.mxu0 %vm1242_vm3, %v5681_v12  ;;  %v931_v27 = vor.u32 %v930_v43, %v927_v40  ;;  %v1104_v54 = vshll.u32 %v421_v44, 16  ;;  %v771_v42 = vsel %vm5318_vm4, %v766_v47, %v5675_v15  ;;  %v1174_v59 = vunpack.c.l.b16 %v761_v52  ;;  %v5708_v44 = vld [vmem:[%s5298_s25 + $0x44] sm:$0xf] }
  0x8d   : > { %v941_v56 = vor.u32 %v940_v8, %v936_v48  ;;  %v1110_v32 = vshll.u32 %v422_v2, 16  ;;  %v1175_v30 = vunpack.c.l.b16 %v771_v42  ;;  %v1103_v26 = vrot.slane %v1101_v53, 4 }
  0x8e   : > { %v932_v10 = vrot.slane %v931_v27, 4  ;;  %v1106_v46 = vrot.slane %v1104_v54, 5  ;;  %v1114_v22 = vshrl.u32 %v422_v2, 16  ;;  %v1120_v13 = vshll.u32 %v5691_v55, 16 }
  0x8f   : > { %v942_v16 = vrot.slane %v941_v56, 4  ;;  %v1112_v18 = vrot.slane %v1110_v32, 5  ;;  %v5700_v23 = vpack.c.b16 %v1175_v30, %v1174_v59  ;;  %v573_v38 = vshrl.u32 %v5697_v6, 16  ;;  %v5723_v56 = vld [vmem:[%s5298_s25 + $0x98] sm:$0xf] }
  0x90   : > { %v937_v24 = vsel %vm5318_vm4, %v932_v10, %v936_v48  ;;  %v1107_v28 = vor.u32 %v1106_v46, %v1103_v26  ;;  %v1116_v2 = vrot.slane %v1114_v22, 4  ;;  %v5714_v47 = vrot.slane %v1120_v13, 5  ;;  %v5730_v26 = vld [vmem:[%s5298_s25 + $0x9c] sm:$0x1] }
  0x91   : > { %v947_v40 = vsel %vm5318_vm4, %v942_v16, %v5684_v51  ;;  %v1190_v43 = vunpack.c.l.b16 %v937_v24  ;;  %4521 = vmatmul.msk.bf16.gmra.mxu1 %vm1242_vm3, %v5700_v23  ;;  %v575_v52 = vrot.slane %v573_v38, 4  ;;  %v576_v27 = vshll.u32 %v5697_v6, 16 }
  0x92   : > { %v1191_v48 = vunpack.c.l.b16 %v947_v40  ;;  %v1108_v8 = vrot.slane %v1107_v28, 4  ;;  %v1117_v53 = vor.u32 %v1116_v2, %v1112_v18  ;;  %v582_v54 = vshll.u32 %v5705_v29, 16 }
  0x93   : > { %v586_v42 = vshrl.u32 %v5705_v29, 16  ;;  %v592_v59 = vshll.u32 %v5708_v44, 16  ;;  %v578_v10 = vrot.slane %v576_v27, 5  ;;  %v772_v46 = vshrl.u32 %v5657_v41, 16 }
  0x94   : > { %v5725_v32 = vpack.c.b16 %v1191_v48, %v1190_v43  ;;  %v1113_v30 = vsel %vm5318_vm4, %v1108_v8, %v1112_v18  ;;  %v1118_v16 = vrot.slane %v1117_v53, 4  ;;  %v584_v13 = vrot.slane %v582_v54, 5  ;;  %v404_v54 = vld [vmem:[%s5298_s25 + $0xe8] sm:$0xf] }
  0x95   : > { %v1206_v22 = vunpack.c.l.b16 %v1113_v30  ;;  %v588_v24 = vrot.slane %v586_v42, 4  ;;  %v579_v28 = vor.u32 %v578_v10, %v575_v52  ;;  %v5735_v38 = vrot.slane %v592_v59, 5 }
  0x96   : > { %7164 = vst [vmem:[#allocation16_spill] sm:$0xff] %v5725_v32  ;;  %4529 = vmatmul.msk.bf16.gmra.mxu2 %vm1242_vm3, %v5725_v32  ;;  %v774_v40 = vrot.slane %v772_v46, 4  ;;  %v778_v43 = vshll.u32 %v5723_v56, 16  ;;  %v1123_v18 = vsel %vm5318_vm4, %v1118_v16, %v5714_v47  ;;  %v782_v2 = vshrl.u32 %v5723_v56, 16 }
  0x97   : > { %v589_v41 = vor.u32 %v588_v24, %v584_v13  ;;  %v788_v48 = vshll.u32 %v5730_v26, 16  ;;  %v1207_v8 = vunpack.c.l.b16 %v1123_v18  ;;  %v580_v27 = vrot.slane %v579_v28, 4  ;;  %v405_v24 = vld [vmem:[%s5298_s25 + $0xec] sm:$0x1] }
  0x98   : > { %v775_v53 = vor.u32 %v774_v40, %v5675_v15  ;;  %v780_v52 = vrot.slane %v778_v43, 5  ;;  %v784_v59 = vrot.slane %v782_v2, 4  ;;  %v948_v61 = vshrl.u32 %v5671_v9, 16  ;;  %v424_v2 = vld [vmem:[%s5298_s25 + $0x138] sm:$0xf] }
  0x99   : > { %v590_v42 = vrot.slane %v589_v41, 4  ;;  %v790_v30 = vrot.slane %v788_v48, 5  ;;  %v5745_v10 = vpack.c.b16 %v1207_v8, %v1206_v22  ;;  %v585_v46 = vsel %vm5318_vm4, %v580_v27, %v584_v13 }
  0x9a   : > { %v776_v16 = vrot.slane %v775_v53, 4  ;;  %v1158_v15 = vunpack.c.l.b16 %v585_v46  ;;  %v785_v40 = vor.u32 %v784_v59, %v780_v52  ;;  %v954_v43 = vshll.u32 %v404_v54, 16  ;;  %v425_v46 = vld [vmem:[%s5298_s25 + $0x13c] sm:$0x1] }
  0x9b   : > { %7165 = vst [vmem:[#allocation17_spill] sm:$0xff] %v5745_v10  ;;  %v595_v28 = vsel %vm5318_vm4, %v590_v42, %v5735_v38  ;;  %4537 = vmatmul.msk.bf16.gmra.mxu3 %vm1242_vm3, %v5745_v10  ;;  %v950_v13 = vrot.slane %v948_v61, 4  ;;  %v958_v41 = vshrl.u32 %v404_v54, 16  ;;  %v964_v8 = vshll.u32 %v405_v24, 16 }
  0x9c   : > { %v1159_v22 = vunpack.c.l.b16 %v595_v28  ;;  %v781_v18 = vsel %vm5318_vm4, %v776_v16, %v780_v52  ;;  %v786_v48 = vrot.slane %v785_v40, 4  ;;  %v956_v9 = vrot.slane %v954_v43, 5 }
  0x9d   : > { %v1176_v53 = vunpack.c.l.b16 %v781_v18  ;;  %v951_v42 = vor.u32 %v950_v13, %v5684_v51  ;;  %v960_v59 = vrot.slane %v958_v41, 4  ;;  %v966_v10 = vrot.slane %v964_v8, 5 }
  0x9e   : > { %v5759_v27 = vpack.c.b16 %v1159_v22, %v1158_v15  ;;  %v791_v28 = vsel %vm5318_vm4, %v786_v48, %v790_v30  ;;  %v1124_v52 = vshrl.u32 %v5691_v55, 16  ;;  %v1130_v61 = vshll.u32 %v424_v2, 16  ;;  %v5769_v22 = vld [vmem:[%s5298_s25 + $0x48] sm:$0xf]  ;;  %v5778_v48 = vld [vmem:[%s5298_s25 + $0x4c] sm:$0x1] }
  0x9f   : > { %v1177_v54 = vunpack.c.l.b16 %v791_v28  ;;  %v952_v16 = vrot.slane %v951_v42, 4  ;;  %v961_v24 = vor.u32 %v960_v59, %v956_v9  ;;  %v1134_v15 = vshrl.u32 %v424_v2, 16 }
  0xa0   : > { %7166 = vst [vmem:[#allocation18_spill] sm:$0xff] %v5759_v27  ;;  %4513 = vmatmul.msk.bf16.gmra.mxu0 %vm1242_vm3, %v5759_v27  ;;  %v1126_v40 = vrot.slane %v1124_v52, 4  ;;  %v1132_v43 = vrot.slane %v1130_v61, 5  ;;  %v1140_v51 = vshll.u32 %v425_v46, 16  ;;  %v596_v59 = vshrl.u32 %v5708_v44, 16 }
  0xa1   : > { %v5773_v30 = vpack.c.b16 %v1177_v54, %v1176_v53  ;;  %v957_v55 = vsel %vm5318_vm4, %v952_v16, %v956_v9  ;;  %v962_v13 = vrot.slane %v961_v24, 4  ;;  %v1136_v41 = vrot.slane %v1134_v15, 4 }
  0xa2   : > { %v1192_v8 = vunpack.c.l.b16 %v957_v55  ;;  %v1127_v42 = vor.u32 %v1126_v40, %v5714_v47  ;;  %v1142_v2 = vrot.slane %v1140_v51, 5  ;;  %v602_v28 = vshll.u32 %v5769_v22, 16 }
  0xa3   : > { %v5771_v18 = vpop.f32.mrf.mxu1  ;;  %4522 = vmatmul.msk.bf16.gmra.mxu1 %vm1242_vm3, %v5773_v30  ;;  %v967_v53 = vsel %vm5318_vm4, %v962_v13, %v966_v10  ;;  %v1137_v46 = vor.u32 %v1136_v41, %v1132_v43  ;;  %v606_v9 = vshrl.u32 %v5769_v22, 16  ;;  %v598_v54 = vrot.slane %v596_v59, 4  ;;  %v4856_v13 = vld [vmem:[%s7083_s2 + $0xc] sm:$0x3] }
  0xa4   : > { %v1193_v52 = vunpack.c.l.b16 %v967_v53  ;;  %v1128_v61 = vrot.slane %v1127_v42, 4  ;;  %v612_v16 = vshll.u32 %v5778_v48, 16  ;;  %v604_v24 = vrot.slane %v602_v28, 5 }
  0xa5   : > { %v1138_v47 = vrot.slane %v1137_v46, 4  ;;  %v608_v15 = vrot.slane %v606_v9, 4  ;;  %v599_v10 = vor.u32 %v598_v54, %v5735_v38  ;;  %v4823_v38 = vld [vmem:[%s7083_s2 + $0xa] sm:$0x3]  ;;  %v5061_v46 = vld [vmem:[%s5298_s25] sm:$0xf] }
  0xa6   : > { %v5789_v40 = vpack.c.b16 %v1193_v52, %v1192_v8  ;;  %v1133_v51 = vsel %vm5318_vm4, %v1128_v61, %v1132_v43  ;;  %v614_v55 = vrot.slane %v612_v16, 5  ;;  %v4897_v8 = vld [vmem:[%s7083_s2 + $0xe] sm:$0x3]  ;;  %v5062_v52 = vld [vmem:[%s5298_s25 + $0x4] sm:$0xf] }
  0xa7   : > { %v1143_v41 = vsel %vm5318_vm4, %v1138_v47, %v1142_v2  ;;  %v1208_v42 = vunpack.c.l.b16 %v1133_v51  ;;  %v609_v59 = vor.u32 %v608_v15, %v604_v24  ;;  %v600_v53 = vrot.slane %v599_v10, 4  ;;  %v5063_v54 = vld [vmem:[%s5298_s25 + $0x8] sm:$0xf]  ;;  %v4931_v15 = vld [vmem:[%s7083_s2 + $0x10] sm:$0x3] }
  0xa8   : > { %7167 = vst [vmem:[#allocation19_spill] sm:$0xff] %v5789_v40  ;;  %4530 = vmatmul.msk.bf16.gmra.mxu2 %vm1242_vm3, %v5789_v40  ;;  %v1209_v43 = vunpack.c.l.b16 %v1143_v41  ;;  %v4699_v2 = vrot.slane %v5061_v46, 9  ;;  %v1961_v61 = vrot.slane %v5062_v52, 5  ;;  %v1964_v16 = vrot.slane %v5063_v54, 5 }
  0xa9   : > { %v610_v9 = vrot.slane %v609_v59, 4  ;;  %v3428_v47 = vsel %vm1339_vm0, %v4856_v13, 0  ;;  %v605_v10 = vsel %vm5318_vm4, %v600_v53, %v604_v24  ;;  %v3722_v59 = vsel %vm1339_vm0, %v4897_v8, 0 }
  0xaa   : > { %v5816_v51 = vpack.c.b16 %v1209_v43, %v1208_v42  ;;  %3437 = vmatpush.bf16.msra.mxu2 %v3428_v47  ;;  %v3174_v13 = vsel %vm1339_vm0, %v4823_v38, 0  ;;  %v1160_v43 = vunpack.c.l.b16 %v605_v10  ;;  %v1963_v52 = vrot.slane %v1961_v61, 4  ;;  %3731 = vmatpush.bf16.msra.mxu3 %v3722_v59  ;;  %v4973_v47 = vld [vmem:[%s5298_s25] sm:$0xff] }
  0xab   : > { %v5808_v28 = vpop.f32.mrf.mxu1  ;;  %v615_v42 = vsel %vm5318_vm4, %v610_v9, %v614_v55  ;;  %3183 = vmatpush.bf16.msra.mxu1 %v3174_v13  ;;  %v3986_v53 = vsel %vm1339_vm0, %v4931_v15, 0  ;;  %v1962_v8 = vsel %vm5821_vm7, %v4699_v2, %v1961_v61  ;;  %v5064_v13 = vld [vmem:[%s5298_s25 + $0xc] sm:$0xf] }
  0xac   : > { %7168 = vst [vmem:[#allocation20_spill] sm:$0xff] %v5816_v51  ;;  %4538 = vmatmul.msk.bf16.gmra.mxu3 %vm1242_vm3, %v5816_v51  ;;  %v1161_v24 = vunpack.c.l.b16 %v615_v42  ;;  %v1965_v38 = vsel %vm5821_vm7, %v1963_v52, %v1964_v16  ;;  %3995 = vmatpush.bf16.msra.mxu0 %v3986_v53  ;;  %v2169_v15 = vunpack.c.l.b16 %v1962_v8  ;;  %v1967_v42 = vrot.slane %v5064_v13, 5  ;;  %v4975_v52 = vld [vmem:[%s5298_s25 + $0x14] sm:$0xff] }
  0xad   : > { %v5826_v46 = vpop.f32.mrf.mxu2  ;;  %v2170_v10 = vunpack.c.l.b16 %v1965_v38  ;;  %v1966_v53 = vrot.slane %v1964_v16, 4  ;;  %v5065_v38 = vld [vmem:[%s5298_s25 + $0x10] sm:$0x1]  ;;  %v4974_v16 = vld [vmem:[%s5298_s25 + $0x8] sm:$0xff] }
  0xae   : > { %7171 = vst [vmem:[#allocation21_spill] sm:$0xff] %v5826_v46  ;;  %v5838_v55 = vpack.c.b16 %v1161_v24, %v1160_v43  ;;  %v1969_v8 = vrot.slane %v1967_v42, 4 }
  0xaf   : > { %v2233_v61 = vpack.c.b16 %v2170_v10, %v2169_v15 }
  0xb0   : > { %7172 = vst [vmem:[#allocation22_spill] sm:$0xff] %v5838_v55  ;;  %4514 = vmatmul.msk.bf16.gmra.mxu0 %vm1242_vm3, %v5838_v55 }
  0xb1   : > { %v5840_v9 = vpop.f32.mrf.mxu0  ;;  %v5842_v54 = vpop.f32.mrf.mxu3 }
  0xb2   : > { %7173 = vst [vmem:[#allocation23_spill] sm:$0xff] %v5842_v54  ;;  %v1970_v54 = vrot.slane %v5065_v38, 5 }
  0xb3   : > { %4667 = vmatmul.msk.bf16.vlgmr.msrb.gmra.mxu1 %vm1242_vm3, %v4973_v47  ;;  %v1968_v47 = vsel %vm5821_vm7, %v1966_v53, %v1967_v42 }
  0xb4   : > { %v1971_v15 = vsel %vm5821_vm7, %v1969_v8, %v1970_v54  ;;  %v5066_v54 = vld [vmem:[%s5298_s25 + $0x18] sm:$0xf]  ;;  %v4976_v8 = vld [vmem:[%s5298_s25 + $0x1c] sm:$0xff] }
  0xb5   : > { %v5847_v59 = vpop.f32.mrf.mxu2  ;;  %v5849_v2 = vpop.f32.mrf.mxu1  ;;  %v2172_v13 = vunpack.c.l.b16 %v1971_v15  ;;  %v1974_v53 = vrot.slane %v5066_v54, 5  ;;  %v5068_v15 = vld [vmem:[%s5298_s25 + $0x1c] sm:$0xf] }
  0xb6   : > { %7174 = vst [vmem:[#allocation24_spill] sm:$0xff] %v5847_v59  ;;  %v1977_v59 = vrot.slane %v5068_v15, 5 }
  0xb8   : > { %4716 = vmatmul.msk.bf16.vlgmr.msrb.gmra.mxu2 %vm1242_vm3, %v2233_v61  ;;  %v2171_v61 = vunpack.c.l.b16 %v1968_v47  ;;  %v1976_v47 = vrot.slane %v1974_v53, 4 }
  0xb9   : > { %v5853_v43 = vpop.f32.mrf.mxu0  ;;  %v5857_v24 = vpop.f32.mrf.mxu3 }
  0xba   : > { %7175 = vst [vmem:[#allocation25_spill] sm:$0xff] %v5857_v24  ;;  %v2234_v24 = vpack.c.b16 %v2172_v13, %v2171_v61  ;;  %v1978_v61 = vsel %vm5821_vm7, %v1976_v47, %v1977_v59  ;;  %v4977_v47 = vld [vmem:[%s5298_s25 + $0x28] sm:$0xff] }
  0xbc   : > { %4757 = vmatmul.msk.bf16.vlgmr.msrb.gmra.mxu3 %vm1242_vm3, %v4975_v52 }
  0xbd   : > { %v5860_v36 = vpop.f32.mrf.mxu1 }
  0xbe   : > { %v5862_v51 = vpop.f32.mrf.mxu2 }
  0xbf   : > { %7176 = vst [vmem:[#allocation26_spill] sm:$0xff] %v5862_v51 }
  0xc0   : > { %4790 = vmatmul.msk.bf16.vlgmr.msrb.gmra.mxu0 %vm1242_vm3, %v5491_v57  ;;  %v5067_v57 = vld [vmem:[%s5298_s25 + $0x14] sm:$0xf] }
  0xc1   : > { %v5869_v10 = vpop.f32.mrf.mxu0  ;;  %v4700_v51 = vrot.slane %v5067_v57, 9  ;;  %v2174_v57 = vunpack.c.l.b16 %v1978_v61  ;;  %v1983_v61 = vrot.slane %v5505_v17, 5 }
  0xc3   : > { %4668 = vmatmul.msk.bf16.gmra.mxu1 %vm1242_vm3, %v4974_v16  ;;  %v1975_v16 = vsel %vm5821_vm7, %v4700_v51, %v1974_v53  ;;  %v1980_v51 = vrot.slane %v5500_v14, 5 }
  0xc4   : > { %v5874_v38 = vpop.f32.mrf.mxu3  ;;  %v2173_v54 = vunpack.c.l.b16 %v1975_v16 }
  0xc5   : > { %7177 = vst [vmem:[#allocation27_spill] sm:$0xff] %v5874_v38  ;;  %v1982_v16 = vrot.slane %v1980_v51, 4 }
  0xc6   : > { %v5877_v58 = vpop.f32.mrf.mxu1  ;;  %v5879_v42 = vpop.f32.mrf.mxu2 }
  0xc7   : > { %7178 = vst [vmem:[#allocation28_spill] sm:$0xff] %v5879_v42  ;;  %v5906_v42 = vpack.c.b16 %v2174_v57, %v2173_v54  ;;  %v1984_v54 = vsel %vm5821_vm7, %v1982_v16, %v1983_v61  ;;  %v4701_v61 = vrot.slane %v5561_v45, 9 }
  0xc8   : > { %4717 = vmatmul.msk.bf16.gmra.mxu2 %vm1242_vm3, %v2234_v24  ;;  %v2176_v17 = vunpack.c.l.b16 %v1984_v54  ;;  %v1990_v54 = vrot.slane %v5578_v4, 5 }
  0xc9   : > { %v5884_v0 = vpop.f32.mrf.mxu0  ;;  %7182 = vst [vmem:[#allocation32_spill] sm:$0xff] %v5906_v42 }
  0xcc   : > { %v5888_v38 = vpop.f32.mrf.mxu3  ;;  %4758 = vmatmul.msk.bf16.gmra.mxu3 %vm1242_vm3, %v4976_v8 }
  0xcd   : > { %7179 = vst [vmem:[#allocation29_spill] sm:$0xff] %v5888_v38 }
  0xce   : > { %v5895_v24 = vpop.f32.mrf.mxu1 }
  0xd0   : > { %4791 = vmatmul.msk.bf16.gmra.mxu0 %vm1242_vm3, %v5550_v34  ;;  %v1979_v34 = vrot.slane %v1977_v59, 4 }
  0xd1   : > { %v5897_v13 = vpop.f32.mrf.mxu2 }
  0xd2   : > { %7180 = vst [vmem:[#allocation30_spill] sm:$0xff] %v5897_v13  ;;  %v1981_v14 = vsel %vm5821_vm7, %v1979_v34, %v1980_v51  ;;  %v1987_v51 = vrot.slane %v5575_v1, 5  ;;  %v4978_v34 = vld [vmem:[%s5298_s25 + $0x30] sm:$0xff] }
  0xd3   : > { %4669 = vmatmul.msk.bf16.gmra.mxu1 %vm1242_vm3, %v4975_v52  ;;  %v2175_v59 = vunpack.c.l.b16 %v1981_v14 }
  0xd4   : > { %v1989_v14 = vrot.slane %v1987_v51, 4  ;;  %v1988_v1 = vsel %vm5821_vm7, %v4701_v61, %v1987_v51  ;;  %v1993_v51 = vrot.slane %v5631_v3, 5 }
  0xd5   : > { %v5901_v15 = vpop.f32.mrf.mxu0  ;;  %v2177_v45 = vunpack.c.l.b16 %v1988_v1  ;;  %v1996_v1 = vrot.slane %v5638_v62, 5 }
  0xd6   : > { %v5904_v38 = vpop.f32.mrf.mxu3 }
  0xd7   : > { %7181 = vst [vmem:[#allocation31_spill] sm:$0xff] %v5904_v38 }
  0xd8   : > { %v5909_v53 = vpop.f32.mrf.mxu1  ;;  %4718 = vmatmul.msk.bf16.gmra.mxu2 %vm1242_vm3, %v5906_v42  ;;  %v5935_v42 = vpack.c.b16 %v2176_v17, %v2175_v59  ;;  %v1991_v17 = vsel %vm5821_vm7, %v1989_v14, %v1990_v54  ;;  %v4979_v14 = vld [vmem:[%s5298_s25 + $0x3c] sm:$0xff] }
  0xd9   : > { %v5914_v13 = vpop.f32.mrf.mxu2  ;;  %v2178_v4 = vunpack.c.l.b16 %v1991_v17  ;;  %v1992_v17 = vrot.slane %v1990_v54, 4 }
  0xda   : > { %7183 = vst [vmem:[#allocation33_spill] sm:$0xff] %v5914_v13 }
  0xdb   : > { %7186 = vst [vmem:[#allocation36_spill] sm:$0xff] %v5935_v42  ;;  %v1994_v3 = vsel %vm5821_vm7, %v1992_v17, %v1993_v51 }
  0xdc   : > { %4759 = vmatmul.msk.bf16.gmra.mxu3 %vm1242_vm3, %v4977_v47  ;;  %v2179_v54 = vunpack.c.l.b16 %v1994_v3 }
  0xdd   : > { %v5917_v33 = vpop.f32.mrf.mxu0 }
  0xde   : > { %v5919_v52 = vpop.f32.mrf.mxu3 }
  0xdf   : > { %7184 = vst [vmem:[#allocation34_spill] sm:$0xff] %v5919_v52 }
  0xe0   : > { %v5926_v57 = vpop.f32.mrf.mxu1  ;;  %4792 = vmatmul.msk.bf16.gmra.mxu0 %vm1242_vm3, %v5621_v35 }
  0xe3   : > { %4670 = vmatmul.msk.bf16.gmra.mxu1 %vm1242_vm3, %v4976_v8 }
  0xe4   : > { %v5930_v38 = vpop.f32.mrf.mxu2 }
  0xe5   : > { %7185 = vst [vmem:[#allocation35_spill] sm:$0xff] %v5930_v38  ;;  %v5933_v52 = vpop.f32.mrf.mxu0 }
  0xe7   : > { %v5937_v13 = vpop.f32.mrf.mxu3 }
  0xe8   : > { %7187 = vst [vmem:[#allocation37_spill] sm:$0xff] %v5937_v13  ;;  %4719 = vmatmul.msk.bf16.gmra.mxu2 %vm1242_vm3, %v5935_v42 }
  0xea   : > { %v5943_v16 = vpop.f32.mrf.mxu1 }
  0xec   : > { %v5947_v8 = vpop.f32.mrf.mxu2  ;;  %4760 = vmatmul.msk.bf16.gmra.mxu3 %vm1242_vm3, %v4978_v34 }
  0xed   : > { %7188 = vst [vmem:[#allocation38_spill] sm:$0xff] %v5947_v8  ;;  %v5950_v59 = vpop.f32.mrf.mxu0  ;;  %v5965_v8 = vpack.c.b16 %v2178_v4, %v2177_v45 }
  0xef   : > { %v5956_v13 = vpop.f32.mrf.mxu3  ;;  %7191 = vst [vmem:[#allocation41_spill] sm:$0xff] %v5965_v8 }
  0xf0   : > { %7189 = vst [vmem:[#allocation39_spill] sm:$0xff] %v5956_v13  ;;  %4793 = vmatmul.msk.bf16.gmra.mxu0 %vm1242_vm3, %v5681_v12  ;;  %v1995_v12 = vrot.slane %v1993_v51, 4  ;;  %v2000_v51 = vrot.slane %v5705_v29, 5 }
  0xf2   : > { %v5960_v42 = vpop.f32.mrf.mxu1  ;;  %v1997_v45 = vsel %vm5821_vm7, %v1995_v12, %v1996_v1  ;;  %v4980_v1 = vld [vmem:[%s5298_s25 + $0x44] sm:$0xff]  ;;  %v2002_v3 = vrot.slane %v2000_v51, 4 }
  0xf3   : > { %4671 = vmatmul.msk.bf16.gmra.mxu1 %vm1242_vm3, %v4977_v47 }
  0xf5   : > { %v5963_v35 = vpop.f32.mrf.mxu2 }
  0xf6   : > { %7190 = vst [vmem:[#allocation40_spill] sm:$0xff] %v5963_v35 }
  0xf8   : > { %4720 = vmatmul.msk.bf16.gmra.mxu2 %vm1242_vm3, %v5965_v8 }
  0xf9   : > { %v5968_v61 = vpop.f32.mrf.mxu0 }
  0xfa   : > { %v5973_v13 = vpop.f32.mrf.mxu3 }
  0xfb   : > { %7192 = vst [vmem:[#allocation42_spill] sm:$0xff] %v5973_v13  ;;  %v2180_v13 = vunpack.c.l.b16 %v1997_v45  ;;  %v2003_v45 = vrot.slane %v5708_v44, 5 }
  0xfc   : > { %v5976_v38 = vpop.f32.mrf.mxu1  ;;  %4761 = vmatmul.msk.bf16.gmra.mxu3 %vm1242_vm3, %v4979_v14 }
  0xfd   : > { %v5979_v47 = vpop.f32.mrf.mxu2  ;;  %v5992_v8 = vpack.c.b16 %v2180_v13, %v2179_v54  ;;  %v2004_v13 = vsel %vm5821_vm7, %v2002_v3, %v2003_v45  ;;  %v4981_v3 = vld [vmem:[%s5298_s25 + $0x50] sm:$0xff] }
  0xfe   : > { %7193 = vst [vmem:[#allocation43_spill] sm:$0xff] %v5979_v47  ;;  %v2182_v44 = vunpack.c.l.b16 %v2004_v13  ;;  %v2005_v13 = vrot.slane %v2003_v45, 4 }
  0xff   : > { %7195 = vst [vmem:[#allocation45_spill] sm:$0xff] %v5992_v8 }
 0x100   : > { %4794 = vmatmul.msk.bf16.gmra.mxu0 %vm1242_vm3, %v5759_v27 }
 0x101   : > { %v5985_v4 = vpop.f32.mrf.mxu0 }
 0x102   : > { %v5989_v62 = vpop.f32.mrf.mxu3 }
 0x103   : > { %7194 = vst [vmem:[#allocation44_spill] sm:$0xff] %v5989_v62  ;;  %4672 = vmatmul.msk.bf16.gmra.mxu1 %vm1242_vm3, %v4978_v34  ;;  %v4702_v62 = vrot.slane %v5697_v6, 9 }
 0x104   : > { %v5994_v47 = vpop.f32.mrf.mxu1 }
 0x105   : > { %v2001_v29 = vsel %vm5821_vm7, %v4702_v62, %v2000_v51  ;;  %v2006_v62 = vrot.slane %v5769_v22, 5 }
 0x106   : > { %v2181_v6 = vunpack.c.l.b16 %v2001_v29  ;;  %v2009_v29 = vrot.slane %v5778_v48, 5 }
 0x107   : > { %v5997_v17 = vpop.f32.mrf.mxu2  ;;  %v2007_v22 = vsel %vm5821_vm7, %v2005_v13, %v2006_v62 }
 0x108   : > { %7196 = vst [vmem:[#allocation46_spill] sm:$0xff] %v5997_v17  ;;  %4721 = vmatmul.msk.bf16.gmra.mxu2 %vm1242_vm3, %v5992_v8  ;;  %v6024_v17 = vpack.c.b16 %v2182_v44, %v2181_v6  ;;  %v2183_v45 = vunpack.c.l.b16 %v2007_v22  ;;  %v5070_v22 = vld [vmem:[%s5298_s25 + $0x50] sm:$0xf] }
 0x109   : > { %v5999_v12 = vpop.f32.mrf.mxu0 }
 0x10a   : > { %7200 = vst [vmem:[#allocation50_spill] sm:$0xff] %v6024_v17 }
 0x10b   : > { %v6006_v34 = vpop.f32.mrf.mxu3 }
 0x10c   : > { %7197 = vst [vmem:[#allocation47_spill] sm:$0xff] %v6006_v34  ;;  %4762 = vmatmul.msk.bf16.gmra.mxu3 %vm1242_vm3, %v4980_v1 }
 0x10e   : > { %v6015_v27 = vpop.f32.mrf.mxu1 }
 0x10f   : > { %v6013_v54 = vpop.f32.mrf.mxu2 }
 0x110   : > { %7198 = vst [vmem:[#allocation48_spill] sm:$0xff] %v6013_v54  ;;  %4795 = vmatmul.msk.bf16.gmra.mxu0 %vm1242_vm3, %v5838_v55  ;;  %v2008_v55 = vrot.slane %v2006_v62, 4 }
 0x111   : > { %v6019_v8 = vpop.f32.mrf.mxu0 }
 0x112   : > { %v2010_v6 = vsel %vm5821_vm7, %v2008_v55, %v2009_v29  ;;  %v5069_v55 = vld [vmem:[%s5298_s25 + $0x54] sm:$0xf] }
 0x113   : > { %4673 = vmatmul.msk.bf16.gmra.mxu1 %vm1242_vm3, %v4979_v14  ;;  %v6022_v34 = vpop.f32.mrf.mxu3  ;;  %v2013_v29 = vrot.slane %v5069_v55, 5 }
 0x114   : > { %7199 = vst [vmem:[#allocation49_spill] sm:$0xff] %v6022_v34  ;;  %v2184_v34 = vunpack.c.l.b16 %v2010_v6  ;;  %v4703_v6 = vrot.slane %v5070_v22, 9 }
 0x115   : > { %v2015_v35 = vrot.slane %v2013_v29, 4 }
 0x116   : > { %v6027_v51 = vpop.f32.mrf.mxu1  ;;  %v6053_v62 = vpack.c.b16 %v2184_v34, %v2183_v45  ;;  %v2014_v45 = vsel %vm5821_vm7, %v4703_v6, %v2013_v29  ;;  %v5072_v29 = vld [vmem:[%s5298_s25 + $0x5c] sm:$0xf] }
 0x117   : > { %7201 = vst [vmem:[#allocation51_spill] sm:$0xff] %v6027_v51  ;;  %v2185_v22 = vunpack.c.l.b16 %v2014_v45  ;;  %v2019_v6 = vrot.slane %v5072_v29, 5 }
 0x118   : > { %4722 = vmatmul.msk.bf16.gmra.mxu2 %vm1242_vm3, %v6024_v17  ;;  %7206 = vst [vmem:[#allocation56_spill] sm:$0xff] %v6053_v62 }
 0x119   : > { %v6032_v54 = vpop.f32.mrf.mxu2  ;;  %v2021_v51 = vrot.slane %v2019_v6, 4 }
 0x11a   : > { %7202 = vst [vmem:[#allocation52_spill] sm:$0xff] %v6032_v54 }
 0x11c   : > { %4763 = vmatmul.msk.bf16.gmra.mxu3 %vm1242_vm3, %v4981_v3 }
 0x11d   : > { %v6035_v14 = vpop.f32.mrf.mxu0 }
 0x11e   : > { %v6042_v44 = vpop.f32.mrf.mxu3 }
 0x11f   : > { %7203 = vst [vmem:[#allocation53_spill] sm:$0xff] %v6042_v44  ;;  %v4982_v44 = vld [vmem:[%s5298_s25 + $0x58] sm:$0xff] }
 0x120   : > { %4796 = vmatmul.msk.bf16.gmra.mxu0 %vm1242_vm3, %v5334_v63  ;;  %v6046_v48 = vpop.f32.mrf.mxu1 }
 0x121   : > { %7204 = vst [vmem:[#allocation54_spill] sm:$0xff] %v6046_v48  ;;  %v6048_v17 = vpop.f32.mrf.mxu2  ;;  %v5073_v48 = vld [vmem:[%s5298_s25 + $0x60] sm:$0x1] }
 0x122   : > { %7205 = vst [vmem:[#allocation55_spill] sm:$0xff] %v6048_v17  ;;  %v5071_v17 = vld [vmem:[%s5298_s25 + $0x58] sm:$0xf]  ;;  %v2022_v45 = vrot.slane %v5073_v48, 5 }
 0x123   : > { %4674 = vmatmul.msk.bf16.gmra.mxu1 %vm1242_vm3, %v4980_v1  ;;  %v2016_v1 = vrot.slane %v5071_v17, 5 }
 0x125   : > { %v6051_v54 = vpop.f32.mrf.mxu0  ;;  %v2017_v55 = vsel %vm5821_vm7, %v2015_v35, %v2016_v1 }
 0x126   : > { %v6056_v13 = vpop.f32.mrf.mxu3 }
 0x127   : > { %7207 = vst [vmem:[#allocation57_spill] sm:$0xff] %v6056_v13 }
 0x128   : > { %4723 = vmatmul.msk.bf16.gmra.mxu2 %vm1242_vm3, %v6053_v62  ;;  %v6061_v63 = vpop.f32.mrf.mxu1  ;;  %v2186_v62 = vunpack.c.l.b16 %v2017_v55  ;;  %v2018_v55 = vrot.slane %v2016_v1, 4 }
 0x129   : > { %7208 = vst [vmem:[#allocation58_spill] sm:$0xff] %v6061_v63 }
 0x12a   : > { %v6081_v63 = vpack.c.b16 %v2186_v62, %v2185_v22  ;;  %v2020_v29 = vsel %vm5821_vm7, %v2018_v55, %v2019_v6  ;;  %v5074_v55 = vld [vmem:[%s5298_s25 + $0x68] sm:$0xf] }
 0x12b   : > { %v6065_v46 = vpop.f32.mrf.mxu2 }
 0x12c   : > { %7209 = vst [vmem:[#allocation59_spill] sm:$0xff] %v6065_v46  ;;  %4764 = vmatmul.msk.bf16.gmra.mxu3 %vm1242_vm3, %v4982_v44 }
 0x12d   : > { %v6068_v34 = vpop.f32.mrf.mxu0  ;;  %7212 = vst [vmem:[#allocation62_spill] sm:$0xff] %v6081_v63 }
 0x12f   : > { %v6074_v13 = vpop.f32.mrf.mxu3 }
 0x130   : > { %7210 = vst [vmem:[#allocation60_spill] sm:$0xff] %v6074_v13  ;;  %4797 = vmatmul.msk.bf16.gmra.mxu0 %vm1242_vm3, %v5390_v21  ;;  %v1780_v17 = vpop.f32.mrf.mxu1  ;;  %v4983_v13 = vld [vmem:[%s5298_s25 + $0x64] sm:$0xff] }
 0x133   : > { %v6078_v46 = vpop.f32.mrf.mxu2  ;;  %4675 = vmatmul.msk.bf16.gmra.mxu1 %vm1242_vm3, %v4981_v3 }
 0x134   : > { %7211 = vst [vmem:[#allocation61_spill] sm:$0xff] %v6078_v46  ;;  %v1781_v46 = vadd.f32 %v1780_v17, %v5840_v9  ;;  %v2187_v9 = vunpack.c.l.b16 %v2020_v29 }
 0x135   : > { %v6083_v5 = vpop.f32.mrf.mxu0 }
 0x137   : > { %v6086_v35 = vpop.f32.mrf.mxu3 }
 0x138   : > { %7213 = vst [vmem:[#allocation63_spill] sm:$0xff] %v6086_v35  ;;  %4724 = vmatmul.msk.bf16.gmra.mxu2 %vm1242_vm3, %v6081_v63  ;;  %v1782_v21 = vpop.f32.mrf.mxu1  ;;  %v2023_v35 = vsel %vm5821_vm7, %v2021_v51, %v2022_v45 }
 0x139   : > { %v2188_v17 = vunpack.c.l.b16 %v2023_v35  ;;  %v4984_v35 = vld [vmem:[%s5298_s25 + $0x6c] sm:$0xff] }
 0x13b   : > { %v2373_v3 = vpop.f32.mrf.mxu2  ;;  %v6104_v51 = vpack.c.b16 %v2188_v17, %v2187_v9 }
 0x13c   : > { %4765 = vmatmul.msk.bf16.gmra.mxu3 %vm1242_vm3, %v4983_v13  ;;  %v2533_v62 = vadd.f32 %v2373_v3, %v1781_v46  ;;  %v1783_v46 = vadd.f32 %v1782_v21, %v5853_v43  ;;  %v5075_v21 = vld [vmem:[%s5298_s25 + $0x64] sm:$0xf] }
 0x13d   : > { %v2921_v22 = vpop.f32.mrf.mxu0  ;;  %v4704_v43 = vrot.slane %v5075_v21, 9 }
 0x13f   : > { %v2627_v63 = vpop.f32.mrf.mxu3 }
 0x140   : > { %4798 = vmatmul.msk.bf16.gmra.mxu0 %vm1242_vm3, %v5444_v49  ;;  %v2787_v48 = vadd.f32 %v2627_v63, %v2533_v62  ;;  %v1785_v1 = vpop.f32.mrf.mxu1  ;;  %v2026_v49 = vrot.slane %v5074_v55, 5 }
 0x142   : > { %v6101_v3 = vadd.f32 %v2921_v22, %v2787_v48  ;;  %v2028_v22 = vrot.slane %v2026_v49, 4  ;;  %v5076_v48 = vld [vmem:[%s5298_s25 + $0x6c] sm:$0xf] }
 0x143   : > { %v2375_v39 = vpop.f32.mrf.mxu2  ;;  %4676 = vmatmul.msk.bf16.gmra.mxu1 %vm1242_vm3, %v4982_v44  ;;  %v1786_v44 = vadd.f32 %v1785_v1, %v5869_v10 }
 0x144   : > { %7214 = vst [vmem:[#allocation64_spill] sm:$0xff] %v6101_v3  ;;  %v2534_v6 = vadd.f32 %v2375_v39, %v1783_v46  ;;  %v2029_v3 = vrot.slane %v5076_v48, 5 }
 0x145   : > { %v2923_v45 = vpop.f32.mrf.mxu0 }
 0x146   : > { %v2030_v55 = vsel %vm5821_vm7, %v2028_v22, %v2029_v3 }
 0x147   : > { %v2629_v63 = vpop.f32.mrf.mxu3 }
 0x148   : > { %v2788_v62 = vadd.f32 %v2629_v63, %v2534_v6  ;;  %4725 = vmatmul.msk.bf16.gmra.mxu2 %vm1242_vm3, %v6104_v51  ;;  %v1787_v29 = vpop.f32.mrf.mxu1  ;;  %v2027_v6 = vsel %vm5821_vm7, %v4704_v43, %v2026_v49 }
 0x149   : > { %v2189_v1 = vunpack.c.l.b16 %v2027_v6  ;;  %v4985_v6 = vld [vmem:[%s5298_s25 + $0x78] sm:$0xff] }
 0x14a   : > { %v6113_v39 = vadd.f32 %v2923_v45, %v2788_v62  ;;  %v2190_v45 = vunpack.c.l.b16 %v2030_v55  ;;  %v1788_v62 = vadd.f32 %v1787_v29, %v5884_v0  ;;  %v2031_v29 = vrot.slane %v2029_v3, 4 }
 0x14b   : > { %v2378_v9 = vpop.f32.mrf.mxu2 }
 0x14c   : > { %7215 = vst [vmem:[#allocation65_spill] sm:$0xff] %v6113_v39  ;;  %4766 = vmatmul.msk.bf16.gmra.mxu3 %vm1242_vm3, %v4984_v35  ;;  %v2535_v17 = vadd.f32 %v2378_v9, %v1786_v44  ;;  %v6126_v43 = vpack.c.b16 %v2190_v45, %v2189_v1  ;;  %v5077_v9 = vld [vmem:[%s5298_s25 + $0x70] sm:$0xf] }
 0x14d   : > { %v2926_v46 = vpop.f32.mrf.mxu0  ;;  %v2032_v39 = vrot.slane %v5077_v9, 5 }
 0x14f   : > { %v2632_v63 = vpop.f32.mrf.mxu3 }
 0x150   : > { %4799 = vmatmul.msk.bf16.gmra.mxu0 %vm1242_vm3, %v5508_v7  ;;  %v2789_v21 = vadd.f32 %v2632_v63, %v2535_v17  ;;  %v1790_v10 = vpop.f32.mrf.mxu1  ;;  %v5078_v63 = vld [vmem:[%s5298_s25 + $0x74] sm:$0x1] }
 0x151   : > { %v2035_v0 = vrot.slane %v5078_v63, 5 }
 0x152   : > { %v6123_v48 = vadd.f32 %v2926_v46, %v2789_v21  ;;  %v2034_v46 = vrot.slane %v2032_v39, 4  ;;  %v1791_v21 = vadd.f32 %v1790_v10, %v5901_v15 }
 0x153   : > { %v2380_v44 = vpop.f32.mrf.mxu2  ;;  %4677 = vmatmul.msk.bf16.gmra.mxu1 %vm1242_vm3, %v4983_v13 }
 0x154   : > { %v2536_v49 = vadd.f32 %v2380_v44, %v1788_v62  ;;  %v2036_v44 = vsel %vm5821_vm7, %v2034_v46, %v2035_v0  ;;  %v5079_v46 = vld [vmem:[%s5298_s25 + $0x7c] sm:$0xf] }
 0x155   : > { %v2928_v22 = vpop.f32.mrf.mxu0 }
 0x157   : > { %v2634_v7 = vpop.f32.mrf.mxu3 }
 0x158   : > { %v2790_v17 = vadd.f32 %v2634_v7, %v2536_v49  ;;  %4726 = vmatmul.msk.bf16.gmra.mxu2 %vm1242_vm3, %v6126_v43  ;;  %v1792_v55 = vpop.f32.mrf.mxu1  ;;  %v2033_v7 = vsel %vm5821_vm7, %v2031_v29, %v2032_v39 }
 0x159   : > { %v2191_v10 = vunpack.c.l.b16 %v2033_v7  ;;  %v1793_v9 = vadd.f32 %v1792_v55, %v5917_v33  ;;  %v4986_v7 = vld [vmem:[%s5298_s25 + $0x80] sm:$0xff]  ;;  %v5080_v33 = vld [vmem:[%s5298_s25 + $0x78] sm:$0xf] }
 0x15a   : > { %v6134_v13 = vadd.f32 %v2928_v22, %v2790_v17  ;;  %v2192_v22 = vunpack.c.l.b16 %v2036_v44  ;;  %v4705_v55 = vrot.slane %v5080_v33, 9 }
 0x15b   : > { %v2383_v1 = vpop.f32.mrf.mxu2 }
 0x15c   : > { %4767 = vmatmul.msk.bf16.gmra.mxu3 %vm1242_vm3, %v4985_v6  ;;  %v2537_v45 = vadd.f32 %v2383_v1, %v1791_v21  ;;  %v6147_v0 = vpack.c.b16 %v2192_v22, %v2191_v10  ;;  %v2039_v21 = vrot.slane %v5079_v46, 5 }
 0x15d   : > { %v2931_v62 = vpop.f32.mrf.mxu0 }
 0x15f   : > { %v2637_v49 = vpop.f32.mrf.mxu3 }
 0x160   : > { %4800 = vmatmul.msk.bf16.gmra.mxu0 %vm1242_vm3, %v5570_v60  ;;  %v2791_v3 = vadd.f32 %v2637_v49, %v2537_v45  ;;  %v1795_v15 = vpop.f32.mrf.mxu1  ;;  %v5081_v49 = vld [vmem:[%s5298_s25 + $0x80] sm:$0xf] }
 0x162   : > { %v6144_v17 = vadd.f32 %v2931_v62, %v2791_v3  ;;  %v2041_v62 = vrot.slane %v2039_v21, 4  ;;  %v2042_v3 = vrot.slane %v5081_v49, 5 }
 0x163   : > { %v2385_v63 = vpop.f32.mrf.mxu2  ;;  %4678 = vmatmul.msk.bf16.gmra.mxu1 %vm1242_vm3, %v4984_v35  ;;  %v1796_v35 = vadd.f32 %v1795_v15, %v5933_v52 }
 0x164   : > { %7216 = vst [vmem:[#allocation66_spill] sm:$0xff] %v6144_v17  ;;  %v2538_v39 = vadd.f32 %v2385_v63, %v1793_v9  ;;  %v2043_v46 = vsel %vm5821_vm7, %v2041_v62, %v2042_v3 }
 0x165   : > { %v2933_v29 = vpop.f32.mrf.mxu0 }
 0x167   : > { %v2639_v1 = vpop.f32.mrf.mxu3 }
 0x168   : > { %v2792_v45 = vadd.f32 %v2639_v1, %v2538_v39  ;;  %4727 = vmatmul.msk.bf16.gmra.mxu2 %vm1242_vm3, %v6147_v0  ;;  %v1797_v44 = vpop.f32.mrf.mxu1  ;;  %v2040_v39 = vsel %vm5821_vm7, %v4705_v55, %v2039_v21 }
 0x169   : > { %v2193_v15 = vunpack.c.l.b16 %v2040_v39  ;;  %v4987_v39 = vld [vmem:[%s5298_s25 + $0x8c] sm:$0xff] }
 0x16a   : > { %v6156_v9 = vadd.f32 %v2933_v29, %v2792_v45  ;;  %v2194_v29 = vunpack.c.l.b16 %v2043_v46  ;;  %v1798_v45 = vadd.f32 %v1797_v44, %v5950_v59  ;;  %v2044_v44 = vrot.slane %v2042_v3, 4 }
 0x16b   : > { %v2388_v10 = vpop.f32.mrf.mxu2 }
 0x16c   : > { %7217 = vst [vmem:[#allocation67_spill] sm:$0xff] %v6156_v9  ;;  %4768 = vmatmul.msk.bf16.gmra.mxu3 %vm1242_vm3, %v4986_v7  ;;  %v2539_v22 = vadd.f32 %v2388_v10, %v1796_v35  ;;  %v6169_v55 = vpack.c.b16 %v2194_v29, %v2193_v15  ;;  %v5082_v10 = vld [vmem:[%s5298_s25 + $0x84] sm:$0xf] }
 0x16d   : > { %v2936_v63 = vpop.f32.mrf.mxu0  ;;  %v2045_v9 = vrot.slane %v5082_v10, 5 }
 0x16f   : > { %v2642_v1 = vpop.f32.mrf.mxu3 }
 0x170   : > { %4801 = vmatmul.msk.bf16.gmra.mxu0 %vm1242_vm3, %v5633_v20  ;;  %v2793_v33 = vadd.f32 %v2642_v1, %v2539_v22  ;;  %v1800_v52 = vpop.f32.mrf.mxu1  ;;  %v5083_v1 = vld [vmem:[%s5298_s25 + $0x88] sm:$0x1] }
 0x171   : > { %v2048_v59 = vrot.slane %v5083_v1, 5 }
 0x172   : > { %v6166_v49 = vadd.f32 %v2936_v63, %v2793_v33  ;;  %v2047_v63 = vrot.slane %v2045_v9, 4  ;;  %v1801_v33 = vadd.f32 %v1800_v52, %v5968_v61 }
 0x173   : > { %v2390_v35 = vpop.f32.mrf.mxu2  ;;  %4679 = vmatmul.msk.bf16.gmra.mxu1 %vm1242_vm3, %v4985_v6 }
 0x174   : > { %v2540_v21 = vadd.f32 %v2390_v35, %v1798_v45  ;;  %v2049_v35 = vsel %vm5821_vm7, %v2047_v63, %v2048_v59  ;;  %v5084_v63 = vld [vmem:[%s5298_s25 + $0x90] sm:$0xf] }
 0x175   : > { %v2938_v62 = vpop.f32.mrf.mxu0 }
 0x177   : > { %v2644_v17 = vpop.f32.mrf.mxu3 }
 0x178   : > { %v2794_v22 = vadd.f32 %v2644_v17, %v2540_v21  ;;  %4728 = vmatmul.msk.bf16.gmra.mxu2 %vm1242_vm3, %v6169_v55  ;;  %v1802_v46 = vpop.f32.mrf.mxu1  ;;  %v2046_v17 = vsel %vm5821_vm7, %v2044_v44, %v2045_v9 }
 0x179   : > { %v2195_v52 = vunpack.c.l.b16 %v2046_v17  ;;  %v1803_v10 = vadd.f32 %v1802_v46, %v5985_v4  ;;  %v4988_v17 = vld [vmem:[%s5298_s25 + $0x94] sm:$0xff]  ;;  %v5085_v4 = vld [vmem:[%s5298_s25 + $0x8c] sm:$0xf] }
 0x17a   : > { %v6177_v6 = vadd.f32 %v2938_v62, %v2794_v22  ;;  %v2196_v62 = vunpack.c.l.b16 %v2049_v35  ;;  %v4706_v46 = vrot.slane %v5085_v4, 9 }
 0x17b   : > { %v2393_v15 = vpop.f32.mrf.mxu2 }
 0x17c   : > { %4769 = vmatmul.msk.bf16.gmra.mxu3 %vm1242_vm3, %v4987_v39  ;;  %v2541_v29 = vadd.f32 %v2393_v15, %v1801_v33  ;;  %v6190_v59 = vpack.c.b16 %v2196_v62, %v2195_v52  ;;  %v2052_v33 = vrot.slane %v5084_v63, 5 }
 0x17d   : > { %v2941_v45 = vpop.f32.mrf.mxu0 }
 0x17f   : > { %v2647_v21 = vpop.f32.mrf.mxu3 }
 0x180   : > { %4802 = vmatmul.msk.bf16.gmra.mxu0 %vm1242_vm3, %v5700_v23  ;;  %v2795_v3 = vadd.f32 %v2647_v21, %v2541_v29  ;;  %v1805_v61 = vpop.f32.mrf.mxu1  ;;  %v5086_v21 = vld [vmem:[%s5298_s25 + $0x94] sm:$0xf] }
 0x182   : > { %v6187_v22 = vadd.f32 %v2941_v45, %v2795_v3  ;;  %v2054_v45 = vrot.slane %v2052_v33, 4  ;;  %v2055_v3 = vrot.slane %v5086_v21, 5 }
 0x183   : > { %v2395_v1 = vpop.f32.mrf.mxu2  ;;  %4680 = vmatmul.msk.bf16.gmra.mxu1 %vm1242_vm3, %v4986_v7  ;;  %v1806_v7 = vadd.f32 %v1805_v61, %v5999_v12 }
 0x184   : > { %7218 = vst [vmem:[#allocation68_spill] sm:$0xff] %v6187_v22  ;;  %v2542_v9 = vadd.f32 %v2395_v1, %v1803_v10  ;;  %v2056_v63 = vsel %vm5821_vm7, %v2054_v45, %v2055_v3 }
 0x185   : > { %v2943_v44 = vpop.f32.mrf.mxu0 }
 0x187   : > { %v2649_v15 = vpop.f32.mrf.mxu3 }
 0x188   : > { %v2796_v29 = vadd.f32 %v2649_v15, %v2542_v9  ;;  %4729 = vmatmul.msk.bf16.gmra.mxu2 %vm1242_vm3, %v6190_v59  ;;  %v1807_v35 = vpop.f32.mrf.mxu1  ;;  %v2053_v9 = vsel %vm5821_vm7, %v4706_v46, %v2052_v33 }
 0x189   : > { %v2197_v61 = vunpack.c.l.b16 %v2053_v9 }
 0x18a   : > { %v6199_v10 = vadd.f32 %v2943_v44, %v2796_v29  ;;  %v2198_v44 = vunpack.c.l.b16 %v2056_v63  ;;  %v1808_v29 = vadd.f32 %v1807_v35, %v6019_v8  ;;  %v2061_v8 = vrot.slane %v5730_v26, 5 }
 0x18b   : > { %v2398_v52 = vpop.f32.mrf.mxu2  ;;  %v2057_v35 = vrot.slane %v2055_v3, 4 }
 0x18c   : > { %7219 = vst [vmem:[#allocation69_spill] sm:$0xff] %v6199_v10  ;;  %4770 = vmatmul.msk.bf16.gmra.mxu3 %vm1242_vm3, %v4988_v17  ;;  %v2543_v62 = vadd.f32 %v2398_v52, %v1806_v7  ;;  %v6212_v46 = vpack.c.b16 %v2198_v44, %v2197_v61  ;;  %v2058_v52 = vrot.slane %v5723_v56, 5 }
 0x18d   : > { %v2946_v1 = vpop.f32.mrf.mxu0 }
 0x18f   : > { %v2652_v15 = vpop.f32.mrf.mxu3 }
 0x190   : > { %4803 = vmatmul.msk.bf16.gmra.mxu0 %vm1242_vm3, %v5773_v30  ;;  %v2797_v4 = vadd.f32 %v2652_v15, %v2543_v62  ;;  %v1810_v12 = vpop.f32.mrf.mxu1  ;;  %v4989_v62 = vld [vmem:[%s5298_s25 + $0xa0] sm:$0xff] }
 0x191   : > { %v1811_v63 = vadd.f32 %v1810_v12, %v6035_v14 }
 0x192   : > { %v6209_v21 = vadd.f32 %v2946_v1, %v2797_v4  ;;  %v2060_v1 = vrot.slane %v2058_v52, 4 }
 0x193   : > { %v2400_v7 = vpop.f32.mrf.mxu2  ;;  %4681 = vmatmul.msk.bf16.gmra.mxu1 %vm1242_vm3, %v4987_v39 }
 0x194   : > { %v2544_v33 = vadd.f32 %v2400_v7, %v1808_v29  ;;  %v2062_v61 = vsel %vm5821_vm7, %v2060_v1, %v2061_v8  ;;  %v5087_v8 = vld [vmem:[%s5298_s25 + $0xa4] sm:$0xf] }
 0x195   : > { %v2948_v45 = vpop.f32.mrf.mxu0  ;;  %v2200_v3 = vunpack.c.l.b16 %v2062_v61 }
 0x197   : > { %v2654_v10 = vpop.f32.mrf.mxu3 }
 0x198   : > { %v2798_v22 = vadd.f32 %v2654_v10, %v2544_v33  ;;  %4730 = vmatmul.msk.bf16.gmra.mxu2 %vm1242_vm3, %v6212_v46  ;;  %v1812_v9 = vpop.f32.mrf.mxu1  ;;  %v2059_v10 = vsel %vm5821_vm7, %v2057_v35, %v2058_v52  ;;  %v2065_v35 = vrot.slane %v5087_v8, 5 }
 0x199   : > { %v1813_v12 = vadd.f32 %v1812_v9, %v6051_v54  ;;  %v5088_v54 = vld [vmem:[%s5298_s25 + $0xa0] sm:$0xf] }
 0x19a   : > { %v6220_v39 = vadd.f32 %v2948_v45, %v2798_v22  ;;  %v2199_v22 = vunpack.c.l.b16 %v2059_v10  ;;  %v4707_v9 = vrot.slane %v5088_v54, 9  ;;  %v5089_v10 = vld [vmem:[%s5298_s25 + $0xa8] sm:$0xf] }
 0x19b   : > { %v2403_v15 = vpop.f32.mrf.mxu2  ;;  %v2068_v61 = vrot.slane %v5089_v10, 5  ;;  %v5090_v10 = vld [vmem:[%s5298_s25 + $0xac] sm:$0xf] }
 0x19c   : > { %4771 = vmatmul.msk.bf16.gmra.mxu3 %vm1242_vm3, %v4989_v62  ;;  %v2545_v4 = vadd.f32 %v2403_v15, %v1811_v63  ;;  %v6233_v45 = vpack.c.b16 %v2200_v3, %v2199_v22  ;;  %v4990_v15 = vld [vmem:[%s5298_s25 + $0xa8] sm:$0xff] }
 0x19d   : > { %v2951_v56 = vpop.f32.mrf.mxu0 }
 0x19f   : > { %v2657_v44 = vpop.f32.mrf.mxu3 }
 0x1a0   : > { %4804 = vmatmul.msk.bf16.gmra.mxu0 %vm1242_vm3, %v5352_v19  ;;  %v2799_v26 = vadd.f32 %v2657_v44, %v2545_v4  ;;  %v1815_v14 = vpop.f32.mrf.mxu1 }
 0x1a2   : > { %v6230_v29 = vadd.f32 %v2951_v56, %v2799_v26  ;;  %v2067_v56 = vrot.slane %v2065_v35, 4 }
 0x1a3   : > { %v2405_v7 = vpop.f32.mrf.mxu2  ;;  %4682 = vmatmul.msk.bf16.gmra.mxu1 %vm1242_vm3, %v4988_v17  ;;  %v1816_v17 = vadd.f32 %v1815_v14, %v6068_v34 }
 0x1a4   : > { %v2546_v33 = vadd.f32 %v2405_v7, %v1813_v12  ;;  %v2066_v12 = vsel %vm5821_vm7, %v4707_v9, %v2065_v35  ;;  %v2069_v7 = vsel %vm5821_vm7, %v2067_v56, %v2068_v61 }
 0x1a5   : > { %v2953_v52 = vpop.f32.mrf.mxu0  ;;  %v2201_v14 = vunpack.c.l.b16 %v2066_v12  ;;  %v4991_v12 = vld [vmem:[%s5298_s25 + $0xb4] sm:$0xff] }
 0x1a7   : > { %v2659_v1 = vpop.f32.mrf.mxu3 }
 0x1a8   : > { %v2800_v63 = vadd.f32 %v2659_v1, %v2546_v33  ;;  %4731 = vmatmul.msk.bf16.gmra.mxu2 %vm1242_vm3, %v6233_v45  ;;  %v1817_v4 = vpop.f32.mrf.mxu1 }
 0x1a9   : > { %v1818_v1 = vadd.f32 %v1817_v4, %v6083_v5  ;;  %v2070_v4 = vrot.slane %v2068_v61, 4 }
 0x1aa   : > { %v6242_v44 = vadd.f32 %v2953_v52, %v2800_v63  ;;  %v2202_v52 = vunpack.c.l.b16 %v2069_v7 }
 0x1ab   : > { %v2408_v26 = vpop.f32.mrf.mxu2 }
 0x1ac   : > { %4772 = vmatmul.msk.bf16.gmra.mxu3 %vm1242_vm3, %v4990_v15  ;;  %v2547_v22 = vadd.f32 %v2408_v26, %v1816_v17  ;;  %v6255_v9 = vpack.c.b16 %v2202_v52, %v2201_v14  ;;  %v2071_v17 = vrot.slane %v5090_v10, 5 }
 0x1ad   : > { %v2956_v3 = vpop.f32.mrf.mxu0 }
 0x1af   : > { %v2662_v33 = vpop.f32.mrf.mxu3 }
 0x1b0   : > { %4805 = vmatmul.msk.bf16.gmra.mxu0 %vm1242_vm3, %v5399_v37  ;;  %v2801_v8 = vadd.f32 %v2662_v33, %v2547_v22  ;;  %v1820_v34 = vpop.f32.mrf.mxu1  ;;  %v5091_v33 = vld [vmem:[%s5298_s25 + $0xb0] sm:$0x1] }
 0x1b1   : > { %v2074_v5 = vrot.slane %v5091_v33, 5 }
 0x1b2   : > { %v6252_v63 = vadd.f32 %v2956_v3, %v2801_v8  ;;  %v2073_v3 = vrot.slane %v2071_v17, 4  ;;  %v1821_v8 = vadd.f32 %v1820_v34, %v5771_v18 }
 0x1b3   : > { %v2410_v54 = vpop.f32.mrf.mxu2  ;;  %4683 = vmatmul.msk.bf16.gmra.mxu1 %vm1242_vm3, %v4989_v62 }
 0x1b4   : > { %v2548_v35 = vadd.f32 %v2410_v54, %v1818_v1  ;;  %v2072_v54 = vsel %vm5821_vm7, %v2070_v4, %v2071_v17 }
 0x1b5   : > { %v2958_v56 = vpop.f32.mrf.mxu0  ;;  %v2203_v34 = vunpack.c.l.b16 %v2072_v54  ;;  %v4992_v54 = vld [vmem:[%s5298_s25 + $0xbc] sm:$0xff] }
 0x1b7   : > { %v2664_v26 = vpop.f32.mrf.mxu3 }
 0x1b8   : > { %v2802_v22 = vadd.f32 %v2664_v26, %v2548_v35  ;;  %4732 = vmatmul.msk.bf16.gmra.mxu2 %vm1242_vm3, %v6255_v9  ;;  %v1822_v7 = vpop.f32.mrf.mxu1  ;;  %v2075_v35 = vsel %vm5821_vm7, %v2073_v3, %v2074_v5  ;;  %v5092_v3 = vld [vmem:[%s5298_s25 + $0xb8] sm:$0xf] }
 0x1b9   : > { %v1823_v26 = vadd.f32 %v1822_v7, %v5808_v28  ;;  %v5093_v28 = vld [vmem:[%s5298_s25 + $0xb4] sm:$0xf] }
 0x1ba   : > { %v6263_v62 = vadd.f32 %v2958_v56, %v2802_v22  ;;  %v2204_v56 = vunpack.c.l.b16 %v2075_v35  ;;  %v4708_v7 = vrot.slane %v5093_v28, 9 }
 0x1bb   : > { %v2413_v14 = vpop.f32.mrf.mxu2 }
 0x1bc   : > { %4773 = vmatmul.msk.bf16.gmra.mxu3 %vm1242_vm3, %v4991_v12  ;;  %v2549_v52 = vadd.f32 %v2413_v14, %v1821_v8  ;;  %v6276_v5 = vpack.c.b16 %v2204_v56, %v2203_v34  ;;  %v2078_v8 = vrot.slane %v5092_v3, 5 }
 0x1bd   : > { %v2961_v1 = vpop.f32.mrf.mxu0 }
 0x1bf   : > { %v2667_v10 = vpop.f32.mrf.mxu3 }
 0x1c0   : > { %4806 = vmatmul.msk.bf16.gmra.mxu0 %vm1242_vm3, %v5462_v11  ;;  %v2803_v61 = vadd.f32 %v2667_v10, %v2549_v52  ;;  %v1825_v18 = vpop.f32.mrf.mxu1  ;;  %v5094_v10 = vld [vmem:[%s5298_s25 + $0xbc] sm:$0xf] }
 0x1c2   : > { %v6273_v22 = vadd.f32 %v2961_v1, %v2803_v61  ;;  %v2080_v1 = vrot.slane %v2078_v8, 4  ;;  %v2081_v61 = vrot.slane %v5094_v10, 5 }
 0x1c3   : > { %v2415_v33 = vpop.f32.mrf.mxu2  ;;  %4684 = vmatmul.msk.bf16.gmra.mxu1 %vm1242_vm3, %v4990_v15  ;;  %v1826_v15 = vadd.f32 %v1825_v18, %v5849_v2 }
 0x1c4   : > { %7220 = vst [vmem:[#allocation70_spill] sm:$0xff] %v6273_v22  ;;  %v2550_v17 = vadd.f32 %v2415_v33, %v1823_v26  ;;  %v2082_v3 = vsel %vm5821_vm7, %v2080_v1, %v2081_v61 }
 0x1c5   : > { %v2963_v4 = vpop.f32.mrf.mxu0 }
 0x1c7   : > { %v2669_v14 = vpop.f32.mrf.mxu3 }
 0x1c8   : > { %v2804_v52 = vadd.f32 %v2669_v14, %v2550_v17  ;;  %4733 = vmatmul.msk.bf16.gmra.mxu2 %vm1242_vm3, %v6276_v5  ;;  %v1827_v35 = vpop.f32.mrf.mxu1  ;;  %v2079_v17 = vsel %vm5821_vm7, %v4708_v7, %v2078_v8 }
 0x1c9   : > { %v2205_v18 = vunpack.c.l.b16 %v2079_v17  ;;  %v4993_v17 = vld [vmem:[%s5298_s25 + $0xc8] sm:$0xff] }
 0x1ca   : > { %v6285_v26 = vadd.f32 %v2963_v4, %v2804_v52  ;;  %v2206_v4 = vunpack.c.l.b16 %v2082_v3  ;;  %v1828_v52 = vadd.f32 %v1827_v35, %v5860_v36  ;;  %v2083_v35 = vrot.slane %v2081_v61, 4 }
 0x1cb   : > { %v2418_v34 = vpop.f32.mrf.mxu2 }
 0x1cc   : > { %7221 = vst [vmem:[#allocation71_spill] sm:$0xff] %v6285_v26  ;;  %4774 = vmatmul.msk.bf16.gmra.mxu3 %vm1242_vm3, %v4992_v54  ;;  %v2551_v56 = vadd.f32 %v2418_v34, %v1826_v15  ;;  %v6298_v7 = vpack.c.b16 %v2206_v4, %v2205_v18  ;;  %v5095_v34 = vld [vmem:[%s5298_s25 + $0xc0] sm:$0xf] }
 0x1cd   : > { %v2966_v33 = vpop.f32.mrf.mxu0  ;;  %v2084_v26 = vrot.slane %v5095_v34, 5 }
 0x1cf   : > { %v2672_v14 = vpop.f32.mrf.mxu3 }
 0x1d0   : > { %4807 = vmatmul.msk.bf16.gmra.mxu0 %vm1242_vm3, %v5526_v50  ;;  %v2805_v28 = vadd.f32 %v2672_v14, %v2551_v56  ;;  %v1830_v2 = vpop.f32.mrf.mxu1  ;;  %v5096_v14 = vld [vmem:[%s5298_s25 + $0xc4] sm:$0x1] }
 0x1d1   : > { %v2087_v36 = vrot.slane %v5096_v14, 5 }
 0x1d2   : > { %v6295_v10 = vadd.f32 %v2966_v33, %v2805_v28  ;;  %v2086_v33 = vrot.slane %v2084_v26, 4  ;;  %v1831_v28 = vadd.f32 %v1830_v2, %v5877_v58 }
 0x1d3   : > { %v2420_v15 = vpop.f32.mrf.mxu2  ;;  %4685 = vmatmul.msk.bf16.gmra.mxu1 %vm1242_vm3, %v4991_v12 }
 0x1d4   : > { %v2552_v8 = vadd.f32 %v2420_v15, %v1828_v52  ;;  %v2088_v15 = vsel %vm5821_vm7, %v2086_v33, %v2087_v36  ;;  %v5097_v33 = vld [vmem:[%s5298_s25 + $0xcc] sm:$0xf] }
 0x1d5   : > { %v2968_v1 = vpop.f32.mrf.mxu0 }
 0x1d7   : > { %v2674_v22 = vpop.f32.mrf.mxu3 }
 0x1d8   : > { %v2806_v56 = vadd.f32 %v2674_v22, %v2552_v8  ;;  %4734 = vmatmul.msk.bf16.gmra.mxu2 %vm1242_vm3, %v6298_v7  ;;  %v1832_v3 = vpop.f32.mrf.mxu1  ;;  %v2085_v22 = vsel %vm5821_vm7, %v2083_v35, %v2084_v26 }
 0x1d9   : > { %v2207_v2 = vunpack.c.l.b16 %v2085_v22  ;;  %v1833_v34 = vadd.f32 %v1832_v3, %v5895_v24  ;;  %v4994_v22 = vld [vmem:[%s5298_s25 + $0xd0] sm:$0xff]  ;;  %v5098_v24 = vld [vmem:[%s5298_s25 + $0xc8] sm:$0xf] }
 0x1da   : > { %v6306_v12 = vadd.f32 %v2968_v1, %v2806_v56  ;;  %v2208_v1 = vunpack.c.l.b16 %v2088_v15  ;;  %v4709_v3 = vrot.slane %v5098_v24, 9 }
 0x1db   : > { %v2423_v18 = vpop.f32.mrf.mxu2 }
 0x1dc   : > { %7222 = vst [vmem:[#allocation72_spill] sm:$0xff] %v6306_v12  ;;  %4775 = vmatmul.msk.bf16.gmra.mxu3 %vm1242_vm3, %v4993_v17  ;;  %v2553_v4 = vadd.f32 %v2423_v18, %v1831_v28  ;;  %v6319_v36 = vpack.c.b16 %v2208_v1, %v2207_v2  ;;  %v2091_v28 = vrot.slane %v5097_v33, 5 }
 0x1dd   : > { %v2971_v52 = vpop.f32.mrf.mxu0 }
 0x1df   : > { %v2677_v8 = vpop.f32.mrf.mxu3 }
 0x1e0   : > { %4808 = vmatmul.msk.bf16.gmra.mxu0 %vm1242_vm3, %v5591_v25  ;;  %v2807_v61 = vadd.f32 %v2677_v8, %v2553_v4  ;;  %v1835_v58 = vpop.f32.mrf.mxu1  ;;  %v5099_v8 = vld [vmem:[%s5298_s25 + $0xd0] sm:$0xf] }
 0x1e2   : > { %v6316_v56 = vadd.f32 %v2971_v52, %v2807_v61  ;;  %v2093_v52 = vrot.slane %v2091_v28, 4  ;;  %v2094_v61 = vrot.slane %v5099_v8, 5 }
 0x1e3   : > { %v2425_v14 = vpop.f32.mrf.mxu2  ;;  %4686 = vmatmul.msk.bf16.gmra.mxu1 %vm1242_vm3, %v4992_v54  ;;  %v1836_v54 = vadd.f32 %v1835_v58, %v5909_v53 }
 0x1e4   : > { %7223 = vst [vmem:[#allocation73_spill] sm:$0xff] %v6316_v56  ;;  %v2554_v26 = vadd.f32 %v2425_v14, %v1833_v34  ;;  %v2095_v33 = vsel %vm5821_vm7, %v2093_v52, %v2094_v61 }
 0x1e5   : > { %v2973_v35 = vpop.f32.mrf.mxu0 }
 0x1e7   : > { %v2679_v18 = vpop.f32.mrf.mxu3 }
 0x1e8   : > { %v2808_v4 = vadd.f32 %v2679_v18, %v2554_v26  ;;  %4735 = vmatmul.msk.bf16.gmra.mxu2 %vm1242_vm3, %v6319_v36  ;;  %v1837_v15 = vpop.f32.mrf.mxu1  ;;  %v2092_v26 = vsel %vm5821_vm7, %v4709_v3, %v2091_v28 }
 0x1e9   : > { %v2209_v58 = vunpack.c.l.b16 %v2092_v26  ;;  %v4995_v26 = vld [vmem:[%s5298_s25 + $0xdc] sm:$0xff] }
 0x1ea   : > { %v6328_v34 = vadd.f32 %v2973_v35, %v2808_v4  ;;  %v2210_v35 = vunpack.c.l.b16 %v2095_v33  ;;  %v1838_v4 = vadd.f32 %v1837_v15, %v5926_v57  ;;  %v2096_v15 = vrot.slane %v2094_v61, 4 }
 0x1eb   : > { %v2428_v2 = vpop.f32.mrf.mxu2 }
 0x1ec   : > { %7224 = vst [vmem:[#allocation74_spill] sm:$0xff] %v6328_v34  ;;  %4776 = vmatmul.msk.bf16.gmra.mxu3 %vm1242_vm3, %v4994_v22  ;;  %v2555_v1 = vadd.f32 %v2428_v2, %v1836_v54  ;;  %v6341_v3 = vpack.c.b16 %v2210_v35, %v2209_v58  ;;  %v5100_v2 = vld [vmem:[%s5298_s25 + $0xd4] sm:$0xf] }
 0x1ed   : > { %v2976_v14 = vpop.f32.mrf.mxu0  ;;  %v2097_v34 = vrot.slane %v5100_v2, 5 }
 0x1ef   : > { %v2682_v18 = vpop.f32.mrf.mxu3 }
 0x1f0   : > { %4809 = vmatmul.msk.bf16.gmra.mxu0 %vm1242_vm3, %v5651_v31  ;;  %v2809_v24 = vadd.f32 %v2682_v18, %v2555_v1  ;;  %v1840_v53 = vpop.f32.mrf.mxu1  ;;  %v5101_v18 = vld [vmem:[%s5298_s25 + $0xd8] sm:$0x1] }
 0x1f1   : > { %v2100_v57 = vrot.slane %v5101_v18, 5 }
 0x1f2   : > { %v6338_v8 = vadd.f32 %v2976_v14, %v2809_v24  ;;  %v2099_v14 = vrot.slane %v2097_v34, 4  ;;  %v1841_v24 = vadd.f32 %v1840_v53, %v5943_v16 }
 0x1f3   : > { %v2430_v54 = vpop.f32.mrf.mxu2  ;;  %4687 = vmatmul.msk.bf16.gmra.mxu1 %vm1242_vm3, %v4993_v17 }
 0x1f4   : > { %7225 = vst [vmem:[#allocation75_spill] sm:$0xff] %v6338_v8  ;;  %v2556_v28 = vadd.f32 %v2430_v54, %v1838_v4  ;;  %v2101_v54 = vsel %vm5821_vm7, %v2099_v14, %v2100_v57  ;;  %v5102_v14 = vld [vmem:[%s5298_s25 + $0xe0] sm:$0xf]  ;;  %v428_v8 = vld [vmem:[%s6540_s6 + $0x8] sm:$0xf] }
 0x1f5   : > { %v2978_v52 = vpop.f32.mrf.mxu0 }
 0x1f7   : > { %v2684_v56 = vpop.f32.mrf.mxu3 }
 0x1f8   : > { %v2810_v1 = vadd.f32 %v2684_v56, %v2556_v28  ;;  %4736 = vmatmul.msk.bf16.gmra.mxu2 %vm1242_vm3, %v6341_v3  ;;  %v1842_v33 = vpop.f32.mrf.mxu1  ;;  %v2098_v56 = vsel %vm5821_vm7, %v2096_v15, %v2097_v34 }
 0x1f9   : > { %v2211_v53 = vunpack.c.l.b16 %v2098_v56  ;;  %v1843_v2 = vadd.f32 %v1842_v33, %v5960_v42  ;;  %v4996_v56 = vld [vmem:[%s5298_s25 + $0xe4] sm:$0xff]  ;;  %v5103_v42 = vld [vmem:[%s5298_s25 + $0xdc] sm:$0xf] }
 0x1fa   : > { %v6349_v17 = vadd.f32 %v2978_v52, %v2810_v1  ;;  %v2212_v52 = vunpack.c.l.b16 %v2101_v54  ;;  %v4710_v33 = vrot.slane %v5103_v42, 9 }
 0x1fb   : > { %v2433_v58 = vpop.f32.mrf.mxu2 }
 0x1fc   : > { %7226 = vst [vmem:[#allocation76_spill] sm:$0xff] %v6349_v17  ;;  %4777 = vmatmul.msk.bf16.gmra.mxu3 %vm1242_vm3, %v4995_v26  ;;  %v2557_v35 = vadd.f32 %v2433_v58, %v1841_v24  ;;  %v6362_v57 = vpack.c.b16 %v2212_v52, %v2211_v53  ;;  %v2104_v24 = vrot.slane %v5102_v14, 5 }
 0x1fd   : > { %v2981_v4 = vpop.f32.mrf.mxu0 }
 0x1fe   : > { %7228 = vst [vmem:[#allocation78_spill] sm:$0xff] %v6362_v57 }
 0x1ff   : > { %v2687_v28 = vpop.f32.mrf.mxu3 }
 0x200   : > { %4810 = vmatmul.msk.bf16.gmra.mxu0 %vm1242_vm3, %v5725_v32  ;;  %v2811_v61 = vadd.f32 %v2687_v28, %v2557_v35  ;;  %v1845_v16 = vpop.f32.mrf.mxu1  ;;  %v5104_v28 = vld [vmem:[%s5298_s25 + $0xe4] sm:$0xf] }
 0x202   : > { %v6359_v1 = vadd.f32 %v2981_v4, %v2811_v61  ;;  %v2106_v4 = vrot.slane %v2104_v24, 4  ;;  %v2107_v61 = vrot.slane %v5104_v28, 5 }
 0x203   : > { %v2435_v18 = vpop.f32.mrf.mxu2  ;;  %4688 = vmatmul.msk.bf16.gmra.mxu1 %vm1242_vm3, %v4994_v22  ;;  %v1846_v22 = vadd.f32 %v1845_v16, %v5976_v38 }
 0x204   : > { %7227 = vst [vmem:[#allocation77_spill] sm:$0xff] %v6359_v1  ;;  %v2558_v34 = vadd.f32 %v2435_v18, %v1843_v2  ;;  %v2108_v14 = vsel %vm5821_vm7, %v2106_v4, %v2107_v61 }
 0x205   : > { %v2983_v15 = vpop.f32.mrf.mxu0 }
 0x207   : > { %v2689_v58 = vpop.f32.mrf.mxu3 }
 0x208   : > { %v2812_v35 = vadd.f32 %v2689_v58, %v2558_v34  ;;  %4737 = vmatmul.msk.bf16.gmra.mxu2 %vm1242_vm3, %v6362_v57  ;;  %v1847_v54 = vpop.f32.mrf.mxu1  ;;  %v2105_v34 = vsel %vm5821_vm7, %v4710_v33, %v2104_v24 }
 0x209   : > { %v2213_v16 = vunpack.c.l.b16 %v2105_v34  ;;  %v4997_v34 = vld [vmem:[%s5298_s25 + $0xf0] sm:$0xff] }
 0x20a   : > { %v6371_v2 = vadd.f32 %v2983_v15, %v2812_v35  ;;  %v2214_v15 = vunpack.c.l.b16 %v2108_v14  ;;  %v1848_v35 = vadd.f32 %v1847_v54, %v5994_v47  ;;  %v2109_v54 = vrot.slane %v2107_v61, 4 }
 0x20b   : > { %v2438_v53 = vpop.f32.mrf.mxu2 }
 0x20c   : > { %7229 = vst [vmem:[#allocation79_spill] sm:$0xff] %v6371_v2  ;;  %4778 = vmatmul.msk.bf16.gmra.mxu3 %vm1242_vm3, %v4996_v56  ;;  %v2559_v52 = vadd.f32 %v2438_v53, %v1846_v22  ;;  %v6384_v33 = vpack.c.b16 %v2214_v15, %v2213_v16  ;;  %v5105_v53 = vld [vmem:[%s5298_s25 + $0xe8] sm:$0xf] }
 0x20d   : > { %v2986_v18 = vpop.f32.mrf.mxu0  ;;  %v2110_v2 = vrot.slane %v5105_v53, 5  ;;  %v7233_v53 = vld [vmem:[#allocation4_spill] sm:$0xff] }
 0x20e   : > { %7231 = vst [vmem:[#allocation81_spill] sm:$0xff] %v6384_v33 }
 0x20f   : > { %v2692_v58 = vpop.f32.mrf.mxu3 }
 0x210   : > { %4811 = vmatmul.msk.bf16.gmra.mxu0 %vm1242_vm3, %v5789_v40  ;;  %v2813_v42 = vadd.f32 %v2692_v58, %v2559_v52  ;;  %v1850_v38 = vpop.f32.mrf.mxu1  ;;  %v5106_v58 = vld [vmem:[%s5298_s25 + $0xec] sm:$0x1] }
 0x211   : > { %v2113_v47 = vrot.slane %v5106_v58, 5 }
 0x212   : > { %v6381_v28 = vadd.f32 %v2986_v18, %v2813_v42  ;;  %v2112_v18 = vrot.slane %v2110_v2, 4  ;;  %v1851_v42 = vadd.f32 %v1850_v38, %v6015_v27 }
 0x213   : > { %v2440_v22 = vpop.f32.mrf.mxu2  ;;  %4689 = vmatmul.msk.bf16.gmra.mxu1 %vm1242_vm3, %v4995_v26 }
 0x214   : > { %7230 = vst [vmem:[#allocation80_spill] sm:$0xff] %v6381_v28  ;;  %v2560_v24 = vadd.f32 %v2440_v22, %v1848_v35  ;;  %v2114_v22 = vsel %vm5821_vm7, %v2112_v18, %v2113_v47  ;;  %v5107_v18 = vld [vmem:[%s5298_s25 + $0xf4] sm:$0xf]  ;;  %v7237_v28 = vld [vmem:[#allocation54_spill] sm:$0xff] }
 0x215   : > { %v2988_v4 = vpop.f32.mrf.mxu0 }
 0x217   : > { %v2694_v1 = vpop.f32.mrf.mxu3 }
 0x218   : > { %v2814_v52 = vadd.f32 %v2694_v1, %v2560_v24  ;;  %4738 = vmatmul.msk.bf16.gmra.mxu2 %vm1242_vm3, %v6384_v33  ;;  %v1852_v14 = vpop.f32.mrf.mxu1  ;;  %v2111_v1 = vsel %vm5821_vm7, %v2109_v54, %v2110_v2 }
 0x219   : > { %v2215_v38 = vunpack.c.l.b16 %v2111_v1  ;;  %v4998_v1 = vld [vmem:[%s5298_s25 + $0xf8] sm:$0xff] }
 0x21a   : > { %v6392_v26 = vadd.f32 %v2988_v4, %v2814_v52  ;;  %v2216_v4 = vunpack.c.l.b16 %v2114_v22  ;;  %v7234_v52 = vld [vmem:[#allocation51_spill] sm:$0xff] }
 0x21b   : > { %v2443_v16 = vpop.f32.mrf.mxu2  ;;  %v1853_v58 = vadd.f32 %v1852_v14, %v7234_v52  ;;  %v5108_v14 = vld [vmem:[%s5298_s25 + $0xf0] sm:$0xf]  ;;  %v5109_v52 = vld [vmem:[%s5298_s25 + $0xf8] sm:$0xf] }
 0x21c   : > { %7232 = vst [vmem:[#allocation82_spill] sm:$0xff] %v6392_v26  ;;  %4779 = vmatmul.msk.bf16.gmra.mxu3 %vm1242_vm3, %v4997_v34  ;;  %v2561_v15 = vadd.f32 %v2443_v16, %v1851_v42  ;;  %v6405_v47 = vpack.c.b16 %v2216_v4, %v2215_v38  ;;  %v2117_v26 = vrot.slane %v5107_v18, 5 }
 0x21d   : > { %v2991_v35 = vpop.f32.mrf.mxu0 }
 0x21e   : > { %7236 = vst [vmem:[#allocation83_spill] sm:$0xff] %v6405_v47 }
 0x21f   : > { %v2697_v24 = vpop.f32.mrf.mxu3 }
 0x220   : > { %4812 = vmatmul.msk.bf16.gmra.mxu0 %vm1242_vm3, %v7233_v53  ;;  %v2815_v61 = vadd.f32 %v2697_v24, %v2561_v15  ;;  %v1855_v27 = vpop.f32.mrf.mxu1  ;;  %v5110_v53 = vld [vmem:[%s5298_s25 + $0xfc] sm:$0xf] }
 0x221   : > { %v2123_v17 = vrot.slane %v5110_v53, 5 }
 0x222   : > { %v6402_v42 = vadd.f32 %v2991_v35, %v2815_v61  ;;  %v4711_v35 = vrot.slane %v5108_v14, 9  ;;  %v2119_v61 = vrot.slane %v2117_v26, 4  ;;  %v7239_v14 = vld [vmem:[#allocation6_spill] sm:$0xff] }
 0x223   : > { %v2445_v16 = vpop.f32.mrf.mxu2  ;;  %4690 = vmatmul.msk.bf16.gmra.mxu1 %vm1242_vm3, %v4996_v56  ;;  %v1856_v56 = vadd.f32 %v1855_v27, %v7237_v28 }
 0x224   : > { %7235 = vst [vmem:[#allocation51_spill] sm:$0xff] %v6402_v42  ;;  %v2562_v2 = vadd.f32 %v2445_v16, %v1853_v58  ;;  %v2120_v42 = vrot.slane %v5109_v52, 5 }
 0x225   : > { %v2993_v54 = vpop.f32.mrf.mxu0 }
 0x226   : > { %v2121_v18 = vsel %vm5821_vm7, %v2119_v61, %v2120_v42 }
 0x227   : > { %v2699_v15 = vpop.f32.mrf.mxu3 }
 0x228   : > { %v2816_v24 = vadd.f32 %v2699_v15, %v2562_v2  ;;  %4739 = vmatmul.msk.bf16.gmra.mxu2 %vm1242_vm3, %v6405_v47  ;;  %v1857_v22 = vpop.f32.mrf.mxu1  ;;  %v2118_v2 = vsel %vm5821_vm7, %v4711_v35, %v2117_v26 }
 0x229   : > { %v2217_v27 = vunpack.c.l.b16 %v2118_v2  ;;  %v4999_v2 = vld [vmem:[%s5298_s25 + $0x104] sm:$0xff] }
 0x22a   : > { %v6414_v58 = vadd.f32 %v2993_v54, %v2816_v24  ;;  %v2218_v54 = vunpack.c.l.b16 %v2121_v18  ;;  %v7240_v24 = vld [vmem:[#allocation58_spill] sm:$0xff] }
 0x22b   : > { %v2448_v38 = vpop.f32.mrf.mxu2 }
 0x22c   : > { %7238 = vst [vmem:[#allocation54_spill] sm:$0xff] %v6414_v58  ;;  %4780 = vmatmul.msk.bf16.gmra.mxu3 %vm1242_vm3, %v4998_v1  ;;  %v2563_v4 = vadd.f32 %v2448_v38, %v1856_v56  ;;  %v1858_v56 = vadd.f32 %v1857_v22, %v7240_v24  ;;  %v6427_v35 = vpack.c.b16 %v2218_v54, %v2217_v27  ;;  %v7243_v24 = vld [vmem:[#allocation21_spill] sm:$0xff] }
 0x22d   : > { %v2996_v16 = vpop.f32.mrf.mxu0 }
 0x22e   : > { %7242 = vst [vmem:[#allocation84_spill] sm:$0xff] %v6427_v35 }
 0x22f   : > { %v2702_v15 = vpop.f32.mrf.mxu3 }
 0x230   : > { %4813 = vmatmul.msk.bf16.gmra.mxu0 %vm1242_vm3, %v7239_v14  ;;  %v2817_v52 = vadd.f32 %v2702_v15, %v2563_v4  ;;  %v1860_v28 = vpop.f32.mrf.mxu1  ;;  %v5111_v15 = vld [vmem:[%s5298_s25 + $0x100] sm:$0x1] }
 0x231   : > { %v2126_v22 = vrot.slane %v5111_v15, 5  ;;  %v7246_v15 = vld [vmem:[#allocation24_spill] sm:$0xff] }
 0x232   : > { %v6424_v38 = vadd.f32 %v2996_v16, %v2817_v52  ;;  %v2122_v16 = vrot.slane %v2120_v42, 4  ;;  %v2125_v52 = vrot.slane %v2123_v17, 4 }
 0x233   : > { %v2450_v58 = vpop.f32.mrf.mxu2  ;;  %4691 = vmatmul.msk.bf16.gmra.mxu1 %vm1242_vm3, %v4997_v34 }
 0x234   : > { %7241 = vst [vmem:[#allocation58_spill] sm:$0xff] %v6424_v38  ;;  %v2564_v26 = vadd.f32 %v2450_v58, %v1858_v56  ;;  %v1861_v38 = vadd.f32 %v1860_v28, %v7243_v24  ;;  %v2127_v54 = vsel %vm5821_vm7, %v2125_v52, %v2126_v22  ;;  %v5112_v52 = vld [vmem:[%s5298_s25 + $0x108] sm:$0xf] }
 0x235   : > { %v2998_v61 = vpop.f32.mrf.mxu0 }
 0x237   : > { %v2704_v14 = vpop.f32.mrf.mxu3 }
 0x238   : > { %v2818_v4 = vadd.f32 %v2704_v14, %v2564_v26  ;;  %4740 = vmatmul.msk.bf16.gmra.mxu2 %vm1242_vm3, %v6427_v35  ;;  %v1862_v18 = vpop.f32.mrf.mxu1  ;;  %v2124_v14 = vsel %vm5821_vm7, %v2122_v16, %v2123_v17  ;;  %v7245_v26 = vld [vmem:[#allocation8_spill] sm:$0xff] }
 0x23a   : > { %v6435_v34 = vadd.f32 %v2998_v61, %v2818_v4  ;;  %v2219_v61 = vunpack.c.l.b16 %v2124_v14  ;;  %v2220_v4 = vunpack.c.l.b16 %v2127_v54  ;;  %v5000_v14 = vld [vmem:[%s5298_s25 + $0x10c] sm:$0xff] }
 0x23b   : > { %v2453_v58 = vpop.f32.mrf.mxu2 }
 0x23c   : > { %7244 = vst [vmem:[#allocation21_spill] sm:$0xff] %v6435_v34  ;;  %4781 = vmatmul.msk.bf16.gmra.mxu3 %vm1242_vm3, %v4999_v2  ;;  %v2565_v27 = vadd.f32 %v2453_v58, %v1861_v38  ;;  %v1863_v38 = vadd.f32 %v1862_v18, %v7246_v15  ;;  %v6448_v22 = vpack.c.b16 %v2220_v4, %v2219_v61  ;;  %v2130_v34 = vrot.slane %v5112_v52, 5  ;;  %v5113_v18 = vld [vmem:[%s5298_s25 + $0x104] sm:$0xf]  ;;  %v5114_v15 = vld [vmem:[%s5298_s25 + $0x10c] sm:$0xf] }
 0x23d   : > { %v3001_v53 = vpop.f32.mrf.mxu0 }
 0x23e   : > { %7248 = vst [vmem:[#allocation85_spill] sm:$0xff] %v6448_v22 }
 0x23f   : > { %v2707_v56 = vpop.f32.mrf.mxu3 }
 0x240   : > { %4814 = vmatmul.msk.bf16.gmra.mxu0 %vm1242_vm3, %v7245_v26  ;;  %v2819_v42 = vadd.f32 %v2707_v56, %v2565_v27  ;;  %v1865_v28 = vpop.f32.mrf.mxu1  ;;  %v7249_v26 = vld [vmem:[#allocation26_spill] sm:$0xff] }
 0x242   : > { %v6445_v24 = vadd.f32 %v3001_v53, %v2819_v42  ;;  %v4712_v53 = vrot.slane %v5113_v18, 9  ;;  %v2132_v42 = vrot.slane %v2130_v34, 4  ;;  %v7251_v18 = vld [vmem:[#allocation10_spill] sm:$0xff] }
 0x243   : > { %v2455_v58 = vpop.f32.mrf.mxu2  ;;  %4692 = vmatmul.msk.bf16.gmra.mxu1 %vm1242_vm3, %v4998_v1  ;;  %v1866_v1 = vadd.f32 %v1865_v28, %v7249_v26 }
 0x244   : > { %7247 = vst [vmem:[#allocation24_spill] sm:$0xff] %v6445_v24  ;;  %v2566_v17 = vadd.f32 %v2455_v58, %v1863_v38  ;;  %v2133_v24 = vrot.slane %v5114_v15, 5 }
 0x245   : > { %v3003_v16 = vpop.f32.mrf.mxu0 }
 0x246   : > { %v2134_v52 = vsel %vm5821_vm7, %v2132_v42, %v2133_v24 }
 0x247   : > { %v2709_v27 = vpop.f32.mrf.mxu3 }
 0x248   : > { %v2820_v56 = vadd.f32 %v2709_v27, %v2566_v17  ;;  %4741 = vmatmul.msk.bf16.gmra.mxu2 %vm1242_vm3, %v6448_v22  ;;  %v1867_v54 = vpop.f32.mrf.mxu1  ;;  %v2131_v17 = vsel %vm5821_vm7, %v4712_v53, %v2130_v34  ;;  %v5115_v22 = vld [vmem:[%s5298_s25 + $0x110] sm:$0xf] }
 0x249   : > { %v2221_v28 = vunpack.c.l.b16 %v2131_v17  ;;  %v2136_v35 = vrot.slane %v5115_v22, 5  ;;  %v5001_v17 = vld [vmem:[%s5298_s25 + $0x118] sm:$0xff] }
 0x24a   : > { %v6457_v38 = vadd.f32 %v3003_v16, %v2820_v56  ;;  %v2222_v16 = vunpack.c.l.b16 %v2134_v52  ;;  %v7252_v56 = vld [vmem:[#allocation28_spill] sm:$0xff] }
 0x24b   : > { %v2458_v61 = vpop.f32.mrf.mxu2 }
 0x24c   : > { %7250 = vst [vmem:[#allocation26_spill] sm:$0xff] %v6457_v38  ;;  %4782 = vmatmul.msk.bf16.gmra.mxu3 %vm1242_vm3, %v5000_v14  ;;  %v2567_v4 = vadd.f32 %v2458_v61, %v1866_v1  ;;  %v1868_v1 = vadd.f32 %v1867_v54, %v7252_v56  ;;  %v6470_v53 = vpack.c.b16 %v2222_v16, %v2221_v28  ;;  %v7255_v56 = vld [vmem:[#allocation30_spill] sm:$0xff] }
 0x24d   : > { %v3006_v58 = vpop.f32.mrf.mxu0 }
 0x24e   : > { %7254 = vst [vmem:[#allocation86_spill] sm:$0xff] %v6470_v53 }
 0x24f   : > { %v2712_v27 = vpop.f32.mrf.mxu3 }
 0x250   : > { %4815 = vmatmul.msk.bf16.gmra.mxu0 %vm1242_vm3, %v7251_v18  ;;  %v2821_v15 = vadd.f32 %v2712_v27, %v2567_v4  ;;  %v1870_v26 = vpop.f32.mrf.mxu1  ;;  %v5116_v27 = vld [vmem:[%s5298_s25 + $0x114] sm:$0x1] }
 0x251   : > { %v2139_v54 = vrot.slane %v5116_v27, 5  ;;  %v7258_v27 = vld [vmem:[#allocation33_spill] sm:$0xff] }
 0x252   : > { %v6467_v61 = vadd.f32 %v3006_v58, %v2821_v15  ;;  %v2135_v58 = vrot.slane %v2133_v24, 4  ;;  %v2138_v15 = vrot.slane %v2136_v35, 4 }
 0x253   : > { %v2460_v38 = vpop.f32.mrf.mxu2  ;;  %4693 = vmatmul.msk.bf16.gmra.mxu1 %vm1242_vm3, %v4999_v2 }
 0x254   : > { %7253 = vst [vmem:[#allocation28_spill] sm:$0xff] %v6467_v61  ;;  %v2568_v34 = vadd.f32 %v2460_v38, %v1868_v1  ;;  %v1871_v61 = vadd.f32 %v1870_v26, %v7255_v56  ;;  %v2140_v16 = vsel %vm5821_vm7, %v2138_v15, %v2139_v54  ;;  %v5117_v15 = vld [vmem:[%s5298_s25 + $0x11c] sm:$0xf] }
 0x255   : > { %v3008_v42 = vpop.f32.mrf.mxu0 }
 0x257   : > { %v2714_v18 = vpop.f32.mrf.mxu3 }
 0x258   : > { %v2822_v4 = vadd.f32 %v2714_v18, %v2568_v34  ;;  %4742 = vmatmul.msk.bf16.gmra.mxu2 %vm1242_vm3, %v6470_v53  ;;  %v1872_v52 = vpop.f32.mrf.mxu1  ;;  %v2137_v18 = vsel %vm5821_vm7, %v2135_v58, %v2136_v35  ;;  %v7257_v34 = vld [vmem:[#allocation11_spill] sm:$0xff] }
 0x25a   : > { %v6478_v2 = vadd.f32 %v3008_v42, %v2822_v4  ;;  %v2223_v42 = vunpack.c.l.b16 %v2137_v18  ;;  %v2224_v4 = vunpack.c.l.b16 %v2140_v16  ;;  %v6497_v18 = vld [vmem:[%s5298_s25 + $0x120] sm:$0xff] }
 0x25b   : > { %v2463_v38 = vpop.f32.mrf.mxu2 }
 0x25c   : > { %7256 = vst [vmem:[#allocation30_spill] sm:$0xff] %v6478_v2  ;;  %4783 = vmatmul.msk.bf16.gmra.mxu3 %vm1242_vm3, %v5001_v17  ;;  %v2569_v28 = vadd.f32 %v2463_v38, %v1871_v61  ;;  %v1873_v61 = vadd.f32 %v1872_v52, %v7258_v27  ;;  %v6491_v54 = vpack.c.b16 %v2224_v4, %v2223_v42  ;;  %v5119_v27 = vld [vmem:[%s5298_s25 + $0x120] sm:$0xf] }
 0x25d   : > { %v3011_v22 = vpop.f32.mrf.mxu0 }
 0x25e   : > { %7260 = vst [vmem:[#allocation87_spill] sm:$0xff] %v6491_v54 }
 0x25f   : > { %v2717_v1 = vpop.f32.mrf.mxu3 }
 0x260   : > { %4816 = vmatmul.msk.bf16.gmra.mxu0 %vm1242_vm3, %v7257_v34  ;;  %v2823_v24 = vadd.f32 %v2717_v1, %v2569_v28  ;;  %v1875_v26 = vpop.f32.mrf.mxu1  ;;  %v2143_v28 = vrot.slane %v5117_v15, 5 }
 0x262   : > { %v6488_v56 = vadd.f32 %v3011_v22, %v2823_v24  ;;  %v5118_v22 = vld [vmem:[%s5298_s25 + $0x118] sm:$0xf]  ;;  %v2145_v24 = vrot.slane %v2143_v28, 4 }
 0x263   : > { %v2465_v38 = vpop.f32.mrf.mxu2  ;;  %4694 = vmatmul.msk.bf16.gmra.mxu1 %vm1242_vm3, %v5000_v14  ;;  %v4713_v16 = vrot.slane %v5118_v22, 9  ;;  %v2146_v14 = vrot.slane %v5119_v27, 5 }
 0x264   : > { %7259 = vst [vmem:[#allocation33_spill] sm:$0xff] %v6488_v56  ;;  %v2570_v35 = vadd.f32 %v2465_v38, %v1873_v61  ;;  %v7261_v61 = vld [vmem:[#allocation35_spill] sm:$0xff]  ;;  %v7263_v56 = vld [vmem:[#allocation14_spill] sm:$0xff] }
 0x265   : > { %v3013_v58 = vpop.f32.mrf.mxu0  ;;  %v1876_v42 = vadd.f32 %v1875_v26, %v7261_v61  ;;  %v2147_v22 = vsel %vm5821_vm7, %v2145_v24, %v2146_v14  ;;  %v5120_v24 = vld [vmem:[%s5298_s25 + $0x124] sm:$0xf] }
 0x266   : > { %v2226_v61 = vunpack.c.l.b16 %v2147_v22 }
 0x267   : > { %v2719_v1 = vpop.f32.mrf.mxu3 }
 0x268   : > { %v2824_v2 = vadd.f32 %v2719_v1, %v2570_v35  ;;  %4743 = vmatmul.msk.bf16.gmra.mxu2 %vm1242_vm3, %v6491_v54  ;;  %v1877_v52 = vpop.f32.mrf.mxu1  ;;  %v2144_v1 = vsel %vm5821_vm7, %v4713_v16, %v2143_v28 }
 0x26a   : > { %v6503_v4 = vadd.f32 %v3013_v58, %v2824_v2  ;;  %v2225_v58 = vunpack.c.l.b16 %v2144_v1  ;;  %v5121_v1 = vld [vmem:[%s5298_s25 + $0x128] sm:$0x1] }
 0x26b   : > { %v2468_v38 = vpop.f32.mrf.mxu2  ;;  %v2152_v22 = vrot.slane %v5121_v1, 5 }
 0x26c   : > { %7262 = vst [vmem:[#allocation35_spill] sm:$0xff] %v6503_v4  ;;  %4784 = vmatmul.msk.bf16.gmra.mxu3 %vm1242_vm3, %v6497_v18  ;;  %v2571_v35 = vadd.f32 %v2468_v38, %v1876_v42  ;;  %v7264_v42 = vld [vmem:[#allocation38_spill] sm:$0xff]  ;;  %v6517_v16 = vpack.c.b16 %v2226_v61, %v2225_v58 }
 0x26d   : > { %v3016_v15 = vpop.f32.mrf.mxu0  ;;  %v1878_v38 = vadd.f32 %v1877_v52, %v7264_v42  ;;  %v6524_v52 = vld [vmem:[%s5298_s25 + $0x12c] sm:$0xff] }
 0x26e   : > { %7266 = vst [vmem:[#allocation88_spill] sm:$0xff] %v6517_v16 }
 0x26f   : > { %v2722_v27 = vpop.f32.mrf.mxu3 }
 0x270   : > { %4817 = vmatmul.msk.bf16.gmra.mxu0 %vm1242_vm3, %v7263_v56  ;;  %v2825_v2 = vadd.f32 %v2722_v27, %v2571_v35  ;;  %v1880_v26 = vpop.f32.mrf.mxu1  ;;  %v2149_v56 = vrot.slane %v5120_v24, 5 }
 0x272   : > { %v6514_v4 = vadd.f32 %v3016_v15, %v2825_v2  ;;  %v2148_v2 = vrot.slane %v2146_v14, 4 }
 0x273   : > { %v2470_v34 = vpop.f32.mrf.mxu2  ;;  %4695 = vmatmul.msk.bf16.gmra.mxu1 %vm1242_vm3, %v5001_v17  ;;  %v2151_v17 = vrot.slane %v2149_v56, 4 }
 0x274   : > { %7265 = vst [vmem:[#allocation38_spill] sm:$0xff] %v6514_v4  ;;  %v2572_v28 = vadd.f32 %v2470_v34, %v1878_v38  ;;  %v7267_v34 = vld [vmem:[#allocation40_spill] sm:$0xff] }
 0x275   : > { %v3018_v35 = vpop.f32.mrf.mxu0  ;;  %v1881_v58 = vadd.f32 %v1880_v26, %v7267_v34  ;;  %v2153_v24 = vsel %vm5821_vm7, %v2151_v17, %v2152_v22  ;;  %v427_v34 = vld [vmem:[%s6540_s6 + $0x4] sm:$0xf]  ;;  %v7270_v22 = vld [vmem:[#allocation43_spill] sm:$0xff] }
 0x276   : > { %v2865_v53 = vshrl.u32 %v427_v34, 16 }
 0x277   : > { %v2724_v27 = vpop.f32.mrf.mxu3 }
 0x278   : > { %v2826_v54 = vadd.f32 %v2724_v27, %v2572_v28  ;;  %4744 = vmatmul.msk.bf16.gmra.mxu2 %vm1242_vm3, %v6517_v16  ;;  %v1882_v15 = vpop.f32.mrf.mxu1  ;;  %v2150_v28 = vsel %vm5821_vm7, %v2148_v2, %v2149_v56  ;;  %v7269_v27 = vld [vmem:[#allocation17_spill] sm:$0xff]  ;;  %v426_v2 = vld [vmem:[%s6540_s6] sm:$0xf]  ;;  %v2867_v40 = vrot.slane %v2865_v53, 4 }
 0x279   : > { %v2227_v26 = vunpack.c.l.b16 %v2150_v28  ;;  %v1883_v17 = vadd.f32 %v1882_v15, %v7270_v22  ;;  %v2855_v4 = vshll.u32 %v426_v2, 16 }
 0x27a   : > { %v6529_v42 = vadd.f32 %v3018_v35, %v2826_v54  ;;  %v2228_v35 = vunpack.c.l.b16 %v2153_v24  ;;  %v2852_v24 = vshrl.u32 %v426_v2, 16 }
 0x27b   : > { %v2473_v61 = vpop.f32.mrf.mxu2 }
 0x27c   : > { %7268 = vst [vmem:[#allocation40_spill] sm:$0xff] %v6529_v42  ;;  %4785 = vmatmul.msk.bf16.gmra.mxu3 %vm1242_vm3, %v6524_v52  ;;  %v2573_v38 = vadd.f32 %v2473_v61, %v1881_v58  ;;  %v6551_v42 = vpack.c.b16 %v2228_v35, %v2227_v26  ;;  %v2854_v26 = vrot.slane %v2852_v24, 4  ;;  %v2857_v35 = vrot.slane %v2855_v4, 5 }
 0x27d   : > { %v3021_v14 = vpop.f32.mrf.mxu0  ;;  %v2871_v24 = vshll.u32 %v428_v8, 16 }
 0x27e   : > { %7272 = vst [vmem:[#allocation89_spill] sm:$0xff] %v6551_v42 }
 0x27f   : > { %v2727_v54 = vpop.f32.mrf.mxu3 }
 0x280   : > { %4818 = vmatmul.msk.bf16.gmra.mxu0 %vm1242_vm3, %v7269_v27  ;;  %v2827_v1 = vadd.f32 %v2727_v54, %v2573_v38  ;;  %v1885_v56 = vpop.f32.mrf.mxu1  ;;  %v2861_v27 = vshll.u32 %v427_v34, 16  ;;  %v5122_v54 = vld [vmem:[%s5298_s25 + $0x130] sm:$0xf] }
 0x281   : > { %v2156_v16 = vrot.slane %v5122_v54, 5  ;;  %v7273_v54 = vld [vmem:[#allocation46_spill] sm:$0xff] }
 0x282   : > { %v6547_v58 = vadd.f32 %v3021_v14, %v2827_v1  ;;  %v6557_v1 = vld [vmem:[%s5298_s25 + $0x134] sm:$0xff]  ;;  %v2863_v22 = vrot.slane %v2861_v27, 5  ;;  %v1886_v34 = vadd.f32 %v1885_v56, %v7273_v54 }
 0x283   : > { %v2475_v61 = vpop.f32.mrf.mxu2  ;;  %4696 = vmatmul.msk.bf16.gmra.mxu1 %vm1242_vm3, %v6497_v18 }
 0x284   : > { %7271 = vst [vmem:[#allocation43_spill] sm:$0xff] %v6547_v58  ;;  %v2574_v28 = vadd.f32 %v2475_v61, %v1883_v17  ;;  %v5123_v17 = vld [vmem:[%s5298_s25 + $0x12c] sm:$0xf]  ;;  %v2158_v61 = vrot.slane %v2156_v16, 4  ;;  %v5124_v58 = vld [vmem:[%s5298_s25 + $0x134] sm:$0xf]  ;;  %v2868_v53 = vor.u32 %v2867_v40, %v2863_v22 }
 0x285   : > { %v3023_v38 = vpop.f32.mrf.mxu0  ;;  %v4714_v2 = vrot.slane %v5123_v17, 9  ;;  %v2159_v47 = vrot.slane %v5124_v58, 5  ;;  %v7275_v17 = vld [vmem:[#allocation20_spill] sm:$0xff] }
 0x287   : > { %v2729_v15 = vpop.f32.mrf.mxu3  ;;  %v2157_v27 = vsel %vm5821_vm7, %v4714_v2, %v2156_v16  ;;  %v2160_v58 = vsel %vm5821_vm7, %v2158_v61, %v2159_v47  ;;  %v429_v2 = vld [vmem:[%s6540_s6 + $0xc] sm:$0xf] }
 0x288   : > { %v2828_v14 = vadd.f32 %v2729_v15, %v2574_v28  ;;  %4745 = vmatmul.msk.bf16.gmra.mxu2 %vm1242_vm3, %v6551_v42  ;;  %v1887_v18 = vpop.f32.mrf.mxu1  ;;  %v2858_v42 = vor.u32 %v2857_v35, %v2854_v26  ;;  %v2229_v54 = vunpack.c.l.b16 %v2157_v27  ;;  %v2869_v35 = vrot.slane %v2868_v53, 4 }
 0x28a   : > { %v6563_v28 = vadd.f32 %v3023_v38, %v2828_v14  ;;  %v2859_v26 = vrot.slane %v2858_v42, 4  ;;  %v2875_v42 = vshrl.u32 %v428_v8, 16 }
 0x28b   : > { %v2478_v33 = vpop.f32.mrf.mxu2 }
 0x28c   : > { %7274 = vst [vmem:[#allocation46_spill] sm:$0xff] %v6563_v28  ;;  %4786 = vmatmul.msk.bf16.gmra.mxu3 %vm1242_vm3, %v6557_v1  ;;  %v2575_v15 = vadd.f32 %v2478_v33, %v1886_v34  ;;  %v2230_v33 = vunpack.c.l.b16 %v2160_v58  ;;  %v2873_v34 = vrot.slane %v2871_v24, 5  ;;  %v7276_v28 = vld [vmem:[#allocation48_spill] sm:$0xff]  ;;  %v2864_v58 = vsel %vm5318_vm4, %v2859_v26, %v2863_v22 }
 0x28d   : > { %v3026_v4 = vpop.f32.mrf.mxu0  ;;  %v1888_v16 = vadd.f32 %v1887_v18, %v7276_v28  ;;  %v5125_v18 = vld [vmem:[%s5298_s25 + $0x138] sm:$0xf]  ;;  %v2877_v26 = vrot.slane %v2875_v42, 4 }
 0x28e   : > { %v2874_v24 = vsel %vm5318_vm4, %v2869_v35, %v2873_v34  ;;  %v2162_v28 = vrot.slane %v5125_v18, 5  ;;  %v7280_v18 = vld [vmem:[#allocation52_spill] sm:$0xff] }
 0x28f   : > { %v2732_v56 = vpop.f32.mrf.mxu3  ;;  %v2898_v22 = vunpack.c.l.b16 %v2874_v24 }
 0x290   : > { %4819 = vmatmul.msk.bf16.gmra.mxu0 %vm1242_vm3, %v7275_v17  ;;  %v2829_v38 = vadd.f32 %v2732_v56, %v2575_v15  ;;  %v1890_v14 = vpop.f32.mrf.mxu1  ;;  %v6579_v15 = vpack.c.b16 %v2230_v33, %v2229_v54  ;;  %v2885_v56 = vshrl.u32 %v429_v2, 16  ;;  %v5005_v54 = vld [vmem:[%s6540_s6] sm:$0xff]  ;;  %v2897_v33 = vunpack.c.l.b16 %v2864_v58 }
 0x291   : > { %v1891_v57 = vadd.f32 %v1890_v14, %v7280_v18 }
 0x292   : > { %v6575_v32 = vadd.f32 %v3026_v4, %v2829_v38  ;;  %7278 = vst [vmem:[#allocation90_spill] sm:$0xff] %v6579_v15  ;;  %v2881_v4 = vshll.u32 %v429_v2, 16  ;;  %v5126_v38 = vld [vmem:[%s5298_s25 + $0x13c] sm:$0x1]  ;;  %v2887_v12 = vrot.slane %v2885_v56, 4 }
 0x293   : > { %v2480_v40 = vpop.f32.mrf.mxu2  ;;  %4697 = vmatmul.msk.bf16.gmra.mxu1 %vm1242_vm3, %v6524_v52  ;;  %v430_v2 = vld [vmem:[%s6540_s6 + $0x10] sm:$0x1] }
 0x294   : > { %7277 = vst [vmem:[#allocation48_spill] sm:$0xff] %v6575_v32  ;;  %v2576_v61 = vadd.f32 %v2480_v40, %v1888_v16  ;;  %v2165_v32 = vrot.slane %v5126_v38, 5  ;;  %v2161_v16 = vrot.slane %v2159_v47, 4  ;;  %v2164_v40 = vrot.slane %v2162_v28, 4 }
 0x295   : > { %v3028_v53 = vpop.f32.mrf.mxu0  ;;  %v2883_v35 = vrot.slane %v2881_v4, 5  ;;  %v2891_v4 = vshll.u32 %v430_v2, 16 }
 0x296   : > { %v2163_v42 = vsel %vm5821_vm7, %v2161_v16, %v2162_v28  ;;  %v2166_v47 = vsel %vm5821_vm7, %v2164_v40, %v2165_v32 }
 0x297   : > { %v2734_v52 = vpop.f32.mrf.mxu3  ;;  %v2888_v24 = vor.u32 %v2887_v12, %v2883_v35  ;;  %v2231_v56 = vunpack.c.l.b16 %v2163_v42 }
 0x298   : > { %v2830_v17 = vadd.f32 %v2734_v52, %v2576_v61  ;;  %4746 = vmatmul.msk.bf16.gmra.mxu2 %vm1242_vm3, %v6579_v15  ;;  %v1892_v8 = vpop.f32.mrf.mxu1  ;;  %v6595_v61 = vpack.c.b16 %v2898_v22, %v2897_v33  ;;  %v2878_v15 = vor.u32 %v2877_v26, %v2873_v34  ;;  %v2893_v33 = vrot.slane %v2891_v4, 5  ;;  %v7281_v22 = vld [vmem:[#allocation55_spill] sm:$0xff] }
 0x299   : > { %v2889_v34 = vrot.slane %v2888_v24, 4  ;;  %v1893_v26 = vadd.f32 %v1892_v8, %v7281_v22  ;;  %v5006_v8 = vld [vmem:[%s6540_s6 + $0x8] sm:$0xff] }
 0x29a   : > { %v6592_v31 = vadd.f32 %v3028_v53, %v2830_v17 }
 0x29b   : > { %v2483_v38 = vpop.f32.mrf.mxu2 }
 0x29c   : > { %4787 = vmatmul.msk.bf16.gmra.mxu3 %vm1242_vm3, %v5005_v54  ;;  %v2577_v52 = vadd.f32 %v2483_v38, %v1891_v57  ;;  %v2232_v54 = vunpack.c.l.b16 %v2166_v47  ;;  %v2879_v57 = vrot.slane %v2878_v15, 4  ;;  %v2894_v15 = vsel %vm5318_vm4, %v2889_v34, %v2893_v33  ;;  %v7283_v34 = vld [vmem:[#allocation61_spill] sm:$0xff] }
 0x29d   : > { %v3031_v58 = vpop.f32.mrf.mxu0 }
 0x29e   : > { %v6608_v12 = vpack.c.b16 %v2232_v54, %v2231_v56  ;;  %v2884_v18 = vsel %vm5318_vm4, %v2879_v57, %v2883_v35 }
 0x29f   : > { %v2737_v14 = vpop.f32.mrf.mxu3 }
 0x2a0   : > { %4820 = vmatmul.msk.bf16.gmra.mxu0 %vm1242_vm3, %v6595_v61  ;;  %v2831_v17 = vadd.f32 %v2737_v14, %v2577_v52  ;;  %v1895_v53 = vpop.f32.mrf.mxu1  ;;  %v2899_v52 = vunpack.c.l.b16 %v2884_v18 }
 0x2a2   : > { %v6604_v28 = vadd.f32 %v3031_v58, %v2831_v17  ;;  %v2900_v58 = vunpack.c.l.b16 %v2894_v15  ;;  %v5127_v15 = vld [vmem:[%s5298_s25 + $0x28] sm:$0xff] }
 0x2a3   : > { %v2485_v16 = vpop.f32.mrf.mxu2  ;;  %4698 = vmatmul.msk.bf16.gmra.mxu1 %vm1242_vm3, %v6557_v1  ;;  %v7282_v1 = vld [vmem:[#allocation59_spill] sm:$0xff] }
 0x2a4   : > { %v2578_v32 = vadd.f32 %v2485_v16, %v1893_v26  ;;  %v1896_v47 = vadd.f32 %v1895_v53, %v7282_v1  ;;  %v6621_v35 = vpack.c.b16 %v2900_v58, %v2899_v52  ;;  %v7284_v26 = vld [vmem:[#allocation32_spill] sm:$0xff] }
 0x2a5   : > { %v3033_v40 = vpop.f32.mrf.mxu0 }
 0x2a7   : > { %v2739_v2 = vpop.f32.mrf.mxu3 }
 0x2a8   : > { %v2832_v38 = vadd.f32 %v2739_v2, %v2578_v32  ;;  %4747 = vmatmul.msk.bf16.gmra.mxu2 %vm1242_vm3, %v6608_v12  ;;  %v1897_v42 = vpop.f32.mrf.mxu1 }
 0x2a9   : > { %v1898_v33 = vadd.f32 %v1897_v42, %v7283_v34  ;;  %v7286_v42 = vld [vmem:[#allocation12_spill] sm:$0xff] }
 0x2aa   : > { %v6618_v24 = vadd.f32 %v3033_v40, %v2832_v38  ;;  %v7285_v38 = vld [vmem:[#allocation23_spill] sm:$0xff] }
 0x2ab   : > { %v2488_v4 = vpop.f32.mrf.mxu2 }
 0x2ac   : > { %4788 = vmatmul.msk.bf16.gmra.mxu3 %vm1242_vm3, %v5006_v8  ;;  %v2579_v14 = vadd.f32 %v2488_v4, %v1896_v47 }
 0x2ad   : > { %v3036_v17 = vpop.f32.mrf.mxu0 }
 0x2af   : > { %v2742_v56 = vpop.f32.mrf.mxu3 }
 0x2b0   : > { %4821 = vmatmul.msk.bf16.gmra.mxu0 %vm1242_vm3, %v6621_v35  ;;  %v2833_v54 = vadd.f32 %v2742_v56, %v2579_v14  ;;  %v1900_v57 = vpop.f32.mrf.mxu1  ;;  %v7287_v14 = vld [vmem:[#allocation41_spill] sm:$0xff] }
 0x2b1   : > { %v1901_v8 = vadd.f32 %v1900_v57, %v7285_v38  ;;  %v7290_v38 = vld [vmem:[#allocation27_spill] sm:$0xff] }
 0x2b2   : > { %v6626_v22 = vadd.f32 %v3036_v17, %v2833_v54  ;;  %v7288_v54 = vld [vmem:[#allocation25_spill] sm:$0xff] }
 0x2b3   : > { %v2490_v53 = vpop.f32.mrf.mxu2  ;;  %4824 = vmatmul.msk.bf16.vlgmr.msra.gmra.mxu1 %vm1242_vm3, %v7284_v26 }
 0x2b4   : > { %v2580_v16 = vadd.f32 %v2490_v53, %v1898_v33  ;;  %v7289_v53 = vld [vmem:[#allocation36_spill] sm:$0xff] }
 0x2b5   : > { %v3038_v32 = vpop.f32.mrf.mxu0 }
 0x2b7   : > { %v2744_v40 = vpop.f32.mrf.mxu3 }
 0x2b8   : > { %v2834_v18 = vadd.f32 %v2744_v40, %v2580_v16  ;;  %4865 = vmatmul.msk.bf16.vlgmr.msra.gmra.mxu2 %vm1242_vm3, %v5127_v15  ;;  %v1902_v2 = vpop.f32.mrf.mxu1 }
 0x2b9   : > { %v1903_v34 = vadd.f32 %v1902_v2, %v7288_v54  ;;  %v7291_v2 = vld [vmem:[#allocation15_spill] sm:$0xff] }
 0x2ba   : > { %v6633_v52 = vadd.f32 %v3038_v32, %v2834_v18  ;;  %v5128_v18 = vld [vmem:[%s5298_s25 + $0x30] sm:$0xff] }
 0x2bb   : > { %v2493_v58 = vpop.f32.mrf.mxu2 }
 0x2bc   : > { %4898 = vmatmul.msk.bf16.vlgmr.msra.gmra.mxu3 %vm1242_vm3, %v7286_v42  ;;  %v2581_v1 = vadd.f32 %v2493_v58, %v1901_v8 }
 0x2bd   : > { %v3041_v47 = vpop.f32.mrf.mxu0 }
 0x2bf   : > { %v2747_v4 = vpop.f32.mrf.mxu3 }
 0x2c0   : > { %4932 = vmatmul.msk.bf16.vlgmr.msra.gmra.mxu0 %vm1242_vm3, %v7287_v14  ;;  %v2835_v17 = vadd.f32 %v2747_v4, %v2581_v1  ;;  %v1905_v56 = vpop.f32.mrf.mxu1 }
 0x2c1   : > { %v1906_v8 = vadd.f32 %v1905_v56, %v7290_v38  ;;  %v5129_v38 = vld [vmem:[%s5298_s25 + $0x3c] sm:$0xff] }
 0x2c2   : > { %v6640_v33 = vadd.f32 %v3041_v47, %v2835_v17  ;;  %v7292_v17 = vld [vmem:[#allocation45_spill] sm:$0xff] }
 0x2c3   : > { %v2495_v57 = vpop.f32.mrf.mxu2  ;;  %4825 = vmatmul.msk.bf16.gmra.mxu1 %vm1242_vm3, %v7289_v53 }
 0x2c4   : > { %v2582_v26 = vadd.f32 %v2495_v57, %v1903_v34  ;;  %v7293_v57 = vld [vmem:[#allocation29_spill] sm:$0xff] }
 0x2c5   : > { %v3043_v16 = vpop.f32.mrf.mxu0 }
 0x2c7   : > { %v2749_v32 = vpop.f32.mrf.mxu3 }
 0x2c8   : > { %v2836_v40 = vadd.f32 %v2749_v32, %v2582_v26  ;;  %4866 = vmatmul.msk.bf16.gmra.mxu2 %vm1242_vm3, %v5128_v18  ;;  %v1907_v15 = vpop.f32.mrf.mxu1 }
 0x2c9   : > { %v1908_v53 = vadd.f32 %v1907_v15, %v7293_v57  ;;  %v7297_v15 = vld [vmem:[#allocation18_spill] sm:$0xff] }
 0x2ca   : > { %v6647_v58 = vadd.f32 %v3043_v16, %v2836_v40  ;;  %v7298_v57 = vld [vmem:[#allocation50_spill] sm:$0xff] }
 0x2cb   : > { %v2498_v42 = vpop.f32.mrf.mxu2 }
 0x2cc   : > { %4899 = vmatmul.msk.bf16.gmra.mxu3 %vm1242_vm3, %v7291_v2  ;;  %v2583_v1 = vadd.f32 %v2498_v42, %v1906_v8  ;;  %v7295_v42 = vld [vmem:[#allocation31_spill] sm:$0xff] }
 0x2cd   : > { %v3046_v47 = vpop.f32.mrf.mxu0 }
 0x2cf   : > { %v2752_v4 = vpop.f32.mrf.mxu3 }
 0x2d0   : > { %4933 = vmatmul.msk.bf16.gmra.mxu0 %vm1242_vm3, %v7292_v17  ;;  %v2837_v54 = vadd.f32 %v2752_v4, %v2583_v1  ;;  %v1910_v34 = vpop.f32.mrf.mxu1 }
 0x2d1   : > { %v1911_v2 = vadd.f32 %v1910_v34, %v7295_v42 }
 0x2d2   : > { %v6654_v26 = vadd.f32 %v3046_v47, %v2837_v54 }
 0x2d3   : > { %v2500_v56 = vpop.f32.mrf.mxu2  ;;  %4826 = vmatmul.msk.bf16.gmra.mxu1 %vm1242_vm3, %v7287_v14 }
 0x2d4   : > { %7294 = vst [vmem:[#allocation2_spill] sm:$0xff] %v6654_v26  ;;  %v2584_v16 = vadd.f32 %v2500_v56, %v1908_v53 }
 0x2d5   : > { %v3048_v32 = vpop.f32.mrf.mxu0 }
 0x2d7   : > { %v2754_v40 = vpop.f32.mrf.mxu3 }
 0x2d8   : > { %v2838_v18 = vadd.f32 %v2754_v40, %v2584_v16  ;;  %4867 = vmatmul.msk.bf16.gmra.mxu2 %vm1242_vm3, %v5129_v38  ;;  %v1912_v8 = vpop.f32.mrf.mxu1  ;;  %v7299_v16 = vld [vmem:[#allocation34_spill] sm:$0xff] }
 0x2d9   : > { %v1913_v40 = vadd.f32 %v1912_v8, %v7299_v16  ;;  %v7303_v8 = vld [vmem:[#allocation22_spill] sm:$0xff]  ;;  %v7304_v16 = vld [vmem:[#allocation56_spill] sm:$0xff] }
 0x2da   : > { %v6661_v1 = vadd.f32 %v3048_v32, %v2838_v18 }
 0x2db   : > { %v2503_v4 = vpop.f32.mrf.mxu2 }
 0x2dc   : > { %7296 = vst [vmem:[#allocation52_spill] sm:$0xff] %v6661_v1  ;;  %4900 = vmatmul.msk.bf16.gmra.mxu3 %vm1242_vm3, %v7297_v15  ;;  %v2585_v47 = vadd.f32 %v2503_v4, %v1911_v2  ;;  %v5130_v2 = vld [vmem:[%s5298_s25 + $0x44] sm:$0xff]  ;;  %v7301_v1 = vld [vmem:[#allocation37_spill] sm:$0xff] }
 0x2dd   : > { %v3051_v54 = vpop.f32.mrf.mxu0 }
 0x2df   : > { %v2757_v14 = vpop.f32.mrf.mxu3 }
 0x2e0   : > { %4934 = vmatmul.msk.bf16.gmra.mxu0 %vm1242_vm3, %v7298_v57  ;;  %v2839_v53 = vadd.f32 %v2757_v14, %v2585_v47  ;;  %v1915_v56 = vpop.f32.mrf.mxu1 }
 0x2e1   : > { %v1916_v26 = vadd.f32 %v1915_v56, %v7301_v1 }
 0x2e2   : > { %v6668_v38 = vadd.f32 %v3051_v54, %v2839_v53 }
 0x2e3   : > { %v2505_v34 = vpop.f32.mrf.mxu2  ;;  %4827 = vmatmul.msk.bf16.gmra.mxu1 %vm1242_vm3, %v7292_v17 }
 0x2e4   : > { %7300 = vst [vmem:[#allocation55_spill] sm:$0xff] %v6668_v38  ;;  %v2586_v32 = vadd.f32 %v2505_v34, %v1913_v40 }
 0x2e5   : > { %v3053_v18 = vpop.f32.mrf.mxu0 }
 0x2e7   : > { %v2759_v42 = vpop.f32.mrf.mxu3 }
 0x2e8   : > { %v2840_v15 = vadd.f32 %v2759_v42, %v2586_v32  ;;  %4868 = vmatmul.msk.bf16.gmra.mxu2 %vm1242_vm3, %v5130_v2  ;;  %v1917_v4 = vpop.f32.mrf.mxu1  ;;  %v7305_v32 = vld [vmem:[#allocation39_spill] sm:$0xff] }
 0x2e9   : > { %v1918_v42 = vadd.f32 %v1917_v4, %v7305_v32  ;;  %v7309_v4 = vld [vmem:[#allocation3_spill] sm:$0xff]  ;;  %v7310_v32 = vld [vmem:[#allocation62_spill] sm:$0xff] }
 0x2ea   : > { %v6675_v47 = vadd.f32 %v3053_v18, %v2840_v15 }
 0x2eb   : > { %v2508_v14 = vpop.f32.mrf.mxu2 }
 0x2ec   : > { %7302 = vst [vmem:[#allocation59_spill] sm:$0xff] %v6675_v47  ;;  %4901 = vmatmul.msk.bf16.gmra.mxu3 %vm1242_vm3, %v7303_v8  ;;  %v2587_v54 = vadd.f32 %v2508_v14, %v1916_v26  ;;  %v5131_v26 = vld [vmem:[%s5298_s25 + $0x50] sm:$0xff]  ;;  %v7307_v47 = vld [vmem:[#allocation42_spill] sm:$0xff] }
 0x2ed   : > { %v3056_v53 = vpop.f32.mrf.mxu0 }
 0x2ef   : > { %v2762_v17 = vpop.f32.mrf.mxu3 }
 0x2f0   : > { %4935 = vmatmul.msk.bf16.gmra.mxu0 %vm1242_vm3, %v7304_v16  ;;  %v2841_v40 = vadd.f32 %v2762_v17, %v2587_v54  ;;  %v1920_v34 = vpop.f32.mrf.mxu1 }
 0x2f1   : > { %v1921_v38 = vadd.f32 %v1920_v34, %v7307_v47 }
 0x2f2   : > { %v6682_v2 = vadd.f32 %v3056_v53, %v2841_v40 }
 0x2f3   : > { %v2510_v1 = vpop.f32.mrf.mxu2  ;;  %4828 = vmatmul.msk.bf16.gmra.mxu1 %vm1242_vm3, %v7298_v57 }
 0x2f4   : > { %7306 = vst [vmem:[#allocation61_spill] sm:$0xff] %v6682_v2  ;;  %v2588_v56 = vadd.f32 %v2510_v1, %v1918_v42 }
 0x2f5   : > { %v3058_v18 = vpop.f32.mrf.mxu0 }
 0x2f7   : > { %v2764_v15 = vpop.f32.mrf.mxu3 }
 0x2f8   : > { %v2842_v8 = vadd.f32 %v2764_v15, %v2588_v56  ;;  %4869 = vmatmul.msk.bf16.gmra.mxu2 %vm1242_vm3, %v5131_v26  ;;  %v1922_v14 = vpop.f32.mrf.mxu1  ;;  %v7311_v56 = vld [vmem:[#allocation44_spill] sm:$0xff] }
 0x2f9   : > { %v1923_v15 = vadd.f32 %v1922_v14, %v7311_v56  ;;  %v7314_v14 = vld [vmem:[#allocation5_spill] sm:$0xff] }
 0x2fa   : > { %v6689_v54 = vadd.f32 %v3058_v18, %v2842_v8 }
 0x2fb   : > { %v2513_v17 = vpop.f32.mrf.mxu2 }
 0x2fc   : > { %7308 = vst [vmem:[#allocation32_spill] sm:$0xff] %v6689_v54  ;;  %4902 = vmatmul.msk.bf16.gmra.mxu3 %vm1242_vm3, %v7309_v4  ;;  %v2589_v53 = vadd.f32 %v2513_v17, %v1921_v38  ;;  %v5132_v38 = vld [vmem:[%s5298_s25 + $0x58] sm:$0xff]  ;;  %v7312_v54 = vld [vmem:[#allocation47_spill] sm:$0xff] }
 0x2fd   : > { %v3061_v40 = vpop.f32.mrf.mxu0 }
 0x2ff   : > { %v2767_v57 = vpop.f32.mrf.mxu3 }
 0x300   : > { %4936 = vmatmul.msk.bf16.gmra.mxu0 %vm1242_vm3, %v7310_v32  ;;  %v2843_v42 = vadd.f32 %v2767_v57, %v2589_v53  ;;  %v1925_v1 = vpop.f32.mrf.mxu1 }
 0x301   : > { %v1926_v2 = vadd.f32 %v1925_v1, %v7312_v54 }
 0x302   : > { %v6696_v26 = vadd.f32 %v3061_v40, %v2843_v42 }
 0x303   : > { %v2515_v47 = vpop.f32.mrf.mxu2  ;;  %4829 = vmatmul.msk.bf16.gmra.mxu1 %vm1242_vm3, %v7304_v16 }
 0x304   : > { %v2590_v34 = vadd.f32 %v2515_v47, %v1923_v15  ;;  %v7315_v47 = vld [vmem:[#allocation49_spill] sm:$0xff] }
 0x305   : > { %v3063_v18 = vpop.f32.mrf.mxu0 }
 0x307   : > { %v2769_v8 = vpop.f32.mrf.mxu3 }
 0x308   : > { %v2844_v4 = vadd.f32 %v2769_v8, %v2590_v34  ;;  %4870 = vmatmul.msk.bf16.gmra.mxu2 %vm1242_vm3, %v5132_v38  ;;  %v1927_v17 = vpop.f32.mrf.mxu1 }
 0x309   : > { %v1928_v34 = vadd.f32 %v1927_v17, %v7315_v47  ;;  %v7318_v17 = vld [vmem:[#allocation7_spill] sm:$0xff] }
 0x30a   : > { %v6703_v53 = vadd.f32 %v3063_v18, %v2844_v4 }
 0x30b   : > { %v2518_v57 = vpop.f32.mrf.mxu2 }
 0x30c   : > { %7313 = vst [vmem:[#allocation23_spill] sm:$0xff] %v6703_v53  ;;  %4903 = vmatmul.msk.bf16.gmra.mxu3 %vm1242_vm3, %v7314_v14  ;;  %v2591_v40 = vadd.f32 %v2518_v57, %v1926_v2  ;;  %v5133_v2 = vld [vmem:[%s5298_s25 + $0x64] sm:$0xff]  ;;  %v7316_v14 = vld [vmem:[#allocation53_spill] sm:$0xff] }
 0x30d   : > { %v3066_v42 = vpop.f32.mrf.mxu0 }
 0x30f   : > { %v2772_v16 = vpop.f32.mrf.mxu3 }
 0x310   : > { %4937 = vmatmul.msk.bf16.gmra.mxu0 %vm1242_vm3, %v6104_v51  ;;  %v2845_v56 = vadd.f32 %v2772_v16, %v2591_v40  ;;  %v1930_v15 = vpop.f32.mrf.mxu1 }
 0x311   : > { %v1931_v53 = vadd.f32 %v1930_v15, %v7316_v14 }
 0x312   : > { %v6710_v8 = vadd.f32 %v3066_v42, %v2845_v56 }
 0x313   : > { %v2520_v54 = vpop.f32.mrf.mxu2  ;;  %4830 = vmatmul.msk.bf16.gmra.mxu1 %vm1242_vm3, %v7310_v32 }
 0x314   : > { %v2592_v1 = vadd.f32 %v2520_v54, %v1928_v34  ;;  %v7319_v54 = vld [vmem:[#allocation57_spill] sm:$0xff] }
 0x315   : > { %v3068_v18 = vpop.f32.mrf.mxu0 }
 0x317   : > { %v2774_v4 = vpop.f32.mrf.mxu3 }
 0x318   : > { %v2846_v38 = vadd.f32 %v2774_v4, %v2592_v1  ;;  %4871 = vmatmul.msk.bf16.gmra.mxu2 %vm1242_vm3, %v5133_v2  ;;  %v1932_v57 = vpop.f32.mrf.mxu1 }
 0x319   : > { %v1933_v1 = vadd.f32 %v1932_v57, %v7319_v54  ;;  %v7322_v57 = vld [vmem:[#allocation9_spill] sm:$0xff] }
 0x31a   : > { %v6717_v40 = vadd.f32 %v3068_v18, %v2846_v38 }
 0x31b   : > { %v2523_v16 = vpop.f32.mrf.mxu2 }
 0x31c   : > { %7317 = vst [vmem:[#allocation12_spill] sm:$0xff] %v6717_v40  ;;  %4904 = vmatmul.msk.bf16.gmra.mxu3 %vm1242_vm3, %v7318_v17  ;;  %v2593_v42 = vadd.f32 %v2523_v16, %v1931_v53  ;;  %v5134_v53 = vld [vmem:[%s5298_s25 + $0x6c] sm:$0xff] }
 0x31d   : > { %v3071_v56 = vpop.f32.mrf.mxu0  ;;  %v7320_v17 = vld [vmem:[#allocation60_spill] sm:$0xff] }
 0x31f   : > { %v2777_v32 = vpop.f32.mrf.mxu3 }
 0x320   : > { %4938 = vmatmul.msk.bf16.gmra.mxu0 %vm1242_vm3, %v6126_v43  ;;  %v2847_v47 = vadd.f32 %v2777_v32, %v2593_v42  ;;  %v1935_v34 = vpop.f32.mrf.mxu1 }
 0x321   : > { %v1936_v40 = vadd.f32 %v1935_v34, %v7320_v17 }
 0x322   : > { %v6724_v4 = vadd.f32 %v3071_v56, %v2847_v47 }
 0x323   : > { %v2525_v15 = vpop.f32.mrf.mxu2  ;;  %4831 = vmatmul.msk.bf16.gmra.mxu1 %vm1242_vm3, %v6104_v51 }
 0x324   : > { %v2594_v18 = vadd.f32 %v2525_v15, %v1933_v1  ;;  %v7323_v15 = vld [vmem:[#allocation63_spill] sm:$0xff] }
 0x325   : > { %v3073_v38 = vpop.f32.mrf.mxu0 }
 0x327   : > { %v2779_v2 = vpop.f32.mrf.mxu3 }
 0x328   : > { %v2848_v14 = vadd.f32 %v2779_v2, %v2594_v18  ;;  %4872 = vmatmul.msk.bf16.gmra.mxu2 %vm1242_vm3, %v5134_v53  ;;  %v1937_v16 = vpop.f32.mrf.mxu1 }
 0x329   : > { %v1938_v18 = vadd.f32 %v1937_v16, %v7323_v15 }
 0x32a   : > { %v6731_v42 = vadd.f32 %v3073_v38, %v2848_v14 }
 0x32b   : > { %v2528_v32 = vpop.f32.mrf.mxu2 }
 0x32c   : > { %7321 = vst [vmem:[#allocation41_spill] sm:$0xff] %v6731_v42  ;;  %4905 = vmatmul.msk.bf16.gmra.mxu3 %vm1242_vm3, %v7322_v57  ;;  %v2595_v56 = vadd.f32 %v2528_v32, %v1936_v40  ;;  %v5135_v40 = vld [vmem:[%s5298_s25 + $0x78] sm:$0xff]  ;;  %v7324_v57 = vld [vmem:[#allocation64_spill] sm:$0xff] }
 0x32d   : > { %v3076_v47 = vpop.f32.mrf.mxu0 }
 0x32f   : > { %v2782_v51 = vpop.f32.mrf.mxu3 }
 0x330   : > { %4939 = vmatmul.msk.bf16.gmra.mxu0 %vm1242_vm3, %v6147_v0  ;;  %v2849_v54 = vadd.f32 %v2782_v51, %v2595_v56  ;;  %v3185_v1 = vpop.f32.mrf.mxu1 }
 0x331   : > { %v3345_v42 = vadd.f32 %v3185_v1, %v7324_v57 }
 0x332   : > { %v6738_v2 = vadd.f32 %v3076_v47, %v2849_v54 }
 0x333   : > { %v2530_v34 = vpop.f32.mrf.mxu2  ;;  %4832 = vmatmul.msk.bf16.gmra.mxu1 %vm1242_vm3, %v6126_v43 }
 0x334   : > { %v2596_v38 = vadd.f32 %v2530_v34, %v1938_v18  ;;  %v7325_v18 = vld [vmem:[#allocation65_spill] sm:$0xff] }
 0x335   : > { %v3078_v14 = vpop.f32.mrf.mxu0 }
 0x337   : > { %v2784_v53 = vpop.f32.mrf.mxu3 }
 0x338   : > { %v2850_v17 = vadd.f32 %v2784_v53, %v2596_v38  ;;  %4873 = vmatmul.msk.bf16.gmra.mxu2 %vm1242_vm3, %v5135_v40  ;;  %v3187_v32 = vpop.f32.mrf.mxu1 }
 0x339   : > { %v3346_v34 = vadd.f32 %v3187_v32, %v7325_v18 }
 0x33a   : > { %v6745_v56 = vadd.f32 %v3078_v14, %v2850_v17 }
 0x33b   : > { %v3439_v51 = vpop.f32.mrf.mxu2 }
 0x33c   : > { %4906 = vmatmul.msk.bf16.gmra.mxu3 %vm1242_vm3, %v5570_v60  ;;  %v3599_v16 = vadd.f32 %v3439_v51, %v3345_v42  ;;  %v5136_v42 = vld [vmem:[%s5298_s25 + $0x80] sm:$0xff] }
 0x33d   : > { %v3997_v47 = vpop.f32.mrf.mxu0 }
 0x33f   : > { %v3733_v43 = vpop.f32.mrf.mxu3 }
 0x340   : > { %4940 = vmatmul.msk.bf16.gmra.mxu0 %vm1242_vm3, %v6169_v55  ;;  %v3893_v54 = vadd.f32 %v3733_v43, %v3599_v16  ;;  %v3190_v15 = vpop.f32.mrf.mxu1 }
 0x341   : > { %v3347_v57 = vadd.f32 %v3190_v15, %v6123_v48 }
 0x342   : > { %v4157_v38 = vadd.f32 %v3997_v47, %v3893_v54 }
 0x343   : > { %v3441_v53 = vpop.f32.mrf.mxu2  ;;  %4833 = vmatmul.msk.bf16.gmra.mxu1 %vm1242_vm3, %v6147_v0 }
 0x344   : > { %4221 = vxpose.xlu0.b32.start [1/16] (narrow) %v4157_v38, 8  ;;  %v3600_v1 = vadd.f32 %v3441_v53, %v3346_v34 }
 0x345   : > { %v3999_v14 = vpop.f32.mrf.mxu0 }
 0x347   : > { %v3735_v60 = vpop.f32.mrf.mxu3 }
 0x348   : > { %v3894_v17 = vadd.f32 %v3735_v60, %v3600_v1  ;;  %4874 = vmatmul.msk.bf16.gmra.mxu2 %vm1242_vm3, %v5136_v42  ;;  %v3192_v40 = vpop.f32.mrf.mxu1  ;;  %v5137_v1 = vld [vmem:[%s5298_s25 + $0x8c] sm:$0xff]  ;;  %v7326_v60 = vld [vmem:[#allocation66_spill] sm:$0xff] }
 0x349   : > { %v3348_v18 = vadd.f32 %v3192_v40, %v6134_v13 }
 0x34a   : > { %v4158_v51 = vadd.f32 %v3999_v14, %v3894_v17 }
 0x34b   : > { %v3444_v16 = vpop.f32.mrf.mxu2 }
 0x34c   : > { %4907 = vmatmul.msk.bf16.gmra.mxu3 %vm1242_vm3, %v5633_v20  ;;  %4222 = vxpose.xlu0.b32.cont [2/16] (narrow) %v4158_v51, 8  ;;  %v3601_v32 = vadd.f32 %v3444_v16, %v3347_v57 }
 0x34d   : > { %v4002_v0 = vpop.f32.mrf.mxu0 }
 0x34f   : > { %v3738_v47 = vpop.f32.mrf.mxu3 }
 0x350   : > { %4941 = vmatmul.msk.bf16.gmra.mxu0 %vm1242_vm3, %v6190_v59  ;;  %v3895_v43 = vadd.f32 %v3738_v47, %v3601_v32  ;;  %v3195_v54 = vpop.f32.mrf.mxu1  ;;  %v7327_v32 = vld [vmem:[#allocation67_spill] sm:$0xff] }
 0x351   : > { %v3349_v17 = vadd.f32 %v3195_v54, %v7326_v60 }
 0x352   : > { %v4159_v34 = vadd.f32 %v4002_v0, %v3895_v43 }
 0x353   : > { %v3446_v38 = vpop.f32.mrf.mxu2  ;;  %4834 = vmatmul.msk.bf16.gmra.mxu1 %vm1242_vm3, %v6169_v55 }
 0x354   : > { %4223 = vxpose.xlu0.b32.cont [3/16] (narrow) %v4159_v34, 8  ;;  %v3602_v48 = vadd.f32 %v3446_v38, %v3348_v18  ;;  %v5138_v38 = vld [vmem:[%s5298_s25 + $0x94] sm:$0xff] }
 0x355   : > { %v4004_v20 = vpop.f32.mrf.mxu0 }
 0x357   : > { %v3740_v15 = vpop.f32.mrf.mxu3 }
 0x358   : > { %v3896_v53 = vadd.f32 %v3740_v15, %v3602_v48  ;;  %4875 = vmatmul.msk.bf16.gmra.mxu2 %vm1242_vm3, %v5137_v1  ;;  %v3197_v14 = vpop.f32.mrf.mxu1 }
 0x359   : > { %v3350_v0 = vadd.f32 %v3197_v14, %v7327_v32  ;;  %v7328_v32 = vld [vmem:[#allocation68_spill] sm:$0xff] }
 0x35a   : > { %v4160_v42 = vadd.f32 %v4004_v20, %v3896_v53 }
 0x35b   : > { %v3449_v57 = vpop.f32.mrf.mxu2 }
 0x35c   : > { %4908 = vmatmul.msk.bf16.gmra.mxu3 %vm1242_vm3, %v5700_v23  ;;  %4224 = vxpose.xlu0.b32.cont [4/16] (narrow) %v4160_v42, 8  ;;  %v3603_v13 = vadd.f32 %v3449_v57, %v3349_v17 }
 0x35d   : > { %v4007_v55 = vpop.f32.mrf.mxu0 }
 0x35f   : > { %v3743_v40 = vpop.f32.mrf.mxu3 }
 0x360   : > { %4942 = vmatmul.msk.bf16.gmra.mxu0 %vm1242_vm3, %v6212_v46  ;;  %v3897_v51 = vadd.f32 %v3743_v40, %v3603_v13  ;;  %v3200_v16 = vpop.f32.mrf.mxu1 }
 0x361   : > { %v3351_v20 = vadd.f32 %v3200_v16, %v6166_v49 }
 0x362   : > { %v4161_v47 = vadd.f32 %v4007_v55, %v3897_v51  ;;  %v5139_v51 = vld [vmem:[%s5298_s25 + $0xa0] sm:$0xff] }
 0x363   : > { %v3451_v43 = vpop.f32.mrf.mxu2  ;;  %4835 = vmatmul.msk.bf16.gmra.mxu1 %vm1242_vm3, %v6190_v59 }
 0x364   : > { %4225 = vxpose.xlu0.b32.cont [5/16] (narrow) %v4161_v47, 8  ;;  %v3604_v54 = vadd.f32 %v3451_v43, %v3350_v0 }
 0x365   : > { %v4009_v23 = vpop.f32.mrf.mxu0 }
 0x367   : > { %v3745_v18 = vpop.f32.mrf.mxu3 }
 0x368   : > { %v3898_v34 = vadd.f32 %v3745_v18, %v3604_v54  ;;  %4876 = vmatmul.msk.bf16.gmra.mxu2 %vm1242_vm3, %v5138_v38  ;;  %v3202_v48 = vpop.f32.mrf.mxu1 }
 0x369   : > { %v3352_v42 = vadd.f32 %v3202_v48, %v6177_v6 }
 0x36a   : > { %v4162_v15 = vadd.f32 %v4009_v23, %v3898_v34  ;;  %v7329_v34 = vld [vmem:[#allocation69_spill] sm:$0xff] }
 0x36b   : > { %v3454_v53 = vpop.f32.mrf.mxu2 }
 0x36c   : > { %4909 = vmatmul.msk.bf16.gmra.mxu3 %vm1242_vm3, %v5773_v30  ;;  %4226 = vxpose.xlu0.b32.cont [6/16] (narrow) %v4162_v15, 8  ;;  %v3605_v1 = vadd.f32 %v3454_v53, %v3351_v20 }
 0x36d   : > { %v4012_v59 = vpop.f32.mrf.mxu0 }
 0x36f   : > { %v3748_v14 = vpop.f32.mrf.mxu3 }
 0x370   : > { %4943 = vmatmul.msk.bf16.gmra.mxu0 %vm1242_vm3, %v6233_v45  ;;  %v3899_v60 = vadd.f32 %v3748_v14, %v3605_v1  ;;  %v3205_v17 = vpop.f32.mrf.mxu1 }
 0x371   : > { %v3353_v0 = vadd.f32 %v3205_v17, %v7328_v32 }
 0x372   : > { %v4163_v57 = vadd.f32 %v4012_v59, %v3899_v60  ;;  %v5140_v59 = vld [vmem:[%s5298_s25 + $0xa8] sm:$0xff] }
 0x373   : > { %v3456_v13 = vpop.f32.mrf.mxu2  ;;  %4836 = vmatmul.msk.bf16.gmra.mxu1 %vm1242_vm3, %v6212_v46 }
 0x374   : > { %4227 = vxpose.xlu0.b32.cont [7/16] (narrow) %v4163_v57, 8  ;;  %v3606_v49 = vadd.f32 %v3456_v13, %v3352_v42 }
 0x375   : > { %v4014_v30 = vpop.f32.mrf.mxu0 }
 0x377   : > { %v3750_v55 = vpop.f32.mrf.mxu3 }
 0x378   : > { %v3900_v40 = vadd.f32 %v3750_v55, %v3606_v49  ;;  %4877 = vmatmul.msk.bf16.gmra.mxu2 %vm1242_vm3, %v5139_v51  ;;  %v3207_v16 = vpop.f32.mrf.mxu1 }
 0x379   : > { %v3354_v38 = vadd.f32 %v3207_v16, %v7329_v34 }
 0x37a   : > { %v4164_v47 = vadd.f32 %v4014_v30, %v3900_v40 }
 0x37b   : > { %v3459_v43 = vpop.f32.mrf.mxu2 }
 0x37c   : > { %4910 = vmatmul.msk.bf16.gmra.mxu3 %vm1242_vm3, %v5352_v19  ;;  %4228 = vxpose.xlu0.b32.cont [8/16] (narrow) %v4164_v47, 8  ;;  %v3607_v6 = vadd.f32 %v3459_v43, %v3353_v0  ;;  %v5141_v0 = vld [vmem:[%s5298_s25 + $0xb4] sm:$0xff] }
 0x37d   : > { %v4017_v46 = vpop.f32.mrf.mxu0 }
 0x37f   : > { %v3753_v54 = vpop.f32.mrf.mxu3 }
 0x380   : > { %4944 = vmatmul.msk.bf16.gmra.mxu0 %vm1242_vm3, %v6255_v9  ;;  %v3901_v23 = vadd.f32 %v3753_v54, %v3607_v6  ;;  %v3210_v18 = vpop.f32.mrf.mxu1 }
 0x381   : > { %v3355_v60 = vadd.f32 %v3210_v18, %v6209_v21 }
 0x382   : > { %v4165_v48 = vadd.f32 %v4017_v46, %v3901_v23 }
 0x383   : > { %v3461_v20 = vpop.f32.mrf.mxu2  ;;  %4837 = vmatmul.msk.bf16.gmra.mxu1 %vm1242_vm3, %v6233_v45 }
 0x384   : > { %4229 = vxpose.xlu0.b32.cont [9/16] (narrow) %v4165_v48, 8  ;;  %v3608_v15 = vadd.f32 %v3461_v20, %v3354_v38 }
 0x385   : > { %v4019_v19 = vpop.f32.mrf.mxu0 }
 0x387   : > { %v3755_v53 = vpop.f32.mrf.mxu3 }
 0x388   : > { %v3902_v1 = vadd.f32 %v3755_v53, %v3608_v15  ;;  %4878 = vmatmul.msk.bf16.gmra.mxu2 %vm1242_vm3, %v5140_v59  ;;  %v3212_v14 = vpop.f32.mrf.mxu1 }
 0x389   : > { %v3356_v55 = vadd.f32 %v3212_v14, %v6220_v39 }
 0x38a   : > { %v4166_v17 = vadd.f32 %v4019_v19, %v3902_v1  ;;  %v5142_v19 = vld [vmem:[%s5298_s25 + $0xbc] sm:$0xff] }
 0x38b   : > { %v3464_v42 = vpop.f32.mrf.mxu2 }
 0x38c   : > { %4911 = vmatmul.msk.bf16.gmra.mxu3 %vm1242_vm3, %v5399_v37  ;;  %4230 = vxpose.xlu0.b32.cont [10/16] (narrow) %v4166_v17, 8  ;;  %v3609_v57 = vadd.f32 %v3464_v42, %v3355_v60 }
 0x38d   : > { %v4022_v45 = vpop.f32.mrf.mxu0 }
 0x38f   : > { %v3758_v13 = vpop.f32.mrf.mxu3 }
 0x390   : > { %4945 = vmatmul.msk.bf16.gmra.mxu0 %vm1242_vm3, %v6276_v5  ;;  %v3903_v49 = vadd.f32 %v3758_v13, %v3609_v57  ;;  %v3215_v30 = vpop.f32.mrf.mxu1 }
 0x391   : > { %v3357_v43 = vadd.f32 %v3215_v30, %v6230_v29 }
 0x392   : > { %v4167_v40 = vadd.f32 %v4022_v45, %v3903_v49 }
 0x393   : > { %v3466_v51 = vpop.f32.mrf.mxu2  ;;  %4838 = vmatmul.msk.bf16.gmra.mxu1 %vm1242_vm3, %v6255_v9 }
 0x394   : > { %4231 = vxpose.xlu0.b32.cont [11/16] (narrow) %v4167_v40, 8  ;;  %v3610_v21 = vadd.f32 %v3466_v51, %v3356_v55  ;;  %v5143_v55 = vld [vmem:[%s5298_s25 + $0xc8] sm:$0xff]  ;;  %v7330_v51 = vld [vmem:[#allocation70_spill] sm:$0xff] }
 0x395   : > { %v4024_v37 = vpop.f32.mrf.mxu0 }
 0x397   : > { %v3760_v16 = vpop.f32.mrf.mxu3 }
 0x398   : > { %v3904_v32 = vadd.f32 %v3760_v16, %v3610_v21  ;;  %4879 = vmatmul.msk.bf16.gmra.mxu2 %vm1242_vm3, %v5141_v0  ;;  %v3217_v47 = vpop.f32.mrf.mxu1 }
 0x399   : > { %v3358_v34 = vadd.f32 %v3217_v47, %v6242_v44 }
 0x39a   : > { %v4168_v6 = vadd.f32 %v4024_v37, %v3904_v32 }
 0x39b   : > { %v3469_v46 = vpop.f32.mrf.mxu2 }
 0x39c   : > { %4912 = vmatmul.msk.bf16.gmra.mxu3 %vm1242_vm3, %v5462_v11  ;;  %4232 = vxpose.xlu0.b32.cont [12/16] (narrow) %v4168_v6, 8  ;;  %v3611_v39 = vadd.f32 %v3469_v46, %v3357_v43  ;;  %v7331_v43 = vld [vmem:[#allocation71_spill] sm:$0xff] }
 0x39d   : > { %v4027_v9 = vpop.f32.mrf.mxu0 }
 0x39f   : > { %v3763_v54 = vpop.f32.mrf.mxu3 }
 0x3a0   : > { %4946 = vmatmul.msk.bf16.gmra.mxu0 %vm1242_vm3, %v6298_v7  ;;  %v3905_v23 = vadd.f32 %v3763_v54, %v3611_v39  ;;  %v3220_v18 = vpop.f32.mrf.mxu1 }
 0x3a1   : > { %v3359_v1 = vadd.f32 %v3220_v18, %v6252_v63  ;;  %v5144_v18 = vld [vmem:[%s5298_s25 + $0xd0] sm:$0xff] }
 0x3a2   : > { %v4169_v38 = vadd.f32 %v4027_v9, %v3905_v23 }
 0x3a3   : > { %v3471_v48 = vpop.f32.mrf.mxu2  ;;  %4839 = vmatmul.msk.bf16.gmra.mxu1 %vm1242_vm3, %v6276_v5 }
 0x3a4   : > { %4233 = vxpose.xlu0.b32.cont [13/16] (narrow) %v4169_v38, 8  ;;  %v3612_v29 = vadd.f32 %v3471_v48, %v3358_v34 }
 0x3a5   : > { %v4029_v11 = vpop.f32.mrf.mxu0 }
 0x3a7   : > { %v3765_v20 = vpop.f32.mrf.mxu3 }
 0x3a8   : > { %v3906_v15 = vadd.f32 %v3765_v20, %v3612_v29  ;;  %4880 = vmatmul.msk.bf16.gmra.mxu2 %vm1242_vm3, %v5142_v19  ;;  %v3222_v53 = vpop.f32.mrf.mxu1  ;;  %v7333_v19 = vld [vmem:[#allocation78_spill] sm:$0xff] }
 0x3a9   : > { %v3360_v57 = vadd.f32 %v3222_v53, %v6263_v62 }
 0x3aa   : > { %v4170_v59 = vadd.f32 %v4029_v11, %v3906_v15  ;;  %v7332_v11 = vld [vmem:[#allocation13_spill] sm:$0xff] }
 0x3ab   : > { %v3474_v14 = vpop.f32.mrf.mxu2 }
 0x3ac   : > { %4913 = vmatmul.msk.bf16.gmra.mxu3 %vm1242_vm3, %v5526_v50  ;;  %4234 = vxpose.xlu0.b32.cont [14/16] (narrow) %v4170_v59, 8  ;;  %v3613_v44 = vadd.f32 %v3474_v14, %v3359_v1  ;;  %v7334_v59 = vld [vmem:[#allocation72_spill] sm:$0xff] }
 0x3ad   : > { %v4032_v5 = vpop.f32.mrf.mxu0 }
 0x3af   : > { %v3768_v60 = vpop.f32.mrf.mxu3 }
 0x3b0   : > { %4947 = vmatmul.msk.bf16.gmra.mxu0 %vm1242_vm3, %v6319_v36  ;;  %v3907_v17 = vadd.f32 %v3768_v60, %v3613_v44  ;;  %v3225_v42 = vpop.f32.mrf.mxu1 }
 0x3b1   : > { %v3361_v21 = vadd.f32 %v3225_v42, %v7330_v51  ;;  %v7337_v51 = vld [vmem:[#allocation81_spill] sm:$0xff] }
 0x3b2   : > { %v4171_v45 = vadd.f32 %v4032_v5, %v3907_v17 }
 0x3b3   : > { %v3476_v13 = vpop.f32.mrf.mxu2  ;;  %4840 = vmatmul.msk.bf16.gmra.mxu1 %vm1242_vm3, %v6298_v7 }
 0x3b4   : > { %4235 = vxpose.xlu0.b32.cont [15/16] (narrow) %v4171_v45, 8  ;;  %v3614_v63 = vadd.f32 %v3476_v13, %v3360_v57  ;;  %v5145_v57 = vld [vmem:[%s5298_s25 + $0xdc] sm:$0xff] }
 0x3b5   : > { %v4034_v50 = vpop.f32.mrf.mxu0  ;;  %v7335_v13 = vld [vmem:[#allocation73_spill] sm:$0xff] }
 0x3b7   : > { %v3770_v49 = vpop.f32.mrf.mxu3 }
 0x3b8   : > { %v3908_v30 = vadd.f32 %v3770_v49, %v3614_v63  ;;  %4881 = vmatmul.msk.bf16.gmra.mxu2 %vm1242_vm3, %v5143_v55  ;;  %v3227_v40 = vpop.f32.mrf.mxu1 }
 0x3b9   : > { %v3362_v6 = vadd.f32 %v3227_v40, %v7331_v43 }
 0x3ba   : > { %v4172_v37 = vadd.f32 %v4034_v50, %v3908_v30  ;;  %v7336_v30 = vld [vmem:[#allocation16_spill] sm:$0xff] }
 0x3bb   : > { %v3479_v16 = vpop.f32.mrf.mxu2 }
 0x3bc   : > { %4914 = vmatmul.msk.bf16.gmra.mxu3 %vm1242_vm3, %v5591_v25  ;;  %4236 = vxpose.xlu0.b32.end [16/16] (narrow) %v4172_v37, 8  ;;  %v3615_v62 = vadd.f32 %v3479_v16, %v3361_v21  ;;  %v7338_v16 = vld [vmem:[#allocation74_spill] sm:$0xff] }
 0x3bd   : > { %v4037_v7 = vpop.f32.mrf.mxu0 }
 0x3bf   : > { %v3773_v32 = vpop.f32.mrf.mxu3 }
 0x3c0   : > { %4948 = vmatmul.msk.bf16.gmra.mxu0 %vm1242_vm3, %v6341_v3  ;;  %v3909_v0 = vadd.f32 %v3773_v32, %v3615_v62  ;;  %v3230_v47 = vpop.f32.mrf.mxu1 }
 0x3c1   : > { %v3363_v38 = vadd.f32 %v3230_v47, %v6295_v10 }
 0x3c2   : > { %v4173_v46 = vadd.f32 %v4037_v7, %v3909_v0 }
 0x3c3   : > { %v3481_v39 = vpop.f32.mrf.mxu2  ;;  %4841 = vmatmul.msk.bf16.gmra.mxu1 %vm1242_vm3, %v6319_v36 }
 0x3c4   : > { %4253 = vxpose.xlu1.b32.start [1/16] (narrow) %v4173_v46, 8  ;;  %v3616_v9 = vadd.f32 %v3481_v39, %v3362_v6  ;;  %v5146_v46 = vld [vmem:[%s5298_s25 + $0xe4] sm:$0xff] }
 0x3c5   : > { %v4039_v25 = vpop.f32.mrf.mxu0 }
 0x3c7   : > { %v3775_v54 = vpop.f32.mrf.mxu3 }
 0x3c8   : > { %v3910_v23 = vadd.f32 %v3775_v54, %v3616_v9  ;;  %4882 = vmatmul.msk.bf16.gmra.mxu2 %vm1242_vm3, %v5144_v18  ;;  %v3232_v34 = vpop.f32.mrf.mxu1  ;;  %v7339_v9 = vld [vmem:[#allocation75_spill] sm:$0xff] }
 0x3c9   : > { %v3364_v14 = vadd.f32 %v3232_v34, %v7334_v59  ;;  %v7340_v18 = vld [vmem:[#allocation19_spill] sm:$0xff] }
 0x3ca   : > { %v4174_v48 = vadd.f32 %v4039_v25, %v3910_v23 }
 0x3cb   : > { %v3484_v29 = vpop.f32.mrf.mxu2 }
 0x3cc   : > { %4915 = vmatmul.msk.bf16.gmra.mxu3 %vm1242_vm3, %v7332_v11  ;;  %4254 = vxpose.xlu1.b32.cont [2/16] (narrow) %v4174_v48, 8  ;;  %v3617_v20 = vadd.f32 %v3484_v29, %v3363_v38  ;;  %v7341_v29 = vld [vmem:[#allocation83_spill] sm:$0xff] }
 0x3cd   : > { %v4042_v36 = vpop.f32.mrf.mxu0 }
 0x3cf   : > { %v3778_v15 = vpop.f32.mrf.mxu3 }
 0x3d0   : > { %4949 = vmatmul.msk.bf16.gmra.mxu0 %vm1242_vm3, %v7333_v19  ;;  %v3911_v53 = vadd.f32 %v3778_v15, %v3617_v20  ;;  %v3235_v1 = vpop.f32.mrf.mxu1 }
 0x3d1   : > { %v3365_v63 = vadd.f32 %v3235_v1, %v7335_v13 }
 0x3d2   : > { %v4175_v44 = vadd.f32 %v4042_v36, %v3911_v53  ;;  %v7342_v36 = vld [vmem:[#allocation76_spill] sm:$0xff] }
 0x3d3   : > { %v3486_v5 = vpop.f32.mrf.mxu2  ;;  %4842 = vmatmul.msk.bf16.gmra.mxu1 %vm1242_vm3, %v6341_v3 }
 0x3d4   : > { %4255 = vxpose.xlu1.b32.cont [3/16] (narrow) %v4175_v44, 8  ;;  %v3618_v10 = vadd.f32 %v3486_v5, %v3364_v14  ;;  %v5147_v5 = vld [vmem:[%s5298_s25 + $0xf0] sm:$0xff] }
 0x3d5   : > { %v4044_v60 = vpop.f32.mrf.mxu0 }
 0x3d7   : > { %v3780_v17 = vpop.f32.mrf.mxu3 }
 0x3d8   : > { %v3912_v42 = vadd.f32 %v3780_v17, %v3618_v10  ;;  %4883 = vmatmul.msk.bf16.gmra.mxu2 %vm1242_vm3, %v5145_v57  ;;  %v3237_v45 = vpop.f32.mrf.mxu1 }
 0x3d9   : > { %v3366_v62 = vadd.f32 %v3237_v45, %v7338_v16  ;;  %v7344_v45 = vld [vmem:[#allocation4_spill] sm:$0xff] }
 0x3da   : > { %v4176_v50 = vadd.f32 %v4044_v60, %v3912_v42  ;;  %v7343_v60 = vld [vmem:[#allocation77_spill] sm:$0xff] }
 0x3db   : > { %v3489_v49 = vpop.f32.mrf.mxu2 }
 0x3dc   : > { %4916 = vmatmul.msk.bf16.gmra.mxu3 %vm1242_vm3, %v7336_v30  ;;  %4256 = vxpose.xlu1.b32.cont [4/16] (narrow) %v4176_v50, 8  ;;  %v3619_v55 = vadd.f32 %v3489_v49, %v3365_v63  ;;  %v7345_v49 = vld [vmem:[#allocation84_spill] sm:$0xff] }
 0x3dd   : > { %v4047_v3 = vpop.f32.mrf.mxu0 }
 0x3df   : > { %v3783_v40 = vpop.f32.mrf.mxu3 }
 0x3e0   : > { %4950 = vmatmul.msk.bf16.gmra.mxu0 %vm1242_vm3, %v7337_v51  ;;  %v3913_v21 = vadd.f32 %v3783_v40, %v3619_v55  ;;  %v3240_v37 = vpop.f32.mrf.mxu1 }
 0x3e1   : > { %v3367_v25 = vadd.f32 %v3240_v37, %v7339_v9 }
 0x3e2   : > { %v4177_v7 = vadd.f32 %v4047_v3, %v3913_v21  ;;  %v7346_v3 = vld [vmem:[#allocation79_spill] sm:$0xff] }
 0x3e3   : > { %v3491_v32 = vpop.f32.mrf.mxu2  ;;  %4843 = vmatmul.msk.bf16.gmra.mxu1 %vm1242_vm3, %v7333_v19 }
 0x3e4   : > { %4257 = vxpose.xlu1.b32.cont [5/16] (narrow) %v4177_v7, 8  ;;  %v3620_v0 = vadd.f32 %v3491_v32, %v3366_v62  ;;  %v5148_v32 = vld [vmem:[%s5298_s25 + $0xf8] sm:$0xff] }
 0x3e5   : > { %v4049_v47 = vpop.f32.mrf.mxu0 }
 0x3e7   : > { %v3785_v43 = vpop.f32.mrf.mxu3 }
 0x3e8   : > { %v3914_v6 = vadd.f32 %v3785_v43, %v3620_v0  ;;  %4884 = vmatmul.msk.bf16.gmra.mxu2 %vm1242_vm3, %v5146_v46  ;;  %v3242_v39 = vpop.f32.mrf.mxu1 }
 0x3e9   : > { %v3368_v15 = vadd.f32 %v3242_v39, %v7342_v36  ;;  %v7348_v39 = vld [vmem:[#allocation6_spill] sm:$0xff] }
 0x3ea   : > { %v4178_v54 = vadd.f32 %v4049_v47, %v3914_v6  ;;  %v7347_v47 = vld [vmem:[#allocation80_spill] sm:$0xff] }
 0x3eb   : > { %v3494_v23 = vpop.f32.mrf.mxu2 }
 0x3ec   : > { %4917 = vmatmul.msk.bf16.gmra.mxu3 %vm1242_vm3, %v7340_v18  ;;  %4258 = vxpose.xlu1.b32.cont [6/16] (narrow) %v4178_v54, 8  ;;  %v3621_v34 = vadd.f32 %v3494_v23, %v3367_v25  ;;  %v7349_v23 = vld [vmem:[#allocation85_spill] sm:$0xff] }
 0x3ed   : > { %v4052_v38 = vpop.f32.mrf.mxu0 }
 0x3ef   : > { %v3788_v48 = vpop.f32.mrf.mxu3 }
 0x3f0   : > { %4951 = vmatmul.msk.bf16.gmra.mxu0 %vm1242_vm3, %v7341_v29  ;;  %v3915_v11 = vadd.f32 %v3788_v48, %v3621_v34  ;;  %v3245_v20 = vpop.f32.mrf.mxu1 }
 0x3f1   : > { %v3369_v17 = vadd.f32 %v3245_v20, %v7343_v60 }
 0x3f2   : > { %v4179_v19 = vadd.f32 %v4052_v38, %v3915_v11  ;;  %v7350_v38 = vld [vmem:[#allocation82_spill] sm:$0xff] }
 0x3f3   : > { %v3496_v53 = vpop.f32.mrf.mxu2  ;;  %4844 = vmatmul.msk.bf16.gmra.mxu1 %vm1242_vm3, %v7337_v51 }
 0x3f4   : > { %4259 = vxpose.xlu1.b32.cont [7/16] (narrow) %v4179_v19, 8  ;;  %v3622_v1 = vadd.f32 %v3496_v53, %v3368_v15  ;;  %v5149_v53 = vld [vmem:[%s5298_s25 + $0x104] sm:$0xff] }
 0x3f5   : > { %v4054_v59 = vpop.f32.mrf.mxu0 }
 0x3f7   : > { %v3790_v14 = vpop.f32.mrf.mxu3 }
 0x3f8   : > { %v3916_v44 = vadd.f32 %v3790_v14, %v3622_v1  ;;  %4885 = vmatmul.msk.bf16.gmra.mxu2 %vm1242_vm3, %v5147_v5  ;;  %v3247_v10 = vpop.f32.mrf.mxu1 }
 0x3f9   : > { %v3370_v40 = vadd.f32 %v3247_v10, %v7346_v3  ;;  %v7352_v10 = vld [vmem:[#allocation8_spill] sm:$0xff] }
 0x3fa   : > { %v4180_v42 = vadd.f32 %v4054_v59, %v3916_v44  ;;  %v7351_v59 = vld [vmem:[#allocation51_spill] sm:$0xff] }
 0x3fb   : > { %v3499_v57 = vpop.f32.mrf.mxu2 }
 0x3fc   : > { %4918 = vmatmul.msk.bf16.gmra.mxu3 %vm1242_vm3, %v7344_v45  ;;  %4260 = vxpose.xlu1.b32.cont [8/16] (narrow) %v4180_v42, 8  ;;  %v3623_v13 = vadd.f32 %v3499_v57, %v3369_v17  ;;  %v7353_v57 = vld [vmem:[#allocation86_spill] sm:$0xff] }
 0x3fd   : > { %v4057_v63 = vpop.f32.mrf.mxu0 }
 0x3ff   : > { %v3793_v50 = vpop.f32.mrf.mxu3 }
 0x400   : > { %4952 = vmatmul.msk.bf16.gmra.mxu0 %vm1242_vm3, %v7345_v49  ;;  %v3917_v30 = vadd.f32 %v3793_v50, %v3623_v13  ;;  %v3250_v55 = vpop.f32.mrf.mxu1 }
 0x401   : > { %v3371_v43 = vadd.f32 %v3250_v55, %v7347_v47 }
 0x402   : > { %v4181_v51 = vadd.f32 %v4057_v63, %v3917_v30  ;;  %v7354_v63 = vld [vmem:[#allocation54_spill] sm:$0xff] }
 0x403   : > { %v3501_v21 = vpop.f32.mrf.mxu2  ;;  %4845 = vmatmul.msk.bf16.gmra.mxu1 %vm1242_vm3, %v7341_v29 }
 0x404   : > { %4261 = vxpose.xlu1.b32.cont [9/16] (narrow) %v4181_v51, 8  ;;  %v3624_v37 = vadd.f32 %v3501_v21, %v3370_v40  ;;  %v5150_v21 = vld [vmem:[%s5298_s25 + $0x10c] sm:$0xff] }
 0x405   : > { %v4059_v16 = vpop.f32.mrf.mxu0 }
 0x407   : > { %v3795_v62 = vpop.f32.mrf.mxu3 }
 0x408   : > { %v3918_v7 = vadd.f32 %v3795_v62, %v3624_v37  ;;  %4886 = vmatmul.msk.bf16.gmra.mxu2 %vm1242_vm3, %v5148_v32  ;;  %v3252_v0 = vpop.f32.mrf.mxu1 }
 0x409   : > { %v3372_v48 = vadd.f32 %v3252_v0, %v7350_v38  ;;  %v7356_v0 = vld [vmem:[#allocation10_spill] sm:$0xff] }
 0x40a   : > { %v4182_v6 = vadd.f32 %v4059_v16, %v3918_v7  ;;  %v7355_v16 = vld [vmem:[#allocation58_spill] sm:$0xff] }
 0x40b   : > { %v3504_v46 = vpop.f32.mrf.mxu2 }
 0x40c   : > { %4919 = vmatmul.msk.bf16.gmra.mxu3 %vm1242_vm3, %v7348_v39  ;;  %4262 = vxpose.xlu1.b32.cont [10/16] (narrow) %v4182_v6, 8  ;;  %v3625_v9 = vadd.f32 %v3504_v46, %v3371_v43  ;;  %v7357_v46 = vld [vmem:[#allocation87_spill] sm:$0xff] }
 0x40d   : > { %v4062_v25 = vpop.f32.mrf.mxu0 }
 0x40f   : > { %v3798_v54 = vpop.f32.mrf.mxu3 }
 0x410   : > { %4953 = vmatmul.msk.bf16.gmra.mxu0 %vm1242_vm3, %v7349_v23  ;;  %v3919_v18 = vadd.f32 %v3798_v54, %v3625_v9  ;;  %v3255_v34 = vpop.f32.mrf.mxu1 }
 0x411   : > { %v3373_v14 = vadd.f32 %v3255_v34, %v7351_v59 }
 0x412   : > { %v4183_v29 = vadd.f32 %v4062_v25, %v3919_v18  ;;  %v7358_v25 = vld [vmem:[#allocation21_spill] sm:$0xff] }
 0x413   : > { %v3506_v11 = vpop.f32.mrf.mxu2  ;;  %4846 = vmatmul.msk.bf16.gmra.mxu1 %vm1242_vm3, %v7345_v49 }
 0x414   : > { %4263 = vxpose.xlu1.b32.cont [11/16] (narrow) %v4183_v29, 8  ;;  %v3626_v20 = vadd.f32 %v3506_v11, %v3372_v48  ;;  %v5151_v11 = vld [vmem:[%s5298_s25 + $0x118] sm:$0xff] }
 0x415   : > { %v4064_v36 = vpop.f32.mrf.mxu0 }
 0x417   : > { %v3800_v15 = vpop.f32.mrf.mxu3 }
 0x418   : > { %v3920_v19 = vadd.f32 %v3800_v15, %v3626_v20  ;;  %4887 = vmatmul.msk.bf16.gmra.mxu2 %vm1242_vm3, %v5149_v53  ;;  %v3257_v1 = vpop.f32.mrf.mxu1 }
 0x419   : > { %v3374_v50 = vadd.f32 %v3257_v1, %v7354_v63  ;;  %v7360_v1 = vld [vmem:[#allocation11_spill] sm:$0xff] }
 0x41a   : > { %v4184_v44 = vadd.f32 %v4064_v36, %v3920_v19  ;;  %v7359_v36 = vld [vmem:[#allocation24_spill] sm:$0xff] }
 0x41b   : > { %v3509_v5 = vpop.f32.mrf.mxu2 }
 0x41c   : > { %4920 = vmatmul.msk.bf16.gmra.mxu3 %vm1242_vm3, %v7352_v10  ;;  %4264 = vxpose.xlu1.b32.cont [12/16] (narrow) %v4184_v44, 8  ;;  %v3627_v60 = vadd.f32 %v3509_v5, %v3373_v14  ;;  %v7361_v5 = vld [vmem:[#allocation88_spill] sm:$0xff] }
 0x41d   : > { %v4067_v17 = vpop.f32.mrf.mxu0 }
 0x41f   : > { %v3803_v42 = vpop.f32.mrf.mxu3 }
 0x420   : > { %4954 = vmatmul.msk.bf16.gmra.mxu0 %vm1242_vm3, %v7353_v57  ;;  %v3921_v45 = vadd.f32 %v3803_v42, %v3627_v60  ;;  %v3260_v13 = vpop.f32.mrf.mxu1 }
 0x421   : > { %v3375_v62 = vadd.f32 %v3260_v13, %v7355_v16 }
 0x422   : > { %v4185_v49 = vadd.f32 %v4067_v17, %v3921_v45  ;;  %v7362_v17 = vld [vmem:[#allocation26_spill] sm:$0xff] }
 0x423   : > { %v3511_v30 = vpop.f32.mrf.mxu2  ;;  %4847 = vmatmul.msk.bf16.gmra.mxu1 %vm1242_vm3, %v7349_v23 }
 0x424   : > { %4265 = vxpose.xlu1.b32.cont [13/16] (narrow) %v4185_v49, 8  ;;  %v3628_v55 = vadd.f32 %v3511_v30, %v3374_v50  ;;  %v5152_v30 = vld [vmem:[%s5298_s25 + $0x120] sm:$0xff] }
 0x425   : > { %v4069_v3 = vpop.f32.mrf.mxu0 }
 0x427   : > { %v3805_v40 = vpop.f32.mrf.mxu3 }
 0x428   : > { %v3922_v51 = vadd.f32 %v3805_v40, %v3628_v55  ;;  %4888 = vmatmul.msk.bf16.gmra.mxu2 %vm1242_vm3, %v5150_v21  ;;  %v3262_v37 = vpop.f32.mrf.mxu1 }
 0x429   : > { %v3376_v54 = vadd.f32 %v3262_v37, %v7358_v25  ;;  %v7364_v37 = vld [vmem:[#allocation14_spill] sm:$0xff] }
 0x42a   : > { %v4186_v7 = vadd.f32 %v4069_v3, %v3922_v51  ;;  %v7363_v3 = vld [vmem:[#allocation28_spill] sm:$0xff] }
 0x42b   : > { %v3514_v32 = vpop.f32.mrf.mxu2 }
 0x42c   : > { %4921 = vmatmul.msk.bf16.gmra.mxu3 %vm1242_vm3, %v7356_v0  ;;  %4266 = vxpose.xlu1.b32.cont [14/16] (narrow) %v4186_v7, 8  ;;  %v3629_v47 = vadd.f32 %v3514_v32, %v3375_v62  ;;  %v7365_v32 = vld [vmem:[#allocation89_spill] sm:$0xff] }
 0x42d   : > { %v4072_v43 = vpop.f32.mrf.mxu0 }
 0x42f   : > { %v3808_v6 = vpop.f32.mrf.mxu3 }
 0x430   : > { %4955 = vmatmul.msk.bf16.gmra.mxu0 %vm1242_vm3, %v7357_v46  ;;  %v3923_v39 = vadd.f32 %v3808_v6, %v3629_v47  ;;  %v3265_v9 = vpop.f32.mrf.mxu1 }
 0x431   : > { %v3377_v15 = vadd.f32 %v3265_v9, %v7359_v36 }
 0x432   : > { %v4187_v23 = vadd.f32 %v4072_v43, %v3923_v39  ;;  %v7366_v43 = vld [vmem:[#allocation30_spill] sm:$0xff] }
 0x433   : > { %v3516_v18 = vpop.f32.mrf.mxu2  ;;  %4848 = vmatmul.msk.bf16.gmra.mxu1 %vm1242_vm3, %v7353_v57 }
 0x434   : > { %4267 = vxpose.xlu1.b32.cont [15/16] (narrow) %v4187_v23, 8  ;;  %v3630_v34 = vadd.f32 %v3516_v18, %v3376_v54  ;;  %v5153_v18 = vld [vmem:[%s5298_s25 + $0x12c] sm:$0xff] }
 0x435   : > { %v4074_v38 = vpop.f32.mrf.mxu0 }
 0x437   : > { %v3810_v48 = vpop.f32.mrf.mxu3 }
 0x438   : > { %v3924_v29 = vadd.f32 %v3810_v48, %v3630_v34  ;;  %4889 = vmatmul.msk.bf16.gmra.mxu2 %vm1242_vm3, %v5151_v11  ;;  %v3267_v20 = vpop.f32.mrf.mxu1 }
 0x439   : > { %v3378_v42 = vadd.f32 %v3267_v20, %v7362_v17  ;;  %v7368_v20 = vld [vmem:[#allocation17_spill] sm:$0xff] }
 0x43a   : > { %v4188_v19 = vadd.f32 %v4074_v38, %v3924_v29  ;;  %v7367_v38 = vld [vmem:[#allocation33_spill] sm:$0xff] }
 0x43b   : > { %v3519_v53 = vpop.f32.mrf.mxu2 }
 0x43c   : > { %4922 = vmatmul.msk.bf16.gmra.mxu3 %vm1242_vm3, %v7360_v1  ;;  %4268 = vxpose.xlu1.b32.end [16/16] (narrow) %v4188_v19, 8  ;;  %v3631_v59 = vadd.f32 %v3519_v53, %v3377_v15  ;;  %v7369_v53 = vld [vmem:[#allocation90_spill] sm:$0xff] }
 0x43d   : > { %v4077_v14 = vpop.f32.mrf.mxu0 }
 0x43f   : > { %v3813_v44 = vpop.f32.mrf.mxu3 }
 0x440   : > { %4956 = vmatmul.msk.bf16.gmra.mxu0 %vm1242_vm3, %v7361_v5  ;;  %v3925_v10 = vadd.f32 %v3813_v44, %v3631_v59  ;;  %v3270_v60 = vpop.f32.mrf.mxu1 }
 0x441   : > { %v3379_v40 = vadd.f32 %v3270_v60, %v7363_v3 }
 0x442   : > { %v4189_v57 = vadd.f32 %v4077_v14, %v3925_v10  ;;  %v7370_v14 = vld [vmem:[#allocation35_spill] sm:$0xff] }
 0x443   : > { %v3521_v45 = vpop.f32.mrf.mxu2  ;;  %4849 = vmatmul.msk.bf16.gmra.mxu1 %vm1242_vm3, %v7357_v46 }
 0x444   : > { %4285 = vxpose.xlu2.b32.start [1/16] (narrow) %v4189_v57, 8  ;;  %v3632_v13 = vadd.f32 %v3521_v45, %v3378_v42  ;;  %v5154_v45 = vld [vmem:[%s5298_s25 + $0x134] sm:$0xff] }
 0x445   : > { %v4079_v63 = vpop.f32.mrf.mxu0 }
 0x447   : > { %v3815_v50 = vpop.f32.mrf.mxu3 }
 0x448   : > { %v3926_v49 = vadd.f32 %v3815_v50, %v3632_v13  ;;  %4890 = vmatmul.msk.bf16.gmra.mxu2 %vm1242_vm3, %v5152_v30  ;;  %v3272_v55 = vpop.f32.mrf.mxu1 }
 0x449   : > { %v3380_v6 = vadd.f32 %v3272_v55, %v7366_v43  ;;  %v7372_v55 = vld [vmem:[#allocation20_spill] sm:$0xff] }
 0x44a   : > { %v4190_v51 = vadd.f32 %v4079_v63, %v3926_v49  ;;  %v7371_v63 = vld [vmem:[#allocation38_spill] sm:$0xff] }
 0x44b   : > { %v3524_v21 = vpop.f32.mrf.mxu2 }
 0x44c   : > { %4923 = vmatmul.msk.bf16.gmra.mxu3 %vm1242_vm3, %v7364_v37  ;;  %4286 = vxpose.xlu2.b32.cont [2/16] (narrow) %v4190_v51, 8  ;;  %v3633_v16 = vadd.f32 %v3524_v21, %v3379_v40  ;;  %v5155_v51 = vld [vmem:[%s6540_s6 + $0x4] sm:$0xf] }
 0x44d   : > { %v4082_v62 = vpop.f32.mrf.mxu0  ;;  %v3148_v21 = vrot.slane %v5155_v51, 5 }
 0x44f   : > { %v3818_v7 = vpop.f32.mrf.mxu3 }
 0x450   : > { %4957 = vmatmul.msk.bf16.gmra.mxu0 %vm1242_vm3, %v7365_v32  ;;  %v3927_v0 = vadd.f32 %v3818_v7, %v3633_v16  ;;  %v3275_v47 = vpop.f32.mrf.mxu1  ;;  %v5156_v7 = vld [vmem:[%s6540_s6] sm:$0xf] }
 0x451   : > { %v3381_v48 = vadd.f32 %v3275_v47, %v7367_v38  ;;  %v5157_v47 = vld [vmem:[%s6540_s6 + $0x8] sm:$0xf] }
 0x452   : > { %v4191_v46 = vadd.f32 %v4082_v62, %v3927_v0  ;;  %v3150_v0 = vrot.slane %v3148_v21, 4  ;;  %v3151_v43 = vrot.slane %v5157_v47, 5 }
 0x453   : > { %v3526_v39 = vpop.f32.mrf.mxu2  ;;  %4850 = vmatmul.msk.bf16.gmra.mxu1 %vm1242_vm3, %v7361_v5 }
 0x454   : > { %4287 = vxpose.xlu2.b32.cont [3/16] (narrow) %v4191_v46, 8  ;;  %v3634_v9 = vadd.f32 %v3526_v39, %v3380_v6  ;;  %v7373_v6 = vld [vmem:[#allocation40_spill] sm:$0xff] }
 0x455   : > { %v4084_v25 = vpop.f32.mrf.mxu0 }
 0x457   : > { %v3820_v54 = vpop.f32.mrf.mxu3 }
 0x458   : > { %v3928_v23 = vadd.f32 %v3820_v54, %v3634_v9  ;;  %4891 = vmatmul.msk.bf16.gmra.mxu2 %vm1242_vm3, %v5153_v18  ;;  %v3277_v34 = vpop.f32.mrf.mxu1  ;;  %v3152_v18 = vsel %vm5821_vm7, %v3150_v0, %v3151_v43 }
 0x459   : > { %v3382_v44 = vadd.f32 %v3277_v34, %v7370_v14  ;;  %v6959_v14 = vld [vmem:[%s6540_s6 + $0x14] sm:$0xf] }
 0x45a   : > { %v4192_v29 = vadd.f32 %v4084_v25, %v3928_v23 }
 0x45b   : > { %v3529_v11 = vpop.f32.mrf.mxu2 }
 0x45c   : > { %4924 = vmatmul.msk.bf16.gmra.mxu3 %vm1242_vm3, %v7368_v20  ;;  %4288 = vxpose.xlu2.b32.cont [4/16] (narrow) %v4192_v29, 8  ;;  %v3635_v36 = vadd.f32 %v3529_v11, %v3381_v48  ;;  %v5158_v48 = vld [vmem:[%s6540_s6] sm:$0xff]  ;;  %v3162_v11 = vunpack.c.l.b16 %v3152_v18 }
 0x45d   : > { %v4087_v15 = vpop.f32.mrf.mxu0 }
 0x45f   : > { %v3823_v19 = vpop.f32.mrf.mxu3 }
 0x460   : > { %4958 = vmatmul.msk.bf16.gmra.mxu0 %vm1242_vm3, %v7369_v53  ;;  %v3929_v1 = vadd.f32 %v3823_v19, %v3635_v36  ;;  %v3280_v59 = vpop.f32.mrf.mxu1  ;;  %v7374_v36 = vld [vmem:[#allocation43_spill] sm:$0xff] }
 0x461   : > { %v3383_v50 = vadd.f32 %v3280_v59, %v7371_v63 }
 0x462   : > { %v4193_v5 = vadd.f32 %v4087_v15, %v3929_v1 }
 0x463   : > { %v3531_v10 = vpop.f32.mrf.mxu2  ;;  %4851 = vmatmul.msk.bf16.gmra.mxu1 %vm1242_vm3, %v7365_v32  ;;  %v4822_v32 = vrot.slane %v5156_v7, 9 }
 0x464   : > { %4289 = vxpose.xlu2.b32.cont [5/16] (narrow) %v4193_v5, 8  ;;  %v3636_v60 = vadd.f32 %v3531_v10, %v3382_v44  ;;  %v5159_v5 = vld [vmem:[%s6540_s6 + $0xc] sm:$0xf] }
 0x465   : > { %v4089_v17 = vpop.f32.mrf.mxu0  ;;  %v3149_v23 = vsel %vm5821_vm7, %v4822_v32, %v3148_v21  ;;  %v3154_v10 = vrot.slane %v5159_v5, 5  ;;  %v6992_v5 = vld [vmem:[%s6540_s6 + $0x20] sm:$0xf] }
 0x466   : > { %v3161_v29 = vunpack.c.l.b16 %v3149_v23 }
 0x467   : > { %v3825_v42 = vpop.f32.mrf.mxu3  ;;  %v3156_v63 = vrot.slane %v3154_v10, 4 }
 0x468   : > { %v3930_v57 = vadd.f32 %v3825_v42, %v3636_v60  ;;  %4892 = vmatmul.msk.bf16.gmra.mxu2 %vm1242_vm3, %v5154_v45  ;;  %v3282_v13 = vpop.f32.mrf.mxu1  ;;  %v6956_v1 = vpack.c.b16 %v3162_v11, %v3161_v29  ;;  %v6963_v60 = vld [vmem:[%s6540_s6 + $0x18] sm:$0xf]  ;;  %v3664_v42 = vshrl.u32 %v6959_v14, 16 }
 0x469   : > { %v3384_v46 = vadd.f32 %v3282_v13, %v7373_v6  ;;  %v3153_v13 = vrot.slane %v3151_v43, 4  ;;  %v6980_v6 = vld [vmem:[%s6540_s6 + $0x1c] sm:$0xf] }
 0x46a   : > { %v4194_v49 = vadd.f32 %v4089_v17, %v3930_v57  ;;  %v3667_v57 = vshll.u32 %v6959_v14, 16 }
 0x46b   : > { %v3534_v30 = vpop.f32.mrf.mxu2  ;;  %v3155_v32 = vsel %vm5821_vm7, %v3153_v13, %v3154_v10  ;;  %v3963_v13 = vrot.slane %v6980_v6, 5 }
 0x46c   : > { %4925 = vmatmul.msk.bf16.gmra.mxu3 %vm1242_vm3, %v7372_v55  ;;  %4290 = vxpose.xlu2.b32.cont [6/16] (narrow) %v4194_v49, 8  ;;  %v3637_v3 = vadd.f32 %v3534_v30, %v3383_v50  ;;  %v5160_v50 = vld [vmem:[%s6540_s6 + $0x10] sm:$0x1]  ;;  %v3673_v30 = vshll.u32 %v6963_v60, 16  ;;  %v3677_v55 = vshrl.u32 %v6963_v60, 16 }
 0x46d   : > { %v4092_v40 = vpop.f32.mrf.mxu0  ;;  %v3157_v49 = vrot.slane %v5160_v50, 5  ;;  %v3697_v50 = vshrl.u32 %v6992_v5, 16 }
 0x46e   : > { %v3675_v47 = vrot.slane %v3673_v30, 5  ;;  %v3679_v43 = vrot.slane %v3677_v55, 4 }
 0x46f   : > { %v3828_v37 = vpop.f32.mrf.mxu3  ;;  %v3158_v0 = vsel %vm5821_vm7, %v3156_v63, %v3157_v49  ;;  %v3693_v63 = vshll.u32 %v6992_v5, 16 }
 0x470   : > { %4959 = vmatmul.msk.bf16.gmra.mxu0 %vm1242_vm3, %v6608_v12  ;;  %v3931_v16 = vadd.f32 %v3828_v37, %v3637_v3  ;;  %v3285_v62 = vpop.f32.mrf.mxu1  ;;  %v7375_v3 = vld [vmem:[#allocation46_spill] sm:$0xff]  ;;  %v3666_v37 = vrot.slane %v3664_v42, 4  ;;  %v3680_v18 = vor.u32 %v3679_v43, %v3675_v47 }
 0x471   : > { %v3385_v15 = vadd.f32 %v3285_v62, %v7374_v36 }
 0x472   : > { %v4195_v39 = vadd.f32 %v4092_v40, %v3931_v16  ;;  %v3669_v16 = vrot.slane %v3667_v57, 5  ;;  %v4930_v57 = vrot.slane %v6959_v14, 9 }
 0x473   : > { %v3536_v9 = vpop.f32.mrf.mxu2  ;;  %4852 = vmatmul.msk.bf16.gmra.mxu1 %vm1242_vm3, %v7369_v53 }
 0x474   : > { %4291 = vxpose.xlu2.b32.cont [7/16] (narrow) %v4195_v39, 8  ;;  %v3638_v25 = vadd.f32 %v3536_v9, %v3384_v46  ;;  %v3670_v39 = vor.u32 %v3669_v16, %v3666_v37 }
 0x475   : > { %v4094_v54 = vpop.f32.mrf.mxu0 }
 0x477   : > { %v3830_v34 = vpop.f32.mrf.mxu3 }
 0x478   : > { %v3932_v38 = vadd.f32 %v3830_v34, %v3638_v25  ;;  %4893 = vmatmul.msk.bf16.gmra.mxu2 %vm1242_vm3, %v5158_v48  ;;  %v3287_v20 = vpop.f32.mrf.mxu1  ;;  %v5161_v25 = vld [vmem:[%s6540_s6 + $0x8] sm:$0xff]  ;;  %v3683_v34 = vshll.u32 %v6980_v6, 16 }
 0x479   : > { %v3386_v40 = vadd.f32 %v3287_v20, %v7375_v3  ;;  %v3671_v20 = vrot.slane %v3670_v39, 4 }
 0x47a   : > { %v4196_v19 = vadd.f32 %v4094_v54, %v3932_v38  ;;  %v3164_v54 = vunpack.c.l.b16 %v3158_v0  ;;  %v7376_v38 = vld [vmem:[#allocation48_spill] sm:$0xff] }
 0x47b   : > { %v3539_v53 = vpop.f32.mrf.mxu2 }
 0x47c   : > { %4926 = vmatmul.msk.bf16.gmra.mxu3 %vm1242_vm3, %v6595_v61  ;;  %4292 = vxpose.xlu2.b32.cont [8/16] (narrow) %v4196_v19, 8  ;;  %v3639_v59 = vadd.f32 %v3539_v53, %v3385_v15  ;;  %v3960_v19 = vrot.slane %v6963_v60, 5  ;;  %v3687_v60 = vshrl.u32 %v6980_v6, 16 }
 0x47d   : > { %v4097_v44 = vpop.f32.mrf.mxu0 }
 0x47e   : > { %v3689_v37 = vrot.slane %v3687_v60, 4 }
 0x47f   : > { %v3833_v17 = vpop.f32.mrf.mxu3 }
 0x480   : > { %4960 = vmatmul.msk.bf16.gmra.mxu0 %vm1242_vm3, %v6956_v1  ;;  %v3933_v61 = vadd.f32 %v3833_v17, %v3639_v59  ;;  %v3290_v45 = vpop.f32.mrf.mxu1  ;;  %v3681_v59 = vrot.slane %v3680_v18, 4  ;;  %v3676_v17 = vsel %vm5318_vm4, %v3671_v20, %v3675_v47  ;;  %v3966_v20 = vrot.slane %v6992_v5, 5 }
 0x481   : > { %v3387_v48 = vadd.f32 %v3290_v45, %v7376_v38  ;;  %v3709_v14 = vunpack.c.l.b16 %v3676_v17 }
 0x482   : > { %v4197_v51 = vadd.f32 %v4097_v44, %v3933_v61  ;;  %v3685_v44 = vrot.slane %v3683_v34, 5  ;;  %v3962_v61 = vrot.slane %v3960_v19, 4 }
 0x483   : > { %v3541_v21 = vpop.f32.mrf.mxu2  ;;  %4853 = vmatmul.msk.bf16.gmra.mxu1 %vm1242_vm3, %v6608_v12  ;;  %v3163_v12 = vunpack.c.l.b16 %v3155_v32  ;;  %v435_v32 = vld [vmem:[%s6540_s6 + $0x24] sm:$0x1] }
 0x484   : > { %4293 = vxpose.xlu2.b32.cont [9/16] (narrow) %v4197_v51, 8  ;;  %v3640_v62 = vadd.f32 %v3541_v21, %v3386_v40  ;;  %v3686_v45 = vsel %vm5318_vm4, %v3681_v59, %v3685_v44  ;;  %v5007_v40 = vld [vmem:[%s6540_s6 + $0x14] sm:$0xff]  ;;  %v3961_v21 = vsel %vm5821_vm7, %v4930_v57, %v3960_v19  ;;  %v3690_v39 = vor.u32 %v3689_v37, %v3685_v44 }
 0x485   : > { %v4099_v7 = vpop.f32.mrf.mxu0  ;;  %v6988_v36 = vpack.c.b16 %v3164_v54, %v3163_v12  ;;  %v3710_v51 = vunpack.c.l.b16 %v3686_v45  ;;  %v3973_v47 = vunpack.c.l.b16 %v3961_v21  ;;  %v3965_v44 = vrot.slane %v3963_v13, 4 }
 0x486   : > { %v3691_v38 = vrot.slane %v3690_v39, 4  ;;  %v3969_v17 = vrot.slane %v435_v32, 5 }
 0x487   : > { %v3835_v46 = vpop.f32.mrf.mxu3  ;;  %v3967_v27 = vsel %vm5821_vm7, %v3965_v44, %v3966_v20 }
 0x488   : > { %v3934_v9 = vadd.f32 %v3835_v46, %v3640_v62  ;;  %4894 = vmatmul.msk.bf16.gmra.mxu2 %vm1242_vm3, %v5161_v25  ;;  %v3292_v23 = vpop.f32.mrf.mxu1  ;;  %v3964_v62 = vsel %vm5821_vm7, %v3962_v61, %v3963_v13  ;;  %v3703_v25 = vshll.u32 %v435_v32, 16  ;;  %v5008_v61 = vld [vmem:[%s6540_s6 + $0x1c] sm:$0xff] }
 0x489   : > { %v3388_v49 = vadd.f32 %v3292_v23, %v6592_v31  ;;  %v3699_v31 = vrot.slane %v3697_v50, 4  ;;  %v3974_v6 = vunpack.c.l.b16 %v3964_v62 }
 0x48a   : > { %v4198_v29 = vadd.f32 %v4099_v7, %v3934_v9  ;;  %v3695_v7 = vrot.slane %v3693_v63, 5 }
 0x48b   : > { %v3544_v11 = vpop.f32.mrf.mxu2  ;;  %v3977_v18 = vpack.c.b16 %v3974_v6, %v3973_v47 }
 0x48c   : > { %4927 = vmatmul.msk.bf16.gmra.mxu3 %vm1242_vm3, %v6621_v35  ;;  %4294 = vxpose.xlu2.b32.cont [10/16] (narrow) %v4198_v29, 8  ;;  %v3641_v15 = vadd.f32 %v3544_v11, %v3387_v48  ;;  %v3700_v9 = vor.u32 %v3699_v31, %v3695_v7  ;;  %v3705_v11 = vrot.slane %v3703_v25, 5 }
 0x48d   : > { %v4102_v53 = vpop.f32.mrf.mxu0 }
 0x48e   : > { %v3701_v29 = vrot.slane %v3700_v9, 4 }
 0x48f   : > { %v3838_v10 = vpop.f32.mrf.mxu3 }
 0x490   : > { %4961 = vmatmul.msk.bf16.gmra.mxu0 %vm1242_vm3, %v6988_v36  ;;  %v3935_v42 = vadd.f32 %v3838_v10, %v3641_v15  ;;  %v3295_v35 = vpop.f32.mrf.mxu1  ;;  %v3706_v59 = vsel %vm5318_vm4, %v3701_v29, %v3705_v11  ;;  %v3968_v10 = vrot.slane %v3966_v20, 4 }
 0x491   : > { %v3389_v12 = vadd.f32 %v3295_v35, %v6604_v28  ;;  %v3696_v28 = vsel %vm5318_vm4, %v3691_v38, %v3695_v7  ;;  %v3712_v45 = vunpack.c.l.b16 %v3706_v59 }
 0x492   : > { %v4199_v30 = vadd.f32 %v4102_v53, %v3935_v42  ;;  %v3711_v60 = vunpack.c.l.b16 %v3696_v28  ;;  %v3970_v13 = vsel %vm5821_vm7, %v3968_v10, %v3969_v17 }
 0x493   : > { %v3546_v55 = vpop.f32.mrf.mxu2  ;;  %4854 = vmatmul.msk.bf16.gmra.mxu1 %vm1242_vm3, %v6956_v1  ;;  %v3713_v1 = vpack.c.b16 %v3710_v51, %v3709_v14 }
 0x494   : > { %4295 = vxpose.xlu2.b32.cont [11/16] (narrow) %v4199_v30, 8  ;;  %v3642_v3 = vadd.f32 %v3546_v55, %v3388_v49  ;;  %v3975_v30 = vunpack.c.l.b16 %v3967_v27  ;;  %v3976_v55 = vunpack.c.l.b16 %v3970_v13  ;;  %v7379_v13 = vld [vmem:[#allocation55_spill] sm:$0xff] }
 0x495   : > { %v4104_v16 = vpop.f32.mrf.mxu0 }
 0x496   : > { %v3978_v51 = vpack.c.b16 %v3976_v55, %v3975_v30 }
 0x497   : > { %v3840_v0 = vpop.f32.mrf.mxu3 }
 0x498   : > { %v3936_v43 = vadd.f32 %v3840_v0, %v3642_v3  ;;  %4895 = vmatmul.msk.bf16.gmra.mxu2 %vm1242_vm3, %v5007_v40  ;;  %v3297_v46 = vpop.f32.mrf.mxu1 }
 0x499   : > { %v3390_v42 = vadd.f32 %v3297_v46, %v6618_v24  ;;  %v3714_v24 = vpack.c.b16 %v3712_v45, %v3711_v60 }
 0x49a   : > { %v4200_v54 = vadd.f32 %v4104_v16, %v3936_v43 }
 0x49b   : > { %v3549_v23 = vpop.f32.mrf.mxu2 }
 0x49c   : > { %4928 = vmatmul.msk.bf16.gmra.mxu3 %vm1242_vm3, %v3713_v1  ;;  %4296 = vxpose.xlu2.b32.cont [12/16] (narrow) %v4200_v54, 8  ;;  %v3643_v34 = vadd.f32 %v3549_v23, %v3389_v12 }
 0x49d   : > { %v4107_v48 = vpop.f32.mrf.mxu0 }
 0x49f   : > { %v3843_v15 = vpop.f32.mrf.mxu3 }
 0x4a0   : > { %4962 = vmatmul.msk.bf16.gmra.mxu0 %vm1242_vm3, %v3977_v18  ;;  %v3937_v19 = vadd.f32 %v3843_v15, %v3643_v34  ;;  %v3300_v53 = vpop.f32.mrf.mxu1 }
 0x4a1   : > { %v3391_v14 = vadd.f32 %v3300_v53, %v6626_v22 }
 0x4a2   : > { %v4201_v35 = vadd.f32 %v4107_v48, %v3937_v19 }
 0x4a3   : > { %v3551_v57 = vpop.f32.mrf.mxu2  ;;  %4855 = vmatmul.msk.bf16.gmra.mxu1 %vm1242_vm3, %v6988_v36 }
 0x4a4   : > { %4297 = vxpose.xlu2.b32.cont [13/16] (narrow) %v4201_v35, 8  ;;  %v3644_v5 = vadd.f32 %v3551_v57, %v3390_v42 }
 0x4a5   : > { %v4109_v63 = vpop.f32.mrf.mxu0 }
 0x4a7   : > { %v3845_v50 = vpop.f32.mrf.mxu3 }
 0x4a8   : > { %v3938_v49 = vadd.f32 %v3845_v50, %v3644_v5  ;;  %4896 = vmatmul.msk.bf16.gmra.mxu2 %vm1242_vm3, %v5008_v61  ;;  %v3302_v36 = vpop.f32.mrf.mxu1 }
 0x4a9   : > { %v3392_v7 = vadd.f32 %v3302_v36, %v6633_v52 }
 0x4aa   : > { %v4202_v3 = vadd.f32 %v4109_v63, %v3938_v49 }
 0x4ab   : > { %v3554_v40 = vpop.f32.mrf.mxu2 }
 0x4ac   : > { %4929 = vmatmul.msk.bf16.gmra.mxu3 %vm1242_vm3, %v3714_v24  ;;  %4298 = vxpose.xlu2.b32.cont [14/16] (narrow) %v4202_v3, 8  ;;  %v3645_v21 = vadd.f32 %v3554_v40, %v3391_v14  ;;  %v7380_v40 = vld [vmem:[#allocation59_spill] sm:$0xff] }
 0x4ad   : > { %v4112_v37 = vpop.f32.mrf.mxu0 }
 0x4af   : > { %v3848_v41 = vpop.f32.mrf.mxu3 }
 0x4b0   : > { %4963 = vmatmul.msk.bf16.gmra.mxu0 %vm1242_vm3, %v3978_v51  ;;  %v3939_v16 = vadd.f32 %v3848_v41, %v3645_v21  ;;  %v3305_v62 = vpop.f32.mrf.mxu1 }
 0x4b1   : > { %v3393_v6 = vadd.f32 %v3305_v62, %v6640_v33  ;;  %v7377_v33 = vld [vmem:[#allocation2_spill] sm:$0xff] }
 0x4b2   : > { %v4203_v31 = vadd.f32 %v4112_v37, %v3939_v16 }
 0x4b3   : > { %v3556_v32 = vpop.f32.mrf.mxu2 }
 0x4b4   : > { %4299 = vxpose.xlu2.b32.cont [15/16] (narrow) %v4203_v31, 8  ;;  %v3646_v0 = vadd.f32 %v3556_v32, %v3392_v7  ;;  %v7381_v32 = vld [vmem:[#allocation61_spill] sm:$0xff] }
 0x4b5   : > { %v4114_v22 = vpop.f32.mrf.mxu0 }
 0x4b7   : > { %v3850_v47 = vpop.f32.mrf.mxu3 }
 0x4b8   : > { %v3940_v43 = vadd.f32 %v3850_v47, %v3646_v0  ;;  %v3307_v1 = vpop.f32.mrf.mxu1 }
 0x4b9   : > { %v3394_v52 = vadd.f32 %v3307_v1, %v6647_v58  ;;  %v7378_v58 = vld [vmem:[#allocation52_spill] sm:$0xff] }
 0x4ba   : > { %v4204_v46 = vadd.f32 %v4114_v22, %v3940_v43 }
 0x4bb   : > { %v3559_v39 = vpop.f32.mrf.mxu2 }
 0x4bc   : > { %4300 = vxpose.xlu2.b32.end [16/16] (narrow) %v4204_v46, 8  ;;  %v3647_v9 = vadd.f32 %v3559_v39, %v3393_v6 }
 0x4bd   : > { %v4117_v25 = vpop.f32.mrf.mxu0 }
 0x4bf   : > { %v3853_v12 = vpop.f32.mrf.mxu3 }
 0x4c0   : > { %v3941_v54 = vadd.f32 %v3853_v12, %v3647_v9  ;;  %v3310_v23 = vpop.f32.mrf.mxu1  ;;  %v7382_v9 = vld [vmem:[#allocation32_spill] sm:$0xff] }
 0x4c1   : > { %v3395_v19 = vadd.f32 %v3310_v23, %v7377_v33 }
 0x4c2   : > { %v4205_v18 = vadd.f32 %v4117_v25, %v3941_v54 }
 0x4c3   : > { %v3561_v34 = vpop.f32.mrf.mxu2 }
 0x4c4   : > { %4317 = vxpose.xlu0.b32.start [1/16] (narrow) %v4205_v18, 8  ;;  %v3648_v38 = vadd.f32 %v3561_v34, %v3394_v52 }
 0x4c5   : > { %v4119_v48 = vpop.f32.mrf.mxu0 }
 0x4c7   : > { %v3855_v29 = vpop.f32.mrf.mxu3 }
 0x4c8   : > { %v3942_v11 = vadd.f32 %v3855_v29, %v3648_v38  ;;  %v3312_v20 = vpop.f32.mrf.mxu1 }
 0x4c9   : > { %v3396_v35 = vadd.f32 %v3312_v20, %v7378_v58 }
 0x4ca   : > { %v4206_v15 = vadd.f32 %v4119_v48, %v3942_v11 }
 0x4cb   : > { %v3564_v53 = vpop.f32.mrf.mxu2 }
 0x4cc   : > { %4318 = vxpose.xlu0.b32.cont [2/16] (narrow) %v4206_v15, 8  ;;  %v3649_v28 = vadd.f32 %v3564_v53, %v3395_v19 }
 0x4cd   : > { %v4122_v59 = vpop.f32.mrf.mxu0 }
 0x4cf   : > { %v3858_v44 = vpop.f32.mrf.mxu3 }
 0x4d0   : > { %v3943_v10 = vadd.f32 %v3858_v44, %v3649_v28  ;;  %v3315_v17 = vpop.f32.mrf.mxu1  ;;  %v7383_v28 = vld [vmem:[#allocation23_spill] sm:$0xff] }
 0x4d1   : > { %v3397_v50 = vadd.f32 %v3315_v17, %v7379_v13 }
 0x4d2   : > { %v4207_v42 = vadd.f32 %v4122_v59, %v3943_v10  ;;  %v5202_v10 = vmov 0  }
 0x4d3   : > { %v3566_v57 = vpop.f32.mrf.mxu2  ;;  %5058 = vset.pattern.permute.xlu1 %v5202_v10 }
 0x4d4   : > { %4319 = vxpose.xlu0.b32.cont [3/16] (narrow) %v4207_v42, 8  ;;  %v3650_v5 = vadd.f32 %v3566_v57, %v3396_v35 }
 0x4d5   : > { %v4124_v61 = vpop.f32.mrf.mxu0 }
 0x4d7   : > { %v3860_v60 = vpop.f32.mrf.mxu3 }
 0x4d8   : > { %v3944_v45 = vadd.f32 %v3860_v60, %v3650_v5  ;;  %v3317_v63 = vpop.f32.mrf.mxu1 }
 0x4d9   : > { %v3398_v51 = vadd.f32 %v3317_v63, %v7380_v40 }
 0x4da   : > { %v4208_v27 = vadd.f32 %v4124_v61, %v3944_v45 }
 0x4db   : > { %v3569_v49 = vpop.f32.mrf.mxu2 }
 0x4dc   : > { %4320 = vxpose.xlu0.b32.cont [4/16] (narrow) %v4208_v27, 8  ;;  %v3651_v24 = vadd.f32 %v3569_v49, %v3397_v50 }
 0x4dd   : > { %v4127_v30 = vpop.f32.mrf.mxu0 }
 0x4df   : > { %v3863_v55 = vpop.f32.mrf.mxu3 }
 0x4e0   : > { %v3945_v36 = vadd.f32 %v3863_v55, %v3651_v24  ;;  %v3320_v14 = vpop.f32.mrf.mxu1  ;;  %v7384_v24 = vld [vmem:[#allocation12_spill] sm:$0xff] }
 0x4e1   : > { %v3399_v0 = vadd.f32 %v3320_v14, %v7381_v32  ;;  %v7385_v32 = vld [vmem:[#allocation41_spill] sm:$0xff] }
 0x4e2   : > { %v4209_v3 = vadd.f32 %v4127_v30, %v3945_v36 }
 0x4e3   : > { %v3571_v21 = vpop.f32.mrf.mxu2 }
 0x4e4   : > { %4321 = vxpose.xlu0.b32.cont [5/16] (narrow) %v4209_v3, 8  ;;  %v3652_v37 = vadd.f32 %v3571_v21, %v3398_v51 }
 0x4e5   : > { %v4129_v41 = vpop.f32.mrf.mxu0 }
 0x4e7   : > { %v3865_v16 = vpop.f32.mrf.mxu3 }
 0x4e8   : > { %v3946_v62 = vadd.f32 %v3865_v16, %v3652_v37  ;;  %v3322_v7 = vpop.f32.mrf.mxu1 }
 0x4e9   : > { %v3400_v25 = vadd.f32 %v3322_v7, %v7382_v9 }
 0x4ea   : > { %v4210_v31 = vadd.f32 %v4129_v41, %v3946_v62 }
 0x4eb   : > { %v3574_v22 = vpop.f32.mrf.mxu2 }
 0x4ec   : > { %4322 = vxpose.xlu0.b32.cont [6/16] (narrow) %v4210_v31, 8  ;;  %v3653_v47 = vadd.f32 %v3574_v22, %v3399_v0  ;;  %v4359_v22 = vld [vmem:[%s7085_s4] sm:$0xff] }
 0x4ed   : > { %v4132_v43 = vpop.f32.mrf.mxu0 }
 0x4ef   : > { %v3868_v1 = vpop.f32.mrf.mxu3 }
 0x4f0   : > { %v3947_v6 = vadd.f32 %v3868_v1, %v3653_v47  ;;  %v3325_v46 = vpop.f32.mrf.mxu1 }
 0x4f1   : > { %v3401_v48 = vadd.f32 %v3325_v46, %v6696_v26  ;;  %v4349_v26 = vld [vmem:[%s7084_s3] sm:$0xff] }
 0x4f2   : > { %v4211_v39 = vadd.f32 %v4132_v43, %v3947_v6  ;;  %4352 = vperm.xlu1 %5058, %v4349_v26  }
 0x4f3   : > { %v3576_v12 = vpop.f32.mrf.mxu2 }
 0x4f4   : > { %4323 = vxpose.xlu0.b32.cont [7/16] (narrow) %v4211_v39, 8  ;;  %v3654_v54 = vadd.f32 %v3576_v12, %v3400_v25 }
 0x4f5   : > { %v4134_v23 = vpop.f32.mrf.mxu0 }
 0x4f7   : > { %v3870_v52 = vpop.f32.mrf.mxu3 }
 0x4f8   : > { %v3948_v18 = vadd.f32 %v3870_v52, %v3654_v54  ;;  %v3327_v34 = vpop.f32.mrf.mxu1 }
 0x4f9   : > { %v3402_v59 = vadd.f32 %v3327_v34, %v7383_v28 }
 0x4fa   : > { %v4212_v38 = vadd.f32 %v4134_v23, %v3948_v18 }
 0x4fb   : > { %v3579_v29 = vpop.f32.mrf.mxu2 }
 0x4fc   : > { %4324 = vxpose.xlu0.b32.cont [8/16] (narrow) %v4212_v38, 8  ;;  %v3655_v11 = vadd.f32 %v3579_v29, %v3401_v48 }
 0x4fd   : > { %v4137_v20 = vpop.f32.mrf.mxu0 }
 0x4ff   : > { %v3873_v15 = vpop.f32.mrf.mxu3 }
 0x500   : > { %v3949_v33 = vadd.f32 %v3873_v15, %v3655_v11  ;;  %v3330_v19 = vpop.f32.mrf.mxu1 }
 0x501   : > { %v3403_v61 = vadd.f32 %v3330_v19, %v6710_v8  ;;  %v4237_v19 = vpop.trf.xlu0 }
 0x502   : > { %v4213_v53 = vadd.f32 %v4137_v20, %v3949_v33 }
 0x503   : > { %v3581_v44 = vpop.f32.mrf.mxu2 }
 0x504   : > { %4325 = vxpose.xlu0.b32.cont [9/16] (narrow) %v4213_v53, 8  ;;  %v3656_v17 = vadd.f32 %v3581_v44, %v3402_v59  ;;  %v4301_v53 = vpop.trf.xlu2 }
 0x505   : > { %v4139_v42 = vpop.f32.mrf.mxu0 }
 0x507   : > { %v3875_v58 = vpop.f32.mrf.mxu3 }
 0x508   : > { %v3950_v35 = vadd.f32 %v3875_v58, %v3656_v17  ;;  %v3332_v57 = vpop.f32.mrf.mxu1 }
 0x509   : > { %v3404_v30 = vadd.f32 %v3332_v57, %v7384_v24 }
 0x50a   : > { %v4214_v5 = vadd.f32 %v4139_v42, %v3950_v35 }
 0x50b   : > { %v3584_v60 = vpop.f32.mrf.mxu2 }
 0x50c   : > { %4326 = vxpose.xlu0.b32.cont [10/16] (narrow) %v4214_v5, 8  ;;  %v3657_v45 = vadd.f32 %v3584_v60, %v3403_v61 }
 0x50d   : > { %v4142_v63 = vpop.f32.mrf.mxu0 }
 0x50f   : > { %v3878_v27 = vpop.f32.mrf.mxu3 }
 0x510   : > { %v3951_v13 = vadd.f32 %v3878_v27, %v3657_v45  ;;  %v3335_v50 = vpop.f32.mrf.mxu1 }
 0x511   : > { %v3405_v21 = vadd.f32 %v3335_v50, %v6724_v4 }
 0x512   : > { %v4215_v49 = vadd.f32 %v4142_v63, %v3951_v13 }
 0x513   : > { %v3586_v55 = vpop.f32.mrf.mxu2 }
 0x514   : > { %4327 = vxpose.xlu0.b32.cont [11/16] (narrow) %v4215_v49, 8  ;;  %v3658_v36 = vadd.f32 %v3586_v55, %v3404_v30 }
 0x515   : > { %v4144_v14 = vpop.f32.mrf.mxu0 }
 0x517   : > { %v3880_v3 = vpop.f32.mrf.mxu3 }
 0x518   : > { %v3952_v40 = vadd.f32 %v3880_v3, %v3658_v36  ;;  %v3337_v8 = vpop.f32.mrf.mxu1 }
 0x519   : > { %v3406_v0 = vadd.f32 %v3337_v8, %v7385_v32 }
 0x51a   : > { %v4216_v51 = vadd.f32 %v4144_v14, %v3952_v40 }
 0x51b   : > { %v3589_v37 = vpop.f32.mrf.mxu2 }
 0x51c   : > { %4328 = vxpose.xlu0.b32.cont [12/16] (narrow) %v4216_v51, 8  ;;  %v3659_v41 = vadd.f32 %v3589_v37, %v3405_v21 }
 0x51d   : > { %v4147_v16 = vpop.f32.mrf.mxu0 }
 0x51e   : > { %5059 = vset.pattern.permute.xlu2 %v5202_v10 }
 0x51f   : > { %v3883_v62 = vpop.f32.mrf.mxu3 }
 0x520   : > { %v3953_v7 = vadd.f32 %v3883_v62, %v3659_v41  ;;  %v3340_v4 = vpop.f32.mrf.mxu1 }
 0x521   : > { %v3407_v9 = vadd.f32 %v3340_v4, %v6738_v2  ;;  %v4269_v2 = vpop.trf.xlu1 }
 0x522   : > { %v4217_v31 = vadd.f32 %v4147_v16, %v3953_v7 }
 0x523   : > { %v3591_v47 = vpop.f32.mrf.mxu2 }
 0x524   : > { %4329 = vxpose.xlu0.b32.cont [13/16] (narrow) %v4217_v31, 8  ;;  %v3660_v43 = vadd.f32 %v3591_v47, %v3406_v0 }
 0x525   : > { %v4149_v1 = vpop.f32.mrf.mxu0  ;;  %4362 = vperm.xlu2 %5059, %v4359_v22  }
 0x527   : > { %v3885_v6 = vpop.f32.mrf.mxu3 }
 0x528   : > { %v3954_v46 = vadd.f32 %v3885_v6, %v3660_v43  ;;  %v3342_v54 = vpop.f32.mrf.mxu1 }
 0x529   : > { %v3408_v38 = vadd.f32 %v3342_v54, %v6745_v56 }
 0x52a   : > { %v4218_v39 = vadd.f32 %v4149_v1, %v3954_v46 }
 0x52b   : > { %v3594_v25 = vpop.f32.mrf.mxu2 }
 0x52c   : > { %4330 = vxpose.xlu0.b32.cont [14/16] (narrow) %v4218_v39, 8  ;;  %v3661_v12 = vadd.f32 %v3594_v25, %v3407_v9 }
 0x52d   : > { %v4152_v23 = vpop.f32.mrf.mxu0 }
 0x52f   : > { %v3888_v52 = vpop.f32.mrf.mxu3 }
 0x530   : > { %v3955_v18 = vadd.f32 %v3888_v52, %v3661_v12 }
 0x532   : > { %v4219_v34 = vadd.f32 %v4152_v23, %v3955_v18 }
 0x533   : > { %v3596_v48 = vpop.f32.mrf.mxu2 }
 0x534   : > { %4331 = vxpose.xlu0.b32.cont [15/16] (narrow) %v4219_v34, 8  ;;  %v3662_v29 = vadd.f32 %v3596_v48, %v3408_v38 }
 0x535   : > { %v4154_v15 = vpop.f32.mrf.mxu0 }
 0x537   : > { %v3890_v11 = vpop.f32.mrf.mxu3 }
 0x538   : > { %v3956_v20 = vadd.f32 %v3890_v11, %v3662_v29 }
 0x53a   : > { %v4220_v33 = vadd.f32 %v4154_v15, %v3956_v20 }
 0x53c   : > { %4332 = vxpose.xlu0.b32.end [16/16] (narrow) %v4220_v33, 8 }
 0x564   : > { %v4353_v28 = vpop.permute.xlu1 %4352 }
 0x565   : > { %v4356_v44 = vmul.f32 %v4353_v28, %v4269_v2  ;;  %v4357_v56 = vmul.f32 %v4353_v28, %v4301_v53  ;;  %v4355_v17 = vmul.f32 %v4353_v28, %v4237_v19 }
 0x568   : > { %v4333_v59 = vpop.trf.xlu0 }
 0x569   : > { %v4358_v42 = vmul.f32 %v4353_v28, %v4333_v59 }
 0x57f   : > { %v4363_v26 = vpop.permute.xlu2 %4362 }
 0x580   : > { %v4365_v58 = vadd.f32 %v4363_v26, %v4355_v17  ;;  %v4366_v35 = vadd.f32 %v4363_v26, %v4356_v44  ;;  %v4367_v57 = vadd.f32 %v4363_v26, %v4357_v56  ;;  %v4368_v5 = vadd.f32 %v4363_v26, %v4358_v42 }
 0x582   : > { %v4369_v61 = vmax.f32 %v4365_v58, 0.0  ;;  %v4370_v60 = vmax.f32 %v4366_v35, 0.0  ;;  %v4371_v45 = vmax.f32 %v4367_v57, 0.0  ;;  %v4372_v63 = vmax.f32 %v4368_v5, 0.0 }
 0x584   : > { %4373 = vst [vmem:[%s343_s18] sm:$0xff] %v4369_v61 }
 0x585   : > { %4374 = vst [vmem:[%s343_s18 + $0x8] sm:$0xff] %v4370_v60 }
 0x586   : > { %4375 = vst [vmem:[%s343_s18 + $0x10] sm:$0xff] %v4371_v45 }
 0x587   : > { %4376 = vst [vmem:[%s343_s18 + $0x18] sm:$0xff] %v4372_v63 }
 0x5a3   : > { %5060 = vset.pattern.permute.xlu0 %v5202_v10 }
 0x5a4 PF: > { %s15_s22 = sadd.s32 1, %s5200_s22   ;;  %s7386_s18 = smov %s5192_s20 }
 0x5a5   : > { %p12_p9 = scmp.ge.s32.totalorder %s15_s22, 6   ;;  %s7387_s19 = smov %s5196_s21 }
 0x5a6   : > { %s7388_s20 = smov %s7391_s23  ;;  %s7389_s21 = smov %s7395_s24 }
 0x5a7   :  { %14 = sbr.rel (!%p12_p9) target bundleno = 3 (0x3), region = 81 }

</bundles_post_ra>
